<compile_context>
chip_gen: v6e
topology: v6e:2x2x1
jax: 0.10.0
libtpu: 0.0.40
codegen_flags: <defaults>
</compile_context>

<pallas_src>
import numpy as np
import jax
import jax.numpy as jnp
from jax.experimental import pallas as pl
from jax.experimental.pallas import tpu as pltpu

N_SIZE = 120            # neuron_size (120 x 120 diffractive grid)
N_PAD = 128             # lane-aligned padded grid
PIXEL = 8e-7            # pixel_length used by create_square_grid_pattern
WAVELENGTH = 1.55e-6
Z_STEP = 1e-5           # distance between consecutive planes (10 um)
POOL = 3                # MaxPool2d(kernel_size=3) -> stride 3, no padding
POOLED = N_SIZE // POOL            # 40
FLAT = POOLED * POOLED             # 1600 == linear_0.in_features
HID = 256
N_CLASSES = 10


# ----------------------------------------------------------------------------
# host-side (glue) setup of the optical operators and parameters
# ----------------------------------------------------------------------------
def build_optics_consts():
    """Builds the constant planes used by the optical kernel.

    Returns:
      c_planes: (6, 128, 128) f32  [cos_in, sin_in, cos_d, sin_d, Hr, Hi]
      m_blocks: (4, 256, 256) f32  real block matrices [[Br,Bi],[-Bi,Br]] for
                D, E, (QE)^T, EP  (zero-padded 120 -> 128 before blocking).
    """
    # TODO(synk): pyonn's exact InputDiffractiveLayer encoding / propagator
    # internals are not available here; a standard angular-spectrum propagator
    # with the module's geometry is used instead.
    n = N_SIZE
    idx = np.arange(n)
    dft = np.exp(-2j * np.pi * np.outer(idx, idx) / n)      # D (symmetric)
    idft = np.conj(dft) / n                                  # E = conj(D)/N

    # angular-spectrum transfer function for dz = 10 um (symmetric in fx<->fy)
    f = np.fft.fftfreq(n, d=PIXEL)                           # cycles / m
    fx, fy = np.meshgrid(f, f, indexing="ij")
    kz_sq = (1.0 / WAVELENGTH) ** 2 - fx ** 2 - fy ** 2
    propagating = kz_sq > 0.0
    kz = 2.0 * np.pi * np.sqrt(np.where(propagating, kz_sq, 0.0))
    h = np.where(propagating, np.exp(1j * kz * Z_STEP), 0.0)

    # permutations that group rows / cols by (index mod 3) so that the 3x3
    # max-pool becomes a max over contiguous 40x40 blocks.
    p = np.zeros((n, n), dtype=np.complex128)
    q = np.zeros((n, n), dtype=np.complex128)
    for c in range(n):
        p[c, (c % POOL) * POOLED + c // POOL] = 1.0          # column permutation
        q[(c % POOL) * POOLED + c // POOL, c] = 1.0          # row permutation
    qe = q @ idft                                            # left matrix of last prop
    ep = idft @ p                                            # right matrix of last prop

    # deterministic phase masks for the two diffractive planes
    key = jax.random.PRNGKey(0)
    k_in, k_d = jax.random.split(key)
    phase_in = np.asarray(jax.random.uniform(k_in, (n, n), jnp.float32,
                                             0.0, 2.0 * np.pi))
    phase_d = np.asarray(jax.random.uniform(k_d, (n, n), jnp.float32,
                                            0.0, 2.0 * np.pi))

    def pad2(a):
        out = np.zeros((N_PAD, N_PAD), dtype=np.float64)
        out[:n, :n] = a
        return out

    def cblock(m):
        """Complex (120,120) -> padded (256,256) real block matrix so that
        [Ur | Ui] @ block == [Re(U@M) | Im(U@M)]."""
        mp = np.zeros((N_PAD, N_PAD), dtype=np.complex128)
        mp[:n, :n] = m
        br, bi = mp.real, mp.imag
        top = np.concatenate([br, bi], axis=1)
        bot = np.concatenate([-bi, br], axis=1)
        return np.concatenate([top, bot], axis=0)

    c_planes = np.stack([
        pad2(np.cos(phase_in)), pad2(np.sin(phase_in)),
        pad2(np.cos(phase_d)), pad2(np.sin(phase_d)),
        pad2(h.real), pad2(h.imag),
    ]).astype(np.float32)

    m_blocks = np.stack([
        cblock(dft),        # D
        cblock(idft),       # E (symmetric: used as L^T and as R of prop 1)
        cblock(qe.T),       # (Q @ E)^T  (left operator of prop 2, transposed)
        cblock(ep),         # E @ P      (right operator of prop 2)
    ]).astype(np.float32)

    return jnp.asarray(c_planes), jnp.asarray(m_blocks)


def init_linear(key, fan_in, fan_out):
    """torch.nn.Linear default init (uniform +/- 1/sqrt(fan_in)), weight stored (in, out)."""
    kw, kb = jax.random.split(key)
    bound = 1.0 / np.sqrt(fan_in)
    w = jax.random.uniform(kw, (fan_in, fan_out), jnp.float32, -bound, bound)
    b = jax.random.uniform(kb, (1, fan_out), jnp.float32, -bound, bound)
    return w, b


# ----------------------------------------------------------------------------
# Pallas kernels
# ----------------------------------------------------------------------------
def optical_kernel(x_ref, c_ref, m_ref, out_ref):
    """A block of batch images: optics (Input -> Diffractive -> Detector) + 3x3 max-pool.

    All complex matmuls are right-multiplies by 256x256 real block matrices on
    a batch-stacked (bblk*128, 256) operand; left multiplies use the symmetry
    of D/E/H and a per-image transpose (XLU) instead.
    """
    bblk = x_ref.shape[0]
    n = N_PAD

    def rmul(ur, ui, blk):
        # (ur + i*ui) @ (Br + i*Bi) as one real matmul with the block matrix.
        lhs = jnp.concatenate(
            [ur.reshape(bblk * n, n), ui.reshape(bblk * n, n)], axis=-1)
        res = jnp.dot(lhs, blk, preferred_element_type=jnp.float32)
        return (res[:, :n].reshape(bblk, n, n),
                res[:, n:].reshape(bblk, n, n))

    def tr(ar, ai):
        return jnp.swapaxes(ar, -1, -2), jnp.swapaxes(ai, -1, -2)

    def propagate(ur, ui, lt_blk, r_blk):
        # L @ (H * (D @ U @ D)) @ R ; D/E/H symmetric, lt_blk holds L^T.
        d_blk = m_ref[0]
        ar, ai = rmul(ur, ui, d_blk)          # A  = U @ D
        atr, ati = tr(ar, ai)                 # A^T
        btr, bti = rmul(atr, ati, d_blk)      # B^T = (D @ U @ D)^T
        hr, hi = c_ref[4], c_ref[5]
        gtr = hr * btr - hi * bti             # G^T = H * B^T  (H symmetric)
        gti = hr * bti + hi * btr
        ctr, cti = rmul(gtr, gti, lt_blk)     # C^T = (L @ G)^T = G^T @ L^T
        cr, ci = tr(ctr, cti)                 # C  = L @ G
        return rmul(cr, ci, r_blk)            # L @ G @ R

    x = x_ref[...]                            # (bblk, 128, 128) real amplitude
    # InputDiffractiveLayer: amplitude encoding + input phase mask, prop 0 -> 10um
    ur = x * c_ref[0]
    ui = x * c_ref[1]
    ur, ui = propagate(ur, ui, m_ref[1], m_ref[1])        # L = R = E
    # DiffractiveLayer: phase modulation, propagate 10um -> 20um.  The last
    # propagation uses (Q @ E) and (E @ P) so its output is row/col permuted
    # into pool-residue blocks.
    cos_d, sin_d = c_ref[2], c_ref[3]
    ur, ui = ur * cos_d - ui * sin_d, ur * sin_d + ui * cos_d
    ur, ui = propagate(ur, ui, m_ref[2], m_ref[3])        # L = QE, R = EP
    # DetectorLayer: intensity |U|^2 (permuted layout, zero outside 120x120)
    intens = ur * ur + ui * ui                            # (bblk, 128, 128)

    # MaxPool2d(kernel_size=3): max over the nine contiguous 40x40 residue blocks
    pooled = intens[:, 0:POOLED, 0:POOLED]
    for di in range(POOL):
        for dj in range(POOL):
            if di == 0 and dj == 0:
                continue
            blk = intens[:, di * POOLED:(di + 1) * POOLED,
                         dj * POOLED:(dj + 1) * POOLED]
            pooled = jnp.maximum(pooled, blk)
    out_ref[...] = pooled


def optical_frontend(x, c_planes, m_blocks, batch_block=8):
    b = x.shape[0]
    bblk = min(batch_block, b)
    b_pad = ((b + bblk - 1) // bblk) * bblk
    # pad batch to a multiple of the batch block and the grid from 120 -> 128
    xp = jnp.pad(x, ((0, b_pad - b), (0, N_PAD - N_SIZE), (0, N_PAD - N_SIZE)))

    pooled = pl.pallas_call(
        optical_kernel,
        out_shape=jax.ShapeDtypeStruct((b_pad, POOLED, POOLED), jnp.float32),
        grid=(b_pad // bblk,),
        in_specs=[
            pl.BlockSpec((bblk, N_PAD, N_PAD), lambda i: (i, 0, 0)),
            pl.BlockSpec((6, N_PAD, N_PAD), lambda i: (0, 0, 0)),
            pl.BlockSpec((4, 2 * N_PAD, 2 * N_PAD), lambda i: (0, 0, 0)),
        ],
        out_specs=pl.BlockSpec((bblk, POOLED, POOLED), lambda i: (i, 0, 0)),
        compiler_params=pltpu.CompilerParams(
            dimension_semantics=("parallel",)),
    )(xp, c_planes, m_blocks)
    return pooled[:b]


def mlp_kernel(x_ref, w0_ref, b0_ref, w1_ref, b1_ref, w2_ref, b2_ref, out_ref):
    h = jnp.dot(x_ref[...], w0_ref[...], preferred_element_type=jnp.float32) + b0_ref[...]
    h = jnp.maximum(h, 0.0)                                            # ReLU
    h = jnp.dot(h, w1_ref[...], preferred_element_type=jnp.float32) + b1_ref[...]
    h = jnp.maximum(h, 0.0)                                            # ReLU
    out_ref[...] = jnp.dot(h, w2_ref[...], preferred_element_type=jnp.float32) + b2_ref[...]


def mlp_head(xflat, params):
    b = xflat.shape[0]
    # small shapes: whole arrays fit in VMEM -> no grid / default full BlockSpecs
    return pl.pallas_call(
        mlp_kernel,
        out_shape=jax.ShapeDtypeStruct((b, N_CLASSES), jnp.float32),
    )(xflat, *params)


def optical_encoder(x, c_planes, m_blocks, params, batch_block=8):
    pooled = optical_frontend(x, c_planes, m_blocks, batch_block)   # (B, 40, 40)
    flat = pooled.reshape(x.shape[0], FLAT)       # torch.flatten(start_dim=1)
    return mlp_head(flat, params)                 # (B, 10) logits (no softmax)


# ----------------------------------------------------------------------------
if __name__ == "__main__":
    key = jax.random.PRNGKey(0)
    kx, k0, k1, k2 = jax.random.split(key, 4)

    # input: batch of 120x120 intensity/amplitude images (geometry forced by
    # linear_0.in_features == 40*40 after MaxPool2d(3) of a 120x120 detector)
    batch = 4
    x = jax.random.uniform(kx, (batch, N_SIZE, N_SIZE), jnp.float32)

    c_planes, m_blocks = build_optics_consts()
    w0, b0 = init_linear(k0, FLAT, HID)
    w1, b1 = init_linear(k1, HID, HID)
    w2, b2 = init_linear(k2, HID, N_CLASSES)

    out = optical_encoder(x, c_planes, m_blocks, (w0, b0, w1, b1, w2, b2))
    out = jax.block_until_ready(out)
    assert out.shape == (batch, N_CLASSES) and out.dtype == jnp.float32
    print("KERNEL_OK")
</pallas_src>

<mosaic_0001>
module attributes {stable_mosaic.version = 11 : i64} {
  func.func @optical_kernel(%arg0: i32, %arg1: memref<4x128x128xf32, #tpu.memory_space<vmem>>, %arg2: memref<6x128x128xf32, #tpu.memory_space<vmem>>, %arg3: memref<4x256x256xf32, #tpu.memory_space<vmem>>, %arg4: memref<4x40x40xf32, #tpu.memory_space<vmem>>) attributes {dimension_semantics = [#tpu.dimension_semantics<parallel>], iteration_bounds = array<i64: 1>, scalar_prefetch = 0 : i64, scratch_operands = 0 : i64, tpu.core_type = #tpu.core_type<tc>, window_params = [{transform_indices = @transform_0, window_bounds = array<i64: 4, 128, 128>}, {pipeline_mode = #tpu.pipeline_mode<synchronous>, transform_indices = @transform_1, window_bounds = array<i64: 6, 128, 128>}, {pipeline_mode = #tpu.pipeline_mode<synchronous>, transform_indices = @transform_2, window_bounds = array<i64: 4, 256, 256>}, {transform_indices = @transform_3, window_bounds = array<i64: 4, 40, 40>}]} {
    %c0 = arith.constant 0 : index
    %c0_0 = arith.constant 0 : index
    %c0_1 = arith.constant 0 : index
    %0 = vector.load %arg1[%c0, %c0_0, %c0_1] : memref<4x128x128xf32, #tpu.memory_space<vmem>>, vector<4x128x128xf32>
    %c0_2 = arith.constant 0 : index
    %c0_3 = arith.constant 0 : index
    %c0_4 = arith.constant 0 : index
    %1 = vector.load %arg2[%c0_2, %c0_3, %c0_4] : memref<6x128x128xf32, #tpu.memory_space<vmem>>, vector<1x128x128xf32>
    %2 = vector.shape_cast %1 : vector<1x128x128xf32> to vector<128x128xf32>
    %3 = vector.shape_cast %2 : vector<128x128xf32> to vector<1x128x128xf32>
    %4 = vector.broadcast %3 : vector<1x128x128xf32> to vector<4x128x128xf32>
    %5 = arith.mulf %0, %4 : vector<4x128x128xf32>
    %c1 = arith.constant 1 : index
    %c0_5 = arith.constant 0 : index
    %c0_6 = arith.constant 0 : index
    %6 = vector.load %arg2[%c1, %c0_5, %c0_6] : memref<6x128x128xf32, #tpu.memory_space<vmem>>, vector<1x128x128xf32>
    %7 = vector.shape_cast %6 : vector<1x128x128xf32> to vector<128x128xf32>
    %8 = vector.shape_cast %7 : vector<128x128xf32> to vector<1x128x128xf32>
    %9 = vector.broadcast %8 : vector<1x128x128xf32> to vector<4x128x128xf32>
    %10 = arith.mulf %0, %9 : vector<4x128x128xf32>
    %c1_7 = arith.constant 1 : index
    %c0_8 = arith.constant 0 : index
    %c0_9 = arith.constant 0 : index
    %11 = vector.load %arg3[%c1_7, %c0_8, %c0_9] : memref<4x256x256xf32, #tpu.memory_space<vmem>>, vector<1x256x256xf32>
    %12 = vector.shape_cast %11 : vector<1x256x256xf32> to vector<256x256xf32>
    %c1_10 = arith.constant 1 : index
    %c0_11 = arith.constant 0 : index
    %c0_12 = arith.constant 0 : index
    %13 = vector.load %arg3[%c1_10, %c0_11, %c0_12] : memref<4x256x256xf32, #tpu.memory_space<vmem>>, vector<1x256x256xf32>
    %14 = vector.shape_cast %13 : vector<1x256x256xf32> to vector<256x256xf32>
    %c0_13 = arith.constant 0 : index
    %c0_14 = arith.constant 0 : index
    %c0_15 = arith.constant 0 : index
    %15 = vector.load %arg3[%c0_13, %c0_14, %c0_15] : memref<4x256x256xf32, #tpu.memory_space<vmem>>, vector<1x256x256xf32>
    %16 = vector.shape_cast %15 : vector<1x256x256xf32> to vector<256x256xf32>
    %17 = vector.shape_cast %5 : vector<4x128x128xf32> to vector<512x128xf32>
    %18 = vector.shape_cast %10 : vector<4x128x128xf32> to vector<512x128xf32>
    %19 = tpu.concatenate %17, %18 in 1 : vector<512x128xf32>, vector<512x128xf32> -> vector<512x256xf32>
    %cst = arith.constant dense<0.000000e+00> : vector<512x256xf32>
    %20 = tpu.matmul %19, %16, %cst {dimension_numbers = #tpu.dot_dimension_numbers<[1], [0], [0], [1], [0, 0, 1, 1], [], []>} : vector<512x256xf32>, vector<256x256xf32>, vector<512x256xf32> -> vector<512x256xf32>
    %21 = vector.extract_strided_slice %20 {offsets = [0, 0], sizes = [512, 128], strides = [1, 1]} : vector<512x256xf32> to vector<512x128xf32>
    %22 = vector.shape_cast %21 : vector<512x128xf32> to vector<4x128x128xf32>
    %23 = vector.extract_strided_slice %20 {offsets = [0, 128], sizes = [512, 128], strides = [1, 1]} : vector<512x256xf32> to vector<512x128xf32>
    %24 = vector.shape_cast %23 : vector<512x128xf32> to vector<4x128x128xf32>
    %25 = tpu.transpose %22, [0, 2, 1] : vector<4x128x128xf32> -> vector<4x128x128xf32>
    %26 = tpu.transpose %24, [0, 2, 1] : vector<4x128x128xf32> -> vector<4x128x128xf32>
    %27 = vector.shape_cast %25 : vector<4x128x128xf32> to vector<512x128xf32>
    %28 = vector.shape_cast %26 : vector<4x128x128xf32> to vector<512x128xf32>
    %29 = tpu.concatenate %27, %28 in 1 : vector<512x128xf32>, vector<512x128xf32> -> vector<512x256xf32>
    %cst_16 = arith.constant dense<0.000000e+00> : vector<512x256xf32>
    %30 = tpu.matmul %29, %16, %cst_16 {dimension_numbers = #tpu.dot_dimension_numbers<[1], [0], [0], [1], [0, 0, 1, 1], [], []>} : vector<512x256xf32>, vector<256x256xf32>, vector<512x256xf32> -> vector<512x256xf32>
    %31 = vector.extract_strided_slice %30 {offsets = [0, 0], sizes = [512, 128], strides = [1, 1]} : vector<512x256xf32> to vector<512x128xf32>
    %32 = vector.shape_cast %31 : vector<512x128xf32> to vector<4x128x128xf32>
    %33 = vector.extract_strided_slice %30 {offsets = [0, 128], sizes = [512, 128], strides = [1, 1]} : vector<512x256xf32> to vector<512x128xf32>
    %34 = vector.shape_cast %33 : vector<512x128xf32> to vector<4x128x128xf32>
    %c4 = arith.constant 4 : index
    %c0_17 = arith.constant 0 : index
    %c0_18 = arith.constant 0 : index
    %35 = vector.load %arg2[%c4, %c0_17, %c0_18] : memref<6x128x128xf32, #tpu.memory_space<vmem>>, vector<1x128x128xf32>
    %36 = vector.shape_cast %35 : vector<1x128x128xf32> to vector<128x128xf32>
    %c5 = arith.constant 5 : index
    %c0_19 = arith.constant 0 : index
    %c0_20 = arith.constant 0 : index
    %37 = vector.load %arg2[%c5, %c0_19, %c0_20] : memref<6x128x128xf32, #tpu.memory_space<vmem>>, vector<1x128x128xf32>
    %38 = vector.shape_cast %37 : vector<1x128x128xf32> to vector<128x128xf32>
    %39 = vector.shape_cast %36 : vector<128x128xf32> to vector<1x128x128xf32>
    %40 = vector.broadcast %39 : vector<1x128x128xf32> to vector<4x128x128xf32>
    %41 = arith.mulf %40, %32 : vector<4x128x128xf32>
    %42 = vector.shape_cast %38 : vector<128x128xf32> to vector<1x128x128xf32>
    %43 = vector.broadcast %42 : vector<1x128x128xf32> to vector<4x128x128xf32>
    %44 = arith.mulf %43, %34 : vector<4x128x128xf32>
    %45 = arith.subf %41, %44 : vector<4x128x128xf32>
    %46 = vector.shape_cast %36 : vector<128x128xf32> to vector<1x128x128xf32>
    %47 = vector.broadcast %46 : vector<1x128x128xf32> to vector<4x128x128xf32>
    %48 = arith.mulf %47, %34 : vector<4x128x128xf32>
    %49 = vector.shape_cast %38 : vector<128x128xf32> to vector<1x128x128xf32>
    %50 = vector.broadcast %49 : vector<1x128x128xf32> to vector<4x128x128xf32>
    %51 = arith.mulf %50, %32 : vector<4x128x128xf32>
    %52 = arith.addf %48, %51 : vector<4x128x128xf32>
    %53 = vector.shape_cast %45 : vector<4x128x128xf32> to vector<512x128xf32>
    %54 = vector.shape_cast %52 : vector<4x128x128xf32> to vector<512x128xf32>
    %55 = tpu.concatenate %53, %54 in 1 : vector<512x128xf32>, vector<512x128xf32> -> vector<512x256xf32>
    %cst_21 = arith.constant dense<0.000000e+00> : vector<512x256xf32>
    %56 = tpu.matmul %55, %12, %cst_21 {dimension_numbers = #tpu.dot_dimension_numbers<[1], [0], [0], [1], [0, 0, 1, 1], [], []>} : vector<512x256xf32>, vector<256x256xf32>, vector<512x256xf32> -> vector<512x256xf32>
    %57 = vector.extract_strided_slice %56 {offsets = [0, 0], sizes = [512, 128], strides = [1, 1]} : vector<512x256xf32> to vector<512x128xf32>
    %58 = vector.shape_cast %57 : vector<512x128xf32> to vector<4x128x128xf32>
    %59 = vector.extract_strided_slice %56 {offsets = [0, 128], sizes = [512, 128], strides = [1, 1]} : vector<512x256xf32> to vector<512x128xf32>
    %60 = vector.shape_cast %59 : vector<512x128xf32> to vector<4x128x128xf32>
    %61 = tpu.transpose %58, [0, 2, 1] : vector<4x128x128xf32> -> vector<4x128x128xf32>
    %62 = tpu.transpose %60, [0, 2, 1] : vector<4x128x128xf32> -> vector<4x128x128xf32>
    %63 = vector.shape_cast %61 : vector<4x128x128xf32> to vector<512x128xf32>
    %64 = vector.shape_cast %62 : vector<4x128x128xf32> to vector<512x128xf32>
    %65 = tpu.concatenate %63, %64 in 1 : vector<512x128xf32>, vector<512x128xf32> -> vector<512x256xf32>
    %cst_22 = arith.constant dense<0.000000e+00> : vector<512x256xf32>
    %66 = tpu.matmul %65, %14, %cst_22 {dimension_numbers = #tpu.dot_dimension_numbers<[1], [0], [0], [1], [0, 0, 1, 1], [], []>} : vector<512x256xf32>, vector<256x256xf32>, vector<512x256xf32> -> vector<512x256xf32>
    %67 = vector.extract_strided_slice %66 {offsets = [0, 0], sizes = [512, 128], strides = [1, 1]} : vector<512x256xf32> to vector<512x128xf32>
    %68 = vector.shape_cast %67 : vector<512x128xf32> to vector<4x128x128xf32>
    %69 = vector.extract_strided_slice %66 {offsets = [0, 128], sizes = [512, 128], strides = [1, 1]} : vector<512x256xf32> to vector<512x128xf32>
    %70 = vector.shape_cast %69 : vector<512x128xf32> to vector<4x128x128xf32>
    %c2 = arith.constant 2 : index
    %c0_23 = arith.constant 0 : index
    %c0_24 = arith.constant 0 : index
    %71 = vector.load %arg2[%c2, %c0_23, %c0_24] : memref<6x128x128xf32, #tpu.memory_space<vmem>>, vector<1x128x128xf32>
    %72 = vector.shape_cast %71 : vector<1x128x128xf32> to vector<128x128xf32>
    %c3 = arith.constant 3 : index
    %c0_25 = arith.constant 0 : index
    %c0_26 = arith.constant 0 : index
    %73 = vector.load %arg2[%c3, %c0_25, %c0_26] : memref<6x128x128xf32, #tpu.memory_space<vmem>>, vector<1x128x128xf32>
    %74 = vector.shape_cast %73 : vector<1x128x128xf32> to vector<128x128xf32>
    %75 = vector.shape_cast %72 : vector<128x128xf32> to vector<1x128x128xf32>
    %76 = vector.broadcast %75 : vector<1x128x128xf32> to vector<4x128x128xf32>
    %77 = arith.mulf %68, %76 : vector<4x128x128xf32>
    %78 = vector.shape_cast %74 : vector<128x128xf32> to vector<1x128x128xf32>
    %79 = vector.broadcast %78 : vector<1x128x128xf32> to vector<4x128x128xf32>
    %80 = arith.mulf %70, %79 : vector<4x128x128xf32>
    %81 = arith.subf %77, %80 : vector<4x128x128xf32>
    %82 = vector.shape_cast %74 : vector<128x128xf32> to vector<1x128x128xf32>
    %83 = vector.broadcast %82 : vector<1x128x128xf32> to vector<4x128x128xf32>
    %84 = arith.mulf %68, %83 : vector<4x128x128xf32>
    %85 = vector.shape_cast %72 : vector<128x128xf32> to vector<1x128x128xf32>
    %86 = vector.broadcast %85 : vector<1x128x128xf32> to vector<4x128x128xf32>
    %87 = arith.mulf %70, %86 : vector<4x128x128xf32>
    %88 = arith.addf %84, %87 : vector<4x128x128xf32>
    %c2_27 = arith.constant 2 : index
    %c0_28 = arith.constant 0 : index
    %c0_29 = arith.constant 0 : index
    %89 = vector.load %arg3[%c2_27, %c0_28, %c0_29] : memref<4x256x256xf32, #tpu.memory_space<vmem>>, vector<1x256x256xf32>
    %90 = vector.shape_cast %89 : vector<1x256x256xf32> to vector<256x256xf32>
    %c3_30 = arith.constant 3 : index
    %c0_31 = arith.constant 0 : index
    %c0_32 = arith.constant 0 : index
    %91 = vector.load %arg3[%c3_30, %c0_31, %c0_32] : memref<4x256x256xf32, #tpu.memory_space<vmem>>, vector<1x256x256xf32>
    %92 = vector.shape_cast %91 : vector<1x256x256xf32> to vector<256x256xf32>
    %c0_33 = arith.constant 0 : index
    %c0_34 = arith.constant 0 : index
    %c0_35 = arith.constant 0 : index
    %93 = vector.load %arg3[%c0_33, %c0_34, %c0_35] : memref<4x256x256xf32, #tpu.memory_space<vmem>>, vector<1x256x256xf32>
    %94 = vector.shape_cast %93 : vector<1x256x256xf32> to vector<256x256xf32>
    %95 = vector.shape_cast %81 : vector<4x128x128xf32> to vector<512x128xf32>
    %96 = vector.shape_cast %88 : vector<4x128x128xf32> to vector<512x128xf32>
    %97 = tpu.concatenate %95, %96 in 1 : vector<512x128xf32>, vector<512x128xf32> -> vector<512x256xf32>
    %cst_36 = arith.constant dense<0.000000e+00> : vector<512x256xf32>
    %98 = tpu.matmul %97, %94, %cst_36 {dimension_numbers = #tpu.dot_dimension_numbers<[1], [0], [0], [1], [0, 0, 1, 1], [], []>} : vector<512x256xf32>, vector<256x256xf32>, vector<512x256xf32> -> vector<512x256xf32>
    %99 = vector.extract_strided_slice %98 {offsets = [0, 0], sizes = [512, 128], strides = [1, 1]} : vector<512x256xf32> to vector<512x128xf32>
    %100 = vector.shape_cast %99 : vector<512x128xf32> to vector<4x128x128xf32>
    %101 = vector.extract_strided_slice %98 {offsets = [0, 128], sizes = [512, 128], strides = [1, 1]} : vector<512x256xf32> to vector<512x128xf32>
    %102 = vector.shape_cast %101 : vector<512x128xf32> to vector<4x128x128xf32>
    %103 = tpu.transpose %100, [0, 2, 1] : vector<4x128x128xf32> -> vector<4x128x128xf32>
    %104 = tpu.transpose %102, [0, 2, 1] : vector<4x128x128xf32> -> vector<4x128x128xf32>
    %105 = vector.shape_cast %103 : vector<4x128x128xf32> to vector<512x128xf32>
    %106 = vector.shape_cast %104 : vector<4x128x128xf32> to vector<512x128xf32>
    %107 = tpu.concatenate %105, %106 in 1 : vector<512x128xf32>, vector<512x128xf32> -> vector<512x256xf32>
    %cst_37 = arith.constant dense<0.000000e+00> : vector<512x256xf32>
    %108 = tpu.matmul %107, %94, %cst_37 {dimension_numbers = #tpu.dot_dimension_numbers<[1], [0], [0], [1], [0, 0, 1, 1], [], []>} : vector<512x256xf32>, vector<256x256xf32>, vector<512x256xf32> -> vector<512x256xf32>
    %109 = vector.extract_strided_slice %108 {offsets = [0, 0], sizes = [512, 128], strides = [1, 1]} : vector<512x256xf32> to vector<512x128xf32>
    %110 = vector.shape_cast %109 : vector<512x128xf32> to vector<4x128x128xf32>
    %111 = vector.extract_strided_slice %108 {offsets = [0, 128], sizes = [512, 128], strides = [1, 1]} : vector<512x256xf32> to vector<512x128xf32>
    %112 = vector.shape_cast %111 : vector<512x128xf32> to vector<4x128x128xf32>
    %c4_38 = arith.constant 4 : index
    %c0_39 = arith.constant 0 : index
    %c0_40 = arith.constant 0 : index
    %113 = vector.load %arg2[%c4_38, %c0_39, %c0_40] : memref<6x128x128xf32, #tpu.memory_space<vmem>>, vector<1x128x128xf32>
    %114 = vector.shape_cast %113 : vector<1x128x128xf32> to vector<128x128xf32>
    %c5_41 = arith.constant 5 : index
    %c0_42 = arith.constant 0 : index
    %c0_43 = arith.constant 0 : index
    %115 = vector.load %arg2[%c5_41, %c0_42, %c0_43] : memref<6x128x128xf32, #tpu.memory_space<vmem>>, vector<1x128x128xf32>
    %116 = vector.shape_cast %115 : vector<1x128x128xf32> to vector<128x128xf32>
    %117 = vector.shape_cast %114 : vector<128x128xf32> to vector<1x128x128xf32>
    %118 = vector.broadcast %117 : vector<1x128x128xf32> to vector<4x128x128xf32>
    %119 = arith.mulf %118, %110 : vector<4x128x128xf32>
    %120 = vector.shape_cast %116 : vector<128x128xf32> to vector<1x128x128xf32>
    %121 = vector.broadcast %120 : vector<1x128x128xf32> to vector<4x128x128xf32>
    %122 = arith.mulf %121, %112 : vector<4x128x128xf32>
    %123 = arith.subf %119, %122 : vector<4x128x128xf32>
    %124 = vector.shape_cast %114 : vector<128x128xf32> to vector<1x128x128xf32>
    %125 = vector.broadcast %124 : vector<1x128x128xf32> to vector<4x128x128xf32>
    %126 = arith.mulf %125, %112 : vector<4x128x128xf32>
    %127 = vector.shape_cast %116 : vector<128x128xf32> to vector<1x128x128xf32>
    %128 = vector.broadcast %127 : vector<1x128x128xf32> to vector<4x128x128xf32>
    %129 = arith.mulf %128, %110 : vector<4x128x128xf32>
    %130 = arith.addf %126, %129 : vector<4x128x128xf32>
    %131 = vector.shape_cast %123 : vector<4x128x128xf32> to vector<512x128xf32>
    %132 = vector.shape_cast %130 : vector<4x128x128xf32> to vector<512x128xf32>
    %133 = tpu.concatenate %131, %132 in 1 : vector<512x128xf32>, vector<512x128xf32> -> vector<512x256xf32>
    %cst_44 = arith.constant dense<0.000000e+00> : vector<512x256xf32>
    %134 = tpu.matmul %133, %90, %cst_44 {dimension_numbers = #tpu.dot_dimension_numbers<[1], [0], [0], [1], [0, 0, 1, 1], [], []>} : vector<512x256xf32>, vector<256x256xf32>, vector<512x256xf32> -> vector<512x256xf32>
    %135 = vector.extract_strided_slice %134 {offsets = [0, 0], sizes = [512, 128], strides = [1, 1]} : vector<512x256xf32> to vector<512x128xf32>
    %136 = vector.shape_cast %135 : vector<512x128xf32> to vector<4x128x128xf32>
    %137 = vector.extract_strided_slice %134 {offsets = [0, 128], sizes = [512, 128], strides = [1, 1]} : vector<512x256xf32> to vector<512x128xf32>
    %138 = vector.shape_cast %137 : vector<512x128xf32> to vector<4x128x128xf32>
    %139 = tpu.transpose %136, [0, 2, 1] : vector<4x128x128xf32> -> vector<4x128x128xf32>
    %140 = tpu.transpose %138, [0, 2, 1] : vector<4x128x128xf32> -> vector<4x128x128xf32>
    %141 = vector.shape_cast %139 : vector<4x128x128xf32> to vector<512x128xf32>
    %142 = vector.shape_cast %140 : vector<4x128x128xf32> to vector<512x128xf32>
    %143 = tpu.concatenate %141, %142 in 1 : vector<512x128xf32>, vector<512x128xf32> -> vector<512x256xf32>
    %cst_45 = arith.constant dense<0.000000e+00> : vector<512x256xf32>
    %144 = tpu.matmul %143, %92, %cst_45 {dimension_numbers = #tpu.dot_dimension_numbers<[1], [0], [0], [1], [0, 0, 1, 1], [], []>} : vector<512x256xf32>, vector<256x256xf32>, vector<512x256xf32> -> vector<512x256xf32>
    %145 = vector.extract_strided_slice %144 {offsets = [0, 0], sizes = [512, 128], strides = [1, 1]} : vector<512x256xf32> to vector<512x128xf32>
    %146 = vector.shape_cast %145 : vector<512x128xf32> to vector<4x128x128xf32>
    %147 = vector.extract_strided_slice %144 {offsets = [0, 128], sizes = [512, 128], strides = [1, 1]} : vector<512x256xf32> to vector<512x128xf32>
    %148 = vector.shape_cast %147 : vector<512x128xf32> to vector<4x128x128xf32>
    %149 = arith.mulf %146, %146 : vector<4x128x128xf32>
    %150 = arith.mulf %148, %148 : vector<4x128x128xf32>
    %151 = arith.addf %149, %150 : vector<4x128x128xf32>
    %152 = vector.extract_strided_slice %151 {offsets = [0, 0, 0], sizes = [4, 40, 40], strides = [1, 1, 1]} : vector<4x128x128xf32> to vector<4x40x40xf32>
    %153 = vector.extract_strided_slice %151 {offsets = [0, 0, 40], sizes = [4, 40, 40], strides = [1, 1, 1]} : vector<4x128x128xf32> to vector<4x40x40xf32>
    %154 = arith.maximumf %152, %153 : vector<4x40x40xf32>
    %155 = vector.extract_strided_slice %151 {offsets = [0, 0, 80], sizes = [4, 40, 40], strides = [1, 1, 1]} : vector<4x128x128xf32> to vector<4x40x40xf32>
    %156 = arith.maximumf %154, %155 : vector<4x40x40xf32>
    %157 = vector.extract_strided_slice %151 {offsets = [0, 40, 0], sizes = [4, 40, 40], strides = [1, 1, 1]} : vector<4x128x128xf32> to vector<4x40x40xf32>
    %158 = arith.maximumf %156, %157 : vector<4x40x40xf32>
    %159 = vector.extract_strided_slice %151 {offsets = [0, 40, 40], sizes = [4, 40, 40], strides = [1, 1, 1]} : vector<4x128x128xf32> to vector<4x40x40xf32>
    %160 = arith.maximumf %158, %159 : vector<4x40x40xf32>
    %161 = vector.extract_strided_slice %151 {offsets = [0, 40, 80], sizes = [4, 40, 40], strides = [1, 1, 1]} : vector<4x128x128xf32> to vector<4x40x40xf32>
    %162 = arith.maximumf %160, %161 : vector<4x40x40xf32>
    %163 = vector.extract_strided_slice %151 {offsets = [0, 80, 0], sizes = [4, 40, 40], strides = [1, 1, 1]} : vector<4x128x128xf32> to vector<4x40x40xf32>
    %164 = arith.maximumf %162, %163 : vector<4x40x40xf32>
    %165 = vector.extract_strided_slice %151 {offsets = [0, 80, 40], sizes = [4, 40, 40], strides = [1, 1, 1]} : vector<4x128x128xf32> to vector<4x40x40xf32>
    %166 = arith.maximumf %164, %165 : vector<4x40x40xf32>
    %167 = vector.extract_strided_slice %151 {offsets = [0, 80, 80], sizes = [4, 40, 40], strides = [1, 1, 1]} : vector<4x128x128xf32> to vector<4x40x40xf32>
    %168 = arith.maximumf %166, %167 : vector<4x40x40xf32>
    %c0_46 = arith.constant 0 : index
    %c0_47 = arith.constant 0 : index
    %c0_48 = arith.constant 0 : index
    %169 = vector.load %arg4[%c0_46, %c0_47, %c0_48] : memref<4x40x40xf32, #tpu.memory_space<vmem>>, vector<4x40x40xf32>
    tpu.vector_store %arg4[%c0_46, %c0_47, %c0_48], %168 {strides = array<i32>} : memref<4x40x40xf32, #tpu.memory_space<vmem>>, vector<4x40x40xf32>,
    return
  }
  func.func @transform_0(%arg0: i32) -> (i32, i32, i32) {
    %c0_i32 = arith.constant 0 : i32
    %c0_i32_0 = arith.constant 0 : i32
    %c0_i32_1 = arith.constant 0 : i32
    return %arg0, %c0_i32, %c0_i32_0 : i32, i32, i32
  }
  func.func @transform_1(%arg0: i32) -> (i32, i32, i32) {
    %c0_i32 = arith.constant 0 : i32
    %c0_i32_0 = arith.constant 0 : i32
    %c0_i32_1 = arith.constant 0 : i32
    %c0_i32_2 = arith.constant 0 : i32
    return %c0_i32, %c0_i32_0, %c0_i32_1 : i32, i32, i32
  }
  func.func @transform_2(%arg0: i32) -> (i32, i32, i32) {
    %c0_i32 = arith.constant 0 : i32
    %c0_i32_0 = arith.constant 0 : i32
    %c0_i32_1 = arith.constant 0 : i32
    %c0_i32_2 = arith.constant 0 : i32
    return %c0_i32, %c0_i32_0, %c0_i32_1 : i32, i32, i32
  }
  func.func @transform_3(%arg0: i32) -> (i32, i32, i32) {
    %c0_i32 = arith.constant 0 : i32
    %c0_i32_0 = arith.constant 0 : i32
    %c0_i32_1 = arith.constant 0 : i32
    return %arg0, %c0_i32, %c0_i32_0 : i32, i32, i32
  }
}

</mosaic_0001>

<bundles_post_ra>
// kernel: tpu_custom_call.1
= control target key start
LH: loop header
LB: loop body
LE: loop exit
PB: predicated region body
PF: predicated region fallthrough
CT: control target
= control target key end

     0   :  { %8 = vsyncpa [#allocation3], 0  ;;  %s11092_s0 = inlined_call_operand.hbm [shape: f32[4,128,128], index: 0, kind: input, shape index: {}]   ;;  %s11093_s1 = inlined_call_operand.hbm [shape: f32[6,128,128], index: 1, kind: input, shape index: {}]   ;;  %s11094_s2 = inlined_call_operand.hbm [shape: f32[4,256,256], index: 2, kind: input, shape index: {}]   ;;  %s11095_s3 = inlined_call_operand.hbm [shape: f32[4,40,40], index: 3, kind: output, shape index: {}]  }
   0x1   :  { %9 = vsyncpa [#allocation6], 0 }
   0x2   :  { %10 = vsyncpa [#allocation4], 0  ;;  %s9310_s12 = smov [#allocation5]   ;;  %s9311_s14 = smov [#allocation2]  }
   0x3   :  { %s28_s13 = sshll.u32 %s9310_s12, 4  ;;  %s16_s15 = sshll.u32 %s9311_s14, 4  ;;  %s29_s13 = int_to_ptr.vmem [resolvable:$true] %s28_s13  ;;  %s17_s15 = int_to_ptr.vmem [resolvable:$true] %s16_s15 }
   0x4   :  { %s9232_s16 = scalar_lea.vmem %s29_s13, 12288  ;;  %p9237_p1 = scmp.lt.s32.totalorder %s29_s13, %s29_s13 }
   0x5   :  { %p9233_p0 = scmp.ne.s32.totalorder %s29_s13, %s9232_s16  ;;  %p9238_p2 = scmp.lt.s32.totalorder %s9232_s16, %s9232_s16 }
   0x7   :  { %p9239_p3 = por %p9238_p2, %p9237_p1 }
   0x9   :  { %p9240_p4 = pnand %p9239_p3, %p9233_p0 }
   0xb   :  { %9243 = shalt.err (!%p9240_p4)
}
   0xc   :  { %s9312_s17 = smov 128   ;;  %s9313_s18 = smov 8  }
   0xd   :  { %34 = dma.hbm_to_vmem [thread:$0]  %s11093_s1, 12288, %s29_s13, [#allocation6], %s9312_s17, %s9312_s17, %s9313_s18  }
   0xe   :  { %s9252_s21 = scalar_lea.vmem %s17_s15, 8192  ;;  %p9257_p6 = scmp.lt.s32.totalorder %s17_s15, %s17_s15 }
   0xf   :  { %p9253_p5 = scmp.ne.s32.totalorder %s17_s15, %s9252_s21  ;;  %p9258_p7 = scmp.lt.s32.totalorder %s9252_s21, %s9252_s21 }
  0x11   :  { %p9259_p8 = por %p9258_p7, %p9257_p6 }
  0x13   :  { %p9260_p9 = pnand %p9259_p8, %p9253_p5 }
  0x15   :  { %9263 = shalt.err (!%p9260_p9)
}
  0x16   :  { %22 = dma.hbm_to_vmem [thread:$0]  %s11092_s0, 8192, %s17_s15, [#allocation3], %s9312_s17, %s9312_s17, %s9313_s18  }
  0x17   :  { %s9314_s24 = smov [#allocation7]  }
  0x18   :  { %s40_s25 = sshll.u32 %s9314_s24, 4  ;;  %s41_s25 = int_to_ptr.vmem [resolvable:$true] %s40_s25 }
  0x19   :  { %s9272_s26 = scalar_lea.vmem %s41_s25, 32768  ;;  %p9277_p11 = scmp.lt.s32.totalorder %s41_s25, %s41_s25 }
  0x1a   :  { %p9273_p10 = scmp.ne.s32.totalorder %s41_s25, %s9272_s26  ;;  %p9278_p12 = scmp.lt.s32.totalorder %s9272_s26, %s9272_s26 }
  0x1c   :  { %p9279_p13 = por %p9278_p12, %p9277_p11 }
  0x1e   :  { %p9280_p0 = pnand %p9279_p13, %p9273_p10 }
  0x20   :  { %9283 = shalt.err (!%p9280_p0)
}
  0x21   :  { %s9315_s1 = smov 256   ;;  %s9316_s27 = smov 16  }
  0x22   :  { %46 = dma.hbm_to_vmem [thread:$0]  %s11094_s2, 32768, %s41_s25, [#allocation6], %s9315_s1, %s9315_s1, %s9316_s27  }
  0x23   :  { %9304 = dma.done.wait [#allocation3], 8192  }
  0x24   :  { %9305 = vsyncadd [#allocation3], 4294959104 }
  0x25   :  { %9306 = dma.done.wait [#allocation6], 45056  }
  0x26   :  { %9307 = vsyncadd [#allocation6], 4294922240  ;;  %v377_v0 = vld [vmem:[#allocation7 + $0xf8] sm:$0xff]  ;;  %v376_v1 = vld [vmem:[#allocation7 + $0xf0] sm:$0xff]  ;;  %s9317_s0 = smov 88   ;;  %s9318_s2 = smov 48  }
  0x27   :  { %v375_v2 = vld [vmem:[#allocation7 + $0xe8] sm:$0xff]  ;;  %410 = vmatprep.subr.mxu0 %v377_v0  ;;  %v374_v3 = vld [vmem:[#allocation7 + $0xe0] sm:$0xff]  ;;  %1115 = vmatprep.subr.mxu1 %v377_v0  ;;  %v373_v4 = vld [vmem:[#allocation7 + $0xd8] sm:$0xff]  ;;  %vm7128_vm0 = vcmask 326656   ;;  %s9319_s30 = smov [#allocation8]  }
  0x28   :  { %411 = vmatpush1.msra.mxu0 %v376_v1  ;;  %1116 = vmatpush1.msra.mxu1 %v376_v1  ;;  %v372_v5 = vld [vmem:[#allocation7 + $0xd0] sm:$0xff]  ;;  %v371_v6 = vld [vmem:[#allocation7 + $0xc8] sm:$0xff]  ;;  %v370_v7 = vld [vmem:[#allocation7 + $0xc0] sm:$0xff]  ;;  %s7154_s4 = sshll.u32 %s9319_s30, 4  ;;  %s7155_s4 = int_to_ptr.vmem [resolvable:$true] %s7154_s4 }
  0x29   :  { %412 = vmatprep.subr.mxu0 %v375_v2  ;;  %1117 = vmatprep.subr.mxu1 %v375_v2  ;;  %v369_v8 = vld [vmem:[#allocation7 + $0xb8] sm:$0xff]  ;;  %v368_v9 = vld [vmem:[#allocation7 + $0xb0] sm:$0xff]  ;;  %v367_v10 = vld [vmem:[#allocation7 + $0xa8] sm:$0xff]  ;;  %s9284_s5 = scalar_lea.vmem %s7155_s4, 2560  ;;  %p9289_p2 = scmp.lt.s32.totalorder %s7155_s4, %s7155_s4 }
  0x2a   :  { %413 = vmatpush1.msra.mxu0 %v374_v3  ;;  %1118 = vmatpush1.msra.mxu1 %v374_v3  ;;  %v366_v11 = vld [vmem:[#allocation7 + $0xa0] sm:$0xff]  ;;  %v365_v12 = vld [vmem:[#allocation7 + $0x98] sm:$0xff]  ;;  %v364_v13 = vld [vmem:[#allocation7 + $0x90] sm:$0xff]  ;;  %p9285_p1 = scmp.ne.s32.totalorder %s7155_s4, %s9284_s5  ;;  %p9290_p3 = scmp.lt.s32.totalorder %s9284_s5, %s9284_s5 }
  0x2b   :  { %414 = vmatprep.subr.mxu0 %v373_v4  ;;  %1119 = vmatprep.subr.mxu1 %v373_v4  ;;  %v363_v14 = vld [vmem:[#allocation7 + $0x88] sm:$0xff]  ;;  %v362_v15 = vld [vmem:[#allocation7 + $0x80] sm:$0xff]  ;;  %v361_v16 = vld [vmem:[#allocation7 + $0x78] sm:$0xff] }
  0x2c   :  { %415 = vmatpush1.msra.mxu0 %v372_v5  ;;  %1120 = vmatpush1.msra.mxu1 %v372_v5  ;;  %v360_v17 = vld [vmem:[#allocation7 + $0x70] sm:$0xff]  ;;  %v359_v18 = vld [vmem:[#allocation7 + $0x68] sm:$0xff]  ;;  %v358_v19 = vld [vmem:[#allocation7 + $0x60] sm:$0xff]  ;;  %p9291_p4 = por %p9290_p3, %p9289_p2 }
  0x2d   :  { %416 = vmatprep.subr.mxu0 %v371_v6  ;;  %1121 = vmatprep.subr.mxu1 %v371_v6  ;;  %v357_v20 = vld [vmem:[#allocation7 + $0x58] sm:$0xff]  ;;  %v356_v21 = vld [vmem:[#allocation7 + $0x50] sm:$0xff]  ;;  %v355_v22 = vld [vmem:[#allocation7 + $0x48] sm:$0xff] }
  0x2e   :  { %417 = vmatpush1.msra.mxu0 %v370_v7  ;;  %1122 = vmatpush1.msra.mxu1 %v370_v7  ;;  %v354_v23 = vld [vmem:[#allocation7 + $0x40] sm:$0xff]  ;;  %v353_v25 = vld [vmem:[#allocation7 + $0x38] sm:$0xff]  ;;  %v352_v27 = vld [vmem:[#allocation7 + $0x30] sm:$0xff]  ;;  %p9292_p5 = pnand %p9291_p4, %p9285_p1 }
  0x2f   :  { %418 = vmatprep.subr.mxu0 %v369_v8  ;;  %1123 = vmatprep.subr.mxu1 %v369_v8  ;;  %v9355_v24 = vld [vmem:[#allocation2] sm:$0xff]  ;;  %v351_v29 = vld [vmem:[#allocation7 + $0x28] sm:$0xff]  ;;  %v349_v31 = vld [vmem:[#allocation7 + $0x18] sm:$0xff] }
  0x30   :  { %419 = vmatpush1.msra.mxu0 %v368_v9  ;;  %1124 = vmatpush1.msra.mxu1 %v368_v9  ;;  %v9357_v26 = vld [vmem:[#allocation5 + $0x80] sm:$0xff]  ;;  %v348_v32 = vld [vmem:[#allocation7 + $0x10] sm:$0xff]  ;;  %v347_v33 = vld [vmem:[#allocation7 + $0x8] sm:$0xff] }
  0x31   :  { %420 = vmatprep.subr.mxu0 %v367_v10  ;;  %1125 = vmatprep.subr.mxu1 %v367_v10  ;;  %v217_v28 = vmul.f32 %v9357_v26, %v9355_v24  ;;  %v350_v30 = vld [vmem:[#allocation7 + $0x20] sm:$0xff]  ;;  %v409_v35 = vld [vmem:[#allocation7 + $0x1f8] sm:$0xff]  ;;  %v408_v36 = vld [vmem:[#allocation7 + $0x1f0] sm:$0xff] }
  0x32   :  { %421 = vmatpush1.msra.mxu0 %v366_v11  ;;  %1126 = vmatpush1.msra.mxu1 %v366_v11  ;;  %v346_v34 = vld [vmem:[#allocation7] sm:$0xff]  ;;  %v407_v37 = vld [vmem:[#allocation7 + $0x1e8] sm:$0xff]  ;;  %v405_v39 = vld [vmem:[#allocation7 + $0x1d8] sm:$0xff] }
  0x33   :  { %422 = vmatprep.subr.mxu0 %v365_v12  ;;  %1127 = vmatprep.subr.mxu1 %v365_v12  ;;  %v406_v38 = vld [vmem:[#allocation7 + $0x1e0] sm:$0xff]  ;;  %v404_v40 = vld [vmem:[#allocation7 + $0x1d0] sm:$0xff]  ;;  %v403_v41 = vld [vmem:[#allocation7 + $0x1c8] sm:$0xff] }
  0x34   :  { %423 = vmatpush1.msra.mxu0 %v364_v13  ;;  %1128 = vmatpush1.msra.mxu1 %v364_v13  ;;  %v402_v42 = vld [vmem:[#allocation7 + $0x1c0] sm:$0xff]  ;;  %v401_v43 = vld [vmem:[#allocation7 + $0x1b8] sm:$0xff]  ;;  %v400_v44 = vld [vmem:[#allocation7 + $0x1b0] sm:$0xff] }
  0x35   :  { %424 = vmatprep.subr.mxu0 %v363_v14  ;;  %1129 = vmatprep.subr.mxu1 %v363_v14  ;;  %v399_v45 = vld [vmem:[#allocation7 + $0x1a8] sm:$0xff]  ;;  %v398_v46 = vld [vmem:[#allocation7 + $0x1a0] sm:$0xff]  ;;  %v397_v47 = vld [vmem:[#allocation7 + $0x198] sm:$0xff] }
  0x36   :  { %425 = vmatpush1.msra.mxu0 %v362_v15  ;;  %1130 = vmatpush1.msra.mxu1 %v362_v15  ;;  %v396_v48 = vld [vmem:[#allocation7 + $0x190] sm:$0xff]  ;;  %v395_v49 = vld [vmem:[#allocation7 + $0x188] sm:$0xff]  ;;  %v394_v50 = vld [vmem:[#allocation7 + $0x180] sm:$0xff] }
  0x37   :  { %426 = vmatprep.subr.mxu0 %v361_v16  ;;  %1131 = vmatprep.subr.mxu1 %v361_v16  ;;  %v393_v51 = vld [vmem:[#allocation7 + $0x178] sm:$0xff]  ;;  %v392_v52 = vld [vmem:[#allocation7 + $0x170] sm:$0xff]  ;;  %v391_v53 = vld [vmem:[#allocation7 + $0x168] sm:$0xff] }
  0x38   :  { %427 = vmatpush1.msra.mxu0 %v360_v17  ;;  %1132 = vmatpush1.msra.mxu1 %v360_v17  ;;  %v390_v54 = vld [vmem:[#allocation7 + $0x160] sm:$0xff]  ;;  %v389_v55 = vld [vmem:[#allocation7 + $0x158] sm:$0xff]  ;;  %v388_v56 = vld [vmem:[#allocation7 + $0x150] sm:$0xff] }
  0x39   :  { %428 = vmatprep.subr.mxu0 %v359_v18  ;;  %1133 = vmatprep.subr.mxu1 %v359_v18  ;;  %v387_v57 = vld [vmem:[#allocation7 + $0x148] sm:$0xff]  ;;  %v386_v58 = vld [vmem:[#allocation7 + $0x140] sm:$0xff]  ;;  %v385_v59 = vld [vmem:[#allocation7 + $0x138] sm:$0xff] }
  0x3a   :  { %429 = vmatpush1.msra.mxu0 %v358_v19  ;;  %1134 = vmatpush1.msra.mxu1 %v358_v19  ;;  %v384_v60 = vld [vmem:[#allocation7 + $0x130] sm:$0xff]  ;;  %v383_v61 = vld [vmem:[#allocation7 + $0x128] sm:$0xff]  ;;  %v382_v62 = vld [vmem:[#allocation7 + $0x120] sm:$0xff] }
  0x3b   :  { %430 = vmatprep.subr.mxu0 %v357_v20  ;;  %1135 = vmatprep.subr.mxu1 %v357_v20  ;;  %v381_v63 = vld [vmem:[#allocation7 + $0x118] sm:$0xff]  ;;  %v9361_v0 = vld [vmem:[#allocation5] sm:$0xff]  ;;  %v380_v1 = vld [vmem:[#allocation7 + $0x110] sm:$0xff] }
  0x3c   :  { %431 = vmatpush1.msra.mxu0 %v356_v21  ;;  %1136 = vmatpush1.msra.mxu1 %v356_v21  ;;  %v57_v2 = vld [vmem:[#allocation2 + $0x8] sm:$0xff]  ;;  %v378_v5 = vld [vmem:[#allocation7 + $0x100] sm:$0xff]  ;;  %v136_v6 = vmul.f32 %v9361_v0, %v9355_v24  ;;  %v58_v9 = vld [vmem:[#allocation2 + $0x10] sm:$0xff] }
  0x3d   :  { %432 = vmatprep.subr.mxu0 %v355_v22  ;;  %1137 = vmatprep.subr.mxu1 %v355_v22  ;;  %v9363_v3 = vld [vmem:[#allocation5 + $0x88] sm:$0xff]  ;;  %v9370_v10 = vld [vmem:[#allocation5 + $0x90] sm:$0xff]  ;;  %v59_v14 = vld [vmem:[#allocation2 + $0x18] sm:$0xff] }
  0x3e   :  { %433 = vmatpush1.msra.mxu0 %v354_v23  ;;  %1138 = vmatpush1.msra.mxu1 %v354_v23  ;;  %v379_v4 = vld [vmem:[#allocation7 + $0x108] sm:$0xff]  ;;  %v218_v7 = vmul.f32 %v9363_v3, %v57_v2  ;;  %v219_v12 = vmul.f32 %v9370_v10, %v58_v9  ;;  %v9374_v13 = vld [vmem:[#allocation5 + $0x10] sm:$0xff]  ;;  %v9376_v15 = vld [vmem:[#allocation5 + $0x98] sm:$0xff] }
  0x3f   :  { %434 = vmatprep.subr.mxu0 %v353_v25  ;;  %474 = vmatprep.mubr.f32.mxu0 %v217_v28  ;;  %v9368_v8 = vld [vmem:[#allocation5 + $0x8] sm:$0xff]  ;;  %v138_v16 = vmul.f32 %v9374_v13, %v58_v9  ;;  %v220_v17 = vmul.f32 %v9376_v15, %v59_v14  ;;  %v9380_v18 = vld [vmem:[#allocation5 + $0x18] sm:$0xff]  ;;  %v60_v19 = vld [vmem:[#allocation2 + $0x20] sm:$0xff] }
  0x40   :  { %435 = vmatpush1.msra.mxu0 %v352_v27  ;;  %1139 = vmatprep.subr.mxu1 %v353_v25  ;;  %v137_v11 = vmul.f32 %v9368_v8, %v57_v2  ;;  %v9382_v20 = vld [vmem:[#allocation5 + $0xa0] sm:$0xff]  ;;  %v139_v21 = vmul.f32 %v9380_v18, %v59_v14  ;;  %v61_v24 = vld [vmem:[#allocation2 + $0x28] sm:$0xff]  ;;  %v70_v9 = vld [vmem:[#allocation2 + $0x70] sm:$0xff] }
  0x41   :  { %436 = vmatprep.subr.mxu0 %v351_v29  ;;  %1140 = vmatpush1.msra.mxu1 %v352_v27  ;;  %v221_v22 = vmul.f32 %v9382_v20, %v60_v19  ;;  %v9386_v23 = vld [vmem:[#allocation5 + $0x20] sm:$0xff]  ;;  %v9388_v25 = vld [vmem:[#allocation5 + $0xa8] sm:$0xff] }
  0x42   :  { %437 = vmatpush1.msra.mxu0 %v350_v30  ;;  %1141 = vmatprep.subr.mxu1 %v351_v29  ;;  %v140_v27 = vmul.f32 %v9386_v23, %v60_v19  ;;  %v222_v28 = vmul.f32 %v9388_v25, %v61_v24  ;;  %v9392_v29 = vld [vmem:[#allocation5 + $0x28] sm:$0xff]  ;;  %v9448_v19 = vld [vmem:[#allocation5 + $0xf8] sm:$0xff] }
  0x43   :  { %438 = vmatprep.subr.mxu0 %v349_v31  ;;  %1142 = vmatpush1.msra.mxu1 %v350_v30  ;;  %v62_v30 = vld [vmem:[#allocation2 + $0x30] sm:$0xff]  ;;  %v69_v2 = vld [vmem:[#allocation2 + $0x68] sm:$0xff] }
  0x44   :  { %439 = vmatpush1.msra.mxu0 %v348_v32  ;;  %1143 = vmatprep.subr.mxu1 %v349_v31  ;;  %v9394_v31 = vld [vmem:[#allocation5 + $0xb0] sm:$0xff] }
  0x45   :  { %440 = vmatprep.subr.mxu0 %v347_v33  ;;  %1144 = vmatpush1.msra.mxu1 %v348_v32  ;;  %v141_v32 = vmul.f32 %v9392_v29, %v61_v24  ;;  %v9452_v24 = vld [vmem:[#allocation5 + $0x78] sm:$0xff] }
  0x46   :  { %441 = vmatpush1.msra.mxu0 %v346_v34  ;;  %1145 = vmatprep.subr.mxu1 %v347_v33  ;;  %v223_v33 = vmul.f32 %v9394_v31, %v62_v30 }
  0x47   :  { %442 = vmatprep.subr.mxu0 %v409_v35  ;;  %1146 = vmatpush1.msra.mxu1 %v346_v34  ;;  %v9398_v34 = vld [vmem:[#allocation5 + $0x30] sm:$0xff] }
  0x48   :  { %443 = vmatpush2.msra.mxu0 %v408_v36  ;;  %1147 = vmatprep.subr.mxu1 %v409_v35  ;;  %v63_v35 = vld [vmem:[#allocation2 + $0x38] sm:$0xff] }
  0x49   :  { %444 = vmatprep.subr.mxu0 %v407_v37  ;;  %1148 = vmatpush2.msra.mxu1 %v408_v36  ;;  %v9400_v36 = vld [vmem:[#allocation5 + $0xb8] sm:$0xff] }
  0x4a   :  { %445 = vmatpush2.msra.mxu0 %v406_v38  ;;  %1149 = vmatprep.subr.mxu1 %v407_v37  ;;  %v142_v37 = vmul.f32 %v9398_v34, %v62_v30 }
  0x4b   :  { %446 = vmatprep.subr.mxu0 %v405_v39  ;;  %1150 = vmatpush2.msra.mxu1 %v406_v38  ;;  %v224_v38 = vmul.f32 %v9400_v36, %v63_v35 }
  0x4c   :  { %447 = vmatpush2.msra.mxu0 %v404_v40  ;;  %1151 = vmatprep.subr.mxu1 %v405_v39  ;;  %v9404_v39 = vld [vmem:[#allocation5 + $0x38] sm:$0xff] }
  0x4d   :  { %448 = vmatprep.subr.mxu0 %v403_v41  ;;  %1152 = vmatpush2.msra.mxu1 %v404_v40  ;;  %v64_v40 = vld [vmem:[#allocation2 + $0x40] sm:$0xff] }
  0x4e   :  { %449 = vmatpush2.msra.mxu0 %v402_v42  ;;  %1153 = vmatprep.subr.mxu1 %v403_v41  ;;  %v9406_v41 = vld [vmem:[#allocation5 + $0xc0] sm:$0xff] }
  0x4f   :  { %450 = vmatprep.subr.mxu0 %v401_v43  ;;  %1154 = vmatpush2.msra.mxu1 %v402_v42  ;;  %v143_v42 = vmul.f32 %v9404_v39, %v63_v35 }
  0x50   :  { %451 = vmatpush2.msra.mxu0 %v400_v44  ;;  %1155 = vmatprep.subr.mxu1 %v401_v43  ;;  %v225_v43 = vmul.f32 %v9406_v41, %v64_v40 }
  0x51   :  { %452 = vmatprep.subr.mxu0 %v399_v45  ;;  %1156 = vmatpush2.msra.mxu1 %v400_v44  ;;  %v9410_v44 = vld [vmem:[#allocation5 + $0x40] sm:$0xff] }
  0x52   :  { %453 = vmatpush2.msra.mxu0 %v398_v46  ;;  %1157 = vmatprep.subr.mxu1 %v399_v45  ;;  %v65_v45 = vld [vmem:[#allocation2 + $0x48] sm:$0xff] }
  0x53   :  { %454 = vmatprep.subr.mxu0 %v397_v47  ;;  %1158 = vmatpush2.msra.mxu1 %v398_v46  ;;  %v9412_v46 = vld [vmem:[#allocation5 + $0xc8] sm:$0xff] }
  0x54   :  { %455 = vmatpush2.msra.mxu0 %v396_v48  ;;  %1159 = vmatprep.subr.mxu1 %v397_v47  ;;  %v144_v47 = vmul.f32 %v9410_v44, %v64_v40 }
  0x55   :  { %456 = vmatprep.subr.mxu0 %v395_v49  ;;  %1160 = vmatpush2.msra.mxu1 %v396_v48  ;;  %v226_v48 = vmul.f32 %v9412_v46, %v65_v45 }
  0x56   :  { %457 = vmatpush2.msra.mxu0 %v394_v50  ;;  %1161 = vmatprep.subr.mxu1 %v395_v49  ;;  %v9416_v49 = vld [vmem:[#allocation5 + $0x48] sm:$0xff] }
  0x57   :  { %458 = vmatprep.subr.mxu0 %v393_v51  ;;  %1162 = vmatpush2.msra.mxu1 %v394_v50  ;;  %v66_v50 = vld [vmem:[#allocation2 + $0x50] sm:$0xff] }
  0x58   :  { %459 = vmatpush2.msra.mxu0 %v392_v52  ;;  %1163 = vmatprep.subr.mxu1 %v393_v51  ;;  %v9418_v51 = vld [vmem:[#allocation5 + $0xd0] sm:$0xff] }
  0x59   :  { %460 = vmatprep.subr.mxu0 %v391_v53  ;;  %1164 = vmatpush2.msra.mxu1 %v392_v52  ;;  %v145_v52 = vmul.f32 %v9416_v49, %v65_v45 }
  0x5a   :  { %461 = vmatpush2.msra.mxu0 %v390_v54  ;;  %1165 = vmatprep.subr.mxu1 %v391_v53  ;;  %v227_v53 = vmul.f32 %v9418_v51, %v66_v50 }
  0x5b   :  { %462 = vmatprep.subr.mxu0 %v389_v55  ;;  %1166 = vmatpush2.msra.mxu1 %v390_v54  ;;  %v9422_v54 = vld [vmem:[#allocation5 + $0x50] sm:$0xff] }
  0x5c   :  { %463 = vmatpush2.msra.mxu0 %v388_v56  ;;  %1167 = vmatprep.subr.mxu1 %v389_v55  ;;  %v67_v55 = vld [vmem:[#allocation2 + $0x58] sm:$0xff] }
  0x5d   :  { %464 = vmatprep.subr.mxu0 %v387_v57  ;;  %1168 = vmatpush2.msra.mxu1 %v388_v56  ;;  %v9424_v56 = vld [vmem:[#allocation5 + $0xd8] sm:$0xff] }
  0x5e   :  { %465 = vmatpush2.msra.mxu0 %v386_v58  ;;  %1169 = vmatprep.subr.mxu1 %v387_v57  ;;  %v146_v57 = vmul.f32 %v9422_v54, %v66_v50 }
  0x5f   :  { %466 = vmatprep.subr.mxu0 %v385_v59  ;;  %1170 = vmatpush2.msra.mxu1 %v386_v58  ;;  %v228_v58 = vmul.f32 %v9424_v56, %v67_v55 }
  0x60   :  { %467 = vmatpush2.msra.mxu0 %v384_v60  ;;  %1171 = vmatprep.subr.mxu1 %v385_v59  ;;  %v9428_v59 = vld [vmem:[#allocation5 + $0x58] sm:$0xff] }
  0x61   :  { %468 = vmatprep.subr.mxu0 %v383_v61  ;;  %1172 = vmatpush2.msra.mxu1 %v384_v60  ;;  %v68_v60 = vld [vmem:[#allocation2 + $0x60] sm:$0xff] }
  0x62   :  { %469 = vmatpush2.msra.mxu0 %v382_v62  ;;  %1173 = vmatprep.subr.mxu1 %v383_v61  ;;  %v9430_v61 = vld [vmem:[#allocation5 + $0xe0] sm:$0xff] }
  0x63   :  { %470 = vmatprep.subr.mxu0 %v381_v63  ;;  %1174 = vmatpush2.msra.mxu1 %v382_v62  ;;  %v147_v62 = vmul.f32 %v9428_v59, %v67_v55 }
  0x64   :  { %471 = vmatpush2.msra.mxu0 %v380_v1  ;;  %1175 = vmatprep.subr.mxu1 %v381_v63  ;;  %v229_v63 = vmul.f32 %v9430_v61, %v68_v60 }
  0x65   :  { %472 = vmatprep.subr.mxu0 %v379_v4  ;;  %1176 = vmatpush2.msra.mxu1 %v380_v1  ;;  %v9434_v1 = vld [vmem:[#allocation5 + $0x60] sm:$0xff] }
  0x66   :  { %473 = vmatpush2.msra.mxu0 %v378_v5  ;;  %1177 = vmatprep.subr.mxu1 %v379_v4  ;;  %v9436_v4 = vld [vmem:[#allocation5 + $0xe8] sm:$0xff] }
  0x67   :  { %475 = vmatmul.mubr.f32.vlgmr.msra.gmra.mxu0 %v136_v6  ;;  %1178 = vmatpush2.msra.mxu1 %v378_v5  ;;  %v148_v5 = vmul.f32 %v9434_v1, %v68_v60  ;;  %v230_v6 = vmul.f32 %v9436_v4, %v69_v2 }
  0x68   :  { %480 = vmatprep.mubr.f32.mxu0 %v218_v7  ;;  %v9440_v7 = vld [vmem:[#allocation5 + $0x68] sm:$0xff] }
  0x6b   :  { %481 = vmatmul.mubr.f32.gmra.mxu0 %v137_v11  ;;  %v9442_v11 = vld [vmem:[#allocation5 + $0xf0] sm:$0xff] }
  0x6c   :  { %486 = vmatprep.mubr.f32.mxu0 %v219_v12  ;;  %v149_v12 = vmul.f32 %v9440_v7, %v69_v2  ;;  %v231_v14 = vmul.f32 %v9442_v11, %v70_v9 }
  0x6f   :  { %487 = vmatmul.mubr.f32.gmra.mxu0 %v138_v16  ;;  %v9446_v16 = vld [vmem:[#allocation5 + $0x70] sm:$0xff] }
  0x70   :  { %492 = vmatprep.mubr.f32.mxu0 %v220_v17  ;;  %v71_v17 = vld [vmem:[#allocation2 + $0x78] sm:$0xff] }
  0x73   :  { %493 = vmatmul.mubr.f32.gmra.mxu0 %v139_v21  ;;  %v150_v21 = vmul.f32 %v9446_v16, %v70_v9 }
  0x74   :  { %498 = vmatprep.mubr.f32.mxu0 %v221_v22  ;;  %v232_v22 = vmul.f32 %v9448_v19, %v71_v17 }
  0x77   :  { %499 = vmatmul.mubr.f32.gmra.mxu0 %v140_v27  ;;  %v72_v27 = vld [vmem:[#allocation2 + $0x80] sm:$0xff] }
  0x78   :  { %504 = vmatprep.mubr.f32.mxu0 %v222_v28  ;;  %v151_v28 = vmul.f32 %v9452_v24, %v71_v17  ;;  %v233_v30 = vmul.f32 %v9357_v26, %v72_v27 }
  0x7b   :  { %505 = vmatmul.mubr.f32.gmra.mxu0 %v141_v32  ;;  %v73_v32 = vld [vmem:[#allocation2 + $0x88] sm:$0xff] }
  0x7c   :  { %510 = vmatprep.mubr.f32.mxu0 %v223_v33  ;;  %v152_v33 = vmul.f32 %v9361_v0, %v72_v27  ;;  %v234_v35 = vmul.f32 %v9363_v3, %v73_v32 }
  0x7f   :  { %511 = vmatmul.mubr.f32.gmra.mxu0 %v142_v37  ;;  %v74_v37 = vld [vmem:[#allocation2 + $0x90] sm:$0xff] }
  0x80   :  { %516 = vmatprep.mubr.f32.mxu0 %v224_v38  ;;  %v153_v38 = vmul.f32 %v9368_v8, %v73_v32  ;;  %v235_v40 = vmul.f32 %v9370_v10, %v74_v37 }
  0x83   :  { %517 = vmatmul.mubr.f32.gmra.mxu0 %v143_v42  ;;  %v75_v42 = vld [vmem:[#allocation2 + $0x98] sm:$0xff] }
  0x84   :  { %522 = vmatprep.mubr.f32.mxu0 %v225_v43  ;;  %v154_v43 = vmul.f32 %v9374_v13, %v74_v37  ;;  %v236_v45 = vmul.f32 %v9376_v15, %v75_v42 }
  0x87   :  { %523 = vmatmul.mubr.f32.gmra.mxu0 %v144_v47  ;;  %v76_v47 = vld [vmem:[#allocation2 + $0xa0] sm:$0xff] }
  0x88   :  { %528 = vmatprep.mubr.f32.mxu0 %v226_v48  ;;  %v155_v48 = vmul.f32 %v9380_v18, %v75_v42  ;;  %v237_v50 = vmul.f32 %v9382_v20, %v76_v47 }
  0x8b   :  { %529 = vmatmul.mubr.f32.gmra.mxu0 %v145_v52  ;;  %v77_v52 = vld [vmem:[#allocation2 + $0xa8] sm:$0xff] }
  0x8c   :  { %534 = vmatprep.mubr.f32.mxu0 %v227_v53  ;;  %v156_v53 = vmul.f32 %v9386_v23, %v76_v47  ;;  %v238_v55 = vmul.f32 %v9388_v25, %v77_v52 }
  0x8f   :  { %535 = vmatmul.mubr.f32.gmra.mxu0 %v146_v57  ;;  %v78_v57 = vld [vmem:[#allocation2 + $0xb0] sm:$0xff] }
  0x90   :  { %540 = vmatprep.mubr.f32.mxu0 %v228_v58  ;;  %v157_v58 = vmul.f32 %v9392_v29, %v77_v52  ;;  %v239_v60 = vmul.f32 %v9394_v31, %v78_v57 }
  0x93   :  { %541 = vmatmul.mubr.f32.gmra.mxu0 %v147_v62  ;;  %v79_v62 = vld [vmem:[#allocation2 + $0xb8] sm:$0xff] }
  0x94   :  { %546 = vmatprep.mubr.f32.mxu0 %v229_v63  ;;  %v158_v63 = vmul.f32 %v9398_v34, %v78_v57  ;;  %v240_v2 = vmul.f32 %v9400_v36, %v79_v62 }
  0x97   :  { %547 = vmatmul.mubr.f32.gmra.mxu0 %v148_v5  ;;  %v80_v5 = vld [vmem:[#allocation2 + $0xc0] sm:$0xff] }
  0x98   :  { %552 = vmatprep.mubr.f32.mxu0 %v230_v6  ;;  %v159_v6 = vmul.f32 %v9404_v39, %v79_v62  ;;  %v241_v9 = vmul.f32 %v9406_v41, %v80_v5 }
  0x9b   :  { %553 = vmatmul.mubr.f32.gmra.mxu0 %v149_v12  ;;  %v81_v12 = vld [vmem:[#allocation2 + $0xc8] sm:$0xff] }
  0x9c   :  { %558 = vmatprep.mubr.f32.mxu0 %v231_v14  ;;  %v160_v14 = vmul.f32 %v9410_v44, %v80_v5  ;;  %v242_v17 = vmul.f32 %v9412_v46, %v81_v12 }
  0x9f   :  { %559 = vmatmul.mubr.f32.gmra.mxu0 %v150_v21  ;;  %v82_v21 = vld [vmem:[#allocation2 + $0xd0] sm:$0xff] }
  0xa0   :  { %564 = vmatprep.mubr.f32.mxu0 %v232_v22  ;;  %v161_v22 = vmul.f32 %v9416_v49, %v81_v12  ;;  %v243_v27 = vmul.f32 %v9418_v51, %v82_v21 }
  0xa3   :  { %565 = vmatmul.mubr.f32.gmra.mxu0 %v151_v28  ;;  %v83_v28 = vld [vmem:[#allocation2 + $0xd8] sm:$0xff] }
  0xa4   :  { %570 = vmatprep.mubr.f32.mxu0 %v233_v30  ;;  %v162_v30 = vmul.f32 %v9422_v54, %v82_v21  ;;  %v244_v32 = vmul.f32 %v9424_v56, %v83_v28 }
  0xa7   :  { %571 = vmatmul.mubr.f32.gmra.mxu0 %v152_v33  ;;  %v84_v33 = vld [vmem:[#allocation2 + $0xe0] sm:$0xff] }
  0xa8   :  { %576 = vmatprep.mubr.f32.mxu0 %v234_v35  ;;  %v163_v35 = vmul.f32 %v9428_v59, %v83_v28  ;;  %v245_v37 = vmul.f32 %v9430_v61, %v84_v33  ;;  %v313_v28 = vld [vmem:[#allocation7 + $0x2f8] sm:$0xff] }
  0xa9   :  { %1982 = vmatprep.subr.mxu0 %v313_v28  ;;  %2687 = vmatprep.subr.mxu1 %v313_v28  ;;  %v9534_v28 = vld [vmem:[#allocation7 + $0x2b8] sm:$0xff] }
  0xab   :  { %577 = vmatmul.mubr.f32.gmra.mxu0 %v153_v38  ;;  %v85_v38 = vld [vmem:[#allocation2 + $0xe8] sm:$0xff] }
  0xac   :  { %582 = vmatprep.mubr.f32.mxu0 %v235_v40  ;;  %v164_v40 = vmul.f32 %v9434_v1, %v84_v33  ;;  %v246_v42 = vmul.f32 %v9436_v4, %v85_v38  ;;  %v94_v33 = vld [vmem:[#allocation2 + $0x130] sm:$0xff] }
  0xaf   :  { %583 = vmatmul.mubr.f32.gmra.mxu0 %v154_v43  ;;  %v86_v43 = vld [vmem:[#allocation2 + $0xf0] sm:$0xff] }
  0xb0   :  { %588 = vmatprep.mubr.f32.mxu0 %v236_v45  ;;  %v165_v45 = vmul.f32 %v9440_v7, %v85_v38  ;;  %v247_v47 = vmul.f32 %v9442_v11, %v86_v43  ;;  %v95_v38 = vld [vmem:[#allocation2 + $0x138] sm:$0xff] }
  0xb3   :  { %589 = vmatmul.mubr.f32.gmra.mxu0 %v155_v48  ;;  %v87_v48 = vld [vmem:[#allocation2 + $0xf8] sm:$0xff] }
  0xb4   :  { %594 = vmatprep.mubr.f32.mxu0 %v237_v50  ;;  %v166_v50 = vmul.f32 %v9446_v16, %v86_v43  ;;  %v248_v52 = vmul.f32 %v9448_v19, %v87_v48  ;;  %v9506_v43 = vld [vmem:[#allocation7 + $0x2e0] sm:$0xff] }
  0xb7   :  { %595 = vmatmul.mubr.f32.gmra.mxu0 %v156_v53  ;;  %v88_v53 = vld [vmem:[#allocation2 + $0x100] sm:$0xff] }
  0xb8   :  { %600 = vmatprep.mubr.f32.mxu0 %v238_v55  ;;  %v167_v55 = vmul.f32 %v9452_v24, %v87_v48  ;;  %v249_v57 = vmul.f32 %v9357_v26, %v88_v53  ;;  %v175_v48 = vmul.f32 %v9404_v39, %v95_v38 }
  0xbb   :  { %601 = vmatmul.mubr.f32.gmra.mxu0 %v157_v58  ;;  %v89_v58 = vld [vmem:[#allocation2 + $0x108] sm:$0xff] }
  0xbc   :  { %606 = vmatprep.mubr.f32.mxu0 %v239_v60  ;;  %v168_v60 = vmul.f32 %v9361_v0, %v88_v53  ;;  %v250_v62 = vmul.f32 %v9363_v3, %v89_v58 }
  0xbf   :  { %607 = vmatmul.mubr.f32.gmra.mxu0 %v158_v63  ;;  %v90_v63 = vld [vmem:[#allocation2 + $0x110] sm:$0xff] }
  0xc0   :  { %612 = vmatprep.mubr.f32.mxu0 %v240_v2  ;;  %v169_v2 = vmul.f32 %v9368_v8, %v89_v58  ;;  %v251_v5 = vmul.f32 %v9370_v10, %v90_v63 }
  0xc3   :  { %613 = vmatmul.mubr.f32.gmra.mxu0 %v159_v6  ;;  %v91_v6 = vld [vmem:[#allocation2 + $0x118] sm:$0xff] }
  0xc4   :  { %618 = vmatprep.mubr.f32.mxu0 %v241_v9  ;;  %v170_v9 = vmul.f32 %v9374_v13, %v90_v63  ;;  %v252_v12 = vmul.f32 %v9376_v15, %v91_v6 }
  0xc7   :  { %619 = vmatmul.mubr.f32.gmra.mxu0 %v160_v14  ;;  %v92_v14 = vld [vmem:[#allocation2 + $0x120] sm:$0xff] }
  0xc8   :  { %624 = vmatprep.mubr.f32.mxu0 %v242_v17  ;;  %v171_v17 = vmul.f32 %v9380_v18, %v91_v6  ;;  %v253_v21 = vmul.f32 %v9382_v20, %v92_v14  ;;  %v9524_v6 = vld [vmem:[#allocation7 + $0x2c8] sm:$0xff] }
  0xcb   :  { %625 = vmatmul.mubr.f32.gmra.mxu0 %v161_v22  ;;  %v93_v22 = vld [vmem:[#allocation2 + $0x128] sm:$0xff] }
  0xcc   :  { %630 = vmatprep.mubr.f32.mxu0 %v243_v27  ;;  %v172_v27 = vmul.f32 %v9386_v23, %v92_v14  ;;  %v100_v14 = vld [vmem:[#allocation2 + $0x160] sm:$0xff] }
  0xcf   :  { %631 = vmatmul.mubr.f32.gmra.mxu0 %v162_v30  ;;  %v9497_v30 = vld [vmem:[#allocation7 + $0x2f0] sm:$0xff] }
  0xd0   :  { %636 = vmatprep.mubr.f32.mxu0 %v244_v32  ;;  %v254_v32 = vmul.f32 %v9388_v25, %v93_v22  ;;  %1983 = vmatpush1.msra.mxu0 %v9497_v30 }
  0xd3   :  { %637 = vmatmul.mubr.f32.gmra.mxu0 %v163_v35  ;;  %v173_v35 = vmul.f32 %v9392_v29, %v93_v22  ;;  %v101_v22 = vld [vmem:[#allocation2 + $0x168] sm:$0xff] }
  0xd4   :  { %642 = vmatprep.mubr.f32.mxu0 %v245_v37  ;;  %v255_v37 = vmul.f32 %v9394_v31, %v94_v33 }
  0xd7   :  { %643 = vmatmul.mubr.f32.gmra.mxu0 %v164_v40  ;;  %v174_v40 = vmul.f32 %v9398_v34, %v94_v33  ;;  %v262_v33 = vmul.f32 %v9436_v4, %v101_v22 }
  0xd8   :  { %648 = vmatprep.mubr.f32.mxu0 %v246_v42  ;;  %v9504_v42 = vld [vmem:[#allocation7 + $0x2e8] sm:$0xff] }
  0xd9   :  { %1984 = vmatprep.subr.mxu0 %v9504_v42 }
  0xda   :  { %1985 = vmatpush1.msra.mxu0 %v9506_v43 }
  0xdb   :  { %649 = vmatmul.mubr.f32.gmra.mxu0 %v165_v45  ;;  %v256_v45 = vmul.f32 %v9400_v36, %v95_v38 }
  0xdc   :  { %654 = vmatprep.mubr.f32.mxu0 %v247_v47  ;;  %v96_v47 = vld [vmem:[#allocation2 + $0x140] sm:$0xff] }
  0xdd   :  { %v176_v53 = vmul.f32 %v9410_v44, %v96_v47 }
  0xdf   :  { %655 = vmatmul.mubr.f32.gmra.mxu0 %v166_v50  ;;  %v257_v50 = vmul.f32 %v9406_v41, %v96_v47  ;;  %v9544_v47 = vld [vmem:[#allocation7 + $0x2a8] sm:$0xff] }
  0xe0   :  { %660 = vmatprep.mubr.f32.mxu0 %v248_v52  ;;  %v97_v52 = vld [vmem:[#allocation2 + $0x148] sm:$0xff] }
  0xe1   :  { %v258_v58 = vmul.f32 %v9412_v46, %v97_v52 }
  0xe3   :  { %661 = vmatmul.mubr.f32.gmra.mxu0 %v167_v55  ;;  %v9514_v55 = vld [vmem:[#allocation7 + $0x2d8] sm:$0xff] }
  0xe4   :  { %666 = vmatprep.mubr.f32.mxu0 %v249_v57  ;;  %v9516_v57 = vld [vmem:[#allocation7 + $0x2d0] sm:$0xff]  ;;  %1986 = vmatprep.subr.mxu0 %v9514_v55 }
  0xe5   :  { %1987 = vmatpush1.msra.mxu0 %v9516_v57 }
  0xe6   :  { %1988 = vmatprep.subr.mxu0 %v9524_v6 }
  0xe7   :  { %667 = vmatmul.mubr.f32.gmra.mxu0 %v168_v60  ;;  %v98_v60 = vld [vmem:[#allocation2 + $0x150] sm:$0xff] }
  0xe8   :  { %672 = vmatprep.mubr.f32.mxu0 %v250_v62  ;;  %v177_v62 = vmul.f32 %v9416_v49, %v97_v52  ;;  %v259_v63 = vmul.f32 %v9418_v51, %v98_v60  ;;  %v104_v52 = vld [vmem:[#allocation2 + $0x180] sm:$0xff] }
  0xeb   :  { %673 = vmatmul.mubr.f32.gmra.mxu0 %v169_v2  ;;  %v99_v2 = vld [vmem:[#allocation2 + $0x158] sm:$0xff] }
  0xec   :  { %678 = vmatprep.mubr.f32.mxu0 %v251_v5  ;;  %v178_v5 = vmul.f32 %v9422_v54, %v98_v60  ;;  %v105_v60 = vld [vmem:[#allocation2 + $0x188] sm:$0xff] }
  0xef   :  { %679 = vmatmul.mubr.f32.gmra.mxu0 %v170_v9  ;;  %v9526_v9 = vld [vmem:[#allocation7 + $0x2c0] sm:$0xff] }
  0xf0   :  { %684 = vmatprep.mubr.f32.mxu0 %v252_v12  ;;  %v260_v12 = vmul.f32 %v9424_v56, %v99_v2  ;;  %1989 = vmatpush1.msra.mxu0 %v9526_v9 }
  0xf1   :  { %1990 = vmatprep.subr.mxu0 %v9534_v28 }
  0xf3   :  { %685 = vmatmul.mubr.f32.gmra.mxu0 %v171_v17  ;;  %v179_v17 = vmul.f32 %v9428_v59, %v99_v2  ;;  %v9556_v2 = vld [vmem:[#allocation7 + $0x290] sm:$0xff] }
  0xf4   :  { %690 = vmatprep.mubr.f32.mxu0 %v253_v21  ;;  %v261_v21 = vmul.f32 %v9430_v61, %v100_v14 }
  0xf7   :  { %691 = vmatmul.mubr.f32.gmra.mxu0 %v172_v27  ;;  %v180_v27 = vmul.f32 %v9434_v1, %v100_v14 }
  0xf8   :  { %696 = vmatprep.mubr.f32.mxu0 %v254_v32  ;;  %v9536_v32 = vld [vmem:[#allocation7 + $0x2b0] sm:$0xff] }
  0xf9   :  { %1991 = vmatpush1.msra.mxu0 %v9536_v32 }
  0xfa   :  { %1992 = vmatprep.subr.mxu0 %v9544_v47 }
  0xfb   :  { %697 = vmatmul.mubr.f32.gmra.mxu0 %v173_v35  ;;  %v102_v35 = vld [vmem:[#allocation2 + $0x170] sm:$0xff] }
  0xfc   :  { %702 = vmatprep.mubr.f32.mxu0 %v255_v37  ;;  %v181_v37 = vmul.f32 %v9440_v7, %v101_v22  ;;  %v263_v38 = vmul.f32 %v9442_v11, %v102_v35 }
  0xff   :  { %703 = vmatmul.mubr.f32.gmra.mxu0 %v174_v40  ;;  %v103_v40 = vld [vmem:[#allocation2 + $0x178] sm:$0xff] }
 0x100   :  { %708 = vmatprep.mubr.f32.mxu0 %v256_v45  ;;  %v182_v45 = vmul.f32 %v9446_v16, %v102_v35  ;;  %v9566_v35 = vld [vmem:[#allocation7 + $0x280] sm:$0xff] }
 0x103   :  { %709 = vmatmul.mubr.f32.gmra.mxu0 %v175_v48  ;;  %v9546_v48 = vld [vmem:[#allocation7 + $0x2a0] sm:$0xff] }
 0x104   :  { %714 = vmatprep.mubr.f32.mxu0 %v257_v50  ;;  %v264_v50 = vmul.f32 %v9448_v19, %v103_v40  ;;  %1993 = vmatpush1.msra.mxu0 %v9546_v48 }
 0x107   :  { %715 = vmatmul.mubr.f32.gmra.mxu0 %v176_v53  ;;  %v183_v53 = vmul.f32 %v9452_v24, %v103_v40 }
 0x108   :  { %720 = vmatprep.mubr.f32.mxu0 %v258_v58  ;;  %v265_v58 = vmul.f32 %v9357_v26, %v104_v52  ;;  %v185_v26 = vmul.f32 %v9368_v8, %v105_v60  ;;  %v108_v8 = vld [vmem:[#allocation2 + $0x1a0] sm:$0xff] }
 0x10b   :  { %721 = vmatmul.mubr.f32.gmra.mxu0 %v177_v62  ;;  %v184_v62 = vmul.f32 %v9361_v0, %v104_v52  ;;  %v109_v52 = vld [vmem:[#allocation2 + $0x1a8] sm:$0xff] }
 0x10c   :  { %726 = vmatprep.mubr.f32.mxu0 %v259_v63  ;;  %v9554_v63 = vld [vmem:[#allocation7 + $0x298] sm:$0xff] }
 0x10d   :  { %1994 = vmatprep.subr.mxu0 %v9554_v63 }
 0x10e   :  { %1995 = vmatpush1.msra.mxu0 %v9556_v2 }
 0x10f   :  { %727 = vmatmul.mubr.f32.gmra.mxu0 %v178_v5  ;;  %v266_v5 = vmul.f32 %v9363_v3, %v105_v60  ;;  %v9564_v3 = vld [vmem:[#allocation7 + $0x288] sm:$0xff]  ;;  %v9574_v60 = vld [vmem:[#allocation7 + $0x278] sm:$0xff] }
 0x110   :  { %732 = vmatprep.mubr.f32.mxu0 %v260_v12  ;;  %v106_v12 = vld [vmem:[#allocation2 + $0x190] sm:$0xff]  ;;  %1996 = vmatprep.subr.mxu0 %v9564_v3 }
 0x111   :  { %1997 = vmatpush1.msra.mxu0 %v9566_v35 }
 0x112   :  { %1998 = vmatprep.subr.mxu0 %v9574_v60 }
 0x113   :  { %733 = vmatmul.mubr.f32.gmra.mxu0 %v179_v17  ;;  %v267_v17 = vmul.f32 %v9370_v10, %v106_v12 }
 0x114   :  { %738 = vmatprep.mubr.f32.mxu0 %v261_v21  ;;  %v107_v21 = vld [vmem:[#allocation2 + $0x198] sm:$0xff] }
 0x117   :  { %739 = vmatmul.mubr.f32.gmra.mxu0 %v180_v27 }
 0x118   :  { %744 = vmatprep.mubr.f32.mxu0 %v262_v33  ;;  %v186_v33 = vmul.f32 %v9374_v13, %v106_v12  ;;  %v269_v13 = vmul.f32 %v9382_v20, %v108_v8  ;;  %v110_v12 = vld [vmem:[#allocation2 + $0x1b0] sm:$0xff] }
 0x11b   :  { %745 = vmatmul.mubr.f32.gmra.mxu0 %v181_v37  ;;  %v268_v37 = vmul.f32 %v9376_v15, %v107_v21  ;;  %v188_v15 = vmul.f32 %v9386_v23, %v108_v8  ;;  %v271_v23 = vmul.f32 %v9394_v31, %v110_v12 }
 0x11c   :  { %750 = vmatprep.mubr.f32.mxu0 %v263_v38 }
 0x11f   :  { %751 = vmatmul.mubr.f32.gmra.mxu0 %v182_v45  ;;  %v187_v45 = vmul.f32 %v9380_v18, %v107_v21 }
 0x120   :  { %756 = vmatprep.mubr.f32.mxu0 %v264_v50 }
 0x123   :  { %757 = vmatmul.mubr.f32.gmra.mxu0 %v183_v53 }
 0x124   :  { %762 = vmatprep.mubr.f32.mxu0 %v265_v58 }
 0x127   :  { %v476_v14 = vpop.f32.mrf.mxu0  ;;  %763 = vmatmul.mubr.f32.gmra.mxu0 %v184_v62  ;;  %v9576_v62 = vld [vmem:[#allocation7 + $0x270] sm:$0xff] }
 0x128   :  { %768 = vmatprep.mubr.f32.mxu0 %v266_v5  ;;  %v270_v5 = vmul.f32 %v9388_v25, %v109_v52  ;;  %1999 = vmatpush1.msra.mxu0 %v9576_v62  ;;  %v190_v25 = vmul.f32 %v9398_v34, %v110_v12 }
 0x129   :  { %v478_v0 = vpop.f32.mrf.mxu0 }
 0x12a   :  { %v7177_v22 = vpack.i.bf16 %v476_v14, %v478_v0  ;;  %v111_v0 = vld [vmem:[#allocation2 + $0x1b8] sm:$0xff] }
 0x12b   :  { %v482_v27 = vpop.f32.mrf.mxu0  ;;  %769 = vmatmul.mubr.f32.gmra.mxu0 %v185_v26  ;;  %v189_v26 = vmul.f32 %v9392_v29, %v109_v52  ;;  %v9594_v52 = vld [vmem:[#allocation7 + $0x258] sm:$0xff] }
 0x12c   :  { %7178 = vxpose.xlu0.b32.start [1/16] %v7177_v22, 128  ;;  %774 = vmatprep.mubr.f32.mxu0 %v267_v17 }
 0x12d   :  { %v484_v38 = vpop.f32.mrf.mxu0 }
 0x12e   :  { %v7179_v10 = vpack.i.bf16 %v482_v27, %v484_v38  ;;  %v9584_v27 = vld [vmem:[#allocation7 + $0x268] sm:$0xff]  ;;  %v112_v38 = vld [vmem:[#allocation2 + $0x1c0] sm:$0xff] }
 0x12f   :  { %v488_v40 = vpop.f32.mrf.mxu0  ;;  %775 = vmatmul.mubr.f32.gmra.mxu0 %v186_v33  ;;  %v9586_v33 = vld [vmem:[#allocation7 + $0x260] sm:$0xff]  ;;  %2000 = vmatprep.subr.mxu0 %v9584_v27  ;;  %v273_v34 = vmul.f32 %v9406_v41, %v112_v38 }
 0x130   :  { %7180 = vxpose.xlu0.b32.cont [2/16] %v7179_v10, 128  ;;  %780 = vmatprep.mubr.f32.mxu0 %v268_v37  ;;  %v272_v37 = vmul.f32 %v9400_v36, %v111_v0  ;;  %v191_v10 = vmul.f32 %v9404_v39, %v111_v0  ;;  %v192_v36 = vmul.f32 %v9410_v44, %v112_v38 }
 0x131   :  { %v490_v50 = vpop.f32.mrf.mxu0  ;;  %2001 = vmatpush1.msra.mxu0 %v9586_v33 }
 0x132   :  { %v7181_v53 = vpack.i.bf16 %v488_v40, %v490_v50  ;;  %2002 = vmatprep.subr.mxu0 %v9594_v52 }
 0x133   :  { %v494_v58 = vpop.f32.mrf.mxu0  ;;  %781 = vmatmul.mubr.f32.gmra.mxu0 %v187_v45  ;;  %v113_v45 = vld [vmem:[#allocation2 + $0x1c8] sm:$0xff] }
 0x134   :  { %7182 = vxpose.xlu0.b32.cont [3/16] %v7181_v53, 128  ;;  %786 = vmatprep.mubr.f32.mxu0 %v269_v13  ;;  %v9596_v53 = vld [vmem:[#allocation7 + $0x250] sm:$0xff] }
 0x135   :  { %v496_v18 = vpop.f32.mrf.mxu0  ;;  %2003 = vmatpush1.msra.mxu0 %v9596_v53 }
 0x136   :  { %v7183_v20 = vpack.i.bf16 %v494_v58, %v496_v18  ;;  %v274_v58 = vmul.f32 %v9412_v46, %v113_v45  ;;  %v193_v18 = vmul.f32 %v9416_v49, %v113_v45 }
 0x137   :  { %v500_v14 = vpop.f32.mrf.mxu0  ;;  %787 = vmatmul.mubr.f32.gmra.mxu0 %v188_v15  ;;  %v114_v15 = vld [vmem:[#allocation2 + $0x1d0] sm:$0xff] }
 0x138   :  { %7184 = vxpose.xlu0.b32.cont [4/16] %v7183_v20, 128  ;;  %792 = vmatprep.mubr.f32.mxu0 %v270_v5  ;;  %v275_v44 = vmul.f32 %v9418_v51, %v114_v15  ;;  %v115_v20 = vld [vmem:[#allocation2 + $0x1d8] sm:$0xff]  ;;  %v194_v46 = vmul.f32 %v9422_v54, %v114_v15  ;;  %v9624_v15 = vld [vmem:[#allocation7 + $0x228] sm:$0xff] }
 0x139   :  { %v502_v17 = vpop.f32.mrf.mxu0  ;;  %v276_v0 = vmul.f32 %v9424_v56, %v115_v20 }
 0x13a   :  { %v7185_v21 = vpack.i.bf16 %v500_v14, %v502_v17  ;;  %v9606_v17 = vld [vmem:[#allocation7 + $0x240] sm:$0xff] }
 0x13b   :  { %v506_v22 = vpop.f32.mrf.mxu0  ;;  %793 = vmatmul.mubr.f32.gmra.mxu0 %v189_v26 }
 0x13c   :  { %7186 = vxpose.xlu0.b32.cont [5/16] %v7185_v21, 128  ;;  %798 = vmatprep.mubr.f32.mxu0 %v271_v23  ;;  %v9604_v23 = vld [vmem:[#allocation7 + $0x248] sm:$0xff]  ;;  %v116_v21 = vld [vmem:[#allocation2 + $0x1e0] sm:$0xff] }
 0x13d   :  { %v508_v29 = vpop.f32.mrf.mxu0  ;;  %2004 = vmatprep.subr.mxu0 %v9604_v23  ;;  %v277_v54 = vmul.f32 %v9430_v61, %v116_v21  ;;  %v196_v56 = vmul.f32 %v9434_v1, %v116_v21 }
 0x13e   :  { %v7187_v31 = vpack.i.bf16 %v506_v22, %v508_v29  ;;  %2005 = vmatpush1.msra.mxu0 %v9606_v17  ;;  %v117_v29 = vld [vmem:[#allocation2 + $0x1e8] sm:$0xff] }
 0x13f   :  { %v512_v8 = vpop.f32.mrf.mxu0  ;;  %799 = vmatmul.mubr.f32.gmra.mxu0 %v190_v25  ;;  %v195_v25 = vmul.f32 %v9428_v59, %v115_v20 }
 0x140   :  { %7188 = vxpose.xlu0.b32.cont [6/16] %v7187_v31, 128  ;;  %804 = vmatprep.mubr.f32.mxu0 %v272_v37 }
 0x141   :  { %v514_v40 = vpop.f32.mrf.mxu0 }
 0x142   :  { %v7189_v13 = vpack.i.bf16 %v512_v8, %v514_v40  ;;  %v9614_v8 = vld [vmem:[#allocation7 + $0x238] sm:$0xff]  ;;  %v118_v40 = vld [vmem:[#allocation2 + $0x1f0] sm:$0xff] }
 0x143   :  { %v518_v50 = vpop.f32.mrf.mxu0  ;;  %805 = vmatmul.mubr.f32.gmra.mxu0 %v191_v10  ;;  %v9616_v10 = vld [vmem:[#allocation7 + $0x230] sm:$0xff]  ;;  %2006 = vmatprep.subr.mxu0 %v9614_v8  ;;  %v279_v1 = vmul.f32 %v9442_v11, %v118_v40 }
 0x144   :  { %7190 = vxpose.xlu0.b32.cont [7/16] %v7189_v13, 128  ;;  %810 = vmatprep.mubr.f32.mxu0 %v273_v34  ;;  %v278_v34 = vmul.f32 %v9436_v4, %v117_v29  ;;  %v197_v13 = vmul.f32 %v9440_v7, %v117_v29  ;;  %v198_v4 = vmul.f32 %v9446_v16, %v118_v40 }
 0x145   :  { %v520_v39 = vpop.f32.mrf.mxu0  ;;  %2007 = vmatpush1.msra.mxu0 %v9616_v10 }
 0x146   :  { %v7191_v41 = vpack.i.bf16 %v518_v50, %v520_v39  ;;  %2008 = vmatprep.subr.mxu0 %v9624_v15 }
 0x147   :  { %v524_v5 = vpop.f32.mrf.mxu0  ;;  %811 = vmatmul.mubr.f32.gmra.mxu0 %v192_v36  ;;  %v119_v36 = vld [vmem:[#allocation2 + $0x1f8] sm:$0xff] }
 0x148   :  { %7192 = vxpose.xlu0.b32.cont [8/16] %v7191_v41, 128  ;;  %816 = vmatprep.mubr.f32.mxu0 %v274_v58  ;;  %v9626_v41 = vld [vmem:[#allocation7 + $0x220] sm:$0xff] }
 0x149   :  { %v526_v12 = vpop.f32.mrf.mxu0  ;;  %2009 = vmatpush1.msra.mxu0 %v9626_v41 }
 0x14a   :  { %v7193_v14 = vpack.i.bf16 %v524_v5, %v526_v12  ;;  %v280_v5 = vmul.f32 %v9448_v19, %v119_v36 }
 0x14b   :  { %v530_v26 = vpop.f32.mrf.mxu0  ;;  %817 = vmatmul.mubr.f32.gmra.mxu0 %v193_v18 }
 0x14c   :  { %7194 = vxpose.xlu0.b32.cont [9/16] %v7193_v14, 128  ;;  %822 = vmatprep.mubr.f32.mxu0 %v275_v44  ;;  %v199_v44 = vmul.f32 %v9452_v24, %v119_v36  ;;  %v9632_v14 = vld [vmem:[#allocation7 + $0x218] sm:$0xff]  ;;  %v9652_v36 = vld [vmem:[#allocation7 + $0x3e0] sm:$0xff] }
 0x14d   :  { %v532_v49 = vpop.f32.mrf.mxu0  ;;  %2010 = vmatprep.subr.mxu0 %v9632_v14 }
 0x14e   :  { %v7195_v51 = vpack.i.bf16 %v530_v26, %v532_v49  ;;  %v9634_v26 = vld [vmem:[#allocation7 + $0x210] sm:$0xff] }
 0x14f   :  { %v536_v22 = vpop.f32.mrf.mxu0  ;;  %823 = vmatmul.mubr.f32.gmra.mxu0 %v194_v46 }
 0x150   :  { %7196 = vxpose.xlu0.b32.cont [10/16] %v7195_v51, 128  ;;  %828 = vmatprep.mubr.f32.mxu0 %v276_v0  ;;  %v9638_v51 = vld [vmem:[#allocation7 + $0x208] sm:$0xff] }
 0x151   :  { %v538_v37 = vpop.f32.mrf.mxu0  ;;  %2011 = vmatpush1.msra.mxu0 %v9634_v26 }
 0x152   :  { %v7197_v38 = vpack.i.bf16 %v536_v22, %v538_v37  ;;  %v9640_v22 = vld [vmem:[#allocation7 + $0x200] sm:$0xff]  ;;  %2012 = vmatprep.subr.mxu0 %v9638_v51 }
 0x153   :  { %v542_v31 = vpop.f32.mrf.mxu0  ;;  %829 = vmatmul.mubr.f32.gmra.mxu0 %v195_v25 }
 0x154   :  { %7198 = vxpose.xlu0.b32.cont [11/16] %v7197_v38, 128  ;;  %834 = vmatprep.mubr.f32.mxu0 %v277_v54 }
 0x155   :  { %v544_v59 = vpop.f32.mrf.mxu0  ;;  %2013 = vmatpush1.msra.mxu0 %v9640_v22 }
 0x156   :  { %v7199_v61 = vpack.i.bf16 %v542_v31, %v544_v59 }
 0x157   :  { %v548_v45 = vpop.f32.mrf.mxu0  ;;  %835 = vmatmul.mubr.f32.gmra.mxu0 %v196_v56  ;;  %v9644_v56 = vld [vmem:[#allocation7 + $0x3f8] sm:$0xff] }
 0x158   :  { %7200 = vxpose.xlu0.b32.cont [12/16] %v7199_v61, 128  ;;  %840 = vmatprep.mubr.f32.mxu0 %v278_v34  ;;  %v9646_v34 = vld [vmem:[#allocation7 + $0x3f0] sm:$0xff] }
 0x159   :  { %v550_v50 = vpop.f32.mrf.mxu0  ;;  %2014 = vmatprep.subr.mxu0 %v9644_v56 }
 0x15a   :  { %v7201_v58 = vpack.i.bf16 %v548_v45, %v550_v50  ;;  %2015 = vmatpush2.msra.mxu0 %v9646_v34  ;;  %v9650_v50 = vld [vmem:[#allocation7 + $0x3e8] sm:$0xff] }
 0x15b   :  { %v554_v39 = vpop.f32.mrf.mxu0  ;;  %841 = vmatmul.mubr.f32.gmra.mxu0 %v197_v13  ;;  %2016 = vmatprep.subr.mxu0 %v9650_v50 }
 0x15c   :  { %7202 = vxpose.xlu0.b32.cont [13/16] %v7201_v58, 128  ;;  %846 = vmatprep.mubr.f32.mxu0 %v279_v1 }
 0x15d   :  { %v556_v7 = vpop.f32.mrf.mxu0  ;;  %2017 = vmatpush2.msra.mxu0 %v9652_v36 }
 0x15e   :  { %v7203_v18 = vpack.i.bf16 %v554_v39, %v556_v7 }
 0x15f   :  { %v560_v11 = vpop.f32.mrf.mxu0  ;;  %847 = vmatmul.mubr.f32.gmra.mxu0 %v198_v4 }
 0x160   :  { %7204 = vxpose.xlu0.b32.cont [14/16] %v7203_v18, 128  ;;  %852 = vmatprep.mubr.f32.mxu0 %v280_v5 }
 0x161   :  { %v562_v16 = vpop.f32.mrf.mxu0 }
 0x162   :  { %v7205_v12 = vpack.i.bf16 %v560_v11, %v562_v16  ;;  %v9656_v11 = vld [vmem:[#allocation7 + $0x3d8] sm:$0xff] }
 0x163   :  { %v566_v20 = vpop.f32.mrf.mxu0  ;;  %853 = vmatmul.mubr.f32.gmra.mxu0 %v199_v44  ;;  %v9658_v44 = vld [vmem:[#allocation7 + $0x3d0] sm:$0xff]  ;;  %2018 = vmatprep.subr.mxu0 %v9656_v11 }
 0x164   :  { %7206 = vxpose.xlu0.b32.cont [15/16] %v7205_v12, 128  ;;  %2019 = vmatpush2.msra.mxu0 %v9658_v44 }
 0x165   :  { %v568_v19 = vpop.f32.mrf.mxu0 }
 0x166   :  { %v7207_v46 = vpack.i.bf16 %v566_v20, %v568_v19 }
 0x167   :  { %v572_v0 = vpop.f32.mrf.mxu0 }
 0x168   :  { %7208 = vxpose.xlu0.b32.end [16/16] %v7207_v46, 128 }
 0x169   :  { %v574_v24 = vpop.f32.mrf.mxu0 }
 0x16a   :  { %v7289_v49 = vpack.i.bf16 %v572_v0, %v574_v24  ;;  %v9662_v24 = vld [vmem:[#allocation7 + $0x3c8] sm:$0xff] }
 0x16b   :  { %v578_v21 = vpop.f32.mrf.mxu0  ;;  %2020 = vmatprep.subr.mxu0 %v9662_v24 }
 0x16c   :  { %7290 = vxpose.xlu1.b32.start [1/16] %v7289_v49, 128  ;;  %v9664_v49 = vld [vmem:[#allocation7 + $0x3c0] sm:$0xff] }
 0x16d   :  { %v580_v25 = vpop.f32.mrf.mxu0  ;;  %2021 = vmatpush2.msra.mxu0 %v9664_v49 }
 0x16e   :  { %v7291_v54 = vpack.i.bf16 %v578_v21, %v580_v25 }
 0x16f   :  { %v584_v37 = vpop.f32.mrf.mxu0 }
 0x170   :  { %7292 = vxpose.xlu1.b32.cont [2/16] %v7291_v54, 128 }
 0x171   :  { %v586_v29 = vpop.f32.mrf.mxu0 }
 0x172   :  { %v7293_v38 = vpack.i.bf16 %v584_v37, %v586_v29 }
 0x173   :  { %v590_v31 = vpop.f32.mrf.mxu0 }
 0x174   :  { %7294 = vxpose.xlu1.b32.cont [3/16] %v7293_v38, 128 }
 0x175   :  { %v592_v59 = vpop.f32.mrf.mxu0 }
 0x176   :  { %v7295_v40 = vpack.i.bf16 %v590_v31, %v592_v59  ;;  %v9668_v31 = vld [vmem:[#allocation7 + $0x3b8] sm:$0xff]  ;;  %v9670_v59 = vld [vmem:[#allocation7 + $0x3b0] sm:$0xff] }
 0x177   :  { %v596_v61 = vpop.f32.mrf.mxu0  ;;  %2022 = vmatprep.subr.mxu0 %v9668_v31 }
 0x178   :  { %7296 = vxpose.xlu1.b32.cont [4/16] %v7295_v40, 128  ;;  %2023 = vmatpush2.msra.mxu0 %v9670_v59 }
 0x179   :  { %v598_v45 = vpop.f32.mrf.mxu0 }
 0x17a   :  { %v7297_v13 = vpack.i.bf16 %v596_v61, %v598_v45 }
 0x17b   :  { %v602_v1 = vpop.f32.mrf.mxu0 }
 0x17c   :  { %7298 = vxpose.xlu1.b32.cont [5/16] %v7297_v13, 128 }
 0x17d   :  { %v604_v58 = vpop.f32.mrf.mxu0 }
 0x17e   :  { %v7299_v39 = vpack.i.bf16 %v602_v1, %v604_v58 }
 0x17f   :  { %v608_v4 = vpop.f32.mrf.mxu0 }
 0x180   :  { %7300 = vxpose.xlu1.b32.cont [6/16] %v7299_v39, 128  ;;  %v9674_v39 = vld [vmem:[#allocation7 + $0x3a8] sm:$0xff] }
 0x181   :  { %v610_v5 = vpop.f32.mrf.mxu0  ;;  %2024 = vmatprep.subr.mxu0 %v9674_v39 }
 0x182   :  { %v7301_v7 = vpack.i.bf16 %v608_v4, %v610_v5  ;;  %v9676_v4 = vld [vmem:[#allocation7 + $0x3a0] sm:$0xff] }
 0x183   :  { %v614_v18 = vpop.f32.mrf.mxu0  ;;  %2025 = vmatpush2.msra.mxu0 %v9676_v4 }
 0x184   :  { %7302 = vxpose.xlu1.b32.cont [7/16] %v7301_v7, 128 }
 0x185   :  { %v616_v16 = vpop.f32.mrf.mxu0 }
 0x186   :  { %v7303_v12 = vpack.i.bf16 %v614_v18, %v616_v16 }
 0x187   :  { %v620_v20 = vpop.f32.mrf.mxu0 }
 0x188   :  { %7304 = vxpose.xlu1.b32.cont [8/16] %v7303_v12, 128 }
 0x189   :  { %v622_v19 = vpop.f32.mrf.mxu0 }
 0x18a   :  { %v7305_v46 = vpack.i.bf16 %v620_v20, %v622_v19  ;;  %v9680_v19 = vld [vmem:[#allocation7 + $0x398] sm:$0xff] }
 0x18b   :  { %v626_v0 = vpop.f32.mrf.mxu0  ;;  %2026 = vmatprep.subr.mxu0 %v9680_v19 }
 0x18c   :  { %7306 = vxpose.xlu1.b32.cont [9/16] %v7305_v46, 128  ;;  %v9682_v46 = vld [vmem:[#allocation7 + $0x390] sm:$0xff] }
 0x18d   :  { %v628_v21 = vpop.f32.mrf.mxu0  ;;  %2027 = vmatpush2.msra.mxu0 %v9682_v46 }
 0x18e   :  { %v7307_v25 = vpack.i.bf16 %v626_v0, %v628_v21 }
 0x18f   :  { %v632_v54 = vpop.f32.mrf.mxu0 }
 0x190   :  { %7308 = vxpose.xlu1.b32.cont [10/16] %v7307_v25, 128 }
 0x191   :  { %v634_v37 = vpop.f32.mrf.mxu0 }
 0x192   :  { %v7309_v29 = vpack.i.bf16 %v632_v54, %v634_v37 }
 0x193   :  { %v638_v38 = vpop.f32.mrf.mxu0 }
 0x194   :  { %7310 = vxpose.xlu1.b32.cont [11/16] %v7309_v29, 128 }
 0x195   :  { %v640_v40 = vpop.f32.mrf.mxu0 }
 0x196   :  { %v7311_v61 = vpack.i.bf16 %v638_v38, %v640_v40 }
 0x197   :  { %v644_v45 = vpop.f32.mrf.mxu0 }
 0x198   :  { %7312 = vxpose.xlu1.b32.cont [12/16] %v7311_v61, 128 }
 0x199   :  { %v646_v13 = vpop.f32.mrf.mxu0 }
 0x19a   :  { %v7313_v1 = vpack.i.bf16 %v644_v45, %v646_v13  ;;  %v9686_v45 = vld [vmem:[#allocation7 + $0x388] sm:$0xff]  ;;  %v9688_v13 = vld [vmem:[#allocation7 + $0x380] sm:$0xff] }
 0x19b   :  { %v650_v58 = vpop.f32.mrf.mxu0  ;;  %2028 = vmatprep.subr.mxu0 %v9686_v45 }
 0x19c   :  { %7314 = vxpose.xlu1.b32.cont [13/16] %v7313_v1, 128  ;;  %2029 = vmatpush2.msra.mxu0 %v9688_v13 }
 0x19d   :  { %v652_v5 = vpop.f32.mrf.mxu0 }
 0x19e   :  { %v7315_v7 = vpack.i.bf16 %v650_v58, %v652_v5 }
 0x19f   :  { %v656_v18 = vpop.f32.mrf.mxu0 }
 0x1a0   :  { %7316 = vxpose.xlu1.b32.cont [14/16] %v7315_v7, 128 }
 0x1a1   :  { %v658_v16 = vpop.f32.mrf.mxu0 }
 0x1a2   :  { %v7317_v12 = vpack.i.bf16 %v656_v18, %v658_v16 }
 0x1a3   :  { %v662_v20 = vpop.f32.mrf.mxu0 }
 0x1a4   :  { %7318 = vxpose.xlu1.b32.cont [15/16] %v7317_v12, 128 }
 0x1a5   :  { %v664_v0 = vpop.f32.mrf.mxu0 }
 0x1a6   :  { %v7319_v21 = vpack.i.bf16 %v662_v20, %v664_v0 }
 0x1a7   :  { %v668_v25 = vpop.f32.mrf.mxu0 }
 0x1a8   :  { %v7209_v54 = vpop.trf.xlu0  ;;  %7320 = vxpose.xlu1.b32.end [16/16] %v7319_v21, 128 }
 0x1a9   :  { %v670_v37 = vpop.f32.mrf.mxu0  ;;  %v7210_v29 = vunpack.i.l.bf16 %v7209_v54  ;;  %v7213_v38 = vunpack.i.h.bf16 %v7209_v54  ;;  %v9697_v54 = vld [vmem:[#allocation7 + $0x378] sm:$0xff] }
 0x1aa   :  { %v7401_v40 = vpack.i.bf16 %v668_v25, %v670_v37  ;;  %2030 = vmatprep.subr.mxu0 %v9697_v54 }
 0x1ab   :  { %v674_v61 = vpop.f32.mrf.mxu0  ;;  %1179 = vmatprep.mubr.f32.mxu1 %v7210_v29 }
 0x1ac   :  { %v7214_v1 = vpop.trf.xlu0  ;;  %1180 = vmatmul.mubr.f32.vlgmr.msra.gmra.mxu1 %v7213_v38  ;;  %7402 = vxpose.xlu0.b32.start [1/16] %v7401_v40, 128 }
 0x1ad   :  { %v676_v58 = vpop.f32.mrf.mxu0  ;;  %v7215_v5 = vunpack.i.l.bf16 %v7214_v1  ;;  %v7218_v7 = vunpack.i.h.bf16 %v7214_v1  ;;  %2688 = vmatpush1.msra.mxu1 %v9497_v30 }
 0x1ae   :  { %v7403_v18 = vpack.i.bf16 %v674_v61, %v676_v58  ;;  %2689 = vmatprep.subr.mxu1 %v9504_v42  ;;  %v9699_v42 = vld [vmem:[#allocation7 + $0x370] sm:$0xff] }
 0x1af   :  { %v680_v16 = vpop.f32.mrf.mxu0  ;;  %1185 = vmatprep.mubr.f32.mxu1 %v7215_v5  ;;  %2690 = vmatpush1.msra.mxu1 %v9506_v43  ;;  %v9709_v5 = vld [vmem:[#allocation7 + $0x368] sm:$0xff] }
 0x1b0   :  { %v7219_v12 = vpop.trf.xlu0  ;;  %1186 = vmatmul.mubr.f32.gmra.mxu1 %v7218_v7  ;;  %7404 = vxpose.xlu0.b32.cont [2/16] %v7403_v18, 128 }
 0x1b1   :  { %v682_v20 = vpop.f32.mrf.mxu0  ;;  %v7220_v0 = vunpack.i.l.bf16 %v7219_v12  ;;  %v7223_v21 = vunpack.i.h.bf16 %v7219_v12  ;;  %2691 = vmatprep.subr.mxu1 %v9514_v55  ;;  %2031 = vmatpush2.msra.mxu0 %v9699_v42 }
 0x1b2   :  { %v7405_v25 = vpack.i.bf16 %v680_v16, %v682_v20  ;;  %2692 = vmatpush1.msra.mxu1 %v9516_v57  ;;  %2032 = vmatprep.subr.mxu0 %v9709_v5 }
 0x1b3   :  { %v686_v30 = vpop.f32.mrf.mxu0  ;;  %1191 = vmatprep.mubr.f32.mxu1 %v7220_v0  ;;  %2693 = vmatprep.subr.mxu1 %v9524_v6 }
 0x1b4   :  { %v7224_v43 = vpop.trf.xlu0  ;;  %1192 = vmatmul.mubr.f32.gmra.mxu1 %v7223_v21  ;;  %7406 = vxpose.xlu0.b32.cont [3/16] %v7405_v25, 128  ;;  %v9721_v25 = vld [vmem:[#allocation7 + $0x358] sm:$0xff] }
 0x1b5   :  { %v688_v37 = vpop.f32.mrf.mxu0  ;;  %v7225_v29 = vunpack.i.l.bf16 %v7224_v43  ;;  %v7228_v38 = vunpack.i.h.bf16 %v7224_v43  ;;  %2694 = vmatpush1.msra.mxu1 %v9526_v9 }
 0x1b6   :  { %v7407_v55 = vpack.i.bf16 %v686_v30, %v688_v37  ;;  %2695 = vmatprep.subr.mxu1 %v9534_v28  ;;  %v9711_v28 = vld [vmem:[#allocation7 + $0x360] sm:$0xff] }
 0x1b7   :  { %v692_v57 = vpop.f32.mrf.mxu0  ;;  %1197 = vmatprep.mubr.f32.mxu1 %v7225_v29  ;;  %2696 = vmatpush1.msra.mxu1 %v9536_v32 }
 0x1b8   :  { %v7229_v6 = vpop.trf.xlu0  ;;  %1198 = vmatmul.mubr.f32.gmra.mxu1 %v7228_v38  ;;  %7408 = vxpose.xlu0.b32.cont [4/16] %v7407_v55, 128 }
 0x1b9   :  { %v694_v40 = vpop.f32.mrf.mxu0  ;;  %v7230_v61 = vunpack.i.l.bf16 %v7229_v6  ;;  %v7233_v1 = vunpack.i.h.bf16 %v7229_v6  ;;  %2697 = vmatprep.subr.mxu1 %v9544_v47  ;;  %2033 = vmatpush2.msra.mxu0 %v9711_v28  ;;  %v9733_v6 = vld [vmem:[#allocation7 + $0x348] sm:$0xff] }
 0x1ba   :  { %v7409_v58 = vpack.i.bf16 %v692_v57, %v694_v40  ;;  %2698 = vmatpush1.msra.mxu1 %v9546_v48  ;;  %2034 = vmatprep.subr.mxu0 %v9721_v25 }
 0x1bb   :  { %v698_v9 = vpop.f32.mrf.mxu0  ;;  %1203 = vmatprep.mubr.f32.mxu1 %v7230_v61  ;;  %2699 = vmatprep.subr.mxu1 %v9554_v63 }
 0x1bc   :  { %v7234_v32 = vpop.trf.xlu0  ;;  %1204 = vmatmul.mubr.f32.gmra.mxu1 %v7233_v1  ;;  %7410 = vxpose.xlu0.b32.cont [5/16] %v7409_v58, 128 }
 0x1bd   :  { %v700_v7 = vpop.f32.mrf.mxu0  ;;  %v7235_v18 = vunpack.i.l.bf16 %v7234_v32  ;;  %v7238_v16 = vunpack.i.h.bf16 %v7234_v32  ;;  %2700 = vmatpush1.msra.mxu1 %v9556_v2 }
 0x1be   :  { %v7411_v47 = vpack.i.bf16 %v698_v9, %v700_v7  ;;  %2701 = vmatprep.subr.mxu1 %v9564_v3  ;;  %v9723_v3 = vld [vmem:[#allocation7 + $0x350] sm:$0xff] }
 0x1bf   :  { %v704_v48 = vpop.f32.mrf.mxu0  ;;  %1209 = vmatprep.mubr.f32.mxu1 %v7235_v18  ;;  %2702 = vmatpush1.msra.mxu1 %v9566_v35  ;;  %v9745_v18 = vld [vmem:[#allocation7 + $0x338] sm:$0xff] }
 0x1c0   :  { %v7239_v63 = vpop.trf.xlu0  ;;  %1210 = vmatmul.mubr.f32.gmra.mxu1 %v7238_v16  ;;  %7412 = vxpose.xlu0.b32.cont [6/16] %v7411_v47, 128 }
 0x1c1   :  { %v706_v12 = vpop.f32.mrf.mxu0  ;;  %v7240_v20 = vunpack.i.l.bf16 %v7239_v63  ;;  %v7243_v0 = vunpack.i.h.bf16 %v7239_v63  ;;  %2703 = vmatprep.subr.mxu1 %v9574_v60  ;;  %2035 = vmatpush2.msra.mxu0 %v9723_v3 }
 0x1c2   :  { %v7413_v21 = vpack.i.bf16 %v704_v48, %v706_v12  ;;  %2704 = vmatpush1.msra.mxu1 %v9576_v62  ;;  %2036 = vmatprep.subr.mxu0 %v9733_v6 }
 0x1c3   :  { %v710_v2 = vpop.f32.mrf.mxu0  ;;  %1215 = vmatprep.mubr.f32.mxu1 %v7240_v20  ;;  %2705 = vmatprep.subr.mxu1 %v9584_v27 }
 0x1c4   :  { %v7244_v35 = vpop.trf.xlu0  ;;  %1216 = vmatmul.mubr.f32.gmra.mxu1 %v7243_v0  ;;  %7414 = vxpose.xlu0.b32.cont [7/16] %v7413_v21, 128  ;;  %v9757_v21 = vld [vmem:[#allocation7 + $0x328] sm:$0xff] }
 0x1c5   :  { %v712_v30 = vpop.f32.mrf.mxu0  ;;  %v7245_v43 = vunpack.i.l.bf16 %v7244_v35  ;;  %v7248_v37 = vunpack.i.h.bf16 %v7244_v35  ;;  %2706 = vmatpush1.msra.mxu1 %v9586_v33 }
 0x1c6   :  { %v7415_v60 = vpack.i.bf16 %v710_v2, %v712_v30  ;;  %2707 = vmatprep.subr.mxu1 %v9594_v52  ;;  %v9735_v52 = vld [vmem:[#allocation7 + $0x340] sm:$0xff] }
 0x1c7   :  { %v716_v62 = vpop.f32.mrf.mxu0  ;;  %1221 = vmatprep.mubr.f32.mxu1 %v7245_v43  ;;  %2708 = vmatpush1.msra.mxu1 %v9596_v53 }
 0x1c8   :  { %v7249_v27 = vpop.trf.xlu0  ;;  %1222 = vmatmul.mubr.f32.gmra.mxu1 %v7248_v37  ;;  %7416 = vxpose.xlu0.b32.cont [8/16] %v7415_v60, 128 }
 0x1c9   :  { %v718_v29 = vpop.f32.mrf.mxu0  ;;  %v7250_v38 = vunpack.i.l.bf16 %v7249_v27  ;;  %v7253_v55 = vunpack.i.h.bf16 %v7249_v27  ;;  %2709 = vmatprep.subr.mxu1 %v9604_v23  ;;  %2037 = vmatpush2.msra.mxu0 %v9735_v52  ;;  %v9769_v27 = vld [vmem:[#allocation7 + $0x318] sm:$0xff] }
 0x1ca   :  { %v7417_v57 = vpack.i.bf16 %v716_v62, %v718_v29  ;;  %2710 = vmatpush1.msra.mxu1 %v9606_v17  ;;  %2038 = vmatprep.subr.mxu0 %v9745_v18 }
 0x1cb   :  { %v722_v33 = vpop.f32.mrf.mxu0  ;;  %1227 = vmatprep.mubr.f32.mxu1 %v7250_v38  ;;  %2711 = vmatprep.subr.mxu1 %v9614_v8 }
 0x1cc   :  { %v7254_v53 = vpop.trf.xlu0  ;;  %1228 = vmatmul.mubr.f32.gmra.mxu1 %v7253_v55  ;;  %7418 = vxpose.xlu0.b32.cont [9/16] %v7417_v57, 128 }
 0x1cd   :  { %v724_v40 = vpop.f32.mrf.mxu0  ;;  %v7255_v61 = vunpack.i.l.bf16 %v7254_v53  ;;  %v7258_v1 = vunpack.i.h.bf16 %v7254_v53  ;;  %2712 = vmatpush1.msra.mxu1 %v9616_v10 }
 0x1ce   :  { %v7419_v23 = vpack.i.bf16 %v722_v33, %v724_v40  ;;  %2713 = vmatprep.subr.mxu1 %v9624_v15  ;;  %v9747_v15 = vld [vmem:[#allocation7 + $0x330] sm:$0xff] }
 0x1cf   :  { %v728_v17 = vpop.f32.mrf.mxu0  ;;  %1233 = vmatprep.mubr.f32.mxu1 %v7255_v61  ;;  %2714 = vmatpush1.msra.mxu1 %v9626_v41  ;;  %v9781_v61 = vld [vmem:[#allocation7 + $0x308] sm:$0xff] }
 0x1d0   :  { %v7259_v8 = vpop.trf.xlu0  ;;  %1234 = vmatmul.mubr.f32.gmra.mxu1 %v7258_v1  ;;  %7420 = vxpose.xlu0.b32.cont [10/16] %v7419_v23, 128 }
 0x1d1   :  { %v730_v58 = vpop.f32.mrf.mxu0  ;;  %v7260_v9 = vunpack.i.l.bf16 %v7259_v8  ;;  %v7263_v32 = vunpack.i.h.bf16 %v7259_v8  ;;  %2715 = vmatprep.subr.mxu1 %v9632_v14  ;;  %2039 = vmatpush2.msra.mxu0 %v9747_v15  ;;  %v8969_v8 = vld [vmem:[#allocation7 + $0xf8] sm:$0xff] }
 0x1d2   :  { %v7421_v7 = vpack.i.bf16 %v728_v17, %v730_v58  ;;  %2716 = vmatpush1.msra.mxu1 %v9634_v26  ;;  %2040 = vmatprep.subr.mxu0 %v9757_v21  ;;  %v314_v17 = vld [vmem:[#allocation7 + $0x300] sm:$0xff] }
 0x1d3   :  { %v734_v10 = vpop.f32.mrf.mxu0  ;;  %1239 = vmatprep.mubr.f32.mxu1 %v7260_v9  ;;  %2717 = vmatprep.subr.mxu1 %v9638_v51 }
 0x1d4   :  { %v7264_v41 = vpop.trf.xlu0  ;;  %1240 = vmatmul.mubr.f32.gmra.mxu1 %v7263_v32  ;;  %7422 = vxpose.xlu0.b32.cont [11/16] %v7421_v7, 128 }
 0x1d5   :  { %v736_v16 = vpop.f32.mrf.mxu0  ;;  %v7265_v47 = vunpack.i.l.bf16 %v7264_v41  ;;  %v7268_v48 = vunpack.i.h.bf16 %v7264_v41  ;;  %2718 = vmatpush1.msra.mxu1 %v9640_v22 }
 0x1d6   :  { %v7423_v14 = vpack.i.bf16 %v734_v10, %v736_v16  ;;  %2719 = vmatprep.subr.mxu1 %v9644_v56  ;;  %v9759_v56 = vld [vmem:[#allocation7 + $0x320] sm:$0xff] }
 0x1d7   :  { %v740_v26 = vpop.f32.mrf.mxu0  ;;  %1245 = vmatprep.mubr.f32.mxu1 %v7265_v47  ;;  %2720 = vmatpush2.msra.mxu1 %v9646_v34 }
 0x1d8   :  { %v7269_v51 = vpop.trf.xlu0  ;;  %1246 = vmatmul.mubr.f32.gmra.mxu1 %v7268_v48  ;;  %7424 = vxpose.xlu0.b32.cont [12/16] %v7423_v14, 128 }
 0x1d9   :  { %v742_v63 = vpop.f32.mrf.mxu0  ;;  %v7270_v12 = vunpack.i.l.bf16 %v7269_v51  ;;  %v7273_v20 = vunpack.i.h.bf16 %v7269_v51  ;;  %2721 = vmatprep.subr.mxu1 %v9650_v50  ;;  %2041 = vmatpush2.msra.mxu0 %v9759_v56 }
 0x1da   :  { %v7425_v0 = vpack.i.bf16 %v740_v26, %v742_v63  ;;  %2722 = vmatpush2.msra.mxu1 %v9652_v36  ;;  %2042 = vmatprep.subr.mxu0 %v9769_v27 }
 0x1db   :  { %v746_v22 = vpop.f32.mrf.mxu0  ;;  %1251 = vmatprep.mubr.f32.mxu1 %v7270_v12  ;;  %2723 = vmatprep.subr.mxu1 %v9656_v11 }
 0x1dc   :  { %v7274_v34 = vpop.trf.xlu0  ;;  %1252 = vmatmul.mubr.f32.gmra.mxu1 %v7273_v20  ;;  %7426 = vxpose.xlu0.b32.cont [13/16] %v7425_v0, 128 }
 0x1dd   :  { %v748_v2 = vpop.f32.mrf.mxu0  ;;  %v7275_v35 = vunpack.i.l.bf16 %v7274_v34  ;;  %v7278_v30 = vunpack.i.h.bf16 %v7274_v34  ;;  %2724 = vmatpush2.msra.mxu1 %v9658_v44 }
 0x1de   :  { %v7427_v50 = vpack.i.bf16 %v746_v22, %v748_v2  ;;  %2725 = vmatprep.subr.mxu1 %v9662_v24  ;;  %v9771_v24 = vld [vmem:[#allocation7 + $0x310] sm:$0xff] }
 0x1df   :  { %v752_v36 = vpop.f32.mrf.mxu0  ;;  %1257 = vmatprep.mubr.f32.mxu1 %v7275_v35  ;;  %2726 = vmatpush2.msra.mxu1 %v9664_v49 }
 0x1e0   :  { %v7279_v11 = vpop.trf.xlu0  ;;  %1258 = vmatmul.mubr.f32.gmra.mxu1 %v7278_v30  ;;  %7428 = vxpose.xlu0.b32.cont [14/16] %v7427_v50, 128 }
 0x1e1   :  { %v754_v43 = vpop.f32.mrf.mxu0  ;;  %v7280_v37 = vunpack.i.l.bf16 %v7279_v11  ;;  %v7283_v60 = vunpack.i.h.bf16 %v7279_v11  ;;  %2727 = vmatprep.subr.mxu1 %v9668_v31  ;;  %2043 = vmatpush2.msra.mxu0 %v9771_v24 }
 0x1e2   :  { %v7429_v62 = vpack.i.bf16 %v752_v36, %v754_v43  ;;  %2728 = vmatpush2.msra.mxu1 %v9670_v59  ;;  %2044 = vmatprep.subr.mxu0 %v9781_v61 }
 0x1e3   :  { %v758_v44 = vpop.f32.mrf.mxu0  ;;  %1263 = vmatprep.mubr.f32.mxu1 %v7280_v37  ;;  %2729 = vmatprep.subr.mxu1 %v9674_v39 }
 0x1e4   :  { %v7284_v49 = vpop.trf.xlu0  ;;  %1264 = vmatmul.mubr.f32.gmra.mxu1 %v7283_v60  ;;  %7430 = vxpose.xlu0.b32.cont [15/16] %v7429_v62, 128 }
 0x1e5   :  { %v760_v29 = vpop.f32.mrf.mxu0  ;;  %v7285_v38 = vunpack.i.l.bf16 %v7284_v49  ;;  %v7288_v55 = vunpack.i.h.bf16 %v7284_v49  ;;  %2730 = vmatpush2.msra.mxu1 %v9676_v4  ;;  %2045 = vmatpush2.msra.mxu0 %v314_v17 }
 0x1e6   :  { %v7431_v31 = vpack.i.bf16 %v758_v44, %v760_v29  ;;  %2731 = vmatprep.subr.mxu1 %v9680_v19  ;;  %3684 = vmatprep.subr.mxu0 %v8969_v8 }
 0x1e7   :  { %v764_v59 = vpop.f32.mrf.mxu0  ;;  %1269 = vmatprep.mubr.f32.mxu1 %v7285_v38  ;;  %2732 = vmatpush2.msra.mxu1 %v9682_v46 }
 0x1e8   :  { %1270 = vmatmul.mubr.f32.gmra.mxu1 %v7288_v55  ;;  %v7321_v39 = vpop.trf.xlu1  ;;  %7432 = vxpose.xlu0.b32.end [16/16] %v7431_v31, 128 }
 0x1e9   :  { %v766_v57 = vpop.f32.mrf.mxu0  ;;  %v7322_v33 = vunpack.i.l.bf16 %v7321_v39  ;;  %v7325_v53 = vunpack.i.h.bf16 %v7321_v39  ;;  %2733 = vmatprep.subr.mxu1 %v9686_v45 }
 0x1ea   :  { %v7513_v40 = vpack.i.bf16 %v764_v59, %v766_v57  ;;  %2734 = vmatpush2.msra.mxu1 %v9688_v13 }
 0x1eb   :  { %v770_v4 = vpop.f32.mrf.mxu0  ;;  %1275 = vmatprep.mubr.f32.mxu1 %v7322_v33  ;;  %2735 = vmatprep.subr.mxu1 %v9697_v54 }
 0x1ec   :  { %v7326_v19 = vpop.trf.xlu1  ;;  %1276 = vmatmul.mubr.f32.gmra.mxu1 %v7325_v53  ;;  %7514 = vxpose.xlu1.b32.start [1/16] %v7513_v40, 128 }
 0x1ed   :  { %v772_v46 = vpop.f32.mrf.mxu0  ;;  %v7327_v1 = vunpack.i.l.bf16 %v7326_v19  ;;  %v7330_v23 = vunpack.i.h.bf16 %v7326_v19  ;;  %2736 = vmatpush2.msra.mxu1 %v9699_v42 }
 0x1ee   :  { %v7515_v45 = vpack.i.bf16 %v770_v4, %v772_v46  ;;  %2737 = vmatprep.subr.mxu1 %v9709_v5 }
 0x1ef   :  { %v776_v13 = vpop.f32.mrf.mxu0  ;;  %1281 = vmatprep.mubr.f32.mxu1 %v7327_v1  ;;  %2738 = vmatpush2.msra.mxu1 %v9711_v28 }
 0x1f0   :  { %v7331_v54 = vpop.trf.xlu1  ;;  %1282 = vmatmul.mubr.f32.gmra.mxu1 %v7330_v23  ;;  %7516 = vxpose.xlu1.b32.cont [2/16] %v7515_v45, 128 }
 0x1f1   :  { %v778_v58 = vpop.f32.mrf.mxu0  ;;  %v7332_v9 = vunpack.i.l.bf16 %v7331_v54  ;;  %v7335_v32 = vunpack.i.h.bf16 %v7331_v54  ;;  %2739 = vmatprep.subr.mxu1 %v9721_v25 }
 0x1f2   :  { %v7517_v7 = vpack.i.bf16 %v776_v13, %v778_v58  ;;  %2740 = vmatpush2.msra.mxu1 %v9723_v3 }
 0x1f3   :  { %v782_v42 = vpop.f32.mrf.mxu0  ;;  %1287 = vmatprep.mubr.f32.mxu1 %v7332_v9  ;;  %2741 = vmatprep.subr.mxu1 %v9733_v6 }
 0x1f4   :  { %v7336_v5 = vpop.trf.xlu1  ;;  %1288 = vmatmul.mubr.f32.gmra.mxu1 %v7335_v32  ;;  %7518 = vxpose.xlu1.b32.cont [3/16] %v7517_v7, 128 }
 0x1f5   :  { %v784_v10 = vpop.f32.mrf.mxu0  ;;  %v7337_v41 = vunpack.i.l.bf16 %v7336_v5  ;;  %v7340_v16 = vunpack.i.h.bf16 %v7336_v5  ;;  %2742 = vmatpush2.msra.mxu1 %v9735_v52 }
 0x1f6   :  { %v7519_v47 = vpack.i.bf16 %v782_v42, %v784_v10  ;;  %2743 = vmatprep.subr.mxu1 %v9745_v18 }
 0x1f7   :  { %v788_v48 = vpop.f32.mrf.mxu0  ;;  %1293 = vmatprep.mubr.f32.mxu1 %v7337_v41  ;;  %2744 = vmatpush2.msra.mxu1 %v9747_v15 }
 0x1f8   :  { %v7341_v28 = vpop.trf.xlu1  ;;  %1294 = vmatmul.mubr.f32.gmra.mxu1 %v7340_v16  ;;  %7520 = vxpose.xlu1.b32.cont [4/16] %v7519_v47, 128 }
 0x1f9   :  { %v790_v25 = vpop.f32.mrf.mxu0  ;;  %v7342_v3 = vunpack.i.l.bf16 %v7341_v28  ;;  %v7345_v14 = vunpack.i.h.bf16 %v7341_v28  ;;  %2745 = vmatprep.subr.mxu1 %v9757_v21 }
 0x1fa   :  { %v7521_v26 = vpack.i.bf16 %v788_v48, %v790_v25  ;;  %2746 = vmatpush2.msra.mxu1 %v9759_v56 }
 0x1fb   :  { %v794_v51 = vpop.f32.mrf.mxu0  ;;  %1299 = vmatprep.mubr.f32.mxu1 %v7342_v3  ;;  %2747 = vmatprep.subr.mxu1 %v9769_v27 }
 0x1fc   :  { %v7346_v6 = vpop.trf.xlu1  ;;  %1300 = vmatmul.mubr.f32.gmra.mxu1 %v7345_v14  ;;  %7522 = vxpose.xlu1.b32.cont [5/16] %v7521_v26, 128 }
 0x1fd   :  { %v796_v52 = vpop.f32.mrf.mxu0  ;;  %v7347_v18 = vunpack.i.l.bf16 %v7346_v6  ;;  %v7350_v63 = vunpack.i.h.bf16 %v7346_v6  ;;  %2748 = vmatpush2.msra.mxu1 %v9771_v24 }
 0x1fe   :  { %v7523_v12 = vpack.i.bf16 %v794_v51, %v796_v52  ;;  %2749 = vmatprep.subr.mxu1 %v9781_v61 }
 0x1ff   :  { %v800_v20 = vpop.f32.mrf.mxu0  ;;  %1305 = vmatprep.mubr.f32.mxu1 %v7347_v18  ;;  %2750 = vmatpush2.msra.mxu1 %v314_v17 }
 0x200   :  { %v7351_v15 = vpop.trf.xlu1  ;;  %1306 = vmatmul.mubr.f32.gmra.mxu1 %v7350_v63  ;;  %7524 = vxpose.xlu1.b32.cont [6/16] %v7523_v12, 128 }
 0x201   :  { %v802_v0 = vpop.f32.mrf.mxu0  ;;  %v7352_v22 = vunpack.i.l.bf16 %v7351_v15  ;;  %v7355_v21 = vunpack.i.h.bf16 %v7351_v15  ;;  %4389 = vmatprep.subr.mxu1 %v8969_v8 }
 0x202   :  { %v7525_v56 = vpack.i.bf16 %v800_v20, %v802_v0 }
 0x203   :  { %v806_v34 = vpop.f32.mrf.mxu0  ;;  %1311 = vmatprep.mubr.f32.mxu1 %v7352_v22 }
 0x204   :  { %v7356_v2 = vpop.trf.xlu1  ;;  %1312 = vmatmul.mubr.f32.gmra.mxu1 %v7355_v21  ;;  %7526 = vxpose.xlu1.b32.cont [7/16] %v7525_v56, 128 }
 0x205   :  { %v808_v35 = vpop.f32.mrf.mxu0  ;;  %v7357_v30 = vunpack.i.l.bf16 %v7356_v2  ;;  %v7360_v50 = vunpack.i.h.bf16 %v7356_v2 }
 0x206   :  { %v7527_v36 = vpack.i.bf16 %v806_v34, %v808_v35 }
 0x207   :  { %v812_v11 = vpop.f32.mrf.mxu0  ;;  %1317 = vmatprep.mubr.f32.mxu1 %v7357_v30 }
 0x208   :  { %v7361_v43 = vpop.trf.xlu1  ;;  %1318 = vmatmul.mubr.f32.gmra.mxu1 %v7360_v50  ;;  %7528 = vxpose.xlu1.b32.cont [8/16] %v7527_v36, 128 }
 0x209   :  { %v814_v37 = vpop.f32.mrf.mxu0  ;;  %v7362_v60 = vunpack.i.l.bf16 %v7361_v43  ;;  %v7365_v62 = vunpack.i.h.bf16 %v7361_v43 }
 0x20a   :  { %v7529_v44 = vpack.i.bf16 %v812_v11, %v814_v37 }
 0x20b   :  { %v818_v27 = vpop.f32.mrf.mxu0  ;;  %1323 = vmatprep.mubr.f32.mxu1 %v7362_v60 }
 0x20c   :  { %v7366_v24 = vpop.trf.xlu1  ;;  %1324 = vmatmul.mubr.f32.gmra.mxu1 %v7365_v62  ;;  %7530 = vxpose.xlu1.b32.cont [9/16] %v7529_v44, 128 }
 0x20d   :  { %v820_v49 = vpop.f32.mrf.mxu0  ;;  %v7367_v29 = vunpack.i.l.bf16 %v7366_v24  ;;  %v7370_v38 = vunpack.i.h.bf16 %v7366_v24 }
 0x20e   :  { %v7531_v55 = vpack.i.bf16 %v818_v27, %v820_v49 }
 0x20f   :  { %v824_v31 = vpop.f32.mrf.mxu0  ;;  %1329 = vmatprep.mubr.f32.mxu1 %v7367_v29 }
 0x210   :  { %v7371_v59 = vpop.trf.xlu1  ;;  %1330 = vmatmul.mubr.f32.gmra.mxu1 %v7370_v38  ;;  %7532 = vxpose.xlu1.b32.cont [10/16] %v7531_v55, 128 }
 0x211   :  { %v826_v39 = vpop.f32.mrf.mxu0  ;;  %v7372_v57 = vunpack.i.l.bf16 %v7371_v59  ;;  %v7375_v33 = vunpack.i.h.bf16 %v7371_v59 }
 0x212   :  { %v7533_v53 = vpack.i.bf16 %v824_v31, %v826_v39 }
 0x213   :  { %v830_v40 = vpop.f32.mrf.mxu0  ;;  %1335 = vmatprep.mubr.f32.mxu1 %v7372_v57 }
 0x214   :  { %v7376_v4 = vpop.trf.xlu1  ;;  %1336 = vmatmul.mubr.f32.gmra.mxu1 %v7375_v33  ;;  %7534 = vxpose.xlu1.b32.cont [11/16] %v7533_v53, 128 }
 0x215   :  { %v832_v61 = vpop.f32.mrf.mxu0  ;;  %v7377_v19 = vunpack.i.l.bf16 %v7376_v4  ;;  %v7380_v46 = vunpack.i.h.bf16 %v7376_v4 }
 0x216   :  { %v7535_v1 = vpack.i.bf16 %v830_v40, %v832_v61 }
 0x217   :  { %v836_v23 = vpop.f32.mrf.mxu0  ;;  %1341 = vmatprep.mubr.f32.mxu1 %v7377_v19 }
 0x218   :  { %v7381_v17 = vpop.trf.xlu1  ;;  %1342 = vmatmul.mubr.f32.gmra.mxu1 %v7380_v46  ;;  %7536 = vxpose.xlu1.b32.cont [12/16] %v7535_v1, 128 }
 0x219   :  { %v838_v45 = vpop.f32.mrf.mxu0  ;;  %v7382_v13 = vunpack.i.l.bf16 %v7381_v17  ;;  %v7385_v8 = vunpack.i.h.bf16 %v7381_v17 }
 0x21a   :  { %v7537_v54 = vpack.i.bf16 %v836_v23, %v838_v45 }
 0x21b   :  { %v842_v58 = vpop.f32.mrf.mxu0  ;;  %1347 = vmatprep.mubr.f32.mxu1 %v7382_v13 }
 0x21c   :  { %v7386_v9 = vpop.trf.xlu1  ;;  %1348 = vmatmul.mubr.f32.gmra.mxu1 %v7385_v8  ;;  %7538 = vxpose.xlu1.b32.cont [13/16] %v7537_v54, 128 }
 0x21d   :  { %v844_v32 = vpop.f32.mrf.mxu0  ;;  %v7387_v7 = vunpack.i.l.bf16 %v7386_v9  ;;  %v7390_v42 = vunpack.i.h.bf16 %v7386_v9 }
 0x21e   :  { %v7539_v5 = vpack.i.bf16 %v842_v58, %v844_v32 }
 0x21f   :  { %v848_v10 = vpop.f32.mrf.mxu0  ;;  %1353 = vmatprep.mubr.f32.mxu1 %v7387_v7 }
 0x220   :  { %v7391_v41 = vpop.trf.xlu1  ;;  %1354 = vmatmul.mubr.f32.gmra.mxu1 %v7390_v42  ;;  %7540 = vxpose.xlu1.b32.cont [14/16] %v7539_v5, 128 }
 0x221   :  { %v850_v16 = vpop.f32.mrf.mxu0  ;;  %v7392_v47 = vunpack.i.l.bf16 %v7391_v41  ;;  %v7395_v48 = vunpack.i.h.bf16 %v7391_v41 }
 0x222   :  { %v7541_v28 = vpack.i.bf16 %v848_v10, %v850_v16  ;;  %v9799_v10 = vld [vmem:[#allocation5 + $0x200] sm:$0xff] }
 0x223   :  { %v854_v25 = vpop.f32.mrf.mxu0  ;;  %1359 = vmatprep.mubr.f32.mxu1 %v7392_v47  ;;  %v9801_v16 = vld [vmem:[#allocation5 + $0x280] sm:$0xff] }
 0x224   :  { %v7396_v3 = vpop.trf.xlu1  ;;  %1360 = vmatmul.mubr.f32.gmra.mxu1 %v7395_v48  ;;  %7542 = vxpose.xlu1.b32.cont [15/16] %v7541_v28, 128 }
 0x225   :  { %v856_v14 = vpop.f32.mrf.mxu0  ;;  %v7397_v26 = vunpack.i.l.bf16 %v7396_v3  ;;  %v7400_v51 = vunpack.i.h.bf16 %v7396_v3 }
 0x226   :  { %v7543_v6 = vpack.i.bf16 %v854_v25, %v856_v14 }
 0x227   :  { %1365 = vmatprep.mubr.f32.mxu1 %v7397_v26 }
 0x228   :  { %1366 = vmatmul.mubr.f32.gmra.mxu1 %v7400_v51  ;;  %v7433_v52 = vpop.trf.xlu0  ;;  %7544 = vxpose.xlu1.b32.end [16/16] %v7543_v6, 128  ;;  %v9807_v6 = vld [vmem:[#allocation5 + $0x208] sm:$0xff] }
 0x229   :  { %v7434_v18 = vunpack.i.l.bf16 %v7433_v52  ;;  %v7437_v63 = vunpack.i.h.bf16 %v7433_v52 }
 0x22b   :  { %1371 = vmatprep.mubr.f32.mxu1 %v7434_v18 }
 0x22c   :  { %v7438_v12 = vpop.trf.xlu0  ;;  %1372 = vmatmul.mubr.f32.gmra.mxu1 %v7437_v63  ;;  %v9809_v63 = vld [vmem:[#allocation5 + $0x288] sm:$0xff] }
 0x22d   :  { %v7439_v20 = vunpack.i.l.bf16 %v7438_v12  ;;  %v7442_v15 = vunpack.i.h.bf16 %v7438_v12 }
 0x22f   :  { %1377 = vmatprep.mubr.f32.mxu1 %v7439_v20 }
 0x230   :  { %v7443_v0 = vpop.trf.xlu0  ;;  %1378 = vmatmul.mubr.f32.gmra.mxu1 %v7442_v15 }
 0x231   :  { %v7444_v22 = vunpack.i.l.bf16 %v7443_v0  ;;  %v7447_v21 = vunpack.i.h.bf16 %v7443_v0 }
 0x233   :  { %1383 = vmatprep.mubr.f32.mxu1 %v7444_v22 }
 0x234   :  { %v7448_v56 = vpop.trf.xlu0  ;;  %1384 = vmatmul.mubr.f32.gmra.mxu1 %v7447_v21 }
 0x235   :  { %v7449_v34 = vunpack.i.l.bf16 %v7448_v56  ;;  %v7452_v2 = vunpack.i.h.bf16 %v7448_v56 }
 0x237   :  { %1389 = vmatprep.mubr.f32.mxu1 %v7449_v34 }
 0x238   :  { %v7453_v35 = vpop.trf.xlu0  ;;  %1390 = vmatmul.mubr.f32.gmra.mxu1 %v7452_v2 }
 0x239   :  { %v7454_v30 = vunpack.i.l.bf16 %v7453_v35  ;;  %v7457_v50 = vunpack.i.h.bf16 %v7453_v35  ;;  %v9815_v35 = vld [vmem:[#allocation5 + $0x210] sm:$0xff] }
 0x23b   :  { %1395 = vmatprep.mubr.f32.mxu1 %v7454_v30 }
 0x23c   :  { %v7458_v36 = vpop.trf.xlu0  ;;  %1396 = vmatmul.mubr.f32.gmra.mxu1 %v7457_v50 }
 0x23d   :  { %v7459_v11 = vunpack.i.l.bf16 %v7458_v36  ;;  %v7462_v43 = vunpack.i.h.bf16 %v7458_v36  ;;  %v9817_v36 = vld [vmem:[#allocation5 + $0x290] sm:$0xff] }
 0x23f   :  { %1401 = vmatprep.mubr.f32.mxu1 %v7459_v11 }
 0x240   :  { %v7463_v37 = vpop.trf.xlu0  ;;  %1402 = vmatmul.mubr.f32.gmra.mxu1 %v7462_v43 }
 0x241   :  { %v7464_v60 = vunpack.i.l.bf16 %v7463_v37  ;;  %v7467_v62 = vunpack.i.h.bf16 %v7463_v37 }
 0x243   :  { %1407 = vmatprep.mubr.f32.mxu1 %v7464_v60 }
 0x244   :  { %v7468_v44 = vpop.trf.xlu0  ;;  %1408 = vmatmul.mubr.f32.gmra.mxu1 %v7467_v62  ;;  %v8970_v62 = vld [vmem:[#allocation7 + $0xf0] sm:$0xff] }
 0x245   :  { %v7469_v27 = vunpack.i.l.bf16 %v7468_v44  ;;  %v7472_v24 = vunpack.i.h.bf16 %v7468_v44 }
 0x247   :  { %1413 = vmatprep.mubr.f32.mxu1 %v7469_v27 }
 0x248   :  { %v7473_v49 = vpop.trf.xlu0  ;;  %1414 = vmatmul.mubr.f32.gmra.mxu1 %v7472_v24 }
 0x249   :  { %v7474_v29 = vunpack.i.l.bf16 %v7473_v49  ;;  %v7477_v38 = vunpack.i.h.bf16 %v7473_v49  ;;  %v8971_v49 = vld [vmem:[#allocation7 + $0xe8] sm:$0xff] }
 0x24b   :  { %1419 = vmatprep.mubr.f32.mxu1 %v7474_v29 }
 0x24c   :  { %v7478_v55 = vpop.trf.xlu0  ;;  %1420 = vmatmul.mubr.f32.gmra.mxu1 %v7477_v38 }
 0x24d   :  { %v7479_v31 = vunpack.i.l.bf16 %v7478_v55  ;;  %v7482_v59 = vunpack.i.h.bf16 %v7478_v55  ;;  %v9823_v55 = vld [vmem:[#allocation5 + $0x218] sm:$0xff] }
 0x24f   :  { %1425 = vmatprep.mubr.f32.mxu1 %v7479_v31 }
 0x250   :  { %v7483_v39 = vpop.trf.xlu0  ;;  %1426 = vmatmul.mubr.f32.gmra.mxu1 %v7482_v59 }
 0x251   :  { %v7484_v57 = vunpack.i.l.bf16 %v7483_v39  ;;  %v7487_v33 = vunpack.i.h.bf16 %v7483_v39  ;;  %v9825_v39 = vld [vmem:[#allocation5 + $0x298] sm:$0xff] }
 0x253   :  { %1431 = vmatprep.mubr.f32.mxu1 %v7484_v57 }
 0x254   :  { %v7488_v53 = vpop.trf.xlu0  ;;  %1432 = vmatmul.mubr.f32.gmra.mxu1 %v7487_v33 }
 0x255   :  { %v7489_v40 = vunpack.i.l.bf16 %v7488_v53  ;;  %v7492_v4 = vunpack.i.h.bf16 %v7488_v53 }
 0x257   :  { %1437 = vmatprep.mubr.f32.mxu1 %v7489_v40 }
 0x258   :  { %v7493_v61 = vpop.trf.xlu0  ;;  %1438 = vmatmul.mubr.f32.gmra.mxu1 %v7492_v4  ;;  %v8972_v4 = vld [vmem:[#allocation7 + $0xe0] sm:$0xff] }
 0x259   :  { %v7494_v19 = vunpack.i.l.bf16 %v7493_v61  ;;  %v7497_v46 = vunpack.i.h.bf16 %v7493_v61 }
 0x25b   :  { %1443 = vmatprep.mubr.f32.mxu1 %v7494_v19 }
 0x25c   :  { %v7498_v1 = vpop.trf.xlu0  ;;  %1444 = vmatmul.mubr.f32.gmra.mxu1 %v7497_v46 }
 0x25d   :  { %v7499_v23 = vunpack.i.l.bf16 %v7498_v1  ;;  %v7502_v17 = vunpack.i.h.bf16 %v7498_v1  ;;  %v8973_v1 = vld [vmem:[#allocation7 + $0xd8] sm:$0xff] }
 0x25f   :  { %1449 = vmatprep.mubr.f32.mxu1 %v7499_v23 }
 0x260   :  { %v7503_v45 = vpop.trf.xlu0  ;;  %1450 = vmatmul.mubr.f32.gmra.mxu1 %v7502_v17 }
 0x261   :  { %v7504_v13 = vunpack.i.l.bf16 %v7503_v45  ;;  %v7507_v8 = vunpack.i.h.bf16 %v7503_v45  ;;  %v9831_v45 = vld [vmem:[#allocation5 + $0x220] sm:$0xff] }
 0x263   :  { %1455 = vmatprep.mubr.f32.mxu1 %v7504_v13 }
 0x264   :  { %v7508_v54 = vpop.trf.xlu0  ;;  %1456 = vmatmul.mubr.f32.gmra.mxu1 %v7507_v8 }
 0x265   :  { %v7509_v58 = vunpack.i.l.bf16 %v7508_v54  ;;  %v7512_v9 = vunpack.i.h.bf16 %v7508_v54  ;;  %v9833_v54 = vld [vmem:[#allocation5 + $0x2a0] sm:$0xff] }
 0x267   :  { %1461 = vmatprep.mubr.f32.mxu1 %v7509_v58 }
 0x268   :  { %1462 = vmatmul.mubr.f32.gmra.mxu1 %v7512_v9  ;;  %v7545_v32 = vpop.trf.xlu1 }
 0x269   :  { %v7546_v7 = vunpack.i.l.bf16 %v7545_v32  ;;  %v7549_v42 = vunpack.i.h.bf16 %v7545_v32 }
 0x26b   :  { %1467 = vmatprep.mubr.f32.mxu1 %v7546_v7 }
 0x26c   :  { %v1181_v5 = vpop.f32.mrf.mxu1  ;;  %v7550_v41 = vpop.trf.xlu1  ;;  %1468 = vmatmul.mubr.f32.gmra.mxu1 %v7549_v42  ;;  %v8974_v42 = vld [vmem:[#allocation7 + $0xd0] sm:$0xff] }
 0x26d   :  { %v7551_v48 = vunpack.i.l.bf16 %v7550_v41  ;;  %v7554_v28 = vunpack.i.h.bf16 %v7550_v41  ;;  %v1598_v25 = vmul.f32 %v9799_v10, %v1181_v5  ;;  %v1854_v26 = vmul.f32 %v9801_v16, %v1181_v5 }
 0x26e   :  { %v1183_v47 = vpop.f32.mrf.mxu1 }
 0x26f   :  { %v1662_v3 = vmul.f32 %v9801_v16, %v1183_v47  ;;  %v1790_v14 = vmul.f32 %v9799_v10, %v1183_v47  ;;  %1473 = vmatprep.mubr.f32.mxu1 %v7551_v48  ;;  %v8975_v48 = vld [vmem:[#allocation7 + $0xc8] sm:$0xff] }
 0x270   :  { %v1187_v51 = vpop.f32.mrf.mxu1  ;;  %v7555_v52 = vpop.trf.xlu1  ;;  %1474 = vmatmul.mubr.f32.gmra.mxu1 %v7554_v28 }
 0x271   :  { %v1726_v18 = vsub.f32 %v1598_v25, %v1662_v3  ;;  %v7556_v20 = vunpack.i.l.bf16 %v7555_v52  ;;  %v1918_v15 = vadd.f32 %v1854_v26, %v1790_v14  ;;  %v7559_v0 = vunpack.i.h.bf16 %v7555_v52  ;;  %v9839_v3 = vld [vmem:[#allocation5 + $0x228] sm:$0xff] }
 0x272   :  { %v1189_v12 = vpop.f32.mrf.mxu1  ;;  %v1599_v22 = vmul.f32 %v9807_v6, %v1187_v51  ;;  %v1855_v34 = vmul.f32 %v9809_v63, %v1187_v51  ;;  %v9841_v51 = vld [vmem:[#allocation5 + $0x2a8] sm:$0xff] }
 0x273   :  { %v1663_v21 = vmul.f32 %v9809_v63, %v1189_v12  ;;  %v1791_v56 = vmul.f32 %v9807_v6, %v1189_v12  ;;  %1479 = vmatprep.mubr.f32.mxu1 %v7556_v20  ;;  %2046 = vmatprep.mubr.f32.mxu0 %v1918_v15  ;;  %v8976_v15 = vld [vmem:[#allocation7 + $0xc0] sm:$0xff] }
 0x274   :  { %v1193_v2 = vpop.f32.mrf.mxu1  ;;  %v7560_v30 = vpop.trf.xlu1  ;;  %2047 = vmatmul.mubr.f32.vlgmr.msra.gmra.mxu0 %v1726_v18  ;;  %1480 = vmatmul.mubr.f32.gmra.mxu1 %v7559_v0 }
 0x275   :  { %v1727_v50 = vsub.f32 %v1599_v22, %v1663_v21  ;;  %v7561_v43 = vunpack.i.l.bf16 %v7560_v30  ;;  %v1919_v37 = vadd.f32 %v1855_v34, %v1791_v56  ;;  %v7564_v60 = vunpack.i.h.bf16 %v7560_v30  ;;  %3685 = vmatpush1.msra.mxu0 %v8970_v62  ;;  %v8977_v56 = vld [vmem:[#allocation7 + $0xb8] sm:$0xff]  ;;  %v9847_v30 = vld [vmem:[#allocation5 + $0x230] sm:$0xff] }
 0x276   :  { %v1195_v11 = vpop.f32.mrf.mxu1  ;;  %v1600_v44 = vmul.f32 %v9815_v35, %v1193_v2  ;;  %3686 = vmatprep.subr.mxu0 %v8971_v49  ;;  %v1856_v29 = vmul.f32 %v9817_v36, %v1193_v2 }
 0x277   :  { %v1664_v27 = vmul.f32 %v9817_v36, %v1195_v11  ;;  %v1792_v24 = vmul.f32 %v9815_v35, %v1195_v11  ;;  %1485 = vmatprep.mubr.f32.mxu1 %v7561_v43  ;;  %2052 = vmatprep.mubr.f32.mxu0 %v1919_v37  ;;  %v9849_v43 = vld [vmem:[#allocation5 + $0x2b0] sm:$0xff] }
 0x278   :  { %v1199_v38 = vpop.f32.mrf.mxu1  ;;  %v7565_v31 = vpop.trf.xlu1  ;;  %2053 = vmatmul.mubr.f32.gmra.mxu0 %v1727_v50  ;;  %1486 = vmatmul.mubr.f32.gmra.mxu1 %v7564_v60 }
 0x279   :  { %v1728_v59 = vsub.f32 %v1600_v44, %v1664_v27  ;;  %v7566_v33 = vunpack.i.l.bf16 %v7565_v31  ;;  %v1920_v53 = vadd.f32 %v1856_v29, %v1792_v24  ;;  %v7569_v40 = vunpack.i.h.bf16 %v7565_v31  ;;  %3687 = vmatpush1.msra.mxu0 %v8972_v4  ;;  %v8978_v27 = vld [vmem:[#allocation7 + $0xb0] sm:$0xff] }
 0x27a   :  { %v1201_v57 = vpop.f32.mrf.mxu1  ;;  %v1601_v61 = vmul.f32 %v9823_v55, %v1199_v38  ;;  %3688 = vmatprep.subr.mxu0 %v8973_v1  ;;  %v1857_v23 = vmul.f32 %v9825_v39, %v1199_v38  ;;  %v8979_v38 = vld [vmem:[#allocation7 + $0xa8] sm:$0xff]  ;;  %v8980_v1 = vld [vmem:[#allocation7 + $0xa0] sm:$0xff] }
 0x27b   :  { %v1665_v19 = vmul.f32 %v9825_v39, %v1201_v57  ;;  %v1793_v46 = vmul.f32 %v9823_v55, %v1201_v57  ;;  %1491 = vmatprep.mubr.f32.mxu1 %v7566_v33  ;;  %2058 = vmatprep.mubr.f32.mxu0 %v1920_v53  ;;  %v9855_v57 = vld [vmem:[#allocation5 + $0x238] sm:$0xff] }
 0x27c   :  { %v1205_v17 = vpop.f32.mrf.mxu1  ;;  %v7570_v13 = vpop.trf.xlu1  ;;  %2059 = vmatmul.mubr.f32.gmra.mxu0 %v1728_v59  ;;  %1492 = vmatmul.mubr.f32.gmra.mxu1 %v7569_v40  ;;  %v9857_v40 = vld [vmem:[#allocation5 + $0x2b8] sm:$0xff] }
 0x27d   :  { %v1729_v8 = vsub.f32 %v1601_v61, %v1665_v19  ;;  %v7571_v9 = vunpack.i.l.bf16 %v7570_v13  ;;  %v1921_v32 = vadd.f32 %v1857_v23, %v1793_v46  ;;  %v7574_v7 = vunpack.i.h.bf16 %v7570_v13  ;;  %3689 = vmatpush1.msra.mxu0 %v8974_v42 }
 0x27e   :  { %v1207_v58 = vpop.f32.mrf.mxu1  ;;  %v1602_v5 = vmul.f32 %v9831_v45, %v1205_v17  ;;  %3690 = vmatprep.subr.mxu0 %v8975_v48  ;;  %v1858_v28 = vmul.f32 %v9833_v54, %v1205_v17 }
 0x27f   :  { %v1666_v41 = vmul.f32 %v9833_v54, %v1207_v58  ;;  %v1794_v47 = vmul.f32 %v9831_v45, %v1207_v58  ;;  %1497 = vmatprep.mubr.f32.mxu1 %v7571_v9  ;;  %2064 = vmatprep.mubr.f32.mxu0 %v1921_v32  ;;  %v9863_v32 = vld [vmem:[#allocation5 + $0x240] sm:$0xff] }
 0x280   :  { %v1211_v25 = vpop.f32.mrf.mxu1  ;;  %v7575_v14 = vpop.trf.xlu1  ;;  %2065 = vmatmul.mubr.f32.gmra.mxu0 %v1729_v8  ;;  %1498 = vmatmul.mubr.f32.gmra.mxu1 %v7574_v7  ;;  %v8981_v8 = vld [vmem:[#allocation7 + $0x98] sm:$0xff] }
 0x281   :  { %v1730_v26 = vsub.f32 %v1602_v5, %v1666_v41  ;;  %v7576_v18 = vunpack.i.l.bf16 %v7575_v14  ;;  %v1922_v12 = vadd.f32 %v1858_v28, %v1794_v47  ;;  %v7579_v20 = vunpack.i.h.bf16 %v7575_v14  ;;  %3691 = vmatpush1.msra.mxu0 %v8976_v15  ;;  %v9865_v5 = vld [vmem:[#allocation5 + $0x2c0] sm:$0xff]  ;;  %v9871_v15 = vld [vmem:[#allocation5 + $0x248] sm:$0xff] }
 0x282   :  { %v1213_v52 = vpop.f32.mrf.mxu1  ;;  %v1603_v0 = vmul.f32 %v9839_v3, %v1211_v25  ;;  %3692 = vmatprep.subr.mxu0 %v8977_v56  ;;  %v1859_v34 = vmul.f32 %v9841_v51, %v1211_v25  ;;  %v8982_v25 = vld [vmem:[#allocation7 + $0x90] sm:$0xff] }
 0x283   :  { %v1667_v22 = vmul.f32 %v9841_v51, %v1213_v52  ;;  %v1795_v21 = vmul.f32 %v9839_v3, %v1213_v52  ;;  %1503 = vmatprep.mubr.f32.mxu1 %v7576_v18  ;;  %2070 = vmatprep.mubr.f32.mxu0 %v1922_v12  ;;  %v8983_v18 = vld [vmem:[#allocation7 + $0x88] sm:$0xff] }
 0x284   :  { %v1217_v2 = vpop.f32.mrf.mxu1  ;;  %v7580_v50 = vpop.trf.xlu1  ;;  %2071 = vmatmul.mubr.f32.gmra.mxu0 %v1730_v26  ;;  %1504 = vmatmul.mubr.f32.gmra.mxu1 %v7579_v20 }
 0x285   :  { %v1731_v11 = vsub.f32 %v1603_v0, %v1667_v22  ;;  %v7581_v60 = vunpack.i.l.bf16 %v7580_v50  ;;  %v1923_v62 = vadd.f32 %v1859_v34, %v1795_v21  ;;  %v7584_v44 = vunpack.i.h.bf16 %v7580_v50  ;;  %3693 = vmatpush1.msra.mxu0 %v8978_v27  ;;  %v9873_v21 = vld [vmem:[#allocation5 + $0x2c8] sm:$0xff] }
 0x286   :  { %v1219_v37 = vpop.f32.mrf.mxu1  ;;  %v1604_v24 = vmul.f32 %v9847_v30, %v1217_v2  ;;  %3694 = vmatprep.subr.mxu0 %v8979_v38  ;;  %v1860_v31 = vmul.f32 %v9849_v43, %v1217_v2 }
 0x287   :  { %v1668_v49 = vmul.f32 %v9849_v43, %v1219_v37  ;;  %v1796_v29 = vmul.f32 %v9847_v30, %v1219_v37  ;;  %1509 = vmatprep.mubr.f32.mxu1 %v7581_v60  ;;  %2076 = vmatprep.mubr.f32.mxu0 %v1923_v62 }
 0x288   :  { %v1223_v59 = vpop.f32.mrf.mxu1  ;;  %v7585_v33 = vpop.trf.xlu1  ;;  %2077 = vmatmul.mubr.f32.gmra.mxu0 %v1731_v11  ;;  %1510 = vmatmul.mubr.f32.gmra.mxu1 %v7584_v44  ;;  %v8984_v11 = vld [vmem:[#allocation7 + $0x80] sm:$0xff]  ;;  %v8985_v44 = vld [vmem:[#allocation7 + $0x78] sm:$0xff] }
 0x289   :  { %v1732_v53 = vsub.f32 %v1604_v24, %v1668_v49  ;;  %v7589_v4 = vunpack.i.h.bf16 %v7585_v33  ;;  %v7586_v19 = vunpack.i.l.bf16 %v7585_v33  ;;  %v1924_v46 = vadd.f32 %v1860_v31, %v1796_v29  ;;  %3695 = vmatpush1.msra.mxu0 %v8980_v1  ;;  %v9879_v49 = vld [vmem:[#allocation5 + $0x250] sm:$0xff] }
 0x28a   :  { %v1225_v61 = vpop.f32.mrf.mxu1  ;;  %v1605_v23 = vmul.f32 %v9855_v57, %v1223_v59  ;;  %3696 = vmatprep.subr.mxu0 %v8981_v8  ;;  %v1861_v58 = vmul.f32 %v9857_v40, %v1223_v59  ;;  %v9881_v31 = vld [vmem:[#allocation5 + $0x2d0] sm:$0xff]  ;;  %v9887_v8 = vld [vmem:[#allocation5 + $0x258] sm:$0xff] }
 0x28b   :  { %v1669_v17 = vmul.f32 %v9857_v40, %v1225_v61  ;;  %v1797_v13 = vmul.f32 %v9855_v57, %v1225_v61  ;;  %1515 = vmatprep.mubr.f32.mxu1 %v7586_v19  ;;  %2082 = vmatprep.mubr.f32.mxu0 %v1924_v46  ;;  %v8986_v61 = vld [vmem:[#allocation7 + $0x70] sm:$0xff] }
 0x28c   :  { %v1229_v9 = vpop.f32.mrf.mxu1  ;;  %v7590_v7 = vpop.trf.xlu1  ;;  %2083 = vmatmul.mubr.f32.gmra.mxu0 %v1732_v53  ;;  %1516 = vmatmul.mubr.f32.gmra.mxu1 %v7589_v4 }
 0x28d   :  { %v1733_v42 = vsub.f32 %v1605_v23, %v1669_v17  ;;  %v7594_v41 = vunpack.i.h.bf16 %v7590_v7  ;;  %v7591_v48 = vunpack.i.l.bf16 %v7590_v7  ;;  %v1925_v28 = vadd.f32 %v1861_v58, %v1797_v13  ;;  %3697 = vmatpush1.msra.mxu0 %v8982_v25  ;;  %v8987_v23 = vld [vmem:[#allocation7 + $0x68] sm:$0xff]  ;;  %v9889_v7 = vld [vmem:[#allocation5 + $0x2d8] sm:$0xff] }
 0x28e   :  { %v1231_v47 = vpop.f32.mrf.mxu1  ;;  %v1606_v14 = vmul.f32 %v9863_v32, %v1229_v9  ;;  %3698 = vmatprep.subr.mxu0 %v8983_v18  ;;  %v1862_v12 = vmul.f32 %v9865_v5, %v1229_v9 }
 0x28f   :  { %v1670_v26 = vmul.f32 %v9865_v5, %v1231_v47  ;;  %v1798_v52 = vmul.f32 %v9863_v32, %v1231_v47  ;;  %1521 = vmatprep.mubr.f32.mxu1 %v7591_v48  ;;  %2088 = vmatprep.mubr.f32.mxu0 %v1925_v28  ;;  %v8988_v28 = vld [vmem:[#allocation7 + $0x60] sm:$0xff] }
 0x290   :  { %v1235_v20 = vpop.f32.mrf.mxu1  ;;  %v7595_v0 = vpop.trf.xlu1  ;;  %2089 = vmatmul.mubr.f32.gmra.mxu0 %v1733_v42  ;;  %1522 = vmatmul.mubr.f32.gmra.mxu1 %v7594_v41 }
 0x291   :  { %v1734_v22 = vsub.f32 %v1606_v14, %v1670_v26  ;;  %v7599_v56 = vunpack.i.h.bf16 %v7595_v0  ;;  %v7596_v2 = vunpack.i.l.bf16 %v7595_v0  ;;  %v1926_v50 = vadd.f32 %v1862_v12, %v1798_v52  ;;  %3699 = vmatpush1.msra.mxu0 %v8984_v11  ;;  %v8989_v52 = vld [vmem:[#allocation7 + $0x58] sm:$0xff] }
 0x292   :  { %v1237_v34 = vpop.f32.mrf.mxu1  ;;  %v1607_v37 = vmul.f32 %v9871_v15, %v1235_v20  ;;  %3700 = vmatprep.subr.mxu0 %v8985_v44  ;;  %v1863_v27 = vmul.f32 %v9873_v21, %v1235_v20  ;;  %v9895_v20 = vld [vmem:[#allocation5 + $0x260] sm:$0xff] }
 0x293   :  { %v1671_v60 = vmul.f32 %v9873_v21, %v1237_v34  ;;  %v1799_v62 = vmul.f32 %v9871_v15, %v1237_v34  ;;  %1527 = vmatprep.mubr.f32.mxu1 %v7596_v2  ;;  %2094 = vmatprep.mubr.f32.mxu0 %v1926_v50 }
 0x294   :  { %v1241_v24 = vpop.f32.mrf.mxu1  ;;  %v7600_v29 = vpop.trf.xlu1  ;;  %2095 = vmatmul.mubr.f32.gmra.mxu0 %v1734_v22  ;;  %1528 = vmatmul.mubr.f32.gmra.mxu1 %v7599_v56  ;;  %v9897_v56 = vld [vmem:[#allocation5 + $0x2e0] sm:$0xff] }
 0x295   :  { %v1735_v38 = vsub.f32 %v1607_v37, %v1671_v60  ;;  %v7604_v59 = vunpack.i.h.bf16 %v7600_v29  ;;  %v7601_v53 = vunpack.i.l.bf16 %v7600_v29  ;;  %v1927_v4 = vadd.f32 %v1863_v27, %v1799_v62  ;;  %3701 = vmatpush1.msra.mxu0 %v8986_v61  ;;  %v8990_v37 = vld [vmem:[#allocation7 + $0x50] sm:$0xff]  ;;  %v8991_v27 = vld [vmem:[#allocation7 + $0x48] sm:$0xff] }
 0x296   :  { %v1243_v33 = vpop.f32.mrf.mxu1  ;;  %v1608_v19 = vmul.f32 %v9879_v49, %v1241_v24  ;;  %3702 = vmatprep.subr.mxu0 %v8987_v23  ;;  %v1864_v17 = vmul.f32 %v9881_v31, %v1241_v24 }
 0x297   :  { %v1672_v46 = vmul.f32 %v9881_v31, %v1243_v33  ;;  %v1800_v1 = vmul.f32 %v9879_v49, %v1243_v33  ;;  %1533 = vmatprep.mubr.f32.mxu1 %v7601_v53  ;;  %2100 = vmatprep.mubr.f32.mxu0 %v1927_v4  ;;  %v9905_v53 = vld [vmem:[#allocation5 + $0x2e8] sm:$0xff] }
 0x298   :  { %v1247_v13 = vpop.f32.mrf.mxu1  ;;  %v7605_v58 = vpop.trf.xlu1  ;;  %2101 = vmatmul.mubr.f32.gmra.mxu0 %v1735_v38  ;;  %1534 = vmatmul.mubr.f32.gmra.mxu1 %v7604_v59  ;;  %v9903_v38 = vld [vmem:[#allocation5 + $0x268] sm:$0xff] }
 0x299   :  { %v1736_v9 = vsub.f32 %v1608_v19, %v1672_v46  ;;  %v7609_v42 = vunpack.i.h.bf16 %v7605_v58  ;;  %v7606_v47 = vunpack.i.l.bf16 %v7605_v58  ;;  %v1928_v48 = vadd.f32 %v1864_v17, %v1800_v1  ;;  %3703 = vmatpush1.msra.mxu0 %v8988_v28  ;;  %v8992_v1 = vld [vmem:[#allocation7 + $0x40] sm:$0xff]  ;;  %v8993_v58 = vld [vmem:[#allocation7 + $0x38] sm:$0xff]  ;;  %v9913_v28 = vld [vmem:[#allocation5 + $0x2f0] sm:$0xff] }
 0x29a   :  { %v1249_v41 = vpop.f32.mrf.mxu1  ;;  %v1609_v25 = vmul.f32 %v9887_v8, %v1247_v13  ;;  %3704 = vmatprep.subr.mxu0 %v8989_v52  ;;  %v1865_v18 = vmul.f32 %v9889_v7, %v1247_v13 }
 0x29b   :  { %v1673_v14 = vmul.f32 %v9889_v7, %v1249_v41  ;;  %v1801_v26 = vmul.f32 %v9887_v8, %v1249_v41  ;;  %1539 = vmatprep.mubr.f32.mxu1 %v7606_v47  ;;  %2106 = vmatprep.mubr.f32.mxu0 %v1928_v48  ;;  %v9911_v41 = vld [vmem:[#allocation5 + $0x270] sm:$0xff] }
 0x29c   :  { %v1253_v12 = vpop.f32.mrf.mxu1  ;;  %v7610_v0 = vpop.trf.xlu1  ;;  %2107 = vmatmul.mubr.f32.gmra.mxu0 %v1736_v9  ;;  %1540 = vmatmul.mubr.f32.gmra.mxu1 %v7609_v42 }
 0x29d   :  { %v1737_v22 = vsub.f32 %v1609_v25, %v1673_v14  ;;  %v7614_v34 = vunpack.i.h.bf16 %v7610_v0  ;;  %v7611_v50 = vunpack.i.l.bf16 %v7610_v0  ;;  %v1929_v11 = vadd.f32 %v1865_v18, %v1801_v26  ;;  %3705 = vmatpush1.msra.mxu0 %v8990_v37  ;;  %v8994_v18 = vld [vmem:[#allocation7 + $0x30] sm:$0xff]  ;;  %v9921_v37 = vld [vmem:[#allocation5 + $0x2f8] sm:$0xff] }
 0x29e   :  { %v1255_v2 = vpop.f32.mrf.mxu1  ;;  %v1610_v60 = vmul.f32 %v9895_v20, %v1253_v12  ;;  %3706 = vmatprep.subr.mxu0 %v8991_v27  ;;  %v1866_v24 = vmul.f32 %v9897_v56, %v1253_v12  ;;  %v8996_v27 = vld [vmem:[#allocation7 + $0x20] sm:$0xff] }
 0x29f   :  { %v1674_v62 = vmul.f32 %v9897_v56, %v1255_v2  ;;  %v1802_v44 = vmul.f32 %v9895_v20, %v1255_v2  ;;  %1545 = vmatprep.mubr.f32.mxu1 %v7611_v50  ;;  %2112 = vmatprep.mubr.f32.mxu0 %v1929_v11  ;;  %v9919_v11 = vld [vmem:[#allocation5 + $0x278] sm:$0xff] }
 0x2a0   :  { %v1259_v29 = vpop.f32.mrf.mxu1  ;;  %v7615_v59 = vpop.trf.xlu1  ;;  %2113 = vmatmul.mubr.f32.gmra.mxu0 %v1737_v22  ;;  %1546 = vmatmul.mubr.f32.gmra.mxu1 %v7614_v34  ;;  %v8995_v34 = vld [vmem:[#allocation7 + $0x28] sm:$0xff] }
 0x2a1   :  { %v1738_v33 = vsub.f32 %v1610_v60, %v1674_v62  ;;  %v7616_v61 = vunpack.i.l.bf16 %v7615_v59  ;;  %v1930_v19 = vadd.f32 %v1866_v24, %v1802_v44  ;;  %v7619_v46 = vunpack.i.h.bf16 %v7615_v59  ;;  %3707 = vmatpush1.msra.mxu0 %v8992_v1 }
 0x2a2   :  { %v1261_v4 = vpop.f32.mrf.mxu1  ;;  %v1611_v23 = vmul.f32 %v9903_v38, %v1259_v29  ;;  %3708 = vmatprep.subr.mxu0 %v8993_v58  ;;  %v1867_v9 = vmul.f32 %v9905_v53, %v1259_v29 }
 0x2a3   :  { %v1675_v17 = vmul.f32 %v9905_v53, %v1261_v4  ;;  %v1803_v13 = vmul.f32 %v9903_v38, %v1261_v4  ;;  %1551 = vmatprep.mubr.f32.mxu1 %v7616_v61  ;;  %2118 = vmatprep.mubr.f32.mxu0 %v1930_v19  ;;  %v8997_v4 = vld [vmem:[#allocation7 + $0x18] sm:$0xff]  ;;  %v8998_v19 = vld [vmem:[#allocation7 + $0x10] sm:$0xff] }
 0x2a4   :  { %v1265_v42 = vpop.f32.mrf.mxu1  ;;  %v7620_v47 = vpop.trf.xlu1  ;;  %2119 = vmatmul.mubr.f32.gmra.mxu0 %v1738_v33  ;;  %1552 = vmatmul.mubr.f32.gmra.mxu1 %v7619_v46 }
 0x2a5   :  { %v1739_v48 = vsub.f32 %v1611_v23, %v1675_v17  ;;  %v7624_v25 = vunpack.i.h.bf16 %v7620_v47  ;;  %v7621_v26 = vunpack.i.l.bf16 %v7620_v47  ;;  %v1931_v52 = vadd.f32 %v1867_v9, %v1803_v13  ;;  %3709 = vmatpush1.msra.mxu0 %v8994_v18  ;;  %v8999_v13 = vld [vmem:[#allocation7 + $0x8] sm:$0xff]  ;;  %v9000_v47 = vld [vmem:[#allocation7] sm:$0xff] }
 0x2a6   :  { %v1267_v14 = vpop.f32.mrf.mxu1  ;;  %v1612_v12 = vmul.f32 %v9911_v41, %v1265_v42  ;;  %3710 = vmatprep.subr.mxu0 %v8995_v34  ;;  %v1868_v2 = vmul.f32 %v9913_v28, %v1265_v42 }
 0x2a7   :  { %v1676_v0 = vmul.f32 %v9913_v28, %v1267_v14  ;;  %v1804_v22 = vmul.f32 %v9911_v41, %v1267_v14  ;;  %1557 = vmatprep.mubr.f32.mxu1 %v7621_v26  ;;  %2124 = vmatprep.mubr.f32.mxu0 %v1931_v52 }
 0x2a8   :  { %v1271_v50 = vpop.f32.mrf.mxu1  ;;  %1558 = vmatmul.mubr.f32.gmra.mxu1 %v7624_v25  ;;  %2125 = vmatmul.mubr.f32.gmra.mxu0 %v1739_v48  ;;  %v9001_v25 = vld [vmem:[#allocation7 + $0x1f8] sm:$0xff] }
 0x2a9   :  { %v1740_v60 = vsub.f32 %v1612_v12, %v1676_v0  ;;  %v1932_v44 = vadd.f32 %v1868_v2, %v1804_v22  ;;  %3711 = vmatpush1.msra.mxu0 %v8996_v27  ;;  %v1613_v24 = vmul.f32 %v9919_v11, %v1271_v50  ;;  %v1869_v29 = vmul.f32 %v9921_v37, %v1271_v50  ;;  %v9002_v12 = vld [vmem:[#allocation7 + $0x1f0] sm:$0xff]  ;;  %v9003_v22 = vld [vmem:[#allocation7 + $0x1e8] sm:$0xff]  ;;  %v9004_v2 = vld [vmem:[#allocation7 + $0x1e0] sm:$0xff] }
 0x2aa   :  { %v1273_v62 = vpop.f32.mrf.mxu1  ;;  %3712 = vmatprep.subr.mxu0 %v8997_v4  ;;  %v9005_v27 = vld [vmem:[#allocation7 + $0x1d8] sm:$0xff] }
 0x2ab   :  { %v1677_v59 = vmul.f32 %v9921_v37, %v1273_v62  ;;  %v1805_v33 = vmul.f32 %v9919_v11, %v1273_v62  ;;  %2130 = vmatprep.mubr.f32.mxu0 %v1932_v44  ;;  %3713 = vmatpush1.msra.mxu0 %v8998_v19 }
 0x2ac   :  { %v1277_v61 = vpop.f32.mrf.mxu1  ;;  %2131 = vmatmul.mubr.f32.gmra.mxu0 %v1740_v60  ;;  %3714 = vmatprep.subr.mxu0 %v8999_v13 }
 0x2ad   :  { %v1741_v46 = vsub.f32 %v1613_v24, %v1677_v59  ;;  %v1933_v1 = vadd.f32 %v1869_v29, %v1805_v33  ;;  %v1614_v23 = vmul.f32 %v9799_v10, %v1277_v61  ;;  %v1870_v58 = vmul.f32 %v9801_v16, %v1277_v61  ;;  %3715 = vmatpush1.msra.mxu0 %v9000_v47  ;;  %v9006_v29 = vld [vmem:[#allocation7 + $0x1d0] sm:$0xff]  ;;  %v9007_v33 = vld [vmem:[#allocation7 + $0x1c8] sm:$0xff] }
 0x2ae   :  { %v1279_v17 = vpop.f32.mrf.mxu1  ;;  %3716 = vmatprep.subr.mxu0 %v9001_v25 }
 0x2af   :  { %v1678_v9 = vmul.f32 %v9801_v16, %v1279_v17  ;;  %v1806_v42 = vmul.f32 %v9799_v10, %v1279_v17  ;;  %2136 = vmatprep.mubr.f32.mxu0 %v1933_v1  ;;  %3717 = vmatpush2.msra.mxu0 %v9002_v12  ;;  %v9008_v1 = vld [vmem:[#allocation7 + $0x1c0] sm:$0xff] }
 0x2b0   :  { %v1283_v48 = vpop.f32.mrf.mxu1  ;;  %2137 = vmatmul.mubr.f32.gmra.mxu0 %v1741_v46  ;;  %3718 = vmatprep.subr.mxu0 %v9003_v22 }
 0x2b1   :  { %v1742_v14 = vsub.f32 %v1614_v23, %v1678_v9  ;;  %v1934_v26 = vadd.f32 %v1870_v58, %v1806_v42  ;;  %v1615_v52 = vmul.f32 %v9807_v6, %v1283_v48  ;;  %v1871_v0 = vmul.f32 %v9809_v63, %v1283_v48  ;;  %3719 = vmatpush2.msra.mxu0 %v9004_v2  ;;  %v9009_v58 = vld [vmem:[#allocation7 + $0x1b8] sm:$0xff]  ;;  %v9010_v42 = vld [vmem:[#allocation7 + $0x1b0] sm:$0xff] }
 0x2b2   :  { %v1285_v18 = vpop.f32.mrf.mxu1  ;;  %3720 = vmatprep.subr.mxu0 %v9005_v27 }
 0x2b3   :  { %v1679_v16 = vmul.f32 %v9809_v63, %v1285_v18  ;;  %v1807_v10 = vmul.f32 %v9807_v6, %v1285_v18  ;;  %2142 = vmatprep.mubr.f32.mxu0 %v1934_v26  ;;  %3721 = vmatpush2.msra.mxu0 %v9006_v29  ;;  %v9011_v26 = vld [vmem:[#allocation7 + $0x1a8] sm:$0xff] }
 0x2b4   :  { %v1289_v34 = vpop.f32.mrf.mxu1  ;;  %2143 = vmatmul.mubr.f32.gmra.mxu0 %v1742_v14  ;;  %3722 = vmatprep.subr.mxu0 %v9007_v33 }
 0x2b5   :  { %v1743_v50 = vsub.f32 %v1615_v52, %v1679_v16  ;;  %v1935_v60 = vadd.f32 %v1871_v0, %v1807_v10  ;;  %v1616_v62 = vmul.f32 %v9815_v35, %v1289_v34  ;;  %v1872_v24 = vmul.f32 %v9817_v36, %v1289_v34  ;;  %3723 = vmatpush2.msra.mxu0 %v9008_v1  ;;  %v9012_v0 = vld [vmem:[#allocation7 + $0x1a0] sm:$0xff]  ;;  %v9013_v10 = vld [vmem:[#allocation7 + $0x198] sm:$0xff] }
 0x2b6   :  { %v1291_v44 = vpop.f32.mrf.mxu1  ;;  %3724 = vmatprep.subr.mxu0 %v9009_v58 }
 0x2b7   :  { %v1680_v63 = vmul.f32 %v9817_v36, %v1291_v44  ;;  %v1808_v6 = vmul.f32 %v9815_v35, %v1291_v44  ;;  %2148 = vmatprep.mubr.f32.mxu0 %v1935_v60  ;;  %3725 = vmatpush2.msra.mxu0 %v9010_v42  ;;  %v9014_v60 = vld [vmem:[#allocation7 + $0x190] sm:$0xff] }
 0x2b8   :  { %v1295_v59 = vpop.f32.mrf.mxu1  ;;  %2149 = vmatmul.mubr.f32.gmra.mxu0 %v1743_v50  ;;  %3726 = vmatprep.subr.mxu0 %v9011_v26 }
 0x2b9   :  { %v1744_v4 = vsub.f32 %v1616_v62, %v1680_v63  ;;  %v1936_v61 = vadd.f32 %v1872_v24, %v1808_v6  ;;  %v1617_v19 = vmul.f32 %v9823_v55, %v1295_v59  ;;  %v1873_v23 = vmul.f32 %v9825_v39, %v1295_v59  ;;  %3727 = vmatpush2.msra.mxu0 %v9012_v0  ;;  %v9015_v24 = vld [vmem:[#allocation7 + $0x188] sm:$0xff]  ;;  %v9016_v6 = vld [vmem:[#allocation7 + $0x180] sm:$0xff] }
 0x2ba   :  { %v1297_v46 = vpop.f32.mrf.mxu1  ;;  %3728 = vmatprep.subr.mxu0 %v9013_v10 }
 0x2bb   :  { %v1681_v17 = vmul.f32 %v9825_v39, %v1297_v46  ;;  %v1809_v13 = vmul.f32 %v9823_v55, %v1297_v46  ;;  %2154 = vmatprep.mubr.f32.mxu0 %v1936_v61  ;;  %3729 = vmatpush2.msra.mxu0 %v9014_v60  ;;  %v9017_v61 = vld [vmem:[#allocation7 + $0x178] sm:$0xff] }
 0x2bc   :  { %v1301_v9 = vpop.f32.mrf.mxu1  ;;  %2155 = vmatmul.mubr.f32.gmra.mxu0 %v1744_v4  ;;  %3730 = vmatprep.subr.mxu0 %v9015_v24 }
 0x2bd   :  { %v1745_v47 = vsub.f32 %v1617_v19, %v1681_v17  ;;  %v1937_v48 = vadd.f32 %v1873_v23, %v1809_v13  ;;  %v1618_v25 = vmul.f32 %v9831_v45, %v1301_v9  ;;  %v1874_v52 = vmul.f32 %v9833_v54, %v1301_v9  ;;  %3731 = vmatpush2.msra.mxu0 %v9016_v6  ;;  %v9018_v23 = vld [vmem:[#allocation7 + $0x170] sm:$0xff]  ;;  %v9019_v13 = vld [vmem:[#allocation7 + $0x168] sm:$0xff] }
 0x2be   :  { %v1303_v14 = vpop.f32.mrf.mxu1  ;;  %3732 = vmatprep.subr.mxu0 %v9017_v61 }
 0x2bf   :  { %v1682_v18 = vmul.f32 %v9833_v54, %v1303_v14  ;;  %v1810_v12 = vmul.f32 %v9831_v45, %v1303_v14  ;;  %2160 = vmatprep.mubr.f32.mxu0 %v1937_v48  ;;  %3733 = vmatpush2.msra.mxu0 %v9018_v23  ;;  %v9020_v48 = vld [vmem:[#allocation7 + $0x160] sm:$0xff] }
 0x2c0   :  { %v1307_v16 = vpop.f32.mrf.mxu1  ;;  %2161 = vmatmul.mubr.f32.gmra.mxu0 %v1745_v47  ;;  %3734 = vmatprep.subr.mxu0 %v9019_v13 }
 0x2c1   :  { %v1746_v22 = vsub.f32 %v1618_v25, %v1682_v18  ;;  %v1938_v34 = vadd.f32 %v1874_v52, %v1810_v12  ;;  %v1619_v2 = vmul.f32 %v9839_v3, %v1307_v16  ;;  %v1875_v62 = vmul.f32 %v9841_v51, %v1307_v16  ;;  %3735 = vmatpush2.msra.mxu0 %v9020_v48  ;;  %v9021_v52 = vld [vmem:[#allocation7 + $0x158] sm:$0xff]  ;;  %v9022_v12 = vld [vmem:[#allocation7 + $0x150] sm:$0xff] }
 0x2c2   :  { %v1309_v50 = vpop.f32.mrf.mxu1  ;;  %3736 = vmatprep.subr.mxu0 %v9021_v52 }
 0x2c3   :  { %v1683_v44 = vmul.f32 %v9841_v51, %v1309_v50  ;;  %v1811_v27 = vmul.f32 %v9839_v3, %v1309_v50  ;;  %2166 = vmatprep.mubr.f32.mxu0 %v1938_v34  ;;  %3737 = vmatpush2.msra.mxu0 %v9022_v12  ;;  %v9023_v34 = vld [vmem:[#allocation7 + $0x148] sm:$0xff] }
 0x2c4   :  { %v1313_v63 = vpop.f32.mrf.mxu1  ;;  %2167 = vmatmul.mubr.f32.gmra.mxu0 %v1746_v22  ;;  %3738 = vmatprep.subr.mxu0 %v9023_v34 }
 0x2c5   :  { %v1747_v29 = vsub.f32 %v1619_v2, %v1683_v44  ;;  %v1939_v59 = vadd.f32 %v1875_v62, %v1811_v27  ;;  %v1620_v33 = vmul.f32 %v9847_v30, %v1313_v63  ;;  %v1876_v19 = vmul.f32 %v9849_v43, %v1313_v63  ;;  %v9024_v62 = vld [vmem:[#allocation7 + $0x140] sm:$0xff]  ;;  %v9025_v27 = vld [vmem:[#allocation7 + $0x138] sm:$0xff] }
 0x2c6   :  { %v1315_v4 = vpop.f32.mrf.mxu1  ;;  %3739 = vmatpush2.msra.mxu0 %v9024_v62 }
 0x2c7   :  { %v1684_v46 = vmul.f32 %v9849_v43, %v1315_v4  ;;  %v1812_v1 = vmul.f32 %v9847_v30, %v1315_v4  ;;  %2172 = vmatprep.mubr.f32.mxu0 %v1939_v59  ;;  %3740 = vmatprep.subr.mxu0 %v9025_v27  ;;  %v9026_v59 = vld [vmem:[#allocation7 + $0x130] sm:$0xff] }
 0x2c8   :  { %v1319_v17 = vpop.f32.mrf.mxu1  ;;  %2173 = vmatmul.mubr.f32.gmra.mxu0 %v1747_v29 }
 0x2c9   :  { %v1748_v58 = vsub.f32 %v1620_v33, %v1684_v46  ;;  %v1940_v9 = vadd.f32 %v1876_v19, %v1812_v1  ;;  %v1621_v42 = vmul.f32 %v9855_v57, %v1319_v17  ;;  %v1877_v25 = vmul.f32 %v9857_v40, %v1319_v17  ;;  %3741 = vmatpush2.msra.mxu0 %v9026_v59  ;;  %v9027_v19 = vld [vmem:[#allocation7 + $0x128] sm:$0xff]  ;;  %v9028_v1 = vld [vmem:[#allocation7 + $0x120] sm:$0xff] }
 0x2ca   :  { %v1321_v47 = vpop.f32.mrf.mxu1  ;;  %3742 = vmatprep.subr.mxu0 %v9027_v19 }
 0x2cb   :  { %v1685_v14 = vmul.f32 %v9857_v40, %v1321_v47  ;;  %v1813_v26 = vmul.f32 %v9855_v57, %v1321_v47  ;;  %2178 = vmatprep.mubr.f32.mxu0 %v1940_v9  ;;  %3743 = vmatpush2.msra.mxu0 %v9028_v1  ;;  %v9029_v9 = vld [vmem:[#allocation7 + $0x118] sm:$0xff] }
 0x2cc   :  { %v1325_v18 = vpop.f32.mrf.mxu1  ;;  %2179 = vmatmul.mubr.f32.gmra.mxu0 %v1748_v58  ;;  %3744 = vmatprep.subr.mxu0 %v9029_v9 }
 0x2cd   :  { %v1749_v0 = vsub.f32 %v1621_v42, %v1685_v14  ;;  %v1941_v16 = vadd.f32 %v1877_v25, %v1813_v26  ;;  %v1622_v10 = vmul.f32 %v9863_v32, %v1325_v18  ;;  %v1878_v2 = vmul.f32 %v9865_v5, %v1325_v18  ;;  %v9030_v25 = vld [vmem:[#allocation7 + $0x110] sm:$0xff]  ;;  %v9031_v26 = vld [vmem:[#allocation7 + $0x108] sm:$0xff] }
 0x2ce   :  { %v1327_v22 = vpop.f32.mrf.mxu1  ;;  %3745 = vmatpush2.msra.mxu0 %v9030_v25 }
 0x2cf   :  { %v1686_v50 = vmul.f32 %v9865_v5, %v1327_v22  ;;  %v1814_v60 = vmul.f32 %v9863_v32, %v1327_v22  ;;  %2184 = vmatprep.mubr.f32.mxu0 %v1941_v16  ;;  %3746 = vmatprep.subr.mxu0 %v9031_v26 }
 0x2d0   :  { %v1331_v44 = vpop.f32.mrf.mxu1  ;;  %2185 = vmatmul.mubr.f32.gmra.mxu0 %v1749_v0  ;;  %v9032_v0 = vld [vmem:[#allocation7 + $0x100] sm:$0xff] }
 0x2d1   :  { %v1750_v24 = vsub.f32 %v1622_v10, %v1686_v50  ;;  %v1942_v63 = vadd.f32 %v1878_v2, %v1814_v60  ;;  %v1623_v6 = vmul.f32 %v9871_v15, %v1331_v44  ;;  %v1879_v33 = vmul.f32 %v9873_v21, %v1331_v44  ;;  %3747 = vmatpush2.msra.mxu0 %v9032_v0 }
 0x2d2   :  { %v1333_v29 = vpop.f32.mrf.mxu1 }
 0x2d3   :  { %v1687_v4 = vmul.f32 %v9873_v21, %v1333_v29  ;;  %v1815_v61 = vmul.f32 %v9871_v15, %v1333_v29  ;;  %2190 = vmatprep.mubr.f32.mxu0 %v1942_v63 }
 0x2d4   :  { %v1337_v46 = vpop.f32.mrf.mxu1  ;;  %2191 = vmatmul.mubr.f32.gmra.mxu0 %v1750_v24 }
 0x2d5   :  { %v1751_v23 = vsub.f32 %v1623_v6, %v1687_v4  ;;  %v1943_v17 = vadd.f32 %v1879_v33, %v1815_v61  ;;  %v1624_v13 = vmul.f32 %v9879_v49, %v1337_v46  ;;  %v1880_v42 = vmul.f32 %v9881_v31, %v1337_v46 }
 0x2d6   :  { %v1339_v58 = vpop.f32.mrf.mxu1 }
 0x2d7   :  { %v1688_v47 = vmul.f32 %v9881_v31, %v1339_v58  ;;  %v1816_v48 = vmul.f32 %v9879_v49, %v1339_v58  ;;  %2196 = vmatprep.mubr.f32.mxu0 %v1943_v17 }
 0x2d8   :  { %v1343_v14 = vpop.f32.mrf.mxu1  ;;  %2197 = vmatmul.mubr.f32.gmra.mxu0 %v1751_v23 }
 0x2d9   :  { %v1752_v52 = vsub.f32 %v1624_v13, %v1688_v47  ;;  %v1944_v18 = vadd.f32 %v1880_v42, %v1816_v48  ;;  %v1625_v16 = vmul.f32 %v9887_v8, %v1343_v14  ;;  %v1881_v10 = vmul.f32 %v9889_v7, %v1343_v14 }
 0x2da   :  { %v1345_v12 = vpop.f32.mrf.mxu1 }
 0x2db   :  { %v1689_v22 = vmul.f32 %v9889_v7, %v1345_v12  ;;  %v1817_v34 = vmul.f32 %v9887_v8, %v1345_v12  ;;  %2202 = vmatprep.mubr.f32.mxu0 %v1944_v18 }
 0x2dc   :  { %v1349_v2 = vpop.f32.mrf.mxu1  ;;  %2203 = vmatmul.mubr.f32.gmra.mxu0 %v1752_v52 }
 0x2dd   :  { %v1753_v50 = vsub.f32 %v1625_v16, %v1689_v22  ;;  %v1945_v60 = vadd.f32 %v1881_v10, %v1817_v34  ;;  %v1626_v44 = vmul.f32 %v9895_v20, %v1349_v2  ;;  %v1882_v27 = vmul.f32 %v9897_v56, %v1349_v2  ;;  %v9991_v2 = vld [vmem:[#allocation5 + $0x200] sm:$0xff] }
 0x2de   :  { %v1351_v62 = vpop.f32.mrf.mxu1 }
 0x2df   :  { %v1690_v24 = vmul.f32 %v9897_v56, %v1351_v62  ;;  %v1818_v63 = vmul.f32 %v9895_v20, %v1351_v62  ;;  %2208 = vmatprep.mubr.f32.mxu0 %v1945_v60  ;;  %v9994_v60 = vld [vmem:[#allocation5 + $0x280] sm:$0xff] }
 0x2e0   :  { %v1355_v6 = vpop.f32.mrf.mxu1  ;;  %2209 = vmatmul.mubr.f32.gmra.mxu0 %v1753_v50 }
 0x2e1   :  { %v1754_v29 = vsub.f32 %v1626_v44, %v1690_v24  ;;  %v1946_v59 = vadd.f32 %v1882_v27, %v1818_v63  ;;  %v1627_v4 = vmul.f32 %v9903_v38, %v1355_v6  ;;  %v1883_v61 = vmul.f32 %v9905_v53, %v1355_v6 }
 0x2e2   :  { %v1357_v33 = vpop.f32.mrf.mxu1 }
 0x2e3   :  { %v1691_v19 = vmul.f32 %v9905_v53, %v1357_v33  ;;  %v1819_v46 = vmul.f32 %v9903_v38, %v1357_v33  ;;  %2214 = vmatprep.mubr.f32.mxu0 %v1946_v59  ;;  %v9999_v59 = vld [vmem:[#allocation5 + $0x208] sm:$0xff] }
 0x2e4   :  { %v1361_v1 = vpop.f32.mrf.mxu1  ;;  %2215 = vmatmul.mubr.f32.gmra.mxu0 %v1754_v29 }
 0x2e5   :  { %v1755_v23 = vsub.f32 %v1627_v4, %v1691_v19  ;;  %v1947_v17 = vadd.f32 %v1883_v61, %v1819_v46  ;;  %v1628_v58 = vmul.f32 %v9911_v41, %v1361_v1  ;;  %v1884_v9 = vmul.f32 %v9913_v28, %v1361_v1  ;;  %v10002_v4 = vld [vmem:[#allocation5 + $0x288] sm:$0xff] }
 0x2e6   :  { %v1363_v13 = vpop.f32.mrf.mxu1 }
 0x2e7   :  { %v1692_v42 = vmul.f32 %v9913_v28, %v1363_v13  ;;  %v1820_v47 = vmul.f32 %v9911_v41, %v1363_v13  ;;  %2220 = vmatprep.mubr.f32.mxu0 %v1947_v17 }
 0x2e8   :  { %v1367_v48 = vpop.f32.mrf.mxu1  ;;  %2221 = vmatmul.mubr.f32.gmra.mxu0 %v1755_v23 }
 0x2e9   :  { %v1756_v25 = vsub.f32 %v1628_v58, %v1692_v42  ;;  %v1948_v14 = vadd.f32 %v1884_v9, %v1820_v47  ;;  %v1629_v52 = vmul.f32 %v9919_v11, %v1367_v48  ;;  %v1885_v18 = vmul.f32 %v9921_v37, %v1367_v48 }
 0x2ea   :  { %v1369_v26 = vpop.f32.mrf.mxu1 }
 0x2eb   :  { %v1693_v12 = vmul.f32 %v9921_v37, %v1369_v26  ;;  %v1821_v0 = vmul.f32 %v9919_v11, %v1369_v26  ;;  %2226 = vmatprep.mubr.f32.mxu0 %v1948_v14 }
 0x2ec   :  { %v1373_v16 = vpop.f32.mrf.mxu1  ;;  %2227 = vmatmul.mubr.f32.gmra.mxu0 %v1756_v25 }
 0x2ed   :  { %v1757_v10 = vsub.f32 %v1629_v52, %v1693_v12  ;;  %v1949_v22 = vadd.f32 %v1885_v18, %v1821_v0  ;;  %v1630_v50 = vmul.f32 %v9991_v2, %v1373_v16  ;;  %v1886_v62 = vmul.f32 %v9994_v60, %v1373_v16 }
 0x2ee   :  { %v1375_v34 = vpop.f32.mrf.mxu1 }
 0x2ef   :  { %v1694_v44 = vmul.f32 %v9994_v60, %v1375_v34  ;;  %v1822_v27 = vmul.f32 %v9991_v2, %v1375_v34  ;;  %2232 = vmatprep.mubr.f32.mxu0 %v1949_v22 }
 0x2f0   :  { %v1379_v24 = vpop.f32.mrf.mxu1  ;;  %2233 = vmatmul.mubr.f32.gmra.mxu0 %v1757_v10 }
 0x2f1   :  { %v1758_v63 = vsub.f32 %v1630_v50, %v1694_v44  ;;  %v1950_v6 = vadd.f32 %v1886_v62, %v1822_v27  ;;  %v1631_v33 = vmul.f32 %v9999_v59, %v1379_v24  ;;  %v1887_v61 = vmul.f32 %v10002_v4, %v1379_v24 }
 0x2f2   :  { %v1381_v29 = vpop.f32.mrf.mxu1 }
 0x2f3   :  { %v1695_v19 = vmul.f32 %v10002_v4, %v1381_v29  ;;  %v1823_v46 = vmul.f32 %v9999_v59, %v1381_v29  ;;  %2238 = vmatprep.mubr.f32.mxu0 %v1950_v6 }
 0x2f4   :  { %v1385_v1 = vpop.f32.mrf.mxu1  ;;  %2239 = vmatmul.mubr.f32.gmra.mxu0 %v1758_v63 }
 0x2f5   :  { %v1759_v23 = vsub.f32 %v1631_v33, %v1695_v19  ;;  %v1951_v17 = vadd.f32 %v1887_v61, %v1823_v46  ;;  %v1632_v58 = vmul.f32 %v9815_v35, %v1385_v1  ;;  %v1888_v9 = vmul.f32 %v9817_v36, %v1385_v1 }
 0x2f6   :  { %v1387_v13 = vpop.f32.mrf.mxu1 }
 0x2f7   :  { %v1696_v42 = vmul.f32 %v9817_v36, %v1387_v13  ;;  %v1824_v47 = vmul.f32 %v9815_v35, %v1387_v13  ;;  %2244 = vmatprep.mubr.f32.mxu0 %v1951_v17 }
 0x2f8   :  { %v1391_v48 = vpop.f32.mrf.mxu1  ;;  %2245 = vmatmul.mubr.f32.gmra.mxu0 %v1759_v23 }
 0x2f9   :  { %v1760_v25 = vsub.f32 %v1632_v58, %v1696_v42  ;;  %v1952_v14 = vadd.f32 %v1888_v9, %v1824_v47  ;;  %v1633_v52 = vmul.f32 %v9823_v55, %v1391_v48  ;;  %v1889_v18 = vmul.f32 %v9825_v39, %v1391_v48 }
 0x2fa   :  { %v1393_v26 = vpop.f32.mrf.mxu1 }
 0x2fb   :  { %v1697_v12 = vmul.f32 %v9825_v39, %v1393_v26  ;;  %v1825_v0 = vmul.f32 %v9823_v55, %v1393_v26  ;;  %2250 = vmatprep.mubr.f32.mxu0 %v1952_v14 }
 0x2fc   :  { %v1397_v16 = vpop.f32.mrf.mxu1  ;;  %2251 = vmatmul.mubr.f32.gmra.mxu0 %v1760_v25 }
 0x2fd   :  { %v1761_v10 = vsub.f32 %v1633_v52, %v1697_v12  ;;  %v1953_v36 = vadd.f32 %v1889_v18, %v1825_v0  ;;  %v1634_v22 = vmul.f32 %v9831_v45, %v1397_v16  ;;  %v1890_v34 = vmul.f32 %v9833_v54, %v1397_v16 }
 0x2fe   :  { %v1399_v35 = vpop.f32.mrf.mxu1 }
 0x2ff   :  { %v1698_v50 = vmul.f32 %v9833_v54, %v1399_v35  ;;  %v1826_v62 = vmul.f32 %v9831_v45, %v1399_v35  ;;  %2256 = vmatprep.mubr.f32.mxu0 %v1953_v36 }
 0x300   :  { %v1403_v44 = vpop.f32.mrf.mxu1  ;;  %2257 = vmatmul.mubr.f32.gmra.mxu0 %v1761_v10 }
 0x301   :  { %v1762_v27 = vsub.f32 %v1634_v22, %v1698_v50  ;;  %v1954_v39 = vadd.f32 %v1890_v34, %v1826_v62  ;;  %v1635_v24 = vmul.f32 %v9839_v3, %v1403_v44  ;;  %v1891_v63 = vmul.f32 %v9841_v51, %v1403_v44 }
 0x302   :  { %v1405_v55 = vpop.f32.mrf.mxu1 }
 0x303   :  { %v1699_v6 = vmul.f32 %v9841_v51, %v1405_v55  ;;  %v1827_v29 = vmul.f32 %v9839_v3, %v1405_v55  ;;  %2262 = vmatprep.mubr.f32.mxu0 %v1954_v39 }
 0x304   :  { %v1409_v33 = vpop.f32.mrf.mxu1  ;;  %2263 = vmatmul.mubr.f32.gmra.mxu0 %v1762_v27 }
 0x305   :  { %v1763_v61 = vsub.f32 %v1635_v24, %v1699_v6  ;;  %v1955_v54 = vadd.f32 %v1891_v63, %v1827_v29  ;;  %v1636_v19 = vmul.f32 %v9847_v30, %v1409_v33  ;;  %v1892_v46 = vmul.f32 %v9849_v43, %v1409_v33 }
 0x306   :  { %v1411_v45 = vpop.f32.mrf.mxu1 }
 0x307   :  { %v1700_v1 = vmul.f32 %v9849_v43, %v1411_v45  ;;  %v1828_v23 = vmul.f32 %v9847_v30, %v1411_v45  ;;  %2268 = vmatprep.mubr.f32.mxu0 %v1955_v54 }
 0x308   :  { %v1415_v17 = vpop.f32.mrf.mxu1  ;;  %2269 = vmatmul.mubr.f32.gmra.mxu0 %v1763_v61 }
 0x309   :  { %v1764_v13 = vsub.f32 %v1636_v19, %v1700_v1  ;;  %v1956_v51 = vadd.f32 %v1892_v46, %v1828_v23  ;;  %v1637_v58 = vmul.f32 %v9855_v57, %v1415_v17  ;;  %v1893_v9 = vmul.f32 %v9857_v40, %v1415_v17 }
 0x30a   :  { %v1417_v3 = vpop.f32.mrf.mxu1 }
 0x30b   :  { %v1701_v42 = vmul.f32 %v9857_v40, %v1417_v3  ;;  %v1829_v47 = vmul.f32 %v9855_v57, %v1417_v3  ;;  %2274 = vmatprep.mubr.f32.mxu0 %v1956_v51 }
 0x30c   :  { %v1421_v48 = vpop.f32.mrf.mxu1  ;;  %2275 = vmatmul.mubr.f32.gmra.mxu0 %v1764_v13 }
 0x30d   :  { %v1765_v25 = vsub.f32 %v1637_v58, %v1701_v42  ;;  %v1957_v43 = vadd.f32 %v1893_v9, %v1829_v47  ;;  %v1638_v14 = vmul.f32 %v9863_v32, %v1421_v48  ;;  %v1894_v26 = vmul.f32 %v9865_v5, %v1421_v48 }
 0x30e   :  { %v1423_v30 = vpop.f32.mrf.mxu1 }
 0x30f   :  { %v1702_v52 = vmul.f32 %v9865_v5, %v1423_v30  ;;  %v1830_v18 = vmul.f32 %v9863_v32, %v1423_v30  ;;  %2280 = vmatprep.mubr.f32.mxu0 %v1957_v43 }
 0x310   :  { %v1427_v12 = vpop.f32.mrf.mxu1  ;;  %2281 = vmatmul.mubr.f32.gmra.mxu0 %v1765_v25 }
 0x311   :  { %v1766_v0 = vsub.f32 %v1638_v14, %v1702_v52  ;;  %v1958_v40 = vadd.f32 %v1894_v26, %v1830_v18  ;;  %v1639_v16 = vmul.f32 %v9871_v15, %v1427_v12  ;;  %v1895_v10 = vmul.f32 %v9873_v21, %v1427_v12 }
 0x312   :  { %v1429_v57 = vpop.f32.mrf.mxu1 }
 0x313   :  { %v1703_v36 = vmul.f32 %v9873_v21, %v1429_v57  ;;  %v1831_v35 = vmul.f32 %v9871_v15, %v1429_v57  ;;  %2286 = vmatprep.mubr.f32.mxu0 %v1958_v40 }
 0x314   :  { %v1433_v22 = vpop.f32.mrf.mxu1  ;;  %2287 = vmatmul.mubr.f32.gmra.mxu0 %v1766_v0 }
 0x315   :  { %v1767_v34 = vsub.f32 %v1639_v16, %v1703_v36  ;;  %v1959_v5 = vadd.f32 %v1895_v10, %v1831_v35  ;;  %v1640_v50 = vmul.f32 %v9879_v49, %v1433_v22  ;;  %v1896_v62 = vmul.f32 %v9881_v31, %v1433_v22 }
 0x316   :  { %v1435_v32 = vpop.f32.mrf.mxu1 }
 0x317   :  { %v1704_v44 = vmul.f32 %v9881_v31, %v1435_v32  ;;  %v1832_v27 = vmul.f32 %v9879_v49, %v1435_v32  ;;  %2292 = vmatprep.mubr.f32.mxu0 %v1959_v5 }
 0x318   :  { %v1439_v39 = vpop.f32.mrf.mxu1  ;;  %2293 = vmatmul.mubr.f32.gmra.mxu0 %v1767_v34 }
 0x319   :  { %v1768_v55 = vsub.f32 %v1640_v50, %v1704_v44  ;;  %v1960_v21 = vadd.f32 %v1896_v62, %v1832_v27  ;;  %v1641_v24 = vmul.f32 %v9887_v8, %v1439_v39  ;;  %v1897_v63 = vmul.f32 %v9889_v7, %v1439_v39  ;;  %v9037_v44 = vld [vmem:[#allocation5 + $0x210] sm:$0xff] }
 0x31a   :  { %v1441_v15 = vpop.f32.mrf.mxu1 }
 0x31b   :  { %v1705_v6 = vmul.f32 %v9889_v7, %v1441_v15  ;;  %v1833_v29 = vmul.f32 %v9887_v8, %v1441_v15  ;;  %2298 = vmatprep.mubr.f32.mxu0 %v1960_v21  ;;  %v9038_v21 = vld [vmem:[#allocation5 + $0x290] sm:$0xff] }
 0x31c   :  { %v1445_v33 = vpop.f32.mrf.mxu1  ;;  %2299 = vmatmul.mubr.f32.gmra.mxu0 %v1768_v55 }
 0x31d   :  { %v1769_v61 = vsub.f32 %v1641_v24, %v1705_v6  ;;  %v1961_v31 = vadd.f32 %v1897_v63, %v1833_v29  ;;  %v1642_v54 = vmul.f32 %v9895_v20, %v1445_v33  ;;  %v1898_v45 = vmul.f32 %v9897_v56, %v1445_v33 }
 0x31e   :  { %v1447_v49 = vpop.f32.mrf.mxu1 }
 0x31f   :  { %v1706_v19 = vmul.f32 %v9897_v56, %v1447_v49  ;;  %v1834_v46 = vmul.f32 %v9895_v20, %v1447_v49  ;;  %2304 = vmatprep.mubr.f32.mxu0 %v1961_v31 }
 0x320   :  { %v1451_v1 = vpop.f32.mrf.mxu1  ;;  %2305 = vmatmul.mubr.f32.gmra.mxu0 %v1769_v61  ;;  %v9039_v61 = vld [vmem:[#allocation5 + $0x218] sm:$0xff] }
 0x321   :  { %v1770_v23 = vsub.f32 %v1642_v54, %v1706_v19  ;;  %v1962_v7 = vadd.f32 %v1898_v45, %v1834_v46  ;;  %v1643_v17 = vmul.f32 %v9903_v38, %v1451_v1  ;;  %v1899_v13 = vmul.f32 %v9905_v53, %v1451_v1  ;;  %v9040_v45 = vld [vmem:[#allocation5 + $0x298] sm:$0xff] }
 0x322   :  { %v1453_v8 = vpop.f32.mrf.mxu1 }
 0x323   :  { %v1707_v51 = vmul.f32 %v9905_v53, %v1453_v8  ;;  %v1835_v3 = vmul.f32 %v9903_v38, %v1453_v8  ;;  %2310 = vmatprep.mubr.f32.mxu0 %v1962_v7 }
 0x324   :  { %v1457_v58 = vpop.f32.mrf.mxu1  ;;  %2311 = vmatmul.mubr.f32.gmra.mxu0 %v1770_v23 }
 0x325   :  { %v1771_v9 = vsub.f32 %v1643_v17, %v1707_v51  ;;  %v1963_v56 = vadd.f32 %v1899_v13, %v1835_v3  ;;  %v1644_v42 = vmul.f32 %v9911_v41, %v1457_v58  ;;  %v1900_v47 = vmul.f32 %v9913_v28, %v1457_v58  ;;  %v9041_v51 = vld [vmem:[#allocation5 + $0x220] sm:$0xff] }
 0x326   :  { %v1459_v20 = vpop.f32.mrf.mxu1 }
 0x327   :  { %v1708_v48 = vmul.f32 %v9913_v28, %v1459_v20  ;;  %v1836_v25 = vmul.f32 %v9911_v41, %v1459_v20  ;;  %2316 = vmatprep.mubr.f32.mxu0 %v1963_v56  ;;  %v9042_v56 = vld [vmem:[#allocation5 + $0x2a0] sm:$0xff] }
 0x328   :  { %v1463_v43 = vpop.f32.mrf.mxu1  ;;  %2317 = vmatmul.mubr.f32.gmra.mxu0 %v1771_v9 }
 0x329   :  { %v1772_v30 = vsub.f32 %v1644_v42, %v1708_v48  ;;  %v1964_v53 = vadd.f32 %v1900_v47, %v1836_v25  ;;  %v1645_v14 = vmul.f32 %v9919_v11, %v1463_v43  ;;  %v1901_v26 = vmul.f32 %v9921_v37, %v1463_v43 }
 0x32a   :  { %v1465_v38 = vpop.f32.mrf.mxu1 }
 0x32b   :  { %v1709_v52 = vmul.f32 %v9921_v37, %v1465_v38  ;;  %v1837_v18 = vmul.f32 %v9919_v11, %v1465_v38  ;;  %2322 = vmatprep.mubr.f32.mxu0 %v1964_v53  ;;  %v9043_v38 = vld [vmem:[#allocation5 + $0x228] sm:$0xff] }
 0x32c   :  { %v1469_v12 = vpop.f32.mrf.mxu1  ;;  %2323 = vmatmul.mubr.f32.gmra.mxu0 %v1772_v30 }
 0x32d   :  { %v1773_v0 = vsub.f32 %v1645_v14, %v1709_v52  ;;  %v1965_v28 = vadd.f32 %v1901_v26, %v1837_v18  ;;  %v1646_v40 = vmul.f32 %v9991_v2, %v1469_v12  ;;  %v1902_v57 = vmul.f32 %v9994_v60, %v1469_v12  ;;  %v9044_v18 = vld [vmem:[#allocation5 + $0x2a8] sm:$0xff] }
 0x32e   :  { %v1471_v41 = vpop.f32.mrf.mxu1 }
 0x32f   :  { %v1710_v16 = vmul.f32 %v9994_v60, %v1471_v41  ;;  %v1838_v10 = vmul.f32 %v9991_v2, %v1471_v41  ;;  %2328 = vmatprep.mubr.f32.mxu0 %v1965_v28 }
 0x330   :  { %v1475_v35 = vpop.f32.mrf.mxu1  ;;  %2329 = vmatmul.mubr.f32.gmra.mxu0 %v1773_v0 }
 0x331   :  { %v1774_v36 = vsub.f32 %v1646_v40, %v1710_v16  ;;  %v1966_v37 = vadd.f32 %v1902_v57, %v1838_v10  ;;  %v1647_v22 = vmul.f32 %v9999_v59, %v1475_v35  ;;  %v1903_v34 = vmul.f32 %v10002_v4, %v1475_v35 }
 0x332   :  { %v1477_v11 = vpop.f32.mrf.mxu1 }
 0x333   :  { %2334 = vmatprep.mubr.f32.mxu0 %v1966_v37  ;;  %v1711_v5 = vmul.f32 %v10002_v4, %v1477_v11  ;;  %v1839_v32 = vmul.f32 %v9999_v59, %v1477_v11 }
 0x334   :  { %v1481_v50 = vpop.f32.mrf.mxu1  ;;  %v2048_v62 = vpop.f32.mrf.mxu0  ;;  %2335 = vmatmul.mubr.f32.gmra.mxu0 %v1774_v36  ;;  %v9045_v36 = vld [vmem:[#allocation5 + $0x230] sm:$0xff] }
 0x335   :  { %v1775_v60 = vsub.f32 %v1647_v22, %v1711_v5  ;;  %v1967_v2 = vadd.f32 %v1903_v34, %v1839_v32  ;;  %v1648_v27 = vmul.f32 %v9037_v44, %v1481_v50  ;;  %v1904_v15 = vmul.f32 %v9038_v21, %v1481_v50  ;;  %v9046_v22 = vld [vmem:[#allocation5 + $0x2b0] sm:$0xff] }
 0x336   :  { %v1483_v39 = vpop.f32.mrf.mxu1  ;;  %v2050_v55 = vpop.f32.mrf.mxu0 }
 0x337   :  { %v1712_v24 = vmul.f32 %v9038_v21, %v1483_v39  ;;  %v1840_v63 = vmul.f32 %v9037_v44, %v1483_v39  ;;  %2340 = vmatprep.mubr.f32.mxu0 %v1967_v2  ;;  %v7625_v6 = vpack.i.bf16 %v2048_v62, %v2050_v55 }
 0x338   :  { %v1487_v29 = vpop.f32.mrf.mxu1  ;;  %v2054_v33 = vpop.f32.mrf.mxu0  ;;  %2341 = vmatmul.mubr.f32.gmra.mxu0 %v1775_v60 }
 0x339   :  { %v1776_v4 = vsub.f32 %v1648_v27, %v1712_v24  ;;  %7626 = vxpose.xlu0.b32.start [1/16] %v7625_v6, 128  ;;  %v1968_v59 = vadd.f32 %v1904_v15, %v1840_v63  ;;  %v1649_v31 = vmul.f32 %v9039_v61, %v1487_v29  ;;  %v1905_v19 = vmul.f32 %v9040_v45, %v1487_v29  ;;  %v9047_v27 = vld [vmem:[#allocation5 + $0x238] sm:$0xff] }
 0x33a   :  { %v1489_v49 = vpop.f32.mrf.mxu1  ;;  %v2056_v54 = vpop.f32.mrf.mxu0  ;;  %v9048_v15 = vld [vmem:[#allocation5 + $0x2b8] sm:$0xff] }
 0x33b   :  { %v1713_v46 = vmul.f32 %v9040_v45, %v1489_v49  ;;  %v1841_v1 = vmul.f32 %v9039_v61, %v1489_v49  ;;  %v7627_v23 = vpack.i.bf16 %v2054_v33, %v2056_v54  ;;  %2346 = vmatprep.mubr.f32.mxu0 %v1968_v59 }
 0x33c   :  { %v1493_v7 = vpop.f32.mrf.mxu1  ;;  %v2060_v8 = vpop.f32.mrf.mxu0  ;;  %2347 = vmatmul.mubr.f32.gmra.mxu0 %v1776_v4 }
 0x33d   :  { %v1777_v17 = vsub.f32 %v1649_v31, %v1713_v46  ;;  %7628 = vxpose.xlu0.b32.cont [2/16] %v7627_v23, 128  ;;  %v1969_v13 = vadd.f32 %v1905_v19, %v1841_v1  ;;  %v1650_v3 = vmul.f32 %v9041_v51, %v1493_v7  ;;  %v1906_v20 = vmul.f32 %v9042_v56, %v1493_v7  ;;  %v9049_v31 = vld [vmem:[#allocation5 + $0x240] sm:$0xff] }
 0x33e   :  { %v1495_v58 = vpop.f32.mrf.mxu1  ;;  %v2062_v9 = vpop.f32.mrf.mxu0  ;;  %v9050_v19 = vld [vmem:[#allocation5 + $0x2c0] sm:$0xff] }
 0x33f   :  { %v1714_v42 = vmul.f32 %v9042_v56, %v1495_v58  ;;  %v1842_v47 = vmul.f32 %v9041_v51, %v1495_v58  ;;  %v7629_v48 = vpack.i.bf16 %v2060_v8, %v2062_v9  ;;  %2352 = vmatprep.mubr.f32.mxu0 %v1969_v13 }
 0x340   :  { %v1499_v25 = vpop.f32.mrf.mxu1  ;;  %v2066_v43 = vpop.f32.mrf.mxu0  ;;  %2353 = vmatmul.mubr.f32.gmra.mxu0 %v1777_v17 }
 0x341   :  { %v1778_v30 = vsub.f32 %v1650_v3, %v1714_v42  ;;  %7630 = vxpose.xlu0.b32.cont [3/16] %v7629_v48, 128  ;;  %v1970_v53 = vadd.f32 %v1906_v20, %v1842_v47  ;;  %v1651_v14 = vmul.f32 %v9043_v38, %v1499_v25  ;;  %v1907_v12 = vmul.f32 %v9044_v18, %v1499_v25  ;;  %v9051_v3 = vld [vmem:[#allocation5 + $0x248] sm:$0xff] }
 0x342   :  { %v1501_v26 = vpop.f32.mrf.mxu1  ;;  %v2068_v52 = vpop.f32.mrf.mxu0  ;;  %v9052_v20 = vld [vmem:[#allocation5 + $0x2c8] sm:$0xff] }
 0x343   :  { %v1715_v0 = vmul.f32 %v9044_v18, %v1501_v26  ;;  %v1843_v28 = vmul.f32 %v9043_v38, %v1501_v26  ;;  %v7631_v41 = vpack.i.bf16 %v2066_v43, %v2068_v52  ;;  %2358 = vmatprep.mubr.f32.mxu0 %v1970_v53 }
 0x344   :  { %v1505_v40 = vpop.f32.mrf.mxu1  ;;  %v2072_v57 = vpop.f32.mrf.mxu0  ;;  %2359 = vmatmul.mubr.f32.gmra.mxu0 %v1778_v30 }
 0x345   :  { %v1779_v16 = vsub.f32 %v1651_v14, %v1715_v0  ;;  %7632 = vxpose.xlu0.b32.cont [4/16] %v7631_v41, 128  ;;  %v1971_v10 = vadd.f32 %v1907_v12, %v1843_v28  ;;  %v1652_v35 = vmul.f32 %v9045_v36, %v1505_v40  ;;  %v1908_v34 = vmul.f32 %v9046_v22, %v1505_v40  ;;  %v9053_v14 = vld [vmem:[#allocation5 + $0x250] sm:$0xff] }
 0x346   :  { %v1507_v37 = vpop.f32.mrf.mxu1  ;;  %v2074_v11 = vpop.f32.mrf.mxu0  ;;  %v9054_v12 = vld [vmem:[#allocation5 + $0x2d0] sm:$0xff] }
 0x347   :  { %v1716_v5 = vmul.f32 %v9046_v22, %v1507_v37  ;;  %v1844_v32 = vmul.f32 %v9045_v36, %v1507_v37  ;;  %v7633_v50 = vpack.i.bf16 %v2072_v57, %v2074_v11  ;;  %2364 = vmatprep.mubr.f32.mxu0 %v1971_v10 }
 0x348   :  { %v1511_v62 = vpop.f32.mrf.mxu1  ;;  %v2078_v60 = vpop.f32.mrf.mxu0  ;;  %2365 = vmatmul.mubr.f32.gmra.mxu0 %v1779_v16 }
 0x349   :  { %v1780_v2 = vsub.f32 %v1652_v35, %v1716_v5  ;;  %7634 = vxpose.xlu0.b32.cont [5/16] %v7633_v50, 128  ;;  %v1972_v44 = vadd.f32 %v1908_v34, %v1844_v32  ;;  %v1653_v39 = vmul.f32 %v9047_v27, %v1511_v62  ;;  %v1909_v24 = vmul.f32 %v9048_v15, %v1511_v62  ;;  %v9055_v35 = vld [vmem:[#allocation5 + $0x258] sm:$0xff] }
 0x34a   :  { %v1513_v55 = vpop.f32.mrf.mxu1  ;;  %v2080_v21 = vpop.f32.mrf.mxu0  ;;  %v9056_v34 = vld [vmem:[#allocation5 + $0x2d8] sm:$0xff] }
 0x34b   :  { %v1717_v63 = vmul.f32 %v9048_v15, %v1513_v55  ;;  %v1845_v6 = vmul.f32 %v9047_v27, %v1513_v55  ;;  %v7635_v29 = vpack.i.bf16 %v2078_v60, %v2080_v21  ;;  %2370 = vmatprep.mubr.f32.mxu0 %v1972_v44 }
 0x34c   :  { %v1517_v33 = vpop.f32.mrf.mxu1  ;;  %v2084_v4 = vpop.f32.mrf.mxu0  ;;  %2371 = vmatmul.mubr.f32.gmra.mxu0 %v1780_v2 }
 0x34d   :  { %v1781_v59 = vsub.f32 %v1653_v39, %v1717_v63  ;;  %7636 = vxpose.xlu0.b32.cont [6/16] %v7635_v29, 128  ;;  %v1973_v61 = vadd.f32 %v1909_v24, %v1845_v6  ;;  %v1654_v49 = vmul.f32 %v9049_v31, %v1517_v33  ;;  %v1910_v46 = vmul.f32 %v9050_v19, %v1517_v33  ;;  %v9057_v39 = vld [vmem:[#allocation5 + $0x260] sm:$0xff] }
 0x34e   :  { %v1519_v54 = vpop.f32.mrf.mxu1  ;;  %v2086_v45 = vpop.f32.mrf.mxu0  ;;  %v9058_v24 = vld [vmem:[#allocation5 + $0x2e0] sm:$0xff] }
 0x34f   :  { %v1718_v1 = vmul.f32 %v9050_v19, %v1519_v54  ;;  %v1846_v23 = vmul.f32 %v9049_v31, %v1519_v54  ;;  %v7637_v7 = vpack.i.bf16 %v2084_v4, %v2086_v45  ;;  %2376 = vmatprep.mubr.f32.mxu0 %v1973_v61 }
 0x350   :  { %v1523_v8 = vpop.f32.mrf.mxu1  ;;  %v2090_v17 = vpop.f32.mrf.mxu0  ;;  %2377 = vmatmul.mubr.f32.gmra.mxu0 %v1781_v59 }
 0x351   :  { %v1782_v13 = vsub.f32 %v1654_v49, %v1718_v1  ;;  %7638 = vxpose.xlu0.b32.cont [7/16] %v7637_v7, 128  ;;  %v1974_v51 = vadd.f32 %v1910_v46, %v1846_v23  ;;  %v1655_v58 = vmul.f32 %v9051_v3, %v1523_v8  ;;  %v1911_v42 = vmul.f32 %v9052_v20, %v1523_v8  ;;  %v9059_v49 = vld [vmem:[#allocation5 + $0x268] sm:$0xff] }
 0x352   :  { %v1525_v9 = vpop.f32.mrf.mxu1  ;;  %v2092_v56 = vpop.f32.mrf.mxu0  ;;  %v9060_v46 = vld [vmem:[#allocation5 + $0x2e8] sm:$0xff] }
 0x353   :  { %v1719_v47 = vmul.f32 %v9052_v20, %v1525_v9  ;;  %v1847_v48 = vmul.f32 %v9051_v3, %v1525_v9  ;;  %v7639_v25 = vpack.i.bf16 %v2090_v17, %v2092_v56  ;;  %2382 = vmatprep.mubr.f32.mxu0 %v1974_v51 }
 0x354   :  { %v1529_v43 = vpop.f32.mrf.mxu1  ;;  %v2096_v30 = vpop.f32.mrf.mxu0  ;;  %2383 = vmatmul.mubr.f32.gmra.mxu0 %v1782_v13 }
 0x355   :  { %v1783_v53 = vsub.f32 %v1655_v58, %v1719_v47  ;;  %7640 = vxpose.xlu0.b32.cont [8/16] %v7639_v25, 128  ;;  %v1975_v38 = vadd.f32 %v1911_v42, %v1847_v48  ;;  %v1656_v26 = vmul.f32 %v9053_v14, %v1529_v43  ;;  %v1912_v0 = vmul.f32 %v9054_v12, %v1529_v43  ;;  %v9061_v58 = vld [vmem:[#allocation5 + $0x270] sm:$0xff] }
 0x356   :  { %v1531_v52 = vpop.f32.mrf.mxu1  ;;  %v2098_v18 = vpop.f32.mrf.mxu0  ;;  %v9062_v42 = vld [vmem:[#allocation5 + $0x2f0] sm:$0xff] }
 0x357   :  { %v1720_v28 = vmul.f32 %v9054_v12, %v1531_v52  ;;  %v1848_v41 = vmul.f32 %v9053_v14, %v1531_v52  ;;  %v7641_v40 = vpack.i.bf16 %v2096_v30, %v2098_v18  ;;  %2388 = vmatprep.mubr.f32.mxu0 %v1975_v38 }
 0x358   :  { %v1535_v57 = vpop.f32.mrf.mxu1  ;;  %v2102_v16 = vpop.f32.mrf.mxu0  ;;  %2389 = vmatmul.mubr.f32.gmra.mxu0 %v1783_v53 }
 0x359   :  { %v1784_v10 = vsub.f32 %v1656_v26, %v1720_v28  ;;  %7642 = vxpose.xlu0.b32.cont [9/16] %v7641_v40, 128  ;;  %v1976_v36 = vadd.f32 %v1912_v0, %v1848_v41  ;;  %v1657_v37 = vmul.f32 %v9055_v35, %v1535_v57  ;;  %v1913_v5 = vmul.f32 %v9056_v34, %v1535_v57  ;;  %v9063_v26 = vld [vmem:[#allocation5 + $0x278] sm:$0xff] }
 0x35a   :  { %v1537_v11 = vpop.f32.mrf.mxu1  ;;  %v2104_v22 = vpop.f32.mrf.mxu0  ;;  %v9064_v0 = vld [vmem:[#allocation5 + $0x2f8] sm:$0xff] }
 0x35b   :  { %v1721_v32 = vmul.f32 %v9056_v34, %v1537_v11  ;;  %v1849_v50 = vmul.f32 %v9055_v35, %v1537_v11  ;;  %v7643_v62 = vpack.i.bf16 %v2102_v16, %v2104_v22  ;;  %2394 = vmatprep.mubr.f32.mxu0 %v1976_v36 }
 0x35c   :  { %v1541_v60 = vpop.f32.mrf.mxu1  ;;  %v2108_v2 = vpop.f32.mrf.mxu0  ;;  %2395 = vmatmul.mubr.f32.gmra.mxu0 %v1784_v10 }
 0x35d   :  { %v1785_v44 = vsub.f32 %v1657_v37, %v1721_v32  ;;  %7644 = vxpose.xlu0.b32.cont [10/16] %v7643_v62, 128  ;;  %v1977_v27 = vadd.f32 %v1913_v5, %v1849_v50  ;;  %v1658_v55 = vmul.f32 %v9057_v39, %v1541_v60  ;;  %v1914_v63 = vmul.f32 %v9058_v24, %v1541_v60 }
 0x35e   :  { %v1543_v21 = vpop.f32.mrf.mxu1  ;;  %v2110_v15 = vpop.f32.mrf.mxu0 }
 0x35f   :  { %v1722_v6 = vmul.f32 %v9058_v24, %v1543_v21  ;;  %v1850_v29 = vmul.f32 %v9057_v39, %v1543_v21  ;;  %v7645_v33 = vpack.i.bf16 %v2108_v2, %v2110_v15  ;;  %2400 = vmatprep.mubr.f32.mxu0 %v1977_v27 }
 0x360   :  { %v1547_v4 = vpop.f32.mrf.mxu1  ;;  %v2114_v59 = vpop.f32.mrf.mxu0  ;;  %2401 = vmatmul.mubr.f32.gmra.mxu0 %v1785_v44 }
 0x361   :  { %v1786_v61 = vsub.f32 %v1658_v55, %v1722_v6  ;;  %7646 = vxpose.xlu0.b32.cont [11/16] %v7645_v33, 128  ;;  %v1978_v31 = vadd.f32 %v1914_v63, %v1850_v29  ;;  %v1659_v54 = vmul.f32 %v9059_v49, %v1547_v4  ;;  %v1915_v1 = vmul.f32 %v9060_v46, %v1547_v4 }
 0x362   :  { %v1549_v45 = vpop.f32.mrf.mxu1  ;;  %v2116_v19 = vpop.f32.mrf.mxu0 }
 0x363   :  { %v1723_v23 = vmul.f32 %v9060_v46, %v1549_v45  ;;  %v1851_v7 = vmul.f32 %v9059_v49, %v1549_v45  ;;  %v7647_v8 = vpack.i.bf16 %v2114_v59, %v2116_v19  ;;  %2406 = vmatprep.mubr.f32.mxu0 %v1978_v31 }
 0x364   :  { %v1553_v17 = vpop.f32.mrf.mxu1  ;;  %v2120_v13 = vpop.f32.mrf.mxu0  ;;  %2407 = vmatmul.mubr.f32.gmra.mxu0 %v1786_v61 }
 0x365   :  { %v1787_v51 = vsub.f32 %v1659_v54, %v1723_v23  ;;  %7648 = vxpose.xlu0.b32.cont [12/16] %v7647_v8, 128  ;;  %v1979_v3 = vadd.f32 %v1915_v1, %v1851_v7  ;;  %v1660_v9 = vmul.f32 %v9061_v58, %v1553_v17  ;;  %v1916_v47 = vmul.f32 %v9062_v42, %v1553_v17 }
 0x366   :  { %v1555_v56 = vpop.f32.mrf.mxu1  ;;  %v2122_v20 = vpop.f32.mrf.mxu0 }
 0x367   :  { %v1724_v48 = vmul.f32 %v9062_v42, %v1555_v56  ;;  %v1852_v25 = vmul.f32 %v9061_v58, %v1555_v56  ;;  %v7649_v43 = vpack.i.bf16 %v2120_v13, %v2122_v20  ;;  %2412 = vmatprep.mubr.f32.mxu0 %v1979_v3 }
 0x368   :  { %v1559_v30 = vpop.f32.mrf.mxu1  ;;  %v2126_v53 = vpop.f32.mrf.mxu0  ;;  %2413 = vmatmul.mubr.f32.gmra.mxu0 %v1787_v51 }
 0x369   :  { %v1788_v38 = vsub.f32 %v1660_v9, %v1724_v48  ;;  %7650 = vxpose.xlu0.b32.cont [13/16] %v7649_v43, 128  ;;  %v1980_v14 = vadd.f32 %v1916_v47, %v1852_v25  ;;  %v1661_v52 = vmul.f32 %v9063_v26, %v1559_v30  ;;  %v1917_v28 = vmul.f32 %v9064_v0, %v1559_v30 }
 0x36a   :  { %v1561_v18 = vpop.f32.mrf.mxu1  ;;  %v2128_v12 = vpop.f32.mrf.mxu0 }
 0x36b   :  { %v1725_v41 = vmul.f32 %v9064_v0, %v1561_v18  ;;  %v1853_v40 = vmul.f32 %v9063_v26, %v1561_v18  ;;  %v7651_v57 = vpack.i.bf16 %v2126_v53, %v2128_v12  ;;  %2418 = vmatprep.mubr.f32.mxu0 %v1980_v14 }
 0x36c   :  { %v2132_v16 = vpop.f32.mrf.mxu0  ;;  %2419 = vmatmul.mubr.f32.gmra.mxu0 %v1788_v38 }
 0x36d   :  { %v1789_v10 = vsub.f32 %v1661_v52, %v1725_v41  ;;  %7652 = vxpose.xlu0.b32.cont [14/16] %v7651_v57, 128  ;;  %v1981_v36 = vadd.f32 %v1917_v28, %v1853_v40 }
 0x36e   :  { %v2134_v35 = vpop.f32.mrf.mxu0 }
 0x36f   :  { %v7653_v37 = vpack.i.bf16 %v2132_v16, %v2134_v35  ;;  %2424 = vmatprep.mubr.f32.mxu0 %v1981_v36  ;;  %v9065_v35 = vld [vmem:[#allocation7 + $0xf0] sm:$0xff] }
 0x370   :  { %v2138_v11 = vpop.f32.mrf.mxu0  ;;  %2425 = vmatmul.mubr.f32.gmra.mxu0 %v1789_v10 }
 0x371   :  { %7654 = vxpose.xlu0.b32.cont [15/16] %v7653_v37, 128 }
 0x372   :  { %v2140_v22 = vpop.f32.mrf.mxu0 }
 0x373   :  { %v7655_v34 = vpack.i.bf16 %v2138_v11, %v2140_v22  ;;  %v9066_v11 = vld [vmem:[#allocation7 + $0xe8] sm:$0xff] }
 0x374   :  { %v2144_v5 = vpop.f32.mrf.mxu0 }
 0x375   :  { %7656 = vxpose.xlu0.b32.end [16/16] %v7655_v34, 128  ;;  %v9067_v34 = vld [vmem:[#allocation7 + $0xe0] sm:$0xff] }
 0x376   :  { %v2146_v32 = vpop.f32.mrf.mxu0 }
 0x377   :  { %v7737_v50 = vpack.i.bf16 %v2144_v5, %v2146_v32 }
 0x378   :  { %v2150_v62 = vpop.f32.mrf.mxu0 }
 0x379   :  { %7738 = vxpose.xlu1.b32.start [1/16] %v7737_v50, 128 }
 0x37a   :  { %v2152_v60 = vpop.f32.mrf.mxu0 }
 0x37b   :  { %v7739_v2 = vpack.i.bf16 %v2150_v62, %v2152_v60  ;;  %v9068_v60 = vld [vmem:[#allocation7 + $0xd8] sm:$0xff] }
 0x37c   :  { %v2156_v44 = vpop.f32.mrf.mxu0 }
 0x37d   :  { %7740 = vxpose.xlu1.b32.cont [2/16] %v7739_v2, 128 }
 0x37e   :  { %v2158_v27 = vpop.f32.mrf.mxu0 }
 0x37f   :  { %v7741_v39 = vpack.i.bf16 %v2156_v44, %v2158_v27  ;;  %v9069_v44 = vld [vmem:[#allocation7 + $0xd0] sm:$0xff] }
 0x380   :  { %v2162_v55 = vpop.f32.mrf.mxu0 }
 0x381   :  { %7742 = vxpose.xlu1.b32.cont [3/16] %v7741_v39, 128  ;;  %v9070_v39 = vld [vmem:[#allocation7 + $0xc8] sm:$0xff] }
 0x382   :  { %v2164_v21 = vpop.f32.mrf.mxu0 }
 0x383   :  { %v7743_v15 = vpack.i.bf16 %v2162_v55, %v2164_v21 }
 0x384   :  { %v2168_v24 = vpop.f32.mrf.mxu0 }
 0x385   :  { %7744 = vxpose.xlu1.b32.cont [4/16] %v7743_v15, 128 }
 0x386   :  { %v2170_v63 = vpop.f32.mrf.mxu0 }
 0x387   :  { %v7745_v6 = vpack.i.bf16 %v2168_v24, %v2170_v63  ;;  %v9071_v63 = vld [vmem:[#allocation7 + $0xc0] sm:$0xff] }
 0x388   :  { %v2174_v29 = vpop.f32.mrf.mxu0 }
 0x389   :  { %7746 = vxpose.xlu1.b32.cont [5/16] %v7745_v6, 128 }
 0x38a   :  { %v2176_v33 = vpop.f32.mrf.mxu0 }
 0x38b   :  { %v7747_v4 = vpack.i.bf16 %v2174_v29, %v2176_v33  ;;  %v9072_v29 = vld [vmem:[#allocation7 + $0xb8] sm:$0xff] }
 0x38c   :  { %v2180_v59 = vpop.f32.mrf.mxu0 }
 0x38d   :  { %7748 = vxpose.xlu1.b32.cont [6/16] %v7747_v4, 128  ;;  %v9073_v4 = vld [vmem:[#allocation7 + $0xb0] sm:$0xff] }
 0x38e   :  { %v2182_v61 = vpop.f32.mrf.mxu0 }
 0x38f   :  { %v7749_v31 = vpack.i.bf16 %v2180_v59, %v2182_v61 }
 0x390   :  { %v2186_v49 = vpop.f32.mrf.mxu0 }
 0x391   :  { %7750 = vxpose.xlu1.b32.cont [7/16] %v7749_v31, 128 }
 0x392   :  { %v2188_v54 = vpop.f32.mrf.mxu0 }
 0x393   :  { %v7751_v45 = vpack.i.bf16 %v2186_v49, %v2188_v54  ;;  %v9074_v54 = vld [vmem:[#allocation7 + $0xa8] sm:$0xff] }
 0x394   :  { %v2192_v19 = vpop.f32.mrf.mxu0 }
 0x395   :  { %7752 = vxpose.xlu1.b32.cont [8/16] %v7751_v45, 128 }
 0x396   :  { %v2194_v46 = vpop.f32.mrf.mxu0 }
 0x397   :  { %v7753_v1 = vpack.i.bf16 %v2192_v19, %v2194_v46  ;;  %v9075_v19 = vld [vmem:[#allocation7 + $0xa0] sm:$0xff] }
 0x398   :  { %v2198_v23 = vpop.f32.mrf.mxu0 }
 0x399   :  { %7754 = vxpose.xlu1.b32.cont [9/16] %v7753_v1, 128  ;;  %v9076_v1 = vld [vmem:[#allocation7 + $0x98] sm:$0xff] }
 0x39a   :  { %v2200_v7 = vpop.f32.mrf.mxu0 }
 0x39b   :  { %v7755_v8 = vpack.i.bf16 %v2198_v23, %v2200_v7 }
 0x39c   :  { %v2204_v17 = vpop.f32.mrf.mxu0 }
 0x39d   :  { %7756 = vxpose.xlu1.b32.cont [10/16] %v7755_v8, 128 }
 0x39e   :  { %v2206_v13 = vpop.f32.mrf.mxu0 }
 0x39f   :  { %v7757_v51 = vpack.i.bf16 %v2204_v17, %v2206_v13  ;;  %v9077_v13 = vld [vmem:[#allocation7 + $0x90] sm:$0xff] }
 0x3a0   :  { %v2210_v3 = vpop.f32.mrf.mxu0 }
 0x3a1   :  { %7758 = vxpose.xlu1.b32.cont [11/16] %v7757_v51, 128 }
 0x3a2   :  { %v2212_v58 = vpop.f32.mrf.mxu0 }
 0x3a3   :  { %v7759_v9 = vpack.i.bf16 %v2210_v3, %v2212_v58  ;;  %v9078_v3 = vld [vmem:[#allocation7 + $0x88] sm:$0xff] }
 0x3a4   :  { %v2216_v56 = vpop.f32.mrf.mxu0 }
 0x3a5   :  { %7760 = vxpose.xlu1.b32.cont [12/16] %v7759_v9, 128  ;;  %v9079_v9 = vld [vmem:[#allocation7 + $0x80] sm:$0xff] }
 0x3a6   :  { %v2218_v20 = vpop.f32.mrf.mxu0 }
 0x3a7   :  { %v7761_v42 = vpack.i.bf16 %v2216_v56, %v2218_v20 }
 0x3a8   :  { %v2222_v47 = vpop.f32.mrf.mxu0 }
 0x3a9   :  { %7762 = vxpose.xlu1.b32.cont [13/16] %v7761_v42, 128 }
 0x3aa   :  { %v2224_v48 = vpop.f32.mrf.mxu0 }
 0x3ab   :  { %v7763_v25 = vpack.i.bf16 %v2222_v47, %v2224_v48  ;;  %v9080_v48 = vld [vmem:[#allocation7 + $0x78] sm:$0xff] }
 0x3ac   :  { %v2228_v43 = vpop.f32.mrf.mxu0 }
 0x3ad   :  { %7764 = vxpose.xlu1.b32.cont [14/16] %v7763_v25, 128 }
 0x3ae   :  { %v2230_v30 = vpop.f32.mrf.mxu0 }
 0x3af   :  { %v7765_v53 = vpack.i.bf16 %v2228_v43, %v2230_v30  ;;  %v9081_v43 = vld [vmem:[#allocation7 + $0x70] sm:$0xff] }
 0x3b0   :  { %v2234_v38 = vpop.f32.mrf.mxu0 }
 0x3b1   :  { %7766 = vxpose.xlu1.b32.cont [15/16] %v7765_v53, 128  ;;  %v9082_v53 = vld [vmem:[#allocation7 + $0x68] sm:$0xff] }
 0x3b2   :  { %v2236_v14 = vpop.f32.mrf.mxu0 }
 0x3b3   :  { %v7767_v26 = vpack.i.bf16 %v2234_v38, %v2236_v14 }
 0x3b4   :  { %v2240_v52 = vpop.f32.mrf.mxu0 }
 0x3b5   :  { %v7657_v18 = vpop.trf.xlu0  ;;  %7768 = vxpose.xlu1.b32.end [16/16] %v7767_v26, 128 }
 0x3b6   :  { %v7661_v12 = vunpack.i.h.bf16 %v7657_v18  ;;  %v2242_v0 = vpop.f32.mrf.mxu0  ;;  %v7658_v28 = vunpack.i.l.bf16 %v7657_v18  ;;  %v9083_v18 = vld [vmem:[#allocation7 + $0x60] sm:$0xff] }
 0x3b7   :  { %v7849_v41 = vpack.i.bf16 %v2240_v52, %v2242_v0  ;;  %v9084_v0 = vld [vmem:[#allocation7 + $0x58] sm:$0xff] }
 0x3b8   :  { %v2246_v40 = vpop.f32.mrf.mxu0  ;;  %2751 = vmatprep.mubr.f32.mxu1 %v7658_v28 }
 0x3b9   :  { %v7662_v57 = vpop.trf.xlu0  ;;  %2752 = vmatmul.mubr.f32.vlgmr.msra.gmra.mxu1 %v7661_v12  ;;  %7850 = vxpose.xlu0.b32.start [1/16] %v7849_v41, 128  ;;  %v9085_v41 = vld [vmem:[#allocation7 + $0x50] sm:$0xff] }
 0x3ba   :  { %v7666_v16 = vunpack.i.h.bf16 %v7662_v57  ;;  %v2248_v10 = vpop.f32.mrf.mxu0  ;;  %v7663_v36 = vunpack.i.l.bf16 %v7662_v57  ;;  %4390 = vmatpush1.msra.mxu1 %v9065_v35 }
 0x3bb   :  { %v7851_v37 = vpack.i.bf16 %v2246_v40, %v2248_v10  ;;  %4391 = vmatprep.subr.mxu1 %v9066_v11 }
 0x3bc   :  { %v2252_v22 = vpop.f32.mrf.mxu0  ;;  %2757 = vmatprep.mubr.f32.mxu1 %v7663_v36  ;;  %4392 = vmatpush1.msra.mxu1 %v9067_v34  ;;  %v9086_v36 = vld [vmem:[#allocation7 + $0x48] sm:$0xff] }
 0x3bd   :  { %v7667_v5 = vpop.trf.xlu0  ;;  %2758 = vmatmul.mubr.f32.gmra.mxu1 %v7666_v16  ;;  %7852 = vxpose.xlu0.b32.cont [2/16] %v7851_v37, 128  ;;  %v9087_v37 = vld [vmem:[#allocation7 + $0x40] sm:$0xff] }
 0x3be   :  { %v7671_v32 = vunpack.i.h.bf16 %v7667_v5  ;;  %v2254_v50 = vpop.f32.mrf.mxu0  ;;  %v7668_v62 = vunpack.i.l.bf16 %v7667_v5  ;;  %4393 = vmatprep.subr.mxu1 %v9068_v60 }
 0x3bf   :  { %v7853_v2 = vpack.i.bf16 %v2252_v22, %v2254_v50  ;;  %4394 = vmatpush1.msra.mxu1 %v9069_v44  ;;  %v9088_v22 = vld [vmem:[#allocation7 + $0x38] sm:$0xff] }
 0x3c0   :  { %v2258_v27 = vpop.f32.mrf.mxu0  ;;  %2763 = vmatprep.mubr.f32.mxu1 %v7668_v62  ;;  %4395 = vmatprep.subr.mxu1 %v9070_v39  ;;  %v9089_v62 = vld [vmem:[#allocation7 + $0x30] sm:$0xff] }
 0x3c1   :  { %v7672_v55 = vpop.trf.xlu0  ;;  %2764 = vmatmul.mubr.f32.gmra.mxu1 %v7671_v32  ;;  %7854 = vxpose.xlu0.b32.cont [3/16] %v7853_v2, 128  ;;  %v9090_v2 = vld [vmem:[#allocation7 + $0x28] sm:$0xff] }
 0x3c2   :  { %v7676_v21 = vunpack.i.h.bf16 %v7672_v55  ;;  %v2260_v15 = vpop.f32.mrf.mxu0  ;;  %v7673_v24 = vunpack.i.l.bf16 %v7672_v55  ;;  %4396 = vmatpush1.msra.mxu1 %v9071_v63 }
 0x3c3   :  { %v7855_v6 = vpack.i.bf16 %v2258_v27, %v2260_v15  ;;  %4397 = vmatprep.subr.mxu1 %v9072_v29  ;;  %v9091_v27 = vld [vmem:[#allocation7 + $0x20] sm:$0xff] }
 0x3c4   :  { %v2264_v33 = vpop.f32.mrf.mxu0  ;;  %2769 = vmatprep.mubr.f32.mxu1 %v7673_v24  ;;  %4398 = vmatpush1.msra.mxu1 %v9073_v4  ;;  %v9092_v24 = vld [vmem:[#allocation7 + $0x18] sm:$0xff] }
 0x3c5   :  { %v7677_v59 = vpop.trf.xlu0  ;;  %2770 = vmatmul.mubr.f32.gmra.mxu1 %v7676_v21  ;;  %7856 = vxpose.xlu0.b32.cont [4/16] %v7855_v6, 128  ;;  %v9093_v6 = vld [vmem:[#allocation7 + $0x10] sm:$0xff] }
 0x3c6   :  { %v7681_v61 = vunpack.i.h.bf16 %v7677_v59  ;;  %v2266_v31 = vpop.f32.mrf.mxu0  ;;  %v7678_v49 = vunpack.i.l.bf16 %v7677_v59  ;;  %4399 = vmatprep.subr.mxu1 %v9074_v54 }
 0x3c7   :  { %v7857_v45 = vpack.i.bf16 %v2264_v33, %v2266_v31  ;;  %4400 = vmatpush1.msra.mxu1 %v9075_v19  ;;  %v9094_v33 = vld [vmem:[#allocation7 + $0x8] sm:$0xff] }
 0x3c8   :  { %v2270_v46 = vpop.f32.mrf.mxu0  ;;  %2775 = vmatprep.mubr.f32.mxu1 %v7678_v49  ;;  %4401 = vmatprep.subr.mxu1 %v9076_v1  ;;  %v9095_v49 = vld [vmem:[#allocation7] sm:$0xff] }
 0x3c9   :  { %v7682_v23 = vpop.trf.xlu0  ;;  %2776 = vmatmul.mubr.f32.gmra.mxu1 %v7681_v61  ;;  %7858 = vxpose.xlu0.b32.cont [5/16] %v7857_v45, 128  ;;  %v9096_v45 = vld [vmem:[#allocation7 + $0x1f8] sm:$0xff] }
 0x3ca   :  { %v7686_v7 = vunpack.i.h.bf16 %v7682_v23  ;;  %v2272_v8 = vpop.f32.mrf.mxu0  ;;  %v7683_v17 = vunpack.i.l.bf16 %v7682_v23  ;;  %4402 = vmatpush1.msra.mxu1 %v9077_v13 }
 0x3cb   :  { %v7859_v51 = vpack.i.bf16 %v2270_v46, %v2272_v8  ;;  %4403 = vmatprep.subr.mxu1 %v9078_v3  ;;  %v9097_v46 = vld [vmem:[#allocation7 + $0x1f0] sm:$0xff] }
 0x3cc   :  { %v2276_v58 = vpop.f32.mrf.mxu0  ;;  %2781 = vmatprep.mubr.f32.mxu1 %v7683_v17  ;;  %4404 = vmatpush1.msra.mxu1 %v9079_v9  ;;  %v9098_v17 = vld [vmem:[#allocation7 + $0x1e8] sm:$0xff] }
 0x3cd   :  { %v7687_v56 = vpop.trf.xlu0  ;;  %2782 = vmatmul.mubr.f32.gmra.mxu1 %v7686_v7  ;;  %7860 = vxpose.xlu0.b32.cont [6/16] %v7859_v51, 128  ;;  %v9099_v51 = vld [vmem:[#allocation7 + $0x1e0] sm:$0xff] }
 0x3ce   :  { %v7691_v20 = vunpack.i.h.bf16 %v7687_v56  ;;  %v2278_v42 = vpop.f32.mrf.mxu0  ;;  %v7688_v47 = vunpack.i.l.bf16 %v7687_v56  ;;  %4405 = vmatprep.subr.mxu1 %v9080_v48 }
 0x3cf   :  { %v7861_v25 = vpack.i.bf16 %v2276_v58, %v2278_v42  ;;  %4406 = vmatpush1.msra.mxu1 %v9081_v43  ;;  %v9100_v58 = vld [vmem:[#allocation7 + $0x1d8] sm:$0xff] }
 0x3d0   :  { %v2282_v30 = vpop.f32.mrf.mxu0  ;;  %2787 = vmatprep.mubr.f32.mxu1 %v7688_v47  ;;  %4407 = vmatprep.subr.mxu1 %v9082_v53  ;;  %v9101_v47 = vld [vmem:[#allocation7 + $0x1d0] sm:$0xff] }
 0x3d1   :  { %v7692_v38 = vpop.trf.xlu0  ;;  %2788 = vmatmul.mubr.f32.gmra.mxu1 %v7691_v20  ;;  %7862 = vxpose.xlu0.b32.cont [7/16] %v7861_v25, 128  ;;  %v9102_v25 = vld [vmem:[#allocation7 + $0x1c8] sm:$0xff] }
 0x3d2   :  { %v7696_v14 = vunpack.i.h.bf16 %v7692_v38  ;;  %v2284_v26 = vpop.f32.mrf.mxu0  ;;  %v7693_v52 = vunpack.i.l.bf16 %v7692_v38  ;;  %4408 = vmatpush1.msra.mxu1 %v9083_v18 }
 0x3d3   :  { %v7863_v12 = vpack.i.bf16 %v2282_v30, %v2284_v26  ;;  %4409 = vmatprep.subr.mxu1 %v9084_v0  ;;  %v9103_v30 = vld [vmem:[#allocation7 + $0x1c0] sm:$0xff] }
 0x3d4   :  { %v2288_v28 = vpop.f32.mrf.mxu0  ;;  %2793 = vmatprep.mubr.f32.mxu1 %v7693_v52  ;;  %4410 = vmatpush1.msra.mxu1 %v9085_v41  ;;  %v9104_v52 = vld [vmem:[#allocation7 + $0x1b8] sm:$0xff] }
 0x3d5   :  { %v7697_v40 = vpop.trf.xlu0  ;;  %2794 = vmatmul.mubr.f32.gmra.mxu1 %v7696_v14  ;;  %7864 = vxpose.xlu0.b32.cont [8/16] %v7863_v12, 128  ;;  %v9105_v12 = vld [vmem:[#allocation7 + $0x1b0] sm:$0xff] }
 0x3d6   :  { %v7701_v57 = vunpack.i.h.bf16 %v7697_v40  ;;  %v2290_v16 = vpop.f32.mrf.mxu0  ;;  %v7698_v10 = vunpack.i.l.bf16 %v7697_v40  ;;  %4411 = vmatprep.subr.mxu1 %v9086_v36 }
 0x3d7   :  { %v7865_v35 = vpack.i.bf16 %v2288_v28, %v2290_v16  ;;  %4412 = vmatpush1.msra.mxu1 %v9087_v37  ;;  %v9106_v28 = vld [vmem:[#allocation7 + $0x1a8] sm:$0xff] }
 0x3d8   :  { %v2294_v11 = vpop.f32.mrf.mxu0  ;;  %2799 = vmatprep.mubr.f32.mxu1 %v7698_v10  ;;  %4413 = vmatprep.subr.mxu1 %v9088_v22  ;;  %v9107_v10 = vld [vmem:[#allocation7 + $0x1a0] sm:$0xff] }
 0x3d9   :  { %v7702_v34 = vpop.trf.xlu0  ;;  %2800 = vmatmul.mubr.f32.gmra.mxu1 %v7701_v57  ;;  %7866 = vxpose.xlu0.b32.cont [9/16] %v7865_v35, 128  ;;  %v9108_v35 = vld [vmem:[#allocation7 + $0x198] sm:$0xff] }
 0x3da   :  { %v7706_v5 = vunpack.i.h.bf16 %v7702_v34  ;;  %v2296_v32 = vpop.f32.mrf.mxu0  ;;  %v7703_v50 = vunpack.i.l.bf16 %v7702_v34  ;;  %4414 = vmatpush1.msra.mxu1 %v9089_v62 }
 0x3db   :  { %v7867_v60 = vpack.i.bf16 %v2294_v11, %v2296_v32  ;;  %4415 = vmatprep.subr.mxu1 %v9090_v2  ;;  %v9109_v11 = vld [vmem:[#allocation7 + $0x190] sm:$0xff] }
 0x3dc   :  { %v2300_v44 = vpop.f32.mrf.mxu0  ;;  %2805 = vmatprep.mubr.f32.mxu1 %v7703_v50  ;;  %4416 = vmatpush1.msra.mxu1 %v9091_v27  ;;  %v9110_v50 = vld [vmem:[#allocation7 + $0x188] sm:$0xff] }
 0x3dd   :  { %v7707_v39 = vpop.trf.xlu0  ;;  %2806 = vmatmul.mubr.f32.gmra.mxu1 %v7706_v5  ;;  %7868 = vxpose.xlu0.b32.cont [10/16] %v7867_v60, 128  ;;  %v9111_v60 = vld [vmem:[#allocation7 + $0x180] sm:$0xff] }
 0x3de   :  { %v7711_v55 = vunpack.i.h.bf16 %v7707_v39  ;;  %v2302_v21 = vpop.f32.mrf.mxu0  ;;  %v7708_v15 = vunpack.i.l.bf16 %v7707_v39  ;;  %4417 = vmatprep.subr.mxu1 %v9092_v24 }
 0x3df   :  { %v7869_v63 = vpack.i.bf16 %v2300_v44, %v2302_v21  ;;  %4418 = vmatpush1.msra.mxu1 %v9093_v6  ;;  %v9112_v44 = vld [vmem:[#allocation7 + $0x178] sm:$0xff] }
 0x3e0   :  { %v2306_v29 = vpop.f32.mrf.mxu0  ;;  %2811 = vmatprep.mubr.f32.mxu1 %v7708_v15  ;;  %4419 = vmatprep.subr.mxu1 %v9094_v33  ;;  %v9113_v15 = vld [vmem:[#allocation7 + $0x170] sm:$0xff] }
 0x3e1   :  { %v7712_v4 = vpop.trf.xlu0  ;;  %2812 = vmatmul.mubr.f32.gmra.mxu1 %v7711_v55  ;;  %7870 = vxpose.xlu0.b32.cont [11/16] %v7869_v63, 128  ;;  %v9114_v63 = vld [vmem:[#allocation7 + $0x168] sm:$0xff] }
 0x3e2   :  { %v7716_v59 = vunpack.i.h.bf16 %v7712_v4  ;;  %v2308_v61 = vpop.f32.mrf.mxu0  ;;  %v7713_v31 = vunpack.i.l.bf16 %v7712_v4  ;;  %4420 = vmatpush1.msra.mxu1 %v9095_v49 }
 0x3e3   :  { %v7871_v54 = vpack.i.bf16 %v2306_v29, %v2308_v61  ;;  %4421 = vmatprep.subr.mxu1 %v9096_v45  ;;  %v9115_v29 = vld [vmem:[#allocation7 + $0x160] sm:$0xff] }
 0x3e4   :  { %v2312_v19 = vpop.f32.mrf.mxu0  ;;  %2817 = vmatprep.mubr.f32.mxu1 %v7713_v31  ;;  %4422 = vmatpush2.msra.mxu1 %v9097_v46  ;;  %v9116_v31 = vld [vmem:[#allocation7 + $0x158] sm:$0xff] }
 0x3e5   :  { %v7717_v1 = vpop.trf.xlu0  ;;  %2818 = vmatmul.mubr.f32.gmra.mxu1 %v7716_v59  ;;  %7872 = vxpose.xlu0.b32.cont [12/16] %v7871_v54, 128  ;;  %v9117_v54 = vld [vmem:[#allocation7 + $0x150] sm:$0xff] }
 0x3e6   :  { %v7721_v23 = vunpack.i.h.bf16 %v7717_v1  ;;  %v2314_v7 = vpop.f32.mrf.mxu0  ;;  %v7718_v8 = vunpack.i.l.bf16 %v7717_v1  ;;  %4423 = vmatprep.subr.mxu1 %v9098_v17 }
 0x3e7   :  { %v7873_v13 = vpack.i.bf16 %v2312_v19, %v2314_v7  ;;  %4424 = vmatpush2.msra.mxu1 %v9099_v51  ;;  %v9118_v19 = vld [vmem:[#allocation7 + $0x148] sm:$0xff] }
 0x3e8   :  { %v2318_v3 = vpop.f32.mrf.mxu0  ;;  %2823 = vmatprep.mubr.f32.mxu1 %v7718_v8  ;;  %4425 = vmatprep.subr.mxu1 %v9100_v58  ;;  %v9119_v8 = vld [vmem:[#allocation7 + $0x140] sm:$0xff] }
 0x3e9   :  { %v7722_v9 = vpop.trf.xlu0  ;;  %2824 = vmatmul.mubr.f32.gmra.mxu1 %v7721_v23  ;;  %7874 = vxpose.xlu0.b32.cont [13/16] %v7873_v13, 128  ;;  %v9120_v13 = vld [vmem:[#allocation7 + $0x138] sm:$0xff] }
 0x3ea   :  { %v7726_v56 = vunpack.i.h.bf16 %v7722_v9  ;;  %v2320_v20 = vpop.f32.mrf.mxu0  ;;  %v7723_v42 = vunpack.i.l.bf16 %v7722_v9  ;;  %4426 = vmatpush2.msra.mxu1 %v9101_v47 }
 0x3eb   :  { %v7875_v48 = vpack.i.bf16 %v2318_v3, %v2320_v20  ;;  %4427 = vmatprep.subr.mxu1 %v9102_v25  ;;  %v9121_v3 = vld [vmem:[#allocation7 + $0x130] sm:$0xff] }
 0x3ec   :  { %v2324_v43 = vpop.f32.mrf.mxu0  ;;  %2829 = vmatprep.mubr.f32.mxu1 %v7723_v42  ;;  %4428 = vmatpush2.msra.mxu1 %v9103_v30  ;;  %v9122_v42 = vld [vmem:[#allocation7 + $0x128] sm:$0xff] }
 0x3ed   :  { %v7727_v53 = vpop.trf.xlu0  ;;  %2830 = vmatmul.mubr.f32.gmra.mxu1 %v7726_v56  ;;  %7876 = vxpose.xlu0.b32.cont [14/16] %v7875_v48, 128  ;;  %v9123_v48 = vld [vmem:[#allocation7 + $0x120] sm:$0xff] }
 0x3ee   :  { %v2326_v38 = vpop.f32.mrf.mxu0  ;;  %v7728_v14 = vunpack.i.l.bf16 %v7727_v53  ;;  %v7731_v26 = vunpack.i.h.bf16 %v7727_v53  ;;  %4429 = vmatprep.subr.mxu1 %v9104_v52 }
 0x3ef   :  { %v7877_v18 = vpack.i.bf16 %v2324_v43, %v2326_v38  ;;  %4430 = vmatpush2.msra.mxu1 %v9105_v12  ;;  %v9124_v43 = vld [vmem:[#allocation7 + $0x118] sm:$0xff] }
 0x3f0   :  { %v2330_v0 = vpop.f32.mrf.mxu0  ;;  %2835 = vmatprep.mubr.f32.mxu1 %v7728_v14  ;;  %4431 = vmatprep.subr.mxu1 %v9106_v28 }
 0x3f1   :  { %v7732_v41 = vpop.trf.xlu0  ;;  %2836 = vmatmul.mubr.f32.gmra.mxu1 %v7731_v26  ;;  %7878 = vxpose.xlu0.b32.cont [15/16] %v7877_v18, 128  ;;  %v9125_v26 = vld [vmem:[#allocation7 + $0x110] sm:$0xff]  ;;  %v9126_v18 = vld [vmem:[#allocation7 + $0x108] sm:$0xff] }
 0x3f2   :  { %v7736_v40 = vunpack.i.h.bf16 %v7732_v41  ;;  %v2332_v57 = vpop.f32.mrf.mxu0  ;;  %v7733_v16 = vunpack.i.l.bf16 %v7732_v41  ;;  %4432 = vmatpush2.msra.mxu1 %v9107_v10 }
 0x3f3   :  { %v7879_v36 = vpack.i.bf16 %v2330_v0, %v2332_v57  ;;  %4433 = vmatprep.subr.mxu1 %v9108_v35  ;;  %v9127_v0 = vld [vmem:[#allocation7 + $0x100] sm:$0xff] }
 0x3f4   :  { %v2336_v37 = vpop.f32.mrf.mxu0  ;;  %2841 = vmatprep.mubr.f32.mxu1 %v7733_v16  ;;  %4434 = vmatpush2.msra.mxu1 %v9109_v11 }
 0x3f5   :  { %2842 = vmatmul.mubr.f32.gmra.mxu1 %v7736_v40  ;;  %v7769_v22 = vpop.trf.xlu1  ;;  %7880 = vxpose.xlu0.b32.end [16/16] %v7879_v36, 128 }
 0x3f6   :  { %v7773_v34 = vunpack.i.h.bf16 %v7769_v22  ;;  %v2338_v5 = vpop.f32.mrf.mxu0  ;;  %v7770_v32 = vunpack.i.l.bf16 %v7769_v22  ;;  %4435 = vmatprep.subr.mxu1 %v9110_v50 }
 0x3f7   :  { %v7961_v62 = vpack.i.bf16 %v2336_v37, %v2338_v5  ;;  %4436 = vmatpush2.msra.mxu1 %v9111_v60 }
 0x3f8   :  { %v2342_v2 = vpop.f32.mrf.mxu0  ;;  %2847 = vmatprep.mubr.f32.mxu1 %v7770_v32  ;;  %4437 = vmatprep.subr.mxu1 %v9112_v44 }
 0x3f9   :  { %v7774_v27 = vpop.trf.xlu1  ;;  %2848 = vmatmul.mubr.f32.gmra.mxu1 %v7773_v34  ;;  %7962 = vxpose.xlu1.b32.start [1/16] %v7961_v62, 128 }
 0x3fa   :  { %v7778_v39 = vunpack.i.h.bf16 %v7774_v27  ;;  %v2344_v55 = vpop.f32.mrf.mxu0  ;;  %v7775_v21 = vunpack.i.l.bf16 %v7774_v27  ;;  %4438 = vmatpush2.msra.mxu1 %v9113_v15 }
 0x3fb   :  { %v7963_v24 = vpack.i.bf16 %v2342_v2, %v2344_v55  ;;  %4439 = vmatprep.subr.mxu1 %v9114_v63 }
 0x3fc   :  { %v2348_v6 = vpop.f32.mrf.mxu0  ;;  %2853 = vmatprep.mubr.f32.mxu1 %v7775_v21  ;;  %4440 = vmatpush2.msra.mxu1 %v9115_v29 }
 0x3fd   :  { %v7779_v33 = vpop.trf.xlu1  ;;  %2854 = vmatmul.mubr.f32.gmra.mxu1 %v7778_v39  ;;  %7964 = vxpose.xlu1.b32.cont [2/16] %v7963_v24, 128 }
 0x3fe   :  { %v7783_v4 = vunpack.i.h.bf16 %v7779_v33  ;;  %v2350_v59 = vpop.f32.mrf.mxu0  ;;  %v7780_v61 = vunpack.i.l.bf16 %v7779_v33  ;;  %4441 = vmatprep.subr.mxu1 %v9116_v31 }
 0x3ff   :  { %v7965_v49 = vpack.i.bf16 %v2348_v6, %v2350_v59  ;;  %4442 = vmatpush2.msra.mxu1 %v9117_v54 }
 0x400   :  { %v2354_v45 = vpop.f32.mrf.mxu0  ;;  %2859 = vmatprep.mubr.f32.mxu1 %v7780_v61  ;;  %4443 = vmatprep.subr.mxu1 %v9118_v19 }
 0x401   :  { %v7784_v46 = vpop.trf.xlu1  ;;  %2860 = vmatmul.mubr.f32.gmra.mxu1 %v7783_v4  ;;  %7966 = vxpose.xlu1.b32.cont [3/16] %v7965_v49, 128 }
 0x402   :  { %v7788_v1 = vunpack.i.h.bf16 %v7784_v46  ;;  %v2356_v23 = vpop.f32.mrf.mxu0  ;;  %v7785_v7 = vunpack.i.l.bf16 %v7784_v46  ;;  %4444 = vmatpush2.msra.mxu1 %v9119_v8 }
 0x403   :  { %v7967_v17 = vpack.i.bf16 %v2354_v45, %v2356_v23  ;;  %4445 = vmatprep.subr.mxu1 %v9120_v13 }
 0x404   :  { %v2360_v51 = vpop.f32.mrf.mxu0  ;;  %2865 = vmatprep.mubr.f32.mxu1 %v7785_v7  ;;  %4446 = vmatpush2.msra.mxu1 %v9121_v3 }
 0x405   :  { %v7789_v58 = vpop.trf.xlu1  ;;  %2866 = vmatmul.mubr.f32.gmra.mxu1 %v7788_v1  ;;  %7968 = vxpose.xlu1.b32.cont [4/16] %v7967_v17, 128 }
 0x406   :  { %v7793_v9 = vunpack.i.h.bf16 %v7789_v58  ;;  %v2362_v56 = vpop.f32.mrf.mxu0  ;;  %v7790_v20 = vunpack.i.l.bf16 %v7789_v58  ;;  %4447 = vmatprep.subr.mxu1 %v9122_v42 }
 0x407   :  { %v7969_v47 = vpack.i.bf16 %v2360_v51, %v2362_v56  ;;  %4448 = vmatpush2.msra.mxu1 %v9123_v48 }
 0x408   :  { %v2366_v25 = vpop.f32.mrf.mxu0  ;;  %2871 = vmatprep.mubr.f32.mxu1 %v7790_v20  ;;  %4449 = vmatprep.subr.mxu1 %v9124_v43 }
 0x409   :  { %v7794_v30 = vpop.trf.xlu1  ;;  %2872 = vmatmul.mubr.f32.gmra.mxu1 %v7793_v9  ;;  %7970 = vxpose.xlu1.b32.cont [5/16] %v7969_v47, 128 }
 0x40a   :  { %v7798_v53 = vunpack.i.h.bf16 %v7794_v30  ;;  %v2368_v38 = vpop.f32.mrf.mxu0  ;;  %v7795_v14 = vunpack.i.l.bf16 %v7794_v30  ;;  %4450 = vmatpush2.msra.mxu1 %v9125_v26 }
 0x40b   :  { %v7971_v52 = vpack.i.bf16 %v2366_v25, %v2368_v38  ;;  %4451 = vmatprep.subr.mxu1 %v9126_v18 }
 0x40c   :  { %v2372_v12 = vpop.f32.mrf.mxu0  ;;  %2877 = vmatprep.mubr.f32.mxu1 %v7795_v14  ;;  %4452 = vmatpush2.msra.mxu1 %v9127_v0 }
 0x40d   :  { %v7799_v28 = vpop.trf.xlu1  ;;  %2878 = vmatmul.mubr.f32.gmra.mxu1 %v7798_v53  ;;  %7972 = vxpose.xlu1.b32.cont [6/16] %v7971_v52, 128 }
 0x40e   :  { %v7803_v41 = vunpack.i.h.bf16 %v7799_v28  ;;  %v2374_v40 = vpop.f32.mrf.mxu0  ;;  %v7800_v57 = vunpack.i.l.bf16 %v7799_v28 }
 0x40f   :  { %v7973_v16 = vpack.i.bf16 %v2372_v12, %v2374_v40 }
 0x410   :  { %v2378_v10 = vpop.f32.mrf.mxu0  ;;  %2883 = vmatprep.mubr.f32.mxu1 %v7800_v57 }
 0x411   :  { %v7804_v36 = vpop.trf.xlu1  ;;  %2884 = vmatmul.mubr.f32.gmra.mxu1 %v7803_v41  ;;  %7974 = vxpose.xlu1.b32.cont [7/16] %v7973_v16, 128 }
 0x412   :  { %v7808_v35 = vunpack.i.h.bf16 %v7804_v36  ;;  %v2380_v37 = vpop.f32.mrf.mxu0  ;;  %v7805_v11 = vunpack.i.l.bf16 %v7804_v36 }
 0x413   :  { %v7975_v22 = vpack.i.bf16 %v2378_v10, %v2380_v37 }
 0x414   :  { %v2384_v34 = vpop.f32.mrf.mxu0  ;;  %2889 = vmatprep.mubr.f32.mxu1 %v7805_v11 }
 0x415   :  { %v7809_v5 = vpop.trf.xlu1  ;;  %2890 = vmatmul.mubr.f32.gmra.mxu1 %v7808_v35  ;;  %7976 = vxpose.xlu1.b32.cont [8/16] %v7975_v22, 128 }
 0x416   :  { %v7813_v32 = vunpack.i.h.bf16 %v7809_v5  ;;  %v2386_v50 = vpop.f32.mrf.mxu0  ;;  %v7810_v62 = vunpack.i.l.bf16 %v7809_v5 }
 0x417   :  { %v7977_v60 = vpack.i.bf16 %v2384_v34, %v2386_v50 }
 0x418   :  { %v2390_v2 = vpop.f32.mrf.mxu0  ;;  %2895 = vmatprep.mubr.f32.mxu1 %v7810_v62 }
 0x419   :  { %v7814_v44 = vpop.trf.xlu1  ;;  %2896 = vmatmul.mubr.f32.gmra.mxu1 %v7813_v32  ;;  %7978 = vxpose.xlu1.b32.cont [9/16] %v7977_v60, 128 }
 0x41a   :  { %v7818_v27 = vunpack.i.h.bf16 %v7814_v44  ;;  %v2392_v39 = vpop.f32.mrf.mxu0  ;;  %v7815_v55 = vunpack.i.l.bf16 %v7814_v44 }
 0x41b   :  { %v7979_v21 = vpack.i.bf16 %v2390_v2, %v2392_v39 }
 0x41c   :  { %v2396_v15 = vpop.f32.mrf.mxu0  ;;  %2901 = vmatprep.mubr.f32.mxu1 %v7815_v55 }
 0x41d   :  { %v7819_v24 = vpop.trf.xlu1  ;;  %2902 = vmatmul.mubr.f32.gmra.mxu1 %v7818_v27  ;;  %7980 = vxpose.xlu1.b32.cont [10/16] %v7979_v21, 128 }
 0x41e   :  { %v7823_v63 = vunpack.i.h.bf16 %v7819_v24  ;;  %v2398_v6 = vpop.f32.mrf.mxu0  ;;  %v7820_v29 = vunpack.i.l.bf16 %v7819_v24 }
 0x41f   :  { %v7981_v33 = vpack.i.bf16 %v2396_v15, %v2398_v6 }
 0x420   :  { %v2402_v4 = vpop.f32.mrf.mxu0  ;;  %2907 = vmatprep.mubr.f32.mxu1 %v7820_v29 }
 0x421   :  { %v7824_v59 = vpop.trf.xlu1  ;;  %2908 = vmatmul.mubr.f32.gmra.mxu1 %v7823_v63  ;;  %7982 = vxpose.xlu1.b32.cont [11/16] %v7981_v33, 128 }
 0x422   :  { %v7828_v61 = vunpack.i.h.bf16 %v7824_v59  ;;  %v2404_v31 = vpop.f32.mrf.mxu0  ;;  %v7825_v49 = vunpack.i.l.bf16 %v7824_v59 }
 0x423   :  { %v7983_v54 = vpack.i.bf16 %v2402_v4, %v2404_v31 }
 0x424   :  { %v2408_v45 = vpop.f32.mrf.mxu0  ;;  %2913 = vmatprep.mubr.f32.mxu1 %v7825_v49 }
 0x425   :  { %v7829_v19 = vpop.trf.xlu1  ;;  %2914 = vmatmul.mubr.f32.gmra.mxu1 %v7828_v61  ;;  %7984 = vxpose.xlu1.b32.cont [12/16] %v7983_v54, 128 }
 0x426   :  { %v7833_v46 = vunpack.i.h.bf16 %v7829_v19  ;;  %v2410_v1 = vpop.f32.mrf.mxu0  ;;  %v7830_v23 = vunpack.i.l.bf16 %v7829_v19 }
 0x427   :  { %v7985_v7 = vpack.i.bf16 %v2408_v45, %v2410_v1 }
 0x428   :  { %v2414_v8 = vpop.f32.mrf.mxu0  ;;  %2919 = vmatprep.mubr.f32.mxu1 %v7830_v23 }
 0x429   :  { %v7834_v17 = vpop.trf.xlu1  ;;  %2920 = vmatmul.mubr.f32.gmra.mxu1 %v7833_v46  ;;  %7986 = vxpose.xlu1.b32.cont [13/16] %v7985_v7, 128 }
 0x42a   :  { %v7838_v13 = vunpack.i.h.bf16 %v7834_v17  ;;  %v2416_v51 = vpop.f32.mrf.mxu0  ;;  %v7835_v3 = vunpack.i.l.bf16 %v7834_v17 }
 0x42b   :  { %v7987_v58 = vpack.i.bf16 %v2414_v8, %v2416_v51 }
 0x42c   :  { %v2420_v9 = vpop.f32.mrf.mxu0  ;;  %2925 = vmatprep.mubr.f32.mxu1 %v7835_v3 }
 0x42d   :  { %v7839_v56 = vpop.trf.xlu1  ;;  %2926 = vmatmul.mubr.f32.gmra.mxu1 %v7838_v13  ;;  %7988 = vxpose.xlu1.b32.cont [14/16] %v7987_v58, 128 }
 0x42e   :  { %v2422_v20 = vpop.f32.mrf.mxu0  ;;  %v7840_v42 = vunpack.i.l.bf16 %v7839_v56  ;;  %v7843_v47 = vunpack.i.h.bf16 %v7839_v56 }
 0x42f   :  { %v7989_v48 = vpack.i.bf16 %v2420_v9, %v2422_v20  ;;  %v10071_v9 = vld [vmem:[#allocation5 + $0x100] sm:$0xff] }
 0x430   :  { %v2426_v25 = vpop.f32.mrf.mxu0  ;;  %2931 = vmatprep.mubr.f32.mxu1 %v7840_v42  ;;  %v10073_v20 = vld [vmem:[#allocation5 + $0x180] sm:$0xff] }
 0x431   :  { %v7844_v43 = vpop.trf.xlu1  ;;  %2932 = vmatmul.mubr.f32.gmra.mxu1 %v7843_v47  ;;  %7990 = vxpose.xlu1.b32.cont [15/16] %v7989_v48, 128 }
 0x432   :  { %v7848_v30 = vunpack.i.h.bf16 %v7844_v43  ;;  %v2428_v53 = vpop.f32.mrf.mxu0  ;;  %v7845_v38 = vunpack.i.l.bf16 %v7844_v43 }
 0x433   :  { %v7991_v14 = vpack.i.bf16 %v2426_v25, %v2428_v53 }
 0x434   :  { %2937 = vmatprep.mubr.f32.mxu1 %v7845_v38 }
 0x435   :  { %2938 = vmatmul.mubr.f32.gmra.mxu1 %v7848_v30  ;;  %v7881_v26 = vpop.trf.xlu0  ;;  %7992 = vxpose.xlu1.b32.end [16/16] %v7991_v14, 128  ;;  %v10079_v14 = vld [vmem:[#allocation5 + $0x108] sm:$0xff] }
 0x436   :  { %v7885_v52 = vunpack.i.h.bf16 %v7881_v26  ;;  %v7882_v18 = vunpack.i.l.bf16 %v7881_v26 }
 0x438   :  { %2943 = vmatprep.mubr.f32.mxu1 %v7882_v18  ;;  %v10081_v18 = vld [vmem:[#allocation5 + $0x188] sm:$0xff] }
 0x439   :  { %v7886_v12 = vpop.trf.xlu0  ;;  %2944 = vmatmul.mubr.f32.gmra.mxu1 %v7885_v52 }
 0x43a   :  { %v7890_v0 = vunpack.i.h.bf16 %v7886_v12  ;;  %v7887_v28 = vunpack.i.l.bf16 %v7886_v12 }
 0x43c   :  { %2949 = vmatprep.mubr.f32.mxu1 %v7887_v28 }
 0x43d   :  { %v7891_v41 = vpop.trf.xlu0  ;;  %2950 = vmatmul.mubr.f32.gmra.mxu1 %v7890_v0 }
 0x43e   :  { %v7895_v40 = vunpack.i.h.bf16 %v7891_v41  ;;  %v7892_v57 = vunpack.i.l.bf16 %v7891_v41 }
 0x440   :  { %2955 = vmatprep.mubr.f32.mxu1 %v7892_v57 }
 0x441   :  { %v7896_v16 = vpop.trf.xlu0  ;;  %2956 = vmatmul.mubr.f32.gmra.mxu1 %v7895_v40 }
 0x442   :  { %v7900_v10 = vunpack.i.h.bf16 %v7896_v16  ;;  %v7897_v36 = vunpack.i.l.bf16 %v7896_v16 }
 0x444   :  { %2961 = vmatprep.mubr.f32.mxu1 %v7897_v36 }
 0x445   :  { %v7901_v35 = vpop.trf.xlu0  ;;  %2962 = vmatmul.mubr.f32.gmra.mxu1 %v7900_v10 }
 0x446   :  { %v7905_v37 = vunpack.i.h.bf16 %v7901_v35  ;;  %v7902_v11 = vunpack.i.l.bf16 %v7901_v35  ;;  %v10087_v35 = vld [vmem:[#allocation5 + $0x110] sm:$0xff] }
 0x448   :  { %2967 = vmatprep.mubr.f32.mxu1 %v7902_v11 }
 0x449   :  { %v7906_v22 = vpop.trf.xlu0  ;;  %2968 = vmatmul.mubr.f32.gmra.mxu1 %v7905_v37 }
 0x44a   :  { %v7910_v34 = vunpack.i.h.bf16 %v7906_v22  ;;  %v7907_v5 = vunpack.i.l.bf16 %v7906_v22  ;;  %v10089_v22 = vld [vmem:[#allocation5 + $0x190] sm:$0xff] }
 0x44c   :  { %2973 = vmatprep.mubr.f32.mxu1 %v7907_v5 }
 0x44d   :  { %v7911_v32 = vpop.trf.xlu0  ;;  %2974 = vmatmul.mubr.f32.gmra.mxu1 %v7910_v34 }
 0x44e   :  { %v7915_v50 = vunpack.i.h.bf16 %v7911_v32  ;;  %v7912_v62 = vunpack.i.l.bf16 %v7911_v32 }
 0x450   :  { %2979 = vmatprep.mubr.f32.mxu1 %v7912_v62 }
 0x451   :  { %v7916_v60 = vpop.trf.xlu0  ;;  %2980 = vmatmul.mubr.f32.gmra.mxu1 %v7915_v50 }
 0x452   :  { %v7920_v2 = vunpack.i.h.bf16 %v7916_v60  ;;  %v7917_v44 = vunpack.i.l.bf16 %v7916_v60 }
 0x454   :  { %2985 = vmatprep.mubr.f32.mxu1 %v7917_v44 }
 0x455   :  { %v7921_v27 = vpop.trf.xlu0  ;;  %2986 = vmatmul.mubr.f32.gmra.mxu1 %v7920_v2 }
 0x456   :  { %v7925_v39 = vunpack.i.h.bf16 %v7921_v27  ;;  %v7922_v55 = vunpack.i.l.bf16 %v7921_v27 }
 0x458   :  { %2991 = vmatprep.mubr.f32.mxu1 %v7922_v55 }
 0x459   :  { %v7926_v21 = vpop.trf.xlu0  ;;  %2992 = vmatmul.mubr.f32.gmra.mxu1 %v7925_v39  ;;  %v10095_v39 = vld [vmem:[#allocation5 + $0x118] sm:$0xff] }
 0x45a   :  { %v7930_v15 = vunpack.i.h.bf16 %v7926_v21  ;;  %v7927_v24 = vunpack.i.l.bf16 %v7926_v21 }
 0x45c   :  { %2997 = vmatprep.mubr.f32.mxu1 %v7927_v24 }
 0x45d   :  { %v7931_v63 = vpop.trf.xlu0  ;;  %2998 = vmatmul.mubr.f32.gmra.mxu1 %v7930_v15  ;;  %v10097_v15 = vld [vmem:[#allocation5 + $0x198] sm:$0xff] }
 0x45e   :  { %v7935_v6 = vunpack.i.h.bf16 %v7931_v63  ;;  %v7932_v29 = vunpack.i.l.bf16 %v7931_v63 }
 0x460   :  { %3003 = vmatprep.mubr.f32.mxu1 %v7932_v29 }
 0x461   :  { %v7936_v33 = vpop.trf.xlu0  ;;  %3004 = vmatmul.mubr.f32.gmra.mxu1 %v7935_v6 }
 0x462   :  { %v7940_v4 = vunpack.i.h.bf16 %v7936_v33  ;;  %v7937_v59 = vunpack.i.l.bf16 %v7936_v33 }
 0x464   :  { %3009 = vmatprep.mubr.f32.mxu1 %v7937_v59 }
 0x465   :  { %v7941_v61 = vpop.trf.xlu0  ;;  %3010 = vmatmul.mubr.f32.gmra.mxu1 %v7940_v4 }
 0x466   :  { %v7945_v31 = vunpack.i.h.bf16 %v7941_v61  ;;  %v7942_v49 = vunpack.i.l.bf16 %v7941_v61 }
 0x468   :  { %3015 = vmatprep.mubr.f32.mxu1 %v7942_v49  ;;  %v10103_v49 = vld [vmem:[#allocation5 + $0x120] sm:$0xff] }
 0x469   :  { %v7946_v54 = vpop.trf.xlu0  ;;  %3016 = vmatmul.mubr.f32.gmra.mxu1 %v7945_v31 }
 0x46a   :  { %v7950_v45 = vunpack.i.h.bf16 %v7946_v54  ;;  %v7947_v19 = vunpack.i.l.bf16 %v7946_v54 }
 0x46c   :  { %3021 = vmatprep.mubr.f32.mxu1 %v7947_v19  ;;  %v10105_v19 = vld [vmem:[#allocation5 + $0x1a0] sm:$0xff] }
 0x46d   :  { %v7951_v46 = vpop.trf.xlu0  ;;  %3022 = vmatmul.mubr.f32.gmra.mxu1 %v7950_v45 }
 0x46e   :  { %v7952_v1 = vunpack.i.l.bf16 %v7951_v46  ;;  %v7955_v23 = vunpack.i.h.bf16 %v7951_v46 }
 0x470   :  { %3027 = vmatprep.mubr.f32.mxu1 %v7952_v1 }
 0x471   :  { %v7956_v7 = vpop.trf.xlu0  ;;  %3028 = vmatmul.mubr.f32.gmra.mxu1 %v7955_v23 }
 0x472   :  { %v7960_v8 = vunpack.i.h.bf16 %v7956_v7  ;;  %v7957_v17 = vunpack.i.l.bf16 %v7956_v7 }
 0x474   :  { %3033 = vmatprep.mubr.f32.mxu1 %v7957_v17 }
 0x475   :  { %3034 = vmatmul.mubr.f32.gmra.mxu1 %v7960_v8  ;;  %v7993_v13 = vpop.trf.xlu1 }
 0x476   :  { %v7997_v51 = vunpack.i.h.bf16 %v7993_v13  ;;  %v7994_v3 = vunpack.i.l.bf16 %v7993_v13 }
 0x478   :  { %3039 = vmatprep.mubr.f32.mxu1 %v7994_v3 }
 0x479   :  { %v2753_v58 = vpop.f32.mrf.mxu1  ;;  %v7998_v56 = vpop.trf.xlu1  ;;  %3040 = vmatmul.mubr.f32.gmra.mxu1 %v7997_v51 }
 0x47a   :  { %v8002_v42 = vunpack.i.h.bf16 %v7998_v56  ;;  %v7999_v48 = vunpack.i.l.bf16 %v7998_v56  ;;  %v3170_v25 = vmul.f32 %v10071_v9, %v2753_v58  ;;  %v3362_v53 = vmul.f32 %v10073_v20, %v2753_v58  ;;  %v10111_v58 = vld [vmem:[#allocation5 + $0x128] sm:$0xff] }
 0x47b   :  { %v2755_v47 = vpop.f32.mrf.mxu1 }
 0x47c   :  { %v3234_v43 = vmul.f32 %v10073_v20, %v2755_v47  ;;  %v3426_v30 = vmul.f32 %v10071_v9, %v2755_v47  ;;  %3045 = vmatprep.mubr.f32.mxu1 %v7999_v48  ;;  %v10113_v47 = vld [vmem:[#allocation5 + $0x1a8] sm:$0xff] }
 0x47d   :  { %v2759_v38 = vpop.f32.mrf.mxu1  ;;  %v8003_v26 = vpop.trf.xlu1  ;;  %3046 = vmatmul.mubr.f32.gmra.mxu1 %v8002_v42 }
 0x47e   :  { %v3298_v52 = vsub.f32 %v3170_v25, %v3234_v43  ;;  %v8007_v12 = vunpack.i.h.bf16 %v8003_v26  ;;  %v8004_v28 = vunpack.i.l.bf16 %v8003_v26  ;;  %v3490_v41 = vadd.f32 %v3426_v30, %v3362_v53 }
 0x47f   :  { %v2761_v0 = vpop.f32.mrf.mxu1  ;;  %v3171_v40 = vmul.f32 %v10079_v14, %v2759_v38  ;;  %v3363_v10 = vmul.f32 %v10081_v18, %v2759_v38 }
 0x480   :  { %v3235_v57 = vmul.f32 %v10081_v18, %v2761_v0  ;;  %v3427_v16 = vmul.f32 %v10079_v14, %v2761_v0  ;;  %3051 = vmatprep.mubr.f32.mxu1 %v8004_v28  ;;  %3748 = vmatprep.mubr.f32.mxu0 %v3490_v41  ;;  %v10119_v0 = vld [vmem:[#allocation5 + $0x130] sm:$0xff] }
 0x481   :  { %v2765_v36 = vpop.f32.mrf.mxu1  ;;  %v8008_v37 = vpop.trf.xlu1  ;;  %3749 = vmatmul.mubr.f32.vlgmr.msra.gmra.mxu0 %v3298_v52  ;;  %3052 = vmatmul.mubr.f32.gmra.mxu1 %v8007_v12 }
 0x482   :  { %v3299_v11 = vsub.f32 %v3171_v40, %v3235_v57  ;;  %v8012_v34 = vunpack.i.h.bf16 %v8008_v37  ;;  %v8009_v32 = vunpack.i.l.bf16 %v8008_v37  ;;  %v3491_v50 = vadd.f32 %v3427_v16, %v3363_v10  ;;  %v10121_v40 = vld [vmem:[#allocation5 + $0x1b0] sm:$0xff] }
 0x483   :  { %v2767_v5 = vpop.f32.mrf.mxu1  ;;  %v3172_v62 = vmul.f32 %v10087_v35, %v2765_v36  ;;  %v3364_v44 = vmul.f32 %v10089_v22, %v2765_v36 }
 0x484   :  { %v3236_v60 = vmul.f32 %v10089_v22, %v2767_v5  ;;  %v3428_v2 = vmul.f32 %v10087_v35, %v2767_v5  ;;  %3057 = vmatprep.mubr.f32.mxu1 %v8009_v32  ;;  %3754 = vmatprep.mubr.f32.mxu0 %v3491_v50  ;;  %v10127_v50 = vld [vmem:[#allocation5 + $0x138] sm:$0xff] }
 0x485   :  { %v2771_v27 = vpop.f32.mrf.mxu1  ;;  %v8013_v55 = vpop.trf.xlu1  ;;  %3755 = vmatmul.mubr.f32.gmra.mxu0 %v3299_v11  ;;  %3058 = vmatmul.mubr.f32.gmra.mxu1 %v8012_v34 }
 0x486   :  { %v3300_v21 = vsub.f32 %v3172_v62, %v3236_v60  ;;  %v8017_v24 = vunpack.i.h.bf16 %v8013_v55  ;;  %v8014_v6 = vunpack.i.l.bf16 %v8013_v55  ;;  %v3492_v29 = vadd.f32 %v3428_v2, %v3364_v44  ;;  %v10129_v2 = vld [vmem:[#allocation5 + $0x1b8] sm:$0xff] }
 0x487   :  { %v2773_v63 = vpop.f32.mrf.mxu1  ;;  %v3173_v33 = vmul.f32 %v10095_v39, %v2771_v27  ;;  %v3365_v61 = vmul.f32 %v10097_v15, %v2771_v27 }
 0x488   :  { %v3237_v4 = vmul.f32 %v10097_v15, %v2773_v63  ;;  %v3429_v59 = vmul.f32 %v10095_v39, %v2773_v63  ;;  %3063 = vmatprep.mubr.f32.mxu1 %v8014_v6  ;;  %3760 = vmatprep.mubr.f32.mxu0 %v3492_v29 }
 0x489   :  { %v2777_v31 = vpop.f32.mrf.mxu1  ;;  %v8018_v54 = vpop.trf.xlu1  ;;  %3761 = vmatmul.mubr.f32.gmra.mxu0 %v3300_v21  ;;  %3064 = vmatmul.mubr.f32.gmra.mxu1 %v8017_v24 }
 0x48a   :  { %v3301_v45 = vsub.f32 %v3173_v33, %v3237_v4  ;;  %v8022_v46 = vunpack.i.h.bf16 %v8018_v54  ;;  %v8019_v23 = vunpack.i.l.bf16 %v8018_v54  ;;  %v3493_v7 = vadd.f32 %v3429_v59, %v3365_v61  ;;  %v10135_v4 = vld [vmem:[#allocation5 + $0x140] sm:$0xff] }
 0x48b   :  { %v2779_v1 = vpop.f32.mrf.mxu1  ;;  %v3174_v8 = vmul.f32 %v10103_v49, %v2777_v31  ;;  %v3366_v51 = vmul.f32 %v10105_v19, %v2777_v31  ;;  %v10137_v31 = vld [vmem:[#allocation5 + $0x1c0] sm:$0xff] }
 0x48c   :  { %v3238_v17 = vmul.f32 %v10105_v19, %v2779_v1  ;;  %v3430_v13 = vmul.f32 %v10103_v49, %v2779_v1  ;;  %3069 = vmatprep.mubr.f32.mxu1 %v8019_v23  ;;  %3766 = vmatprep.mubr.f32.mxu0 %v3493_v7 }
 0x48d   :  { %v2783_v3 = vpop.f32.mrf.mxu1  ;;  %v8023_v56 = vpop.trf.xlu1  ;;  %3767 = vmatmul.mubr.f32.gmra.mxu0 %v3301_v45  ;;  %3070 = vmatmul.mubr.f32.gmra.mxu1 %v8022_v46 }
 0x48e   :  { %v3302_v42 = vsub.f32 %v3174_v8, %v3238_v17  ;;  %v8027_v48 = vunpack.i.h.bf16 %v8023_v56  ;;  %v8024_v43 = vunpack.i.l.bf16 %v8023_v56  ;;  %v3494_v30 = vadd.f32 %v3430_v13, %v3366_v51  ;;  %v10143_v51 = vld [vmem:[#allocation5 + $0x148] sm:$0xff] }
 0x48f   :  { %v2785_v25 = vpop.f32.mrf.mxu1  ;;  %v3175_v53 = vmul.f32 %v10111_v58, %v2783_v3  ;;  %v3367_v52 = vmul.f32 %v10113_v47, %v2783_v3 }
 0x490   :  { %v3239_v38 = vmul.f32 %v10113_v47, %v2785_v25  ;;  %v3431_v26 = vmul.f32 %v10111_v58, %v2785_v25  ;;  %3075 = vmatprep.mubr.f32.mxu1 %v8024_v43  ;;  %3772 = vmatprep.mubr.f32.mxu0 %v3494_v30 }
 0x491   :  { %v2789_v12 = vpop.f32.mrf.mxu1  ;;  %v8028_v28 = vpop.trf.xlu1  ;;  %3773 = vmatmul.mubr.f32.gmra.mxu0 %v3302_v42  ;;  %3076 = vmatmul.mubr.f32.gmra.mxu1 %v8027_v48  ;;  %v10145_v42 = vld [vmem:[#allocation5 + $0x1c8] sm:$0xff] }
 0x492   :  { %v3303_v41 = vsub.f32 %v3175_v53, %v3239_v38  ;;  %v8032_v57 = vunpack.i.h.bf16 %v8028_v28  ;;  %v8029_v10 = vunpack.i.l.bf16 %v8028_v28  ;;  %v3495_v36 = vadd.f32 %v3431_v26, %v3367_v52  ;;  %v10151_v28 = vld [vmem:[#allocation5 + $0x150] sm:$0xff] }
 0x493   :  { %v2791_v16 = vpop.f32.mrf.mxu1  ;;  %v3176_v37 = vmul.f32 %v10119_v0, %v2789_v12  ;;  %v3368_v5 = vmul.f32 %v10121_v40, %v2789_v12 }
 0x494   :  { %v3240_v11 = vmul.f32 %v10121_v40, %v2791_v16  ;;  %v3432_v34 = vmul.f32 %v10119_v0, %v2791_v16  ;;  %3081 = vmatprep.mubr.f32.mxu1 %v8029_v10  ;;  %3778 = vmatprep.mubr.f32.mxu0 %v3495_v36  ;;  %v10153_v16 = vld [vmem:[#allocation5 + $0x1d0] sm:$0xff] }
 0x495   :  { %v2795_v32 = vpop.f32.mrf.mxu1  ;;  %v8033_v62 = vpop.trf.xlu1  ;;  %3779 = vmatmul.mubr.f32.gmra.mxu0 %v3303_v41  ;;  %3082 = vmatmul.mubr.f32.gmra.mxu1 %v8032_v57 }
 0x496   :  { %v3304_v60 = vsub.f32 %v3176_v37, %v3240_v11  ;;  %v8037_v44 = vunpack.i.h.bf16 %v8033_v62  ;;  %v8034_v55 = vunpack.i.l.bf16 %v8033_v62  ;;  %v3496_v21 = vadd.f32 %v3432_v34, %v3368_v5 }
 0x497   :  { %v2797_v27 = vpop.f32.mrf.mxu1  ;;  %v3177_v24 = vmul.f32 %v10127_v50, %v2795_v32  ;;  %v3369_v29 = vmul.f32 %v10129_v2, %v2795_v32 }
 0x498   :  { %v3241_v63 = vmul.f32 %v10129_v2, %v2797_v27  ;;  %v3433_v6 = vmul.f32 %v10127_v50, %v2797_v27  ;;  %3087 = vmatprep.mubr.f32.mxu1 %v8034_v55  ;;  %3784 = vmatprep.mubr.f32.mxu0 %v3496_v21  ;;  %v10161_v21 = vld [vmem:[#allocation5 + $0x1d8] sm:$0xff] }
 0x499   :  { %v2801_v33 = vpop.f32.mrf.mxu1  ;;  %v8038_v59 = vpop.trf.xlu1  ;;  %3785 = vmatmul.mubr.f32.gmra.mxu0 %v3304_v60  ;;  %3088 = vmatmul.mubr.f32.gmra.mxu1 %v8037_v44  ;;  %v10159_v44 = vld [vmem:[#allocation5 + $0x158] sm:$0xff] }
 0x49a   :  { %v3305_v61 = vsub.f32 %v3177_v24, %v3241_v63  ;;  %v8042_v54 = vunpack.i.h.bf16 %v8038_v59  ;;  %v8039_v46 = vunpack.i.l.bf16 %v8038_v59  ;;  %v3497_v1 = vadd.f32 %v3433_v6, %v3369_v29 }
 0x49b   :  { %v2803_v45 = vpop.f32.mrf.mxu1  ;;  %v3178_v23 = vmul.f32 %v10135_v4, %v2801_v33  ;;  %v3370_v17 = vmul.f32 %v10137_v31, %v2801_v33 }
 0x49c   :  { %v3242_v7 = vmul.f32 %v10137_v31, %v2803_v45  ;;  %v3434_v8 = vmul.f32 %v10135_v4, %v2803_v45  ;;  %3093 = vmatprep.mubr.f32.mxu1 %v8039_v46  ;;  %3790 = vmatprep.mubr.f32.mxu0 %v3497_v1  ;;  %v10167_v46 = vld [vmem:[#allocation5 + $0x160] sm:$0xff] }
 0x49d   :  { %v2807_v13 = vpop.f32.mrf.mxu1  ;;  %v8043_v3 = vpop.trf.xlu1  ;;  %3791 = vmatmul.mubr.f32.gmra.mxu0 %v3305_v61  ;;  %3094 = vmatmul.mubr.f32.gmra.mxu1 %v8042_v54 }
 0x49e   :  { %v3306_v56 = vsub.f32 %v3178_v23, %v3242_v7  ;;  %v8047_v48 = vunpack.i.h.bf16 %v8043_v3  ;;  %v8044_v43 = vunpack.i.l.bf16 %v8043_v3  ;;  %v3498_v30 = vadd.f32 %v3434_v8, %v3370_v17  ;;  %v10169_v7 = vld [vmem:[#allocation5 + $0x1e0] sm:$0xff] }
 0x49f   :  { %v2809_v25 = vpop.f32.mrf.mxu1  ;;  %v3179_v53 = vmul.f32 %v10143_v51, %v2807_v13  ;;  %v3371_v52 = vmul.f32 %v10145_v42, %v2807_v13 }
 0x4a0   :  { %v3243_v38 = vmul.f32 %v10145_v42, %v2809_v25  ;;  %v3435_v26 = vmul.f32 %v10143_v51, %v2809_v25  ;;  %3099 = vmatprep.mubr.f32.mxu1 %v8044_v43  ;;  %3796 = vmatprep.mubr.f32.mxu0 %v3498_v30 }
 0x4a1   :  { %v2813_v12 = vpop.f32.mrf.mxu1  ;;  %v8048_v41 = vpop.trf.xlu1  ;;  %3797 = vmatmul.mubr.f32.gmra.mxu0 %v3306_v56  ;;  %3100 = vmatmul.mubr.f32.gmra.mxu1 %v8047_v48 }
 0x4a2   :  { %v3307_v57 = vsub.f32 %v3179_v53, %v3243_v38  ;;  %v8052_v10 = vunpack.i.h.bf16 %v8048_v41  ;;  %v8049_v37 = vunpack.i.l.bf16 %v8048_v41  ;;  %v3499_v11 = vadd.f32 %v3435_v26, %v3371_v52  ;;  %v10175_v53 = vld [vmem:[#allocation5 + $0x168] sm:$0xff] }
 0x4a3   :  { %v2815_v36 = vpop.f32.mrf.mxu1  ;;  %v3180_v34 = vmul.f32 %v10151_v28, %v2813_v12  ;;  %v3372_v62 = vmul.f32 %v10153_v16, %v2813_v12  ;;  %v10177_v52 = vld [vmem:[#allocation5 + $0x1e8] sm:$0xff] }
 0x4a4   :  { %v3244_v5 = vmul.f32 %v10153_v16, %v2815_v36  ;;  %v3436_v32 = vmul.f32 %v10151_v28, %v2815_v36  ;;  %3105 = vmatprep.mubr.f32.mxu1 %v8049_v37  ;;  %3802 = vmatprep.mubr.f32.mxu0 %v3499_v11 }
 0x4a5   :  { %v2819_v60 = vpop.f32.mrf.mxu1  ;;  %v8053_v27 = vpop.trf.xlu1  ;;  %3803 = vmatmul.mubr.f32.gmra.mxu0 %v3307_v57  ;;  %3106 = vmatmul.mubr.f32.gmra.mxu1 %v8052_v10 }
 0x4a6   :  { %v3308_v55 = vsub.f32 %v3180_v34, %v3244_v5  ;;  %v8057_v24 = vunpack.i.h.bf16 %v8053_v27  ;;  %v8054_v6 = vunpack.i.l.bf16 %v8053_v27  ;;  %v3500_v29 = vadd.f32 %v3436_v32, %v3372_v62  ;;  %v10183_v32 = vld [vmem:[#allocation5 + $0x170] sm:$0xff] }
 0x4a7   :  { %v2821_v63 = vpop.f32.mrf.mxu1  ;;  %v3181_v33 = vmul.f32 %v10159_v44, %v2819_v60  ;;  %v3373_v54 = vmul.f32 %v10161_v21, %v2819_v60  ;;  %v10185_v27 = vld [vmem:[#allocation5 + $0x1f0] sm:$0xff] }
 0x4a8   :  { %v3245_v59 = vmul.f32 %v10161_v21, %v2821_v63  ;;  %v3437_v61 = vmul.f32 %v10159_v44, %v2821_v63  ;;  %3111 = vmatprep.mubr.f32.mxu1 %v8054_v6  ;;  %3808 = vmatprep.mubr.f32.mxu0 %v3500_v29 }
 0x4a9   :  { %v2825_v45 = vpop.f32.mrf.mxu1  ;;  %v8058_v1 = vpop.trf.xlu1  ;;  %3809 = vmatmul.mubr.f32.gmra.mxu0 %v3308_v55  ;;  %3112 = vmatmul.mubr.f32.gmra.mxu1 %v8057_v24 }
 0x4aa   :  { %v3309_v23 = vsub.f32 %v3181_v33, %v3245_v59  ;;  %v8062_v8 = vunpack.i.h.bf16 %v8058_v1  ;;  %v8059_v13 = vunpack.i.l.bf16 %v8058_v1  ;;  %v3501_v3 = vadd.f32 %v3437_v61, %v3373_v54  ;;  %v10193_v1 = vld [vmem:[#allocation5 + $0x1f8] sm:$0xff] }
 0x4ab   :  { %v2827_v17 = vpop.f32.mrf.mxu1  ;;  %v3182_v56 = vmul.f32 %v10167_v46, %v2825_v45  ;;  %v3374_v43 = vmul.f32 %v10169_v7, %v2825_v45  ;;  %v10191_v45 = vld [vmem:[#allocation5 + $0x178] sm:$0xff] }
 0x4ac   :  { %v3246_v48 = vmul.f32 %v10169_v7, %v2827_v17  ;;  %v3438_v25 = vmul.f32 %v10167_v46, %v2827_v17  ;;  %3117 = vmatprep.mubr.f32.mxu1 %v8059_v13  ;;  %3814 = vmatprep.mubr.f32.mxu0 %v3501_v3 }
 0x4ad   :  { %v2831_v30 = vpop.f32.mrf.mxu1  ;;  %v8063_v38 = vpop.trf.xlu1  ;;  %3815 = vmatmul.mubr.f32.gmra.mxu0 %v3309_v23  ;;  %3118 = vmatmul.mubr.f32.gmra.mxu1 %v8062_v8 }
 0x4ae   :  { %v3310_v26 = vsub.f32 %v3182_v56, %v3246_v48  ;;  %v8064_v41 = vunpack.i.l.bf16 %v8063_v38  ;;  %v3502_v57 = vadd.f32 %v3438_v25, %v3374_v43  ;;  %v8067_v10 = vunpack.i.h.bf16 %v8063_v38 }
 0x4af   :  { %v2833_v12 = vpop.f32.mrf.mxu1  ;;  %v3183_v36 = vmul.f32 %v10175_v53, %v2831_v30  ;;  %v3375_v34 = vmul.f32 %v10177_v52, %v2831_v30 }
 0x4b0   :  { %v3247_v37 = vmul.f32 %v10177_v52, %v2833_v12  ;;  %v3439_v11 = vmul.f32 %v10175_v53, %v2833_v12  ;;  %3123 = vmatprep.mubr.f32.mxu1 %v8064_v41  ;;  %3820 = vmatprep.mubr.f32.mxu0 %v3502_v57 }
 0x4b1   :  { %v2837_v5 = vpop.f32.mrf.mxu1  ;;  %v8068_v62 = vpop.trf.xlu1  ;;  %3821 = vmatmul.mubr.f32.gmra.mxu0 %v3310_v26  ;;  %3124 = vmatmul.mubr.f32.gmra.mxu1 %v8067_v10 }
 0x4b2   :  { %v3311_v60 = vsub.f32 %v3183_v36, %v3247_v37  ;;  %v8072_v55 = vunpack.i.h.bf16 %v8068_v62  ;;  %v8069_v63 = vunpack.i.l.bf16 %v8068_v62  ;;  %v3503_v6 = vadd.f32 %v3439_v11, %v3375_v34 }
 0x4b3   :  { %v2839_v24 = vpop.f32.mrf.mxu1  ;;  %v3184_v29 = vmul.f32 %v10183_v32, %v2837_v5  ;;  %v3376_v61 = vmul.f32 %v10185_v27, %v2837_v5 }
 0x4b4   :  { %v3248_v33 = vmul.f32 %v10185_v27, %v2839_v24  ;;  %v3440_v59 = vmul.f32 %v10183_v32, %v2839_v24  ;;  %3129 = vmatprep.mubr.f32.mxu1 %v8069_v63  ;;  %3826 = vmatprep.mubr.f32.mxu0 %v3503_v6 }
 0x4b5   :  { %v2843_v54 = vpop.f32.mrf.mxu1  ;;  %3130 = vmatmul.mubr.f32.gmra.mxu1 %v8072_v55  ;;  %3827 = vmatmul.mubr.f32.gmra.mxu0 %v3311_v60 }
 0x4b6   :  { %v3312_v23 = vsub.f32 %v3184_v29, %v3248_v33  ;;  %v3504_v17 = vadd.f32 %v3440_v59, %v3376_v61  ;;  %v3185_v13 = vmul.f32 %v10191_v45, %v2843_v54  ;;  %v3377_v3 = vmul.f32 %v10193_v1, %v2843_v54 }
 0x4b7   :  { %v2845_v8 = vpop.f32.mrf.mxu1 }
 0x4b8   :  { %v3249_v56 = vmul.f32 %v10193_v1, %v2845_v8  ;;  %v3441_v48 = vmul.f32 %v10191_v45, %v2845_v8  ;;  %3832 = vmatprep.mubr.f32.mxu0 %v3504_v17 }
 0x4b9   :  { %v2849_v25 = vpop.f32.mrf.mxu1  ;;  %3833 = vmatmul.mubr.f32.gmra.mxu0 %v3312_v23 }
 0x4ba   :  { %v3313_v43 = vsub.f32 %v3185_v13, %v3249_v56  ;;  %v3505_v30 = vadd.f32 %v3441_v48, %v3377_v3  ;;  %v3186_v26 = vmul.f32 %v10071_v9, %v2849_v25  ;;  %v3378_v12 = vmul.f32 %v10073_v20, %v2849_v25 }
 0x4bb   :  { %v2851_v38 = vpop.f32.mrf.mxu1 }
 0x4bc   :  { %v3250_v41 = vmul.f32 %v10073_v20, %v2851_v38  ;;  %v3442_v57 = vmul.f32 %v10071_v9, %v2851_v38  ;;  %3838 = vmatprep.mubr.f32.mxu0 %v3505_v30 }
 0x4bd   :  { %v2855_v10 = vpop.f32.mrf.mxu1  ;;  %3839 = vmatmul.mubr.f32.gmra.mxu0 %v3313_v43 }
 0x4be   :  { %v3314_v36 = vsub.f32 %v3186_v26, %v3250_v41  ;;  %v3506_v37 = vadd.f32 %v3442_v57, %v3378_v12  ;;  %v3187_v34 = vmul.f32 %v10079_v14, %v2855_v10  ;;  %v3379_v5 = vmul.f32 %v10081_v18, %v2855_v10 }
 0x4bf   :  { %v2857_v11 = vpop.f32.mrf.mxu1 }
 0x4c0   :  { %v3251_v62 = vmul.f32 %v10081_v18, %v2857_v11  ;;  %v3443_v60 = vmul.f32 %v10079_v14, %v2857_v11  ;;  %3844 = vmatprep.mubr.f32.mxu0 %v3506_v37 }
 0x4c1   :  { %v2861_v55 = vpop.f32.mrf.mxu1  ;;  %3845 = vmatmul.mubr.f32.gmra.mxu0 %v3314_v36 }
 0x4c2   :  { %v3315_v24 = vsub.f32 %v3187_v34, %v3251_v62  ;;  %v3507_v63 = vadd.f32 %v3443_v60, %v3379_v5  ;;  %v3188_v29 = vmul.f32 %v10087_v35, %v2861_v55  ;;  %v3380_v33 = vmul.f32 %v10089_v22, %v2861_v55 }
 0x4c3   :  { %v2863_v6 = vpop.f32.mrf.mxu1 }
 0x4c4   :  { %v3252_v59 = vmul.f32 %v10089_v22, %v2863_v6  ;;  %v3444_v61 = vmul.f32 %v10087_v35, %v2863_v6  ;;  %3850 = vmatprep.mubr.f32.mxu0 %v3507_v63 }
 0x4c5   :  { %v2867_v54 = vpop.f32.mrf.mxu1  ;;  %3851 = vmatmul.mubr.f32.gmra.mxu0 %v3315_v24 }
 0x4c6   :  { %v3316_v23 = vsub.f32 %v3188_v29, %v3252_v59  ;;  %v3508_v8 = vadd.f32 %v3444_v61, %v3380_v33  ;;  %v3189_v13 = vmul.f32 %v10095_v39, %v2867_v54  ;;  %v3381_v3 = vmul.f32 %v10097_v15, %v2867_v54 }
 0x4c7   :  { %v2869_v17 = vpop.f32.mrf.mxu1 }
 0x4c8   :  { %v3253_v56 = vmul.f32 %v10097_v15, %v2869_v17  ;;  %v3445_v48 = vmul.f32 %v10095_v39, %v2869_v17  ;;  %3856 = vmatprep.mubr.f32.mxu0 %v3508_v8 }
 0x4c9   :  { %v2873_v25 = vpop.f32.mrf.mxu1  ;;  %3857 = vmatmul.mubr.f32.gmra.mxu0 %v3316_v23 }
 0x4ca   :  { %v3317_v43 = vsub.f32 %v3189_v13, %v3253_v56  ;;  %v3509_v30 = vadd.f32 %v3445_v48, %v3381_v3  ;;  %v3190_v26 = vmul.f32 %v10103_v49, %v2873_v25  ;;  %v3382_v12 = vmul.f32 %v10105_v19, %v2873_v25 }
 0x4cb   :  { %v2875_v38 = vpop.f32.mrf.mxu1 }
 0x4cc   :  { %v3254_v41 = vmul.f32 %v10105_v19, %v2875_v38  ;;  %v3446_v57 = vmul.f32 %v10103_v49, %v2875_v38  ;;  %3862 = vmatprep.mubr.f32.mxu0 %v3509_v30 }
 0x4cd   :  { %v2879_v10 = vpop.f32.mrf.mxu1  ;;  %3863 = vmatmul.mubr.f32.gmra.mxu0 %v3317_v43 }
 0x4ce   :  { %v3318_v36 = vsub.f32 %v3190_v26, %v3254_v41  ;;  %v3510_v37 = vadd.f32 %v3446_v57, %v3382_v12  ;;  %v3191_v34 = vmul.f32 %v10111_v58, %v2879_v10  ;;  %v3383_v5 = vmul.f32 %v10113_v47, %v2879_v10 }
 0x4cf   :  { %v2881_v11 = vpop.f32.mrf.mxu1 }
 0x4d0   :  { %v3255_v62 = vmul.f32 %v10113_v47, %v2881_v11  ;;  %v3447_v60 = vmul.f32 %v10111_v58, %v2881_v11  ;;  %3868 = vmatprep.mubr.f32.mxu0 %v3510_v37 }
 0x4d1   :  { %v2885_v55 = vpop.f32.mrf.mxu1  ;;  %3869 = vmatmul.mubr.f32.gmra.mxu0 %v3318_v36 }
 0x4d2   :  { %v3319_v24 = vsub.f32 %v3191_v34, %v3255_v62  ;;  %v3511_v63 = vadd.f32 %v3447_v60, %v3383_v5  ;;  %v3192_v29 = vmul.f32 %v10119_v0, %v2885_v55  ;;  %v3384_v33 = vmul.f32 %v10121_v40, %v2885_v55 }
 0x4d3   :  { %v2887_v6 = vpop.f32.mrf.mxu1 }
 0x4d4   :  { %v3256_v59 = vmul.f32 %v10121_v40, %v2887_v6  ;;  %v3448_v61 = vmul.f32 %v10119_v0, %v2887_v6  ;;  %3874 = vmatprep.mubr.f32.mxu0 %v3511_v63 }
 0x4d5   :  { %v2891_v54 = vpop.f32.mrf.mxu1  ;;  %3875 = vmatmul.mubr.f32.gmra.mxu0 %v3319_v24 }
 0x4d6   :  { %v3320_v23 = vsub.f32 %v3192_v29, %v3256_v59  ;;  %v3512_v8 = vadd.f32 %v3448_v61, %v3384_v33  ;;  %v3193_v13 = vmul.f32 %v10127_v50, %v2891_v54  ;;  %v3385_v3 = vmul.f32 %v10129_v2, %v2891_v54 }
 0x4d7   :  { %v2893_v17 = vpop.f32.mrf.mxu1 }
 0x4d8   :  { %v3257_v56 = vmul.f32 %v10129_v2, %v2893_v17  ;;  %v3449_v48 = vmul.f32 %v10127_v50, %v2893_v17  ;;  %3880 = vmatprep.mubr.f32.mxu0 %v3512_v8 }
 0x4d9   :  { %v2897_v25 = vpop.f32.mrf.mxu1  ;;  %3881 = vmatmul.mubr.f32.gmra.mxu0 %v3320_v23 }
 0x4da   :  { %v3321_v43 = vsub.f32 %v3193_v13, %v3257_v56  ;;  %v3513_v30 = vadd.f32 %v3449_v48, %v3385_v3  ;;  %v3194_v26 = vmul.f32 %v10135_v4, %v2897_v25  ;;  %v3386_v12 = vmul.f32 %v10137_v31, %v2897_v25 }
 0x4db   :  { %v2899_v38 = vpop.f32.mrf.mxu1 }
 0x4dc   :  { %v3258_v41 = vmul.f32 %v10137_v31, %v2899_v38  ;;  %v3450_v57 = vmul.f32 %v10135_v4, %v2899_v38  ;;  %3886 = vmatprep.mubr.f32.mxu0 %v3513_v30 }
 0x4dd   :  { %v2903_v10 = vpop.f32.mrf.mxu1  ;;  %3887 = vmatmul.mubr.f32.gmra.mxu0 %v3321_v43 }
 0x4de   :  { %v3322_v36 = vsub.f32 %v3194_v26, %v3258_v41  ;;  %v3514_v37 = vadd.f32 %v3450_v57, %v3386_v12  ;;  %v3195_v34 = vmul.f32 %v10143_v51, %v2903_v10  ;;  %v3387_v5 = vmul.f32 %v10145_v42, %v2903_v10 }
 0x4df   :  { %v2905_v11 = vpop.f32.mrf.mxu1 }
 0x4e0   :  { %v3259_v62 = vmul.f32 %v10145_v42, %v2905_v11  ;;  %v3451_v60 = vmul.f32 %v10143_v51, %v2905_v11  ;;  %3892 = vmatprep.mubr.f32.mxu0 %v3514_v37 }
 0x4e1   :  { %v2909_v55 = vpop.f32.mrf.mxu1  ;;  %3893 = vmatmul.mubr.f32.gmra.mxu0 %v3322_v36 }
 0x4e2   :  { %v3323_v24 = vsub.f32 %v3195_v34, %v3259_v62  ;;  %v3515_v63 = vadd.f32 %v3451_v60, %v3387_v5  ;;  %v3196_v29 = vmul.f32 %v10151_v28, %v2909_v55  ;;  %v3388_v33 = vmul.f32 %v10153_v16, %v2909_v55 }
 0x4e3   :  { %v2911_v6 = vpop.f32.mrf.mxu1 }
 0x4e4   :  { %v3260_v59 = vmul.f32 %v10153_v16, %v2911_v6  ;;  %v3452_v61 = vmul.f32 %v10151_v28, %v2911_v6  ;;  %3898 = vmatprep.mubr.f32.mxu0 %v3515_v63 }
 0x4e5   :  { %v2915_v54 = vpop.f32.mrf.mxu1  ;;  %3899 = vmatmul.mubr.f32.gmra.mxu0 %v3323_v24 }
 0x4e6   :  { %v3324_v23 = vsub.f32 %v3196_v29, %v3260_v59  ;;  %v3516_v8 = vadd.f32 %v3452_v61, %v3388_v33  ;;  %v3197_v13 = vmul.f32 %v10159_v44, %v2915_v54  ;;  %v3389_v3 = vmul.f32 %v10161_v21, %v2915_v54 }
 0x4e7   :  { %v2917_v17 = vpop.f32.mrf.mxu1 }
 0x4e8   :  { %v3261_v56 = vmul.f32 %v10161_v21, %v2917_v17  ;;  %v3453_v48 = vmul.f32 %v10159_v44, %v2917_v17  ;;  %3904 = vmatprep.mubr.f32.mxu0 %v3516_v8 }
 0x4e9   :  { %v2921_v25 = vpop.f32.mrf.mxu1  ;;  %3905 = vmatmul.mubr.f32.gmra.mxu0 %v3324_v23 }
 0x4ea   :  { %v3325_v43 = vsub.f32 %v3197_v13, %v3261_v56  ;;  %v3517_v30 = vadd.f32 %v3453_v48, %v3389_v3  ;;  %v3198_v26 = vmul.f32 %v10167_v46, %v2921_v25  ;;  %v3390_v12 = vmul.f32 %v10169_v7, %v2921_v25 }
 0x4eb   :  { %v2923_v38 = vpop.f32.mrf.mxu1 }
 0x4ec   :  { %v3262_v41 = vmul.f32 %v10169_v7, %v2923_v38  ;;  %v3454_v57 = vmul.f32 %v10167_v46, %v2923_v38  ;;  %3910 = vmatprep.mubr.f32.mxu0 %v3517_v30 }
 0x4ed   :  { %v2927_v10 = vpop.f32.mrf.mxu1  ;;  %3911 = vmatmul.mubr.f32.gmra.mxu0 %v3325_v43 }
 0x4ee   :  { %v3326_v36 = vsub.f32 %v3198_v26, %v3262_v41  ;;  %v3518_v37 = vadd.f32 %v3454_v57, %v3390_v12  ;;  %v3199_v34 = vmul.f32 %v10175_v53, %v2927_v10  ;;  %v3391_v5 = vmul.f32 %v10177_v52, %v2927_v10 }
 0x4ef   :  { %v2929_v11 = vpop.f32.mrf.mxu1 }
 0x4f0   :  { %v3263_v62 = vmul.f32 %v10177_v52, %v2929_v11  ;;  %v3455_v60 = vmul.f32 %v10175_v53, %v2929_v11  ;;  %3916 = vmatprep.mubr.f32.mxu0 %v3518_v37 }
 0x4f1   :  { %v2933_v55 = vpop.f32.mrf.mxu1  ;;  %3917 = vmatmul.mubr.f32.gmra.mxu0 %v3326_v36 }
 0x4f2   :  { %v3327_v24 = vsub.f32 %v3199_v34, %v3263_v62  ;;  %v3519_v63 = vadd.f32 %v3455_v60, %v3391_v5  ;;  %v3200_v29 = vmul.f32 %v10183_v32, %v2933_v55  ;;  %v3392_v33 = vmul.f32 %v10185_v27, %v2933_v55 }
 0x4f3   :  { %v2935_v6 = vpop.f32.mrf.mxu1 }
 0x4f4   :  { %v3264_v59 = vmul.f32 %v10185_v27, %v2935_v6  ;;  %v3456_v61 = vmul.f32 %v10183_v32, %v2935_v6  ;;  %3922 = vmatprep.mubr.f32.mxu0 %v3519_v63 }
 0x4f5   :  { %v2939_v54 = vpop.f32.mrf.mxu1  ;;  %3923 = vmatmul.mubr.f32.gmra.mxu0 %v3327_v24 }
 0x4f6   :  { %v3328_v23 = vsub.f32 %v3200_v29, %v3264_v59  ;;  %v3520_v8 = vadd.f32 %v3456_v61, %v3392_v33  ;;  %v3201_v13 = vmul.f32 %v10191_v45, %v2939_v54  ;;  %v3393_v3 = vmul.f32 %v10193_v1, %v2939_v54 }
 0x4f7   :  { %v2941_v17 = vpop.f32.mrf.mxu1 }
 0x4f8   :  { %v3265_v56 = vmul.f32 %v10193_v1, %v2941_v17  ;;  %v3457_v48 = vmul.f32 %v10191_v45, %v2941_v17  ;;  %3928 = vmatprep.mubr.f32.mxu0 %v3520_v8 }
 0x4f9   :  { %v2945_v25 = vpop.f32.mrf.mxu1  ;;  %3929 = vmatmul.mubr.f32.gmra.mxu0 %v3328_v23 }
 0x4fa   :  { %v3329_v43 = vsub.f32 %v3201_v13, %v3265_v56  ;;  %v3521_v30 = vadd.f32 %v3457_v48, %v3393_v3  ;;  %v3202_v26 = vmul.f32 %v10071_v9, %v2945_v25  ;;  %v3394_v12 = vmul.f32 %v10073_v20, %v2945_v25 }
 0x4fb   :  { %v2947_v38 = vpop.f32.mrf.mxu1 }
 0x4fc   :  { %v3266_v41 = vmul.f32 %v10073_v20, %v2947_v38  ;;  %v3458_v57 = vmul.f32 %v10071_v9, %v2947_v38  ;;  %3934 = vmatprep.mubr.f32.mxu0 %v3521_v30 }
 0x4fd   :  { %v2951_v10 = vpop.f32.mrf.mxu1  ;;  %3935 = vmatmul.mubr.f32.gmra.mxu0 %v3329_v43 }
 0x4fe   :  { %v3330_v36 = vsub.f32 %v3202_v26, %v3266_v41  ;;  %v3522_v37 = vadd.f32 %v3458_v57, %v3394_v12  ;;  %v3203_v34 = vmul.f32 %v10079_v14, %v2951_v10  ;;  %v3395_v5 = vmul.f32 %v10081_v18, %v2951_v10  ;;  %v3585_v26 = vld [vmem:[#allocation7 + $0x4f0] sm:$0xff] }
 0x4ff   :  { %v2953_v11 = vpop.f32.mrf.mxu1 }
 0x500   :  { %v3267_v62 = vmul.f32 %v10081_v18, %v2953_v11  ;;  %v3459_v60 = vmul.f32 %v10079_v14, %v2953_v11  ;;  %3940 = vmatprep.mubr.f32.mxu0 %v3522_v37 }
 0x501   :  { %v2957_v55 = vpop.f32.mrf.mxu1  ;;  %3941 = vmatmul.mubr.f32.gmra.mxu0 %v3330_v36 }
 0x502   :  { %v3331_v24 = vsub.f32 %v3203_v34, %v3267_v62  ;;  %v3523_v20 = vadd.f32 %v3459_v60, %v3395_v5  ;;  %v3204_v63 = vmul.f32 %v10087_v35, %v2957_v55  ;;  %v3396_v6 = vmul.f32 %v10089_v22, %v2957_v55 }
 0x503   :  { %v2959_v9 = vpop.f32.mrf.mxu1 }
 0x504   :  { %v3268_v29 = vmul.f32 %v10089_v22, %v2959_v9  ;;  %v3460_v33 = vmul.f32 %v10087_v35, %v2959_v9  ;;  %3946 = vmatprep.mubr.f32.mxu0 %v3523_v20  ;;  %v3583_v20 = vld [vmem:[#allocation7 + $0x4e0] sm:$0xff] }
 0x505   :  { %v2963_v59 = vpop.f32.mrf.mxu1  ;;  %3947 = vmatmul.mubr.f32.gmra.mxu0 %v3331_v24  ;;  %v3584_v24 = vld [vmem:[#allocation7 + $0x4e8] sm:$0xff] }
 0x506   :  { %v3332_v61 = vsub.f32 %v3204_v63, %v3268_v29  ;;  %v3524_v18 = vadd.f32 %v3460_v33, %v3396_v6  ;;  %v3205_v54 = vmul.f32 %v10095_v39, %v2963_v59  ;;  %v3397_v23 = vmul.f32 %v10097_v15, %v2963_v59 }
 0x507   :  { %v2965_v14 = vpop.f32.mrf.mxu1 }
 0x508   :  { %v3269_v8 = vmul.f32 %v10097_v15, %v2965_v14  ;;  %v3461_v17 = vmul.f32 %v10095_v39, %v2965_v14  ;;  %3952 = vmatprep.mubr.f32.mxu0 %v3524_v18  ;;  %v3586_v39 = vld [vmem:[#allocation7 + $0x4f8] sm:$0xff] }
 0x509   :  { %v2969_v13 = vpop.f32.mrf.mxu1  ;;  %3953 = vmatmul.mubr.f32.gmra.mxu0 %v3332_v61  ;;  %5222 = vmatprep.subr.mxu0 %v3586_v39 }
 0x50a   :  { %v3333_v3 = vsub.f32 %v3205_v54, %v3269_v8  ;;  %v3525_v22 = vadd.f32 %v3461_v17, %v3397_v23  ;;  %v3206_v56 = vmul.f32 %v10103_v49, %v2969_v13  ;;  %v3398_v48 = vmul.f32 %v10105_v19, %v2969_v13  ;;  %5223 = vmatpush1.msra.mxu0 %v3585_v26  ;;  %v3582_v17 = vld [vmem:[#allocation7 + $0x4d8] sm:$0xff]  ;;  %v3581_v13 = vld [vmem:[#allocation7 + $0x4d0] sm:$0xff] }
 0x50b   :  { %v2971_v35 = vpop.f32.mrf.mxu1  ;;  %5224 = vmatprep.subr.mxu0 %v3584_v24 }
 0x50c   :  { %v3270_v25 = vmul.f32 %v10105_v19, %v2971_v35  ;;  %v3462_v43 = vmul.f32 %v10103_v49, %v2971_v35  ;;  %3958 = vmatprep.mubr.f32.mxu0 %v3525_v22  ;;  %5225 = vmatpush1.msra.mxu0 %v3583_v20 }
 0x50d   :  { %v2975_v30 = vpop.f32.mrf.mxu1  ;;  %3959 = vmatmul.mubr.f32.gmra.mxu0 %v3333_v3  ;;  %5226 = vmatprep.subr.mxu0 %v3582_v17 }
 0x50e   :  { %v3334_v38 = vsub.f32 %v3206_v56, %v3270_v25  ;;  %v3526_v15 = vadd.f32 %v3462_v43, %v3398_v48  ;;  %v3207_v12 = vmul.f32 %v10111_v58, %v2975_v30  ;;  %v3399_v57 = vmul.f32 %v10113_v47, %v2975_v30  ;;  %5227 = vmatpush1.msra.mxu0 %v3581_v13 }
 0x50f   :  { %v2977_v41 = vpop.f32.mrf.mxu1 }
 0x510   :  { %v3271_v10 = vmul.f32 %v10113_v47, %v2977_v41  ;;  %v3463_v36 = vmul.f32 %v10111_v58, %v2977_v41  ;;  %3964 = vmatprep.mubr.f32.mxu0 %v3526_v15  ;;  %v3579_v41 = vld [vmem:[#allocation7 + $0x4c0] sm:$0xff] }
 0x511   :  { %v2981_v49 = vpop.f32.mrf.mxu1  ;;  %3965 = vmatmul.mubr.f32.gmra.mxu0 %v3334_v38 }
 0x512   :  { %v3335_v19 = vsub.f32 %v3207_v12, %v3271_v10  ;;  %v3527_v37 = vadd.f32 %v3463_v36, %v3399_v57  ;;  %v3208_v34 = vmul.f32 %v10119_v0, %v2981_v49  ;;  %v3400_v5 = vmul.f32 %v10121_v40, %v2981_v49  ;;  %v3580_v12 = vld [vmem:[#allocation7 + $0x4c8] sm:$0xff] }
 0x513   :  { %v2983_v11 = vpop.f32.mrf.mxu1  ;;  %5228 = vmatprep.subr.mxu0 %v3580_v12 }
 0x514   :  { %v3272_v62 = vmul.f32 %v10121_v40, %v2983_v11  ;;  %v3464_v60 = vmul.f32 %v10119_v0, %v2983_v11  ;;  %3970 = vmatprep.mubr.f32.mxu0 %v3527_v37  ;;  %5229 = vmatpush1.msra.mxu0 %v3579_v41 }
 0x515   :  { %v2987_v55 = vpop.f32.mrf.mxu1  ;;  %3971 = vmatmul.mubr.f32.gmra.mxu0 %v3335_v19 }
 0x516   :  { %v3336_v47 = vsub.f32 %v3208_v34, %v3272_v62  ;;  %v3528_v58 = vadd.f32 %v3464_v60, %v3400_v5  ;;  %v3209_v9 = vmul.f32 %v10127_v50, %v2987_v55  ;;  %v3401_v6 = vmul.f32 %v10129_v2, %v2987_v55 }
 0x517   :  { %v2989_v63 = vpop.f32.mrf.mxu1 }
 0x518   :  { %v3273_v29 = vmul.f32 %v10129_v2, %v2989_v63  ;;  %v3465_v33 = vmul.f32 %v10127_v50, %v2989_v63  ;;  %3976 = vmatprep.mubr.f32.mxu0 %v3528_v58  ;;  %v3577_v58 = vld [vmem:[#allocation7 + $0x4b0] sm:$0xff] }
 0x519   :  { %v2993_v0 = vpop.f32.mrf.mxu1  ;;  %3977 = vmatmul.mubr.f32.gmra.mxu0 %v3336_v47  ;;  %v3578_v47 = vld [vmem:[#allocation7 + $0x4b8] sm:$0xff] }
 0x51a   :  { %v3337_v40 = vsub.f32 %v3209_v9, %v3273_v29  ;;  %v3529_v59 = vadd.f32 %v3465_v33, %v3401_v6  ;;  %v3210_v18 = vmul.f32 %v10135_v4, %v2993_v0  ;;  %v3402_v14 = vmul.f32 %v10137_v31, %v2993_v0  ;;  %5230 = vmatprep.subr.mxu0 %v3578_v47 }
 0x51b   :  { %v2995_v61 = vpop.f32.mrf.mxu1  ;;  %5231 = vmatpush1.msra.mxu0 %v3577_v58 }
 0x51c   :  { %v3274_v54 = vmul.f32 %v10137_v31, %v2995_v61  ;;  %v3466_v23 = vmul.f32 %v10135_v4, %v2995_v61  ;;  %3982 = vmatprep.mubr.f32.mxu0 %v3529_v59 }
 0x51d   :  { %v2999_v8 = vpop.f32.mrf.mxu1  ;;  %3983 = vmatmul.mubr.f32.gmra.mxu0 %v3337_v40 }
 0x51e   :  { %v3338_v2 = vsub.f32 %v3210_v18, %v3274_v54  ;;  %v3530_v50 = vadd.f32 %v3466_v23, %v3402_v14  ;;  %v3211_v3 = vmul.f32 %v10143_v51, %v2999_v8  ;;  %v3403_v35 = vmul.f32 %v10145_v42, %v2999_v8  ;;  %v3576_v14 = vld [vmem:[#allocation7 + $0x4a8] sm:$0xff]  ;;  %v3575_v54 = vld [vmem:[#allocation7 + $0x4a0] sm:$0xff] }
 0x51f   :  { %v3001_v22 = vpop.f32.mrf.mxu1  ;;  %5232 = vmatprep.subr.mxu0 %v3576_v14 }
 0x520   :  { %v3275_v56 = vmul.f32 %v10145_v42, %v3001_v22  ;;  %v3467_v48 = vmul.f32 %v10143_v51, %v3001_v22  ;;  %3988 = vmatprep.mubr.f32.mxu0 %v3530_v50  ;;  %5233 = vmatpush1.msra.mxu0 %v3575_v54  ;;  %v9128_v22 = vld [vmem:[#allocation5 + $0x100] sm:$0xff] }
 0x521   :  { %v3005_v4 = vpop.f32.mrf.mxu1  ;;  %3989 = vmatmul.mubr.f32.gmra.mxu0 %v3338_v2  ;;  %v9137_v54 = vld [vmem:[#allocation5 + $0x1a0] sm:$0xff] }
 0x522   :  { %v3339_v31 = vsub.f32 %v3211_v3, %v3275_v56  ;;  %v3531_v25 = vadd.f32 %v3467_v48, %v3403_v35  ;;  %v3212_v30 = vmul.f32 %v10151_v28, %v3005_v4  ;;  %v3404_v38 = vmul.f32 %v10153_v16, %v3005_v4  ;;  %v9129_v56 = vld [vmem:[#allocation5 + $0x180] sm:$0xff] }
 0x523   :  { %v3007_v43 = vpop.f32.mrf.mxu1 }
 0x524   :  { %v3276_v15 = vmul.f32 %v10153_v16, %v3007_v43  ;;  %v3468_v39 = vmul.f32 %v10151_v28, %v3007_v43  ;;  %3994 = vmatprep.mubr.f32.mxu0 %v3531_v25 }
 0x525   :  { %v3011_v26 = vpop.f32.mrf.mxu1  ;;  %3995 = vmatmul.mubr.f32.gmra.mxu0 %v3339_v31 }
 0x526   :  { %v3340_v42 = vsub.f32 %v3212_v30, %v3276_v15  ;;  %v3532_v51 = vadd.f32 %v3468_v39, %v3404_v38  ;;  %v3213_v57 = vmul.f32 %v10159_v44, %v3011_v26  ;;  %v3405_v36 = vmul.f32 %v10161_v21, %v3011_v26  ;;  %v3574_v30 = vld [vmem:[#allocation7 + $0x498] sm:$0xff]  ;;  %v9130_v15 = vld [vmem:[#allocation5 + $0x108] sm:$0xff] }
 0x527   :  { %v3013_v10 = vpop.f32.mrf.mxu1  ;;  %5234 = vmatprep.subr.mxu0 %v3574_v30  ;;  %v9131_v26 = vld [vmem:[#allocation5 + $0x188] sm:$0xff] }
 0x528   :  { %v3277_v49 = vmul.f32 %v10161_v21, %v3013_v10  ;;  %v3469_v19 = vmul.f32 %v10159_v44, %v3013_v10  ;;  %4000 = vmatprep.mubr.f32.mxu0 %v3532_v51 }
 0x529   :  { %v3017_v28 = vpop.f32.mrf.mxu1  ;;  %4001 = vmatmul.mubr.f32.gmra.mxu0 %v3340_v42 }
 0x52a   :  { %v3341_v16 = vsub.f32 %v3213_v57, %v3277_v49  ;;  %v3533_v37 = vadd.f32 %v3469_v19, %v3405_v36  ;;  %v3214_v34 = vmul.f32 %v10167_v46, %v3017_v28  ;;  %v3406_v5 = vmul.f32 %v10169_v7, %v3017_v28  ;;  %v9132_v49 = vld [vmem:[#allocation5 + $0x110] sm:$0xff] }
 0x52b   :  { %v3019_v11 = vpop.f32.mrf.mxu1 }
 0x52c   :  { %v3278_v62 = vmul.f32 %v10169_v7, %v3019_v11  ;;  %v3470_v60 = vmul.f32 %v10167_v46, %v3019_v11  ;;  %4006 = vmatprep.mubr.f32.mxu0 %v3533_v37  ;;  %v9133_v37 = vld [vmem:[#allocation5 + $0x190] sm:$0xff] }
 0x52d   :  { %v3023_v55 = vpop.f32.mrf.mxu1  ;;  %4007 = vmatmul.mubr.f32.gmra.mxu0 %v3341_v16 }
 0x52e   :  { %v3342_v21 = vsub.f32 %v3214_v34, %v3278_v62  ;;  %v3534_v44 = vadd.f32 %v3470_v60, %v3406_v5  ;;  %v3215_v24 = vmul.f32 %v10175_v53, %v3023_v55  ;;  %v3407_v9 = vmul.f32 %v10177_v52, %v3023_v55 }
 0x52f   :  { %v3025_v20 = vpop.f32.mrf.mxu1 }
 0x530   :  { %v3279_v63 = vmul.f32 %v10177_v52, %v3025_v20  ;;  %v3471_v6 = vmul.f32 %v10175_v53, %v3025_v20  ;;  %4012 = vmatprep.mubr.f32.mxu0 %v3534_v44  ;;  %v3571_v44 = vld [vmem:[#allocation7 + $0x480] sm:$0xff] }
 0x531   :  { %v3029_v46 = vpop.f32.mrf.mxu1  ;;  %4013 = vmatmul.mubr.f32.gmra.mxu0 %v3342_v21  ;;  %v3572_v21 = vld [vmem:[#allocation7 + $0x488] sm:$0xff] }
 0x532   :  { %v3343_v7 = vsub.f32 %v3215_v24, %v3279_v63  ;;  %v3535_v29 = vadd.f32 %v3471_v6, %v3407_v9  ;;  %v3216_v0 = vmul.f32 %v10183_v32, %v3029_v46  ;;  %v3408_v40 = vmul.f32 %v10185_v27, %v3029_v46  ;;  %v9134_v24 = vld [vmem:[#allocation5 + $0x118] sm:$0xff] }
 0x533   :  { %v3031_v33 = vpop.f32.mrf.mxu1  ;;  %v9135_v9 = vld [vmem:[#allocation5 + $0x198] sm:$0xff] }
 0x534   :  { %v3280_v59 = vmul.f32 %v10185_v27, %v3031_v33  ;;  %v3472_v61 = vmul.f32 %v10183_v32, %v3031_v33  ;;  %4018 = vmatprep.mubr.f32.mxu0 %v3535_v29 }
 0x535   :  { %v3035_v18 = vpop.f32.mrf.mxu1  ;;  %4019 = vmatmul.mubr.f32.gmra.mxu0 %v3343_v7 }
 0x536   :  { %v3344_v52 = vsub.f32 %v3216_v0, %v3280_v59  ;;  %v3536_v53 = vadd.f32 %v3472_v61, %v3408_v40  ;;  %v3217_v23 = vmul.f32 %v10191_v45, %v3035_v18  ;;  %v3409_v2 = vmul.f32 %v10193_v1, %v3035_v18  ;;  %v9136_v18 = vld [vmem:[#allocation5 + $0x120] sm:$0xff] }
 0x537   :  { %v3037_v8 = vpop.f32.mrf.mxu1 }
 0x538   :  { %v3281_v50 = vmul.f32 %v10193_v1, %v3037_v8  ;;  %v3473_v17 = vmul.f32 %v10191_v45, %v3037_v8  ;;  %4024 = vmatprep.mubr.f32.mxu0 %v3536_v53  ;;  %v3573_v45 = vld [vmem:[#allocation7 + $0x490] sm:$0xff] }
 0x539   :  { %v3041_v32 = vpop.f32.mrf.mxu1  ;;  %4025 = vmatmul.mubr.f32.gmra.mxu0 %v3344_v52 }
 0x53a   :  { %v3345_v27 = vsub.f32 %v3217_v23, %v3281_v50  ;;  %v3537_v13 = vadd.f32 %v3473_v17, %v3409_v2  ;;  %v3218_v35 = vmul.f32 %v9128_v22, %v3041_v32  ;;  %v3410_v48 = vmul.f32 %v9129_v56, %v3041_v32  ;;  %5235 = vmatpush1.msra.mxu0 %v3573_v45 }
 0x53b   :  { %v3043_v3 = vpop.f32.mrf.mxu1  ;;  %5236 = vmatprep.subr.mxu0 %v3572_v21 }
 0x53c   :  { %v3282_v4 = vmul.f32 %v9129_v56, %v3043_v3  ;;  %v3474_v31 = vmul.f32 %v9128_v22, %v3043_v3  ;;  %4030 = vmatprep.mubr.f32.mxu0 %v3537_v13  ;;  %5237 = vmatpush1.msra.mxu0 %v3571_v44  ;;  %v3569_v13 = vld [vmem:[#allocation7 + $0x470] sm:$0xff] }
 0x53d   :  { %v3047_v43 = vpop.f32.mrf.mxu1  ;;  %4031 = vmatmul.mubr.f32.gmra.mxu0 %v3345_v27  ;;  %v3570_v27 = vld [vmem:[#allocation7 + $0x478] sm:$0xff] }
 0x53e   :  { %v3346_v25 = vsub.f32 %v3218_v35, %v3282_v4  ;;  %v3538_v1 = vadd.f32 %v3474_v31, %v3410_v48  ;;  %v3219_v39 = vmul.f32 %v9130_v15, %v3047_v43  ;;  %v3411_v42 = vmul.f32 %v9131_v26, %v3047_v43  ;;  %v9138_v35 = vld [vmem:[#allocation5 + $0x128] sm:$0xff]  ;;  %5238 = vmatprep.subr.mxu0 %v3570_v27 }
 0x53f   :  { %v3049_v38 = vpop.f32.mrf.mxu1  ;;  %v9139_v48 = vld [vmem:[#allocation5 + $0x1a8] sm:$0xff]  ;;  %5239 = vmatpush1.msra.mxu0 %v3569_v13 }
 0x540   :  { %4036 = vmatprep.mubr.f32.mxu0 %v3538_v1  ;;  %v3283_v51 = vmul.f32 %v9131_v26, %v3049_v38  ;;  %v3475_v12 = vmul.f32 %v9130_v15, %v3049_v38  ;;  %v9140_v26 = vld [vmem:[#allocation5 + $0x130] sm:$0xff] }
 0x541   :  { %v3053_v41 = vpop.f32.mrf.mxu1  ;;  %v3750_v57 = vpop.f32.mrf.mxu0  ;;  %4037 = vmatmul.mubr.f32.gmra.mxu0 %v3346_v25 }
 0x542   :  { %v3347_v10 = vsub.f32 %v3219_v39, %v3283_v51  ;;  %v3539_v36 = vadd.f32 %v3475_v12, %v3411_v42  ;;  %v3220_v19 = vmul.f32 %v9132_v49, %v3053_v41  ;;  %v3412_v11 = vmul.f32 %v9133_v37, %v3053_v41  ;;  %v9141_v41 = vld [vmem:[#allocation5 + $0x1b0] sm:$0xff] }
 0x543   :  { %v3055_v28 = vpop.f32.mrf.mxu1  ;;  %v3752_v16 = vpop.f32.mrf.mxu0 }
 0x544   :  { %v3284_v34 = vmul.f32 %v9133_v37, %v3055_v28  ;;  %v3476_v5 = vmul.f32 %v9132_v49, %v3055_v28  ;;  %v8073_v62 = vpack.i.bf16 %v3750_v57, %v3752_v16  ;;  %4042 = vmatprep.mubr.f32.mxu0 %v3539_v36  ;;  %v3568_v16 = vld [vmem:[#allocation7 + $0x468] sm:$0xff]  ;;  %v3567_v37 = vld [vmem:[#allocation7 + $0x460] sm:$0xff] }
 0x545   :  { %v3059_v60 = vpop.f32.mrf.mxu1  ;;  %v3756_v55 = vpop.f32.mrf.mxu0  ;;  %4043 = vmatmul.mubr.f32.gmra.mxu0 %v3347_v10  ;;  %5240 = vmatprep.subr.mxu0 %v3568_v16 }
 0x546   :  { %v3348_v47 = vsub.f32 %v3220_v19, %v3284_v34  ;;  %8074 = vxpose.xlu0.b32.start [1/16] %v8073_v62, 128  ;;  %v3540_v58 = vadd.f32 %v3476_v5, %v3412_v11  ;;  %v3221_v20 = vmul.f32 %v9134_v24, %v3059_v60  ;;  %v3413_v63 = vmul.f32 %v9135_v9, %v3059_v60  ;;  %v9142_v5 = vld [vmem:[#allocation5 + $0x138] sm:$0xff] }
 0x547   :  { %v3061_v6 = vpop.f32.mrf.mxu1  ;;  %v3758_v46 = vpop.f32.mrf.mxu0  ;;  %v9143_v60 = vld [vmem:[#allocation5 + $0x1b8] sm:$0xff]  ;;  %5241 = vmatpush1.msra.mxu0 %v3567_v37 }
 0x548   :  { %v3285_v7 = vmul.f32 %v9135_v9, %v3061_v6  ;;  %v3477_v29 = vmul.f32 %v9134_v24, %v3061_v6  ;;  %v8075_v33 = vpack.i.bf16 %v3756_v55, %v3758_v46  ;;  %4048 = vmatprep.mubr.f32.mxu0 %v3540_v58  ;;  %v9144_v46 = vld [vmem:[#allocation5 + $0x140] sm:$0xff] }
 0x549   :  { %v3065_v0 = vpop.f32.mrf.mxu1  ;;  %v3762_v40 = vpop.f32.mrf.mxu0  ;;  %4049 = vmatmul.mubr.f32.gmra.mxu0 %v3348_v47 }
 0x54a   :  { %v3349_v59 = vsub.f32 %v3221_v20, %v3285_v7  ;;  %8076 = vxpose.xlu0.b32.cont [2/16] %v8075_v33, 128  ;;  %v3541_v61 = vadd.f32 %v3477_v29, %v3413_v63  ;;  %v3222_v52 = vmul.f32 %v9136_v18, %v3065_v0  ;;  %v3414_v23 = vmul.f32 %v9137_v54, %v3065_v0  ;;  %v9145_v0 = vld [vmem:[#allocation5 + $0x1c0] sm:$0xff] }
 0x54b   :  { %v3067_v53 = vpop.f32.mrf.mxu1  ;;  %v3764_v14 = vpop.f32.mrf.mxu0 }
 0x54c   :  { %v3286_v8 = vmul.f32 %v9137_v54, %v3067_v53  ;;  %v3478_v2 = vmul.f32 %v9136_v18, %v3067_v53  ;;  %v8077_v50 = vpack.i.bf16 %v3762_v40, %v3764_v14  ;;  %4054 = vmatprep.mubr.f32.mxu0 %v3541_v61  ;;  %v3566_v14 = vld [vmem:[#allocation7 + $0x458] sm:$0xff]  ;;  %v3565_v54 = vld [vmem:[#allocation7 + $0x450] sm:$0xff] }
 0x54d   :  { %v3071_v17 = vpop.f32.mrf.mxu1  ;;  %v3768_v32 = vpop.f32.mrf.mxu0  ;;  %4055 = vmatmul.mubr.f32.gmra.mxu0 %v3349_v59  ;;  %5242 = vmatprep.subr.mxu0 %v3566_v14 }
 0x54e   :  { %v3350_v3 = vsub.f32 %v3222_v52, %v3286_v8  ;;  %8078 = vxpose.xlu0.b32.cont [3/16] %v8077_v50, 128  ;;  %v3542_v22 = vadd.f32 %v3478_v2, %v3414_v23  ;;  %v3223_v56 = vmul.f32 %v9138_v35, %v3071_v17  ;;  %v3415_v4 = vmul.f32 %v9139_v48, %v3071_v17  ;;  %v9146_v2 = vld [vmem:[#allocation5 + $0x148] sm:$0xff] }
 0x54f   :  { %v3073_v31 = vpop.f32.mrf.mxu1  ;;  %v3770_v25 = vpop.f32.mrf.mxu0  ;;  %v9147_v17 = vld [vmem:[#allocation5 + $0x1c8] sm:$0xff]  ;;  %5243 = vmatpush1.msra.mxu0 %v3565_v54 }
 0x550   :  { %v3287_v43 = vmul.f32 %v9139_v48, %v3073_v31  ;;  %v3479_v1 = vmul.f32 %v9138_v35, %v3073_v31  ;;  %v8079_v30 = vpack.i.bf16 %v3768_v32, %v3770_v25  ;;  %4060 = vmatprep.mubr.f32.mxu0 %v3542_v22  ;;  %v9148_v25 = vld [vmem:[#allocation5 + $0x150] sm:$0xff] }
 0x551   :  { %v3077_v45 = vpop.f32.mrf.mxu1  ;;  %v3774_v38 = vpop.f32.mrf.mxu0  ;;  %4061 = vmatmul.mubr.f32.gmra.mxu0 %v3350_v3 }
 0x552   :  { %v3351_v15 = vsub.f32 %v3223_v56, %v3287_v43  ;;  %8080 = vxpose.xlu0.b32.cont [4/16] %v8079_v30, 128  ;;  %v3543_v39 = vadd.f32 %v3479_v1, %v3415_v4  ;;  %v3224_v42 = vmul.f32 %v9140_v26, %v3077_v45  ;;  %v3416_v57 = vmul.f32 %v9141_v41, %v3077_v45  ;;  %v9149_v45 = vld [vmem:[#allocation5 + $0x1d0] sm:$0xff] }
 0x553   :  { %v3079_v51 = vpop.f32.mrf.mxu1  ;;  %v3776_v12 = vpop.f32.mrf.mxu0 }
 0x554   :  { %v3288_v10 = vmul.f32 %v9141_v41, %v3079_v51  ;;  %v3480_v36 = vmul.f32 %v9140_v26, %v3079_v51  ;;  %v8081_v49 = vpack.i.bf16 %v3774_v38, %v3776_v12  ;;  %4066 = vmatprep.mubr.f32.mxu0 %v3543_v39  ;;  %v3564_v12 = vld [vmem:[#allocation7 + $0x448] sm:$0xff]  ;;  %v3563_v41 = vld [vmem:[#allocation7 + $0x440] sm:$0xff] }
 0x555   :  { %v3083_v19 = vpop.f32.mrf.mxu1  ;;  %v3780_v28 = vpop.f32.mrf.mxu0  ;;  %4067 = vmatmul.mubr.f32.gmra.mxu0 %v3351_v15  ;;  %5244 = vmatprep.subr.mxu0 %v3564_v12 }
 0x556   :  { %v3352_v11 = vsub.f32 %v3224_v42, %v3288_v10  ;;  %8082 = vxpose.xlu0.b32.cont [5/16] %v8081_v49, 128  ;;  %v3544_v34 = vadd.f32 %v3480_v36, %v3416_v57  ;;  %v3225_v62 = vmul.f32 %v9142_v5, %v3083_v19  ;;  %v3417_v55 = vmul.f32 %v9143_v60, %v3083_v19  ;;  %v9150_v36 = vld [vmem:[#allocation5 + $0x158] sm:$0xff] }
 0x557   :  { %v3085_v21 = vpop.f32.mrf.mxu1  ;;  %v3782_v44 = vpop.f32.mrf.mxu0  ;;  %v9151_v19 = vld [vmem:[#allocation5 + $0x1d8] sm:$0xff]  ;;  %5245 = vmatpush1.msra.mxu0 %v3563_v41 }
 0x558   :  { %v3289_v47 = vmul.f32 %v9143_v60, %v3085_v21  ;;  %v3481_v58 = vmul.f32 %v9142_v5, %v3085_v21  ;;  %v8083_v24 = vpack.i.bf16 %v3780_v28, %v3782_v44  ;;  %4072 = vmatprep.mubr.f32.mxu0 %v3544_v34  ;;  %v9152_v44 = vld [vmem:[#allocation5 + $0x160] sm:$0xff] }
 0x559   :  { %v3089_v20 = vpop.f32.mrf.mxu1  ;;  %v3786_v9 = vpop.f32.mrf.mxu0  ;;  %4073 = vmatmul.mubr.f32.gmra.mxu0 %v3352_v11 }
 0x55a   :  { %v3353_v63 = vsub.f32 %v3225_v62, %v3289_v47  ;;  %8084 = vxpose.xlu0.b32.cont [6/16] %v8083_v24, 128  ;;  %v3545_v6 = vadd.f32 %v3481_v58, %v3417_v55  ;;  %v3226_v7 = vmul.f32 %v9144_v46, %v3089_v20  ;;  %v3418_v40 = vmul.f32 %v9145_v0, %v3089_v20  ;;  %v9153_v20 = vld [vmem:[#allocation5 + $0x1e0] sm:$0xff] }
 0x55b   :  { %v3091_v29 = vpop.f32.mrf.mxu1  ;;  %v3788_v33 = vpop.f32.mrf.mxu0 }
 0x55c   :  { %v3290_v59 = vmul.f32 %v9145_v0, %v3091_v29  ;;  %v3482_v61 = vmul.f32 %v9144_v46, %v3091_v29  ;;  %v8085_v18 = vpack.i.bf16 %v3786_v9, %v3788_v33  ;;  %4078 = vmatprep.mubr.f32.mxu0 %v3545_v6  ;;  %v3562_v33 = vld [vmem:[#allocation7 + $0x438] sm:$0xff]  ;;  %v3561_v0 = vld [vmem:[#allocation7 + $0x430] sm:$0xff] }
 0x55d   :  { %v3095_v52 = vpop.f32.mrf.mxu1  ;;  %v3792_v53 = vpop.f32.mrf.mxu0  ;;  %4079 = vmatmul.mubr.f32.gmra.mxu0 %v3353_v63  ;;  %5246 = vmatprep.subr.mxu0 %v3562_v33  ;;  %v3617_v33 = vld [vmem:[#allocation7 + $0x5f0] sm:$0xff] }
 0x55e   :  { %v3354_v23 = vsub.f32 %v3226_v7, %v3290_v59  ;;  %8086 = vxpose.xlu0.b32.cont [7/16] %v8085_v18, 128  ;;  %v3546_v8 = vadd.f32 %v3482_v61, %v3418_v40  ;;  %v3227_v50 = vmul.f32 %v9146_v2, %v3095_v52  ;;  %v3419_v32 = vmul.f32 %v9147_v17, %v3095_v52  ;;  %v9154_v61 = vld [vmem:[#allocation5 + $0x168] sm:$0xff] }
 0x55f   :  { %v3097_v27 = vpop.f32.mrf.mxu1  ;;  %v3794_v13 = vpop.f32.mrf.mxu0  ;;  %v9155_v52 = vld [vmem:[#allocation5 + $0x1e8] sm:$0xff]  ;;  %5247 = vmatpush1.msra.mxu0 %v3561_v0 }
 0x560   :  { %v3291_v3 = vmul.f32 %v9147_v17, %v3097_v27  ;;  %v3483_v22 = vmul.f32 %v9146_v2, %v3097_v27  ;;  %v8087_v35 = vpack.i.bf16 %v3792_v53, %v3794_v13  ;;  %4084 = vmatprep.mubr.f32.mxu0 %v3546_v8  ;;  %v9156_v13 = vld [vmem:[#allocation5 + $0x170] sm:$0xff] }
 0x561   :  { %v3101_v56 = vpop.f32.mrf.mxu1  ;;  %v3798_v48 = vpop.f32.mrf.mxu0  ;;  %4085 = vmatmul.mubr.f32.gmra.mxu0 %v3354_v23 }
 0x562   :  { %v3355_v4 = vsub.f32 %v3227_v50, %v3291_v3  ;;  %8088 = vxpose.xlu0.b32.cont [8/16] %v8087_v35, 128  ;;  %v3547_v31 = vadd.f32 %v3483_v22, %v3419_v32  ;;  %v3228_v43 = vmul.f32 %v9148_v25, %v3101_v56  ;;  %v3420_v38 = vmul.f32 %v9149_v45, %v3101_v56  ;;  %v9157_v56 = vld [vmem:[#allocation5 + $0x1f0] sm:$0xff] }
 0x563   :  { %v3103_v1 = vpop.f32.mrf.mxu1  ;;  %v3800_v30 = vpop.f32.mrf.mxu0 }
 0x564   :  { %v3292_v15 = vmul.f32 %v9149_v45, %v3103_v1  ;;  %v3484_v39 = vmul.f32 %v9148_v25, %v3103_v1  ;;  %v8089_v26 = vpack.i.bf16 %v3798_v48, %v3800_v30  ;;  %4090 = vmatprep.mubr.f32.mxu0 %v3547_v31  ;;  %v3560_v30 = vld [vmem:[#allocation7 + $0x428] sm:$0xff]  ;;  %v3559_v45 = vld [vmem:[#allocation7 + $0x420] sm:$0xff] }
 0x565   :  { %v3107_v42 = vpop.f32.mrf.mxu1  ;;  %v3804_v51 = vpop.f32.mrf.mxu0  ;;  %4091 = vmatmul.mubr.f32.gmra.mxu0 %v3355_v4  ;;  %5248 = vmatprep.subr.mxu0 %v3560_v30 }
 0x566   :  { %v3356_v57 = vsub.f32 %v3228_v43, %v3292_v15  ;;  %8090 = vxpose.xlu0.b32.cont [9/16] %v8089_v26, 128  ;;  %v3548_v10 = vadd.f32 %v3484_v39, %v3420_v38  ;;  %v3229_v49 = vmul.f32 %v9150_v36, %v3107_v42  ;;  %v3421_v28 = vmul.f32 %v9151_v19, %v3107_v42  ;;  %v9158_v39 = vld [vmem:[#allocation5 + $0x178] sm:$0xff] }
 0x567   :  { %v3109_v16 = vpop.f32.mrf.mxu1  ;;  %v3806_v37 = vpop.f32.mrf.mxu0  ;;  %v9159_v42 = vld [vmem:[#allocation5 + $0x1f8] sm:$0xff]  ;;  %5249 = vmatpush1.msra.mxu0 %v3559_v45 }
 0x568   :  { %v3293_v11 = vmul.f32 %v9151_v19, %v3109_v16  ;;  %v3485_v34 = vmul.f32 %v9150_v36, %v3109_v16  ;;  %v8091_v5 = vpack.i.bf16 %v3804_v51, %v3806_v37  ;;  %4096 = vmatprep.mubr.f32.mxu0 %v3548_v10 }
 0x569   :  { %v3113_v62 = vpop.f32.mrf.mxu1  ;;  %v3810_v60 = vpop.f32.mrf.mxu0  ;;  %4097 = vmatmul.mubr.f32.gmra.mxu0 %v3356_v57 }
 0x56a   :  { %v3357_v55 = vsub.f32 %v3229_v49, %v3293_v11  ;;  %8092 = vxpose.xlu0.b32.cont [10/16] %v8091_v5, 128  ;;  %v3549_v21 = vadd.f32 %v3485_v34, %v3421_v28  ;;  %v3230_v47 = vmul.f32 %v9152_v44, %v3113_v62  ;;  %v3422_v9 = vmul.f32 %v9153_v20, %v3113_v62  ;;  %v3558_v34 = vld [vmem:[#allocation7 + $0x418] sm:$0xff]  ;;  %v3557_v5 = vld [vmem:[#allocation7 + $0x410] sm:$0xff] }
 0x56b   :  { %v3115_v58 = vpop.f32.mrf.mxu1  ;;  %v3812_v24 = vpop.f32.mrf.mxu0  ;;  %5250 = vmatprep.subr.mxu0 %v3558_v34  ;;  %v3606_v34 = vld [vmem:[#allocation7 + $0x598] sm:$0xff] }
 0x56c   :  { %v3294_v63 = vmul.f32 %v9153_v20, %v3115_v58  ;;  %v3486_v6 = vmul.f32 %v9152_v44, %v3115_v58  ;;  %v8093_v46 = vpack.i.bf16 %v3810_v60, %v3812_v24  ;;  %4102 = vmatprep.mubr.f32.mxu0 %v3549_v21  ;;  %5251 = vmatpush1.msra.mxu0 %v3557_v5  ;;  %v3556_v58 = vld [vmem:[#allocation7 + $0x408] sm:$0xff]  ;;  %v3555_v24 = vld [vmem:[#allocation7 + $0x400] sm:$0xff]  ;;  %v3605_v5 = vld [vmem:[#allocation7 + $0x590] sm:$0xff] }
 0x56d   :  { %v3119_v7 = vpop.f32.mrf.mxu1  ;;  %v3816_v29 = vpop.f32.mrf.mxu0  ;;  %4103 = vmatmul.mubr.f32.gmra.mxu0 %v3357_v55  ;;  %5252 = vmatprep.subr.mxu0 %v3556_v58 }
 0x56e   :  { %v3358_v40 = vsub.f32 %v3230_v47, %v3294_v63  ;;  %8094 = vxpose.xlu0.b32.cont [11/16] %v8093_v46, 128  ;;  %v3550_v59 = vadd.f32 %v3486_v6, %v3422_v9  ;;  %v3231_v18 = vmul.f32 %v9154_v61, %v3119_v7  ;;  %v3423_v53 = vmul.f32 %v9155_v52, %v3119_v7 }
 0x56f   :  { %v3121_v14 = vpop.f32.mrf.mxu1  ;;  %v3818_v54 = vpop.f32.mrf.mxu0  ;;  %5253 = vmatpush1.msra.mxu0 %v3555_v24 }
 0x570   :  { %v3295_v23 = vmul.f32 %v9155_v52, %v3121_v14  ;;  %v3487_v8 = vmul.f32 %v9154_v61, %v3121_v14  ;;  %v8095_v2 = vpack.i.bf16 %v3816_v29, %v3818_v54  ;;  %4108 = vmatprep.mubr.f32.mxu0 %v3550_v59  ;;  %v3618_v29 = vld [vmem:[#allocation7 + $0x5f8] sm:$0xff]  ;;  %v3615_v14 = vld [vmem:[#allocation7 + $0x5e0] sm:$0xff] }
 0x571   :  { %v3125_v50 = vpop.f32.mrf.mxu1  ;;  %v3822_v17 = vpop.f32.mrf.mxu0  ;;  %4109 = vmatmul.mubr.f32.gmra.mxu0 %v3358_v40  ;;  %5254 = vmatprep.subr.mxu0 %v3618_v29 }
 0x572   :  { %v3359_v32 = vsub.f32 %v3231_v18, %v3295_v23  ;;  %8096 = vxpose.xlu0.b32.cont [12/16] %v8095_v2, 128  ;;  %v3551_v27 = vadd.f32 %v3487_v8, %v3423_v53  ;;  %v3232_v3 = vmul.f32 %v9156_v13, %v3125_v50  ;;  %v3424_v48 = vmul.f32 %v9157_v56, %v3125_v50  ;;  %v3616_v53 = vld [vmem:[#allocation7 + $0x5e8] sm:$0xff] }
 0x573   :  { %v3127_v22 = vpop.f32.mrf.mxu1  ;;  %v3824_v35 = vpop.f32.mrf.mxu0  ;;  %5255 = vmatpush2.msra.mxu0 %v3617_v33 }
 0x574   :  { %v3296_v4 = vmul.f32 %v9157_v56, %v3127_v22  ;;  %v3488_v31 = vmul.f32 %v9156_v13, %v3127_v22  ;;  %v8097_v25 = vpack.i.bf16 %v3822_v17, %v3824_v35  ;;  %4114 = vmatprep.mubr.f32.mxu0 %v3551_v27  ;;  %5256 = vmatprep.subr.mxu0 %v3616_v53  ;;  %v3613_v27 = vld [vmem:[#allocation7 + $0x5d0] sm:$0xff] }
 0x575   :  { %v3131_v43 = vpop.f32.mrf.mxu1  ;;  %v3828_v1 = vpop.f32.mrf.mxu0  ;;  %4115 = vmatmul.mubr.f32.gmra.mxu0 %v3359_v32  ;;  %v3614_v32 = vld [vmem:[#allocation7 + $0x5d8] sm:$0xff] }
 0x576   :  { %v3360_v38 = vsub.f32 %v3232_v3, %v3296_v4  ;;  %8098 = vxpose.xlu0.b32.cont [13/16] %v8097_v25, 128  ;;  %v3552_v15 = vadd.f32 %v3488_v31, %v3424_v48  ;;  %v3233_v26 = vmul.f32 %v9158_v39, %v3131_v43  ;;  %v3425_v51 = vmul.f32 %v9159_v42, %v3131_v43  ;;  %v3612_v4 = vld [vmem:[#allocation7 + $0x5c8] sm:$0xff]  ;;  %v3611_v31 = vld [vmem:[#allocation7 + $0x5c0] sm:$0xff] }
 0x577   :  { %v3133_v12 = vpop.f32.mrf.mxu1  ;;  %v3830_v41 = vpop.f32.mrf.mxu0  ;;  %5257 = vmatpush2.msra.mxu0 %v3615_v14  ;;  %v3602_v14 = vld [vmem:[#allocation7 + $0x578] sm:$0xff] }
 0x578   :  { %v3297_v57 = vmul.f32 %v9159_v42, %v3133_v12  ;;  %v3489_v10 = vmul.f32 %v9158_v39, %v3133_v12  ;;  %v8099_v36 = vpack.i.bf16 %v3828_v1, %v3830_v41  ;;  %4120 = vmatprep.mubr.f32.mxu0 %v3552_v15  ;;  %5258 = vmatprep.subr.mxu0 %v3614_v32  ;;  %v3610_v15 = vld [vmem:[#allocation7 + $0x5b8] sm:$0xff]  ;;  %v3609_v39 = vld [vmem:[#allocation7 + $0x5b0] sm:$0xff] }
 0x579   :  { %v3834_v49 = vpop.f32.mrf.mxu0  ;;  %4121 = vmatmul.mubr.f32.gmra.mxu0 %v3360_v38 }
 0x57a   :  { %v3361_v19 = vsub.f32 %v3233_v26, %v3297_v57  ;;  %8100 = vxpose.xlu0.b32.cont [14/16] %v8099_v36, 128  ;;  %v3553_v28 = vadd.f32 %v3489_v10, %v3425_v51  ;;  %5259 = vmatpush2.msra.mxu0 %v3613_v27  ;;  %v3608_v10 = vld [vmem:[#allocation7 + $0x5a8] sm:$0xff]  ;;  %v3607_v36 = vld [vmem:[#allocation7 + $0x5a0] sm:$0xff] }
 0x57b   :  { %v3836_v16 = vpop.f32.mrf.mxu0  ;;  %5260 = vmatprep.subr.mxu0 %v3612_v4  ;;  %v3599_v4 = vld [vmem:[#allocation7 + $0x560] sm:$0xff] }
 0x57c   :  { %v8101_v37 = vpack.i.bf16 %v3834_v49, %v3836_v16  ;;  %4126 = vmatprep.mubr.f32.mxu0 %v3553_v28  ;;  %5261 = vmatpush2.msra.mxu0 %v3611_v31 }
 0x57d   :  { %v3840_v11 = vpop.f32.mrf.mxu0  ;;  %4127 = vmatmul.mubr.f32.gmra.mxu0 %v3361_v19  ;;  %5262 = vmatprep.subr.mxu0 %v3610_v15 }
 0x57e   :  { %8102 = vxpose.xlu0.b32.cont [15/16] %v8101_v37, 128  ;;  %5263 = vmatpush2.msra.mxu0 %v3609_v39 }
 0x57f   :  { %v3842_v62 = vpop.f32.mrf.mxu0  ;;  %5264 = vmatprep.subr.mxu0 %v3608_v10 }
 0x580   :  { %v8103_v60 = vpack.i.bf16 %v3840_v11, %v3842_v62  ;;  %5265 = vmatpush2.msra.mxu0 %v3607_v36 }
 0x581   :  { %v3846_v55 = vpop.f32.mrf.mxu0  ;;  %5266 = vmatprep.subr.mxu0 %v3606_v34 }
 0x582   :  { %8104 = vxpose.xlu0.b32.end [16/16] %v8103_v60, 128  ;;  %5267 = vmatpush2.msra.mxu0 %v3605_v5 }
 0x583   :  { %v3848_v21 = vpop.f32.mrf.mxu0 }
 0x584   :  { %v8185_v44 = vpack.i.bf16 %v3846_v55, %v3848_v21 }
 0x585   :  { %v3852_v47 = vpop.f32.mrf.mxu0 }
 0x586   :  { %8186 = vxpose.xlu1.b32.start [1/16] %v8185_v44, 128 }
 0x587   :  { %v3854_v20 = vpop.f32.mrf.mxu0 }
 0x588   :  { %v8187_v9 = vpack.i.bf16 %v3852_v47, %v3854_v20 }
 0x589   :  { %v3858_v63 = vpop.f32.mrf.mxu0 }
 0x58a   :  { %8188 = vxpose.xlu1.b32.cont [2/16] %v8187_v9, 128  ;;  %v3604_v9 = vld [vmem:[#allocation7 + $0x588] sm:$0xff] }
 0x58b   :  { %v3860_v6 = vpop.f32.mrf.mxu0  ;;  %5268 = vmatprep.subr.mxu0 %v3604_v9 }
 0x58c   :  { %v8189_v46 = vpack.i.bf16 %v3858_v63, %v3860_v6  ;;  %v3603_v63 = vld [vmem:[#allocation7 + $0x580] sm:$0xff] }
 0x58d   :  { %v3864_v7 = vpop.f32.mrf.mxu0  ;;  %5269 = vmatpush2.msra.mxu0 %v3603_v63 }
 0x58e   :  { %8190 = vxpose.xlu1.b32.cont [3/16] %v8189_v46, 128  ;;  %5270 = vmatprep.subr.mxu0 %v3602_v14 }
 0x58f   :  { %v3866_v0 = vpop.f32.mrf.mxu0 }
 0x590   :  { %v8191_v40 = vpack.i.bf16 %v3864_v7, %v3866_v0 }
 0x591   :  { %v3870_v59 = vpop.f32.mrf.mxu0 }
 0x592   :  { %8192 = vxpose.xlu1.b32.cont [4/16] %v8191_v40, 128 }
 0x593   :  { %v3872_v61 = vpop.f32.mrf.mxu0 }
 0x594   :  { %v8193_v18 = vpack.i.bf16 %v3870_v59, %v3872_v61 }
 0x595   :  { %v3876_v52 = vpop.f32.mrf.mxu0 }
 0x596   :  { %8194 = vxpose.xlu1.b32.cont [5/16] %v8193_v18, 128 }
 0x597   :  { %v3878_v54 = vpop.f32.mrf.mxu0 }
 0x598   :  { %v8195_v23 = vpack.i.bf16 %v3876_v52, %v3878_v54  ;;  %v3601_v54 = vld [vmem:[#allocation7 + $0x570] sm:$0xff] }
 0x599   :  { %v3882_v8 = vpop.f32.mrf.mxu0  ;;  %5271 = vmatpush2.msra.mxu0 %v3601_v54 }
 0x59a   :  { %8196 = vxpose.xlu1.b32.cont [6/16] %v8195_v23, 128 }
 0x59b   :  { %v3884_v2 = vpop.f32.mrf.mxu0 }
 0x59c   :  { %v8197_v50 = vpack.i.bf16 %v3882_v8, %v3884_v2 }
 0x59d   :  { %v3888_v17 = vpop.f32.mrf.mxu0 }
 0x59e   :  { %8198 = vxpose.xlu1.b32.cont [7/16] %v8197_v50, 128 }
 0x59f   :  { %v3890_v13 = vpop.f32.mrf.mxu0 }
 0x5a0   :  { %v8199_v3 = vpack.i.bf16 %v3888_v17, %v3890_v13 }
 0x5a1   :  { %v3894_v22 = vpop.f32.mrf.mxu0 }
 0x5a2   :  { %8200 = vxpose.xlu1.b32.cont [8/16] %v8199_v3, 128 }
 0x5a3   :  { %v3896_v35 = vpop.f32.mrf.mxu0 }
 0x5a4   :  { %v8201_v56 = vpack.i.bf16 %v3894_v22, %v3896_v35 }
 0x5a5   :  { %v3900_v48 = vpop.f32.mrf.mxu0 }
 0x5a6   :  { %8202 = vxpose.xlu1.b32.cont [9/16] %v8201_v56, 128 }
 0x5a7   :  { %v3902_v25 = vpop.f32.mrf.mxu0 }
 0x5a8   :  { %v8203_v43 = vpack.i.bf16 %v3900_v48, %v3902_v25  ;;  %v3600_v48 = vld [vmem:[#allocation7 + $0x568] sm:$0xff] }
 0x5a9   :  { %v3906_v1 = vpop.f32.mrf.mxu0  ;;  %5272 = vmatprep.subr.mxu0 %v3600_v48 }
 0x5aa   :  { %8204 = vxpose.xlu1.b32.cont [10/16] %v8203_v43, 128  ;;  %5273 = vmatpush2.msra.mxu0 %v3599_v4 }
 0x5ab   :  { %v3908_v30 = vpop.f32.mrf.mxu0 }
 0x5ac   :  { %v8205_v45 = vpack.i.bf16 %v3906_v1, %v3908_v30 }
 0x5ad   :  { %v3912_v38 = vpop.f32.mrf.mxu0 }
 0x5ae   :  { %8206 = vxpose.xlu1.b32.cont [11/16] %v8205_v45, 128 }
 0x5af   :  { %v3914_v26 = vpop.f32.mrf.mxu0 }
 0x5b0   :  { %v8207_v42 = vpack.i.bf16 %v3912_v38, %v3914_v26 }
 0x5b1   :  { %v3918_v51 = vpop.f32.mrf.mxu0 }
 0x5b2   :  { %8208 = vxpose.xlu1.b32.cont [12/16] %v8207_v42, 128 }
 0x5b3   :  { %v3920_v12 = vpop.f32.mrf.mxu0 }
 0x5b4   :  { %v8209_v41 = vpack.i.bf16 %v3918_v51, %v3920_v12  ;;  %v3598_v12 = vld [vmem:[#allocation7 + $0x558] sm:$0xff] }
 0x5b5   :  { %v3924_v57 = vpop.f32.mrf.mxu0  ;;  %5274 = vmatprep.subr.mxu0 %v3598_v12 }
 0x5b6   :  { %8210 = vxpose.xlu1.b32.cont [13/16] %v8209_v41, 128  ;;  %v3597_v41 = vld [vmem:[#allocation7 + $0x550] sm:$0xff] }
 0x5b7   :  { %v3926_v49 = vpop.f32.mrf.mxu0  ;;  %5275 = vmatpush2.msra.mxu0 %v3597_v41 }
 0x5b8   :  { %v8211_v19 = vpack.i.bf16 %v3924_v57, %v3926_v49 }
 0x5b9   :  { %v3930_v28 = vpop.f32.mrf.mxu0 }
 0x5ba   :  { %8212 = vxpose.xlu1.b32.cont [14/16] %v8211_v19, 128 }
 0x5bb   :  { %v3932_v16 = vpop.f32.mrf.mxu0 }
 0x5bc   :  { %v8213_v37 = vpack.i.bf16 %v3930_v28, %v3932_v16 }
 0x5bd   :  { %v3936_v11 = vpop.f32.mrf.mxu0 }
 0x5be   :  { %8214 = vxpose.xlu1.b32.cont [15/16] %v8213_v37, 128 }
 0x5bf   :  { %v3938_v62 = vpop.f32.mrf.mxu0 }
 0x5c0   :  { %v8215_v60 = vpack.i.bf16 %v3936_v11, %v3938_v62 }
 0x5c1   :  { %v3942_v55 = vpop.f32.mrf.mxu0 }
 0x5c2   :  { %v8105_v21 = vpop.trf.xlu0  ;;  %8216 = vxpose.xlu1.b32.end [16/16] %v8215_v60, 128  ;;  %v3596_v60 = vld [vmem:[#allocation7 + $0x548] sm:$0xff] }
 0x5c3   :  { %v8109_v44 = vunpack.i.h.bf16 %v8105_v21  ;;  %v3944_v47 = vpop.f32.mrf.mxu0  ;;  %v8106_v58 = vunpack.i.l.bf16 %v8105_v21  ;;  %5276 = vmatprep.subr.mxu0 %v3596_v60 }
 0x5c4   :  { %v8297_v24 = vpack.i.bf16 %v3942_v55, %v3944_v47  ;;  %v3595_v55 = vld [vmem:[#allocation7 + $0x540] sm:$0xff] }
 0x5c5   :  { %v3948_v20 = vpop.f32.mrf.mxu0  ;;  %4453 = vmatprep.mubr.f32.mxu1 %v8106_v58  ;;  %5277 = vmatpush2.msra.mxu0 %v3595_v55 }
 0x5c6   :  { %v8110_v6 = vpop.trf.xlu0  ;;  %4454 = vmatmul.mubr.f32.vlgmr.msra.gmra.mxu1 %v8109_v44  ;;  %8298 = vxpose.xlu0.b32.start [1/16] %v8297_v24, 128 }
 0x5c7   :  { %v8114_v46 = vunpack.i.h.bf16 %v8110_v6  ;;  %v3950_v7 = vpop.f32.mrf.mxu0  ;;  %v8111_v29 = vunpack.i.l.bf16 %v8110_v6 }
 0x5c8   :  { %v8299_v33 = vpack.i.bf16 %v3948_v20, %v3950_v7 }
 0x5c9   :  { %v3954_v0 = vpop.f32.mrf.mxu0  ;;  %4459 = vmatprep.mubr.f32.mxu1 %v8111_v29 }
 0x5ca   :  { %v8115_v40 = vpop.trf.xlu0  ;;  %4460 = vmatmul.mubr.f32.gmra.mxu1 %v8114_v46  ;;  %8300 = vxpose.xlu0.b32.cont [2/16] %v8299_v33, 128  ;;  %v3594_v33 = vld [vmem:[#allocation7 + $0x538] sm:$0xff] }
 0x5cb   :  { %v8119_v59 = vunpack.i.h.bf16 %v8115_v40  ;;  %v3956_v61 = vpop.f32.mrf.mxu0  ;;  %v8116_v18 = vunpack.i.l.bf16 %v8115_v40  ;;  %5278 = vmatprep.subr.mxu0 %v3594_v33 }
 0x5cc   :  { %v8301_v52 = vpack.i.bf16 %v3954_v0, %v3956_v61  ;;  %v3593_v0 = vld [vmem:[#allocation7 + $0x530] sm:$0xff] }
 0x5cd   :  { %v3960_v53 = vpop.f32.mrf.mxu0  ;;  %4465 = vmatprep.mubr.f32.mxu1 %v8116_v18  ;;  %5279 = vmatpush2.msra.mxu0 %v3593_v0 }
 0x5ce   :  { %v8120_v23 = vpop.trf.xlu0  ;;  %4466 = vmatmul.mubr.f32.gmra.mxu1 %v8119_v59  ;;  %8302 = vxpose.xlu0.b32.cont [3/16] %v8301_v52, 128 }
 0x5cf   :  { %v8124_v8 = vunpack.i.h.bf16 %v8120_v23  ;;  %v3962_v2 = vpop.f32.mrf.mxu0  ;;  %v8121_v50 = vunpack.i.l.bf16 %v8120_v23 }
 0x5d0   :  { %v8303_v17 = vpack.i.bf16 %v3960_v53, %v3962_v2 }
 0x5d1   :  { %v3966_v32 = vpop.f32.mrf.mxu0  ;;  %4471 = vmatprep.mubr.f32.mxu1 %v8121_v50 }
 0x5d2   :  { %v8125_v27 = vpop.trf.xlu0  ;;  %4472 = vmatmul.mubr.f32.gmra.mxu1 %v8124_v8  ;;  %8304 = vxpose.xlu0.b32.cont [4/16] %v8303_v17, 128  ;;  %v3592_v17 = vld [vmem:[#allocation7 + $0x528] sm:$0xff] }
 0x5d3   :  { %v8129_v13 = vunpack.i.h.bf16 %v8125_v27  ;;  %v3968_v3 = vpop.f32.mrf.mxu0  ;;  %v8126_v22 = vunpack.i.l.bf16 %v8125_v27  ;;  %5280 = vmatprep.subr.mxu0 %v3592_v17 }
 0x5d4   :  { %v8305_v35 = vpack.i.bf16 %v3966_v32, %v3968_v3  ;;  %v3591_v32 = vld [vmem:[#allocation7 + $0x520] sm:$0xff] }
 0x5d5   :  { %v3972_v56 = vpop.f32.mrf.mxu0  ;;  %4477 = vmatprep.mubr.f32.mxu1 %v8126_v22  ;;  %5281 = vmatpush2.msra.mxu0 %v3591_v32 }
 0x5d6   :  { %v8130_v31 = vpop.trf.xlu0  ;;  %4478 = vmatmul.mubr.f32.gmra.mxu1 %v8129_v13  ;;  %8306 = vxpose.xlu0.b32.cont [5/16] %v8305_v35, 128 }
 0x5d7   :  { %v8134_v25 = vunpack.i.h.bf16 %v8130_v31  ;;  %v3974_v43 = vpop.f32.mrf.mxu0  ;;  %v8131_v1 = vunpack.i.l.bf16 %v8130_v31 }
 0x5d8   :  { %v8307_v30 = vpack.i.bf16 %v3972_v56, %v3974_v43 }
 0x5d9   :  { %v3978_v45 = vpop.f32.mrf.mxu0  ;;  %4483 = vmatprep.mubr.f32.mxu1 %v8131_v1 }
 0x5da   :  { %v8135_v38 = vpop.trf.xlu0  ;;  %4484 = vmatmul.mubr.f32.gmra.mxu1 %v8134_v25  ;;  %8308 = vxpose.xlu0.b32.cont [6/16] %v8307_v30, 128  ;;  %v3590_v30 = vld [vmem:[#allocation7 + $0x518] sm:$0xff] }
 0x5db   :  { %v8139_v15 = vunpack.i.h.bf16 %v8135_v38  ;;  %v3980_v39 = vpop.f32.mrf.mxu0  ;;  %v8136_v26 = vunpack.i.l.bf16 %v8135_v38  ;;  %5282 = vmatprep.subr.mxu0 %v3590_v30 }
 0x5dc   :  { %v8309_v42 = vpack.i.bf16 %v3978_v45, %v3980_v39  ;;  %v3589_v45 = vld [vmem:[#allocation7 + $0x510] sm:$0xff] }
 0x5dd   :  { %v3984_v51 = vpop.f32.mrf.mxu0  ;;  %4489 = vmatprep.mubr.f32.mxu1 %v8136_v26  ;;  %5283 = vmatpush2.msra.mxu0 %v3589_v45 }
 0x5de   :  { %v8140_v57 = vpop.trf.xlu0  ;;  %4490 = vmatmul.mubr.f32.gmra.mxu1 %v8139_v15  ;;  %8310 = vxpose.xlu0.b32.cont [7/16] %v8309_v42, 128 }
 0x5df   :  { %v8144_v10 = vunpack.i.h.bf16 %v8140_v57  ;;  %v3986_v36 = vpop.f32.mrf.mxu0  ;;  %v8141_v49 = vunpack.i.l.bf16 %v8140_v57 }
 0x5e0   :  { %v8311_v19 = vpack.i.bf16 %v3984_v51, %v3986_v36 }
 0x5e1   :  { %v3990_v28 = vpop.f32.mrf.mxu0  ;;  %4495 = vmatprep.mubr.f32.mxu1 %v8141_v49 }
 0x5e2   :  { %v8145_v16 = vpop.trf.xlu0  ;;  %4496 = vmatmul.mubr.f32.gmra.mxu1 %v8144_v10  ;;  %8312 = vxpose.xlu0.b32.cont [8/16] %v8311_v19, 128  ;;  %v3588_v19 = vld [vmem:[#allocation7 + $0x508] sm:$0xff] }
 0x5e3   :  { %v8149_v37 = vunpack.i.h.bf16 %v8145_v16  ;;  %v3992_v11 = vpop.f32.mrf.mxu0  ;;  %v8146_v34 = vunpack.i.l.bf16 %v8145_v16  ;;  %5284 = vmatprep.subr.mxu0 %v3588_v19 }
 0x5e4   :  { %v8313_v5 = vpack.i.bf16 %v3990_v28, %v3992_v11 }
 0x5e5   :  { %v3996_v62 = vpop.f32.mrf.mxu0  ;;  %4501 = vmatprep.mubr.f32.mxu1 %v8146_v34  ;;  %v3587_v34 = vld [vmem:[#allocation7 + $0x500] sm:$0xff] }
 0x5e6   :  { %v8150_v21 = vpop.trf.xlu0  ;;  %4502 = vmatmul.mubr.f32.gmra.mxu1 %v8149_v37  ;;  %8314 = vxpose.xlu0.b32.cont [9/16] %v8313_v5, 128 }
 0x5e7   :  { %v8154_v44 = vunpack.i.h.bf16 %v8150_v21  ;;  %v3998_v47 = vpop.f32.mrf.mxu0  ;;  %v8151_v58 = vunpack.i.l.bf16 %v8150_v21  ;;  %5285 = vmatpush2.msra.mxu0 %v3587_v34 }
 0x5e8   :  { %v8315_v24 = vpack.i.bf16 %v3996_v62, %v3998_v47 }
 0x5e9   :  { %v4002_v20 = vpop.f32.mrf.mxu0  ;;  %4507 = vmatprep.mubr.f32.mxu1 %v8151_v58 }
 0x5ea   :  { %v8155_v9 = vpop.trf.xlu0  ;;  %4508 = vmatmul.mubr.f32.gmra.mxu1 %v8154_v44  ;;  %8316 = vxpose.xlu0.b32.cont [10/16] %v8315_v24, 128 }
 0x5eb   :  { %v8159_v63 = vunpack.i.h.bf16 %v8155_v9  ;;  %v4004_v6 = vpop.f32.mrf.mxu0  ;;  %v8156_v46 = vunpack.i.l.bf16 %v8155_v9 }
 0x5ec   :  { %v8317_v7 = vpack.i.bf16 %v4002_v20, %v4004_v6 }
 0x5ed   :  { %v4008_v29 = vpop.f32.mrf.mxu0  ;;  %4513 = vmatprep.mubr.f32.mxu1 %v8156_v46 }
 0x5ee   :  { %v8160_v40 = vpop.trf.xlu0  ;;  %4514 = vmatmul.mubr.f32.gmra.mxu1 %v8159_v63  ;;  %8318 = vxpose.xlu0.b32.cont [11/16] %v8317_v7, 128 }
 0x5ef   :  { %v8164_v59 = vunpack.i.h.bf16 %v8160_v40  ;;  %v4010_v61 = vpop.f32.mrf.mxu0  ;;  %v8161_v18 = vunpack.i.l.bf16 %v8160_v40 }
 0x5f0   :  { %v8319_v52 = vpack.i.bf16 %v4008_v29, %v4010_v61 }
 0x5f1   :  { %v4014_v53 = vpop.f32.mrf.mxu0  ;;  %4519 = vmatprep.mubr.f32.mxu1 %v8161_v18 }
 0x5f2   :  { %v8165_v14 = vpop.trf.xlu0  ;;  %4520 = vmatmul.mubr.f32.gmra.mxu1 %v8164_v59  ;;  %8320 = vxpose.xlu0.b32.cont [12/16] %v8319_v52, 128 }
 0x5f3   :  { %v8169_v54 = vunpack.i.h.bf16 %v8165_v14  ;;  %v4016_v23 = vpop.f32.mrf.mxu0  ;;  %v8166_v8 = vunpack.i.l.bf16 %v8165_v14 }
 0x5f4   :  { %v8321_v2 = vpack.i.bf16 %v4014_v53, %v4016_v23 }
 0x5f5   :  { %v4020_v50 = vpop.f32.mrf.mxu0  ;;  %4525 = vmatprep.mubr.f32.mxu1 %v8166_v8 }
 0x5f6   :  { %v8170_v27 = vpop.trf.xlu0  ;;  %4526 = vmatmul.mubr.f32.gmra.mxu1 %v8169_v54  ;;  %8322 = vxpose.xlu0.b32.cont [13/16] %v8321_v2, 128 }
 0x5f7   :  { %v8174_v13 = vunpack.i.h.bf16 %v8170_v27  ;;  %v4022_v3 = vpop.f32.mrf.mxu0  ;;  %v8171_v22 = vunpack.i.l.bf16 %v8170_v27 }
 0x5f8   :  { %v8323_v35 = vpack.i.bf16 %v4020_v50, %v4022_v3 }
 0x5f9   :  { %v4026_v56 = vpop.f32.mrf.mxu0  ;;  %4531 = vmatprep.mubr.f32.mxu1 %v8171_v22 }
 0x5fa   :  { %v8175_v48 = vpop.trf.xlu0  ;;  %4532 = vmatmul.mubr.f32.gmra.mxu1 %v8174_v13  ;;  %8324 = vxpose.xlu0.b32.cont [14/16] %v8323_v35, 128 }
 0x5fb   :  { %v4028_v4 = vpop.f32.mrf.mxu0  ;;  %v8176_v31 = vunpack.i.l.bf16 %v8175_v48  ;;  %v8179_v25 = vunpack.i.h.bf16 %v8175_v48 }
 0x5fc   :  { %v8325_v43 = vpack.i.bf16 %v4026_v56, %v4028_v4 }
 0x5fd   :  { %v4032_v1 = vpop.f32.mrf.mxu0  ;;  %4537 = vmatprep.mubr.f32.mxu1 %v8176_v31 }
 0x5fe   :  { %v8180_v38 = vpop.trf.xlu0  ;;  %4538 = vmatmul.mubr.f32.gmra.mxu1 %v8179_v25  ;;  %8326 = vxpose.xlu0.b32.cont [15/16] %v8325_v43, 128 }
 0x5ff   :  { %v4034_v15 = vpop.f32.mrf.mxu0  ;;  %v8181_v39 = vunpack.i.l.bf16 %v8180_v38  ;;  %v8184_v26 = vunpack.i.h.bf16 %v8180_v38 }
 0x600   :  { %v8327_v42 = vpack.i.bf16 %v4032_v1, %v4034_v15 }
 0x601   :  { %v4038_v51 = vpop.f32.mrf.mxu0  ;;  %4543 = vmatprep.mubr.f32.mxu1 %v8181_v39 }
 0x602   :  { %4544 = vmatmul.mubr.f32.gmra.mxu1 %v8184_v26  ;;  %v8217_v12 = vpop.trf.xlu1  ;;  %8328 = vxpose.xlu0.b32.end [16/16] %v8327_v42, 128 }
 0x603   :  { %v8221_v41 = vunpack.i.h.bf16 %v8217_v12  ;;  %v4040_v57 = vpop.f32.mrf.mxu0  ;;  %v8218_v10 = vunpack.i.l.bf16 %v8217_v12 }
 0x604   :  { %v8409_v36 = vpack.i.bf16 %v4038_v51, %v4040_v57 }
 0x605   :  { %v4044_v49 = vpop.f32.mrf.mxu0  ;;  %4549 = vmatprep.mubr.f32.mxu1 %v8218_v10 }
 0x606   :  { %v8222_v28 = vpop.trf.xlu1  ;;  %4550 = vmatmul.mubr.f32.gmra.mxu1 %v8221_v41  ;;  %8410 = vxpose.xlu1.b32.start [1/16] %v8409_v36, 128 }
 0x607   :  { %v8226_v16 = vunpack.i.h.bf16 %v8222_v28  ;;  %v4046_v37 = vpop.f32.mrf.mxu0  ;;  %v8223_v11 = vunpack.i.l.bf16 %v8222_v28 }
 0x608   :  { %v8411_v5 = vpack.i.bf16 %v4044_v49, %v4046_v37 }
 0x609   :  { %v4050_v62 = vpop.f32.mrf.mxu0  ;;  %4555 = vmatprep.mubr.f32.mxu1 %v8223_v11 }
 0x60a   :  { %v8227_v60 = vpop.trf.xlu1  ;;  %4556 = vmatmul.mubr.f32.gmra.mxu1 %v8226_v16  ;;  %8412 = vxpose.xlu1.b32.cont [2/16] %v8411_v5, 128 }
 0x60b   :  { %v8231_v55 = vunpack.i.h.bf16 %v8227_v60  ;;  %v4052_v21 = vpop.f32.mrf.mxu0  ;;  %v8228_v44 = vunpack.i.l.bf16 %v8227_v60 }
 0x60c   :  { %v8413_v47 = vpack.i.bf16 %v4050_v62, %v4052_v21 }
 0x60d   :  { %v4056_v58 = vpop.f32.mrf.mxu0  ;;  %4561 = vmatprep.mubr.f32.mxu1 %v8228_v44 }
 0x60e   :  { %v8232_v24 = vpop.trf.xlu1  ;;  %4562 = vmatmul.mubr.f32.gmra.mxu1 %v8231_v55  ;;  %8414 = vxpose.xlu1.b32.cont [3/16] %v8413_v47, 128 }
 0x60f   :  { %v8236_v20 = vunpack.i.h.bf16 %v8232_v24  ;;  %v4058_v9 = vpop.f32.mrf.mxu0  ;;  %v8233_v63 = vunpack.i.l.bf16 %v8232_v24 }
 0x610   :  { %v8415_v6 = vpack.i.bf16 %v4056_v58, %v4058_v9 }
 0x611   :  { %v4062_v46 = vpop.f32.mrf.mxu0  ;;  %4567 = vmatprep.mubr.f32.mxu1 %v8233_v63 }
 0x612   :  { %v8237_v7 = vpop.trf.xlu1  ;;  %4568 = vmatmul.mubr.f32.gmra.mxu1 %v8236_v20  ;;  %8416 = vxpose.xlu1.b32.cont [4/16] %v8415_v6, 128 }
 0x613   :  { %v8241_v29 = vunpack.i.h.bf16 %v8237_v7  ;;  %v4064_v33 = vpop.f32.mrf.mxu0  ;;  %v8238_v0 = vunpack.i.l.bf16 %v8237_v7 }
 0x614   :  { %v8417_v40 = vpack.i.bf16 %v4062_v46, %v4064_v33 }
 0x615   :  { %v4068_v59 = vpop.f32.mrf.mxu0  ;;  %4573 = vmatprep.mubr.f32.mxu1 %v8238_v0 }
 0x616   :  { %v8242_v61 = vpop.trf.xlu1  ;;  %4574 = vmatmul.mubr.f32.gmra.mxu1 %v8241_v29  ;;  %8418 = vxpose.xlu1.b32.cont [5/16] %v8417_v40, 128 }
 0x617   :  { %v8246_v18 = vunpack.i.h.bf16 %v8242_v61  ;;  %v4070_v52 = vpop.f32.mrf.mxu0  ;;  %v8243_v53 = vunpack.i.l.bf16 %v8242_v61 }
 0x618   :  { %v8419_v14 = vpack.i.bf16 %v4068_v59, %v4070_v52 }
 0x619   :  { %v4074_v54 = vpop.f32.mrf.mxu0  ;;  %4579 = vmatprep.mubr.f32.mxu1 %v8243_v53 }
 0x61a   :  { %v8247_v23 = vpop.trf.xlu1  ;;  %4580 = vmatmul.mubr.f32.gmra.mxu1 %v8246_v18  ;;  %8420 = vxpose.xlu1.b32.cont [6/16] %v8419_v14, 128 }
 0x61b   :  { %v8251_v8 = vunpack.i.h.bf16 %v8247_v23  ;;  %v4076_v2 = vpop.f32.mrf.mxu0  ;;  %v8248_v50 = vunpack.i.l.bf16 %v8247_v23 }
 0x61c   :  { %v8421_v17 = vpack.i.bf16 %v4074_v54, %v4076_v2 }
 0x61d   :  { %v4080_v32 = vpop.f32.mrf.mxu0  ;;  %4585 = vmatprep.mubr.f32.mxu1 %v8248_v50 }
 0x61e   :  { %v8252_v27 = vpop.trf.xlu1  ;;  %4586 = vmatmul.mubr.f32.gmra.mxu1 %v8251_v8  ;;  %8422 = vxpose.xlu1.b32.cont [7/16] %v8421_v17, 128 }
 0x61f   :  { %v8256_v13 = vunpack.i.h.bf16 %v8252_v27  ;;  %v4082_v3 = vpop.f32.mrf.mxu0  ;;  %v8253_v22 = vunpack.i.l.bf16 %v8252_v27 }
 0x620   :  { %v8423_v35 = vpack.i.bf16 %v4080_v32, %v4082_v3 }
 0x621   :  { %v4086_v56 = vpop.f32.mrf.mxu0  ;;  %4591 = vmatprep.mubr.f32.mxu1 %v8253_v22 }
 0x622   :  { %v8257_v48 = vpop.trf.xlu1  ;;  %4592 = vmatmul.mubr.f32.gmra.mxu1 %v8256_v13  ;;  %8424 = vxpose.xlu1.b32.cont [8/16] %v8423_v35, 128  ;;  %v3651_v35 = vld [vmem:[#allocation7 + $0x6f8] sm:$0xff] }
 0x623   :  { %v8261_v4 = vunpack.i.h.bf16 %v8257_v48  ;;  %v4088_v31 = vpop.f32.mrf.mxu0  ;;  %v8258_v25 = vunpack.i.l.bf16 %v8257_v48  ;;  %5927 = vmatprep.subr.mxu1 %v3651_v35  ;;  %v3637_v35 = vld [vmem:[#allocation7 + $0x688] sm:$0xff] }
 0x624   :  { %v8425_v43 = vpack.i.bf16 %v4086_v56, %v4088_v31  ;;  %v3650_v56 = vld [vmem:[#allocation7 + $0x6f0] sm:$0xff] }
 0x625   :  { %v4092_v1 = vpop.f32.mrf.mxu0  ;;  %4597 = vmatprep.mubr.f32.mxu1 %v8258_v25  ;;  %5928 = vmatpush1.msra.mxu1 %v3650_v56  ;;  %v3636_v56 = vld [vmem:[#allocation7 + $0x680] sm:$0xff] }
 0x626   :  { %v8262_v30 = vpop.trf.xlu1  ;;  %4598 = vmatmul.mubr.f32.gmra.mxu1 %v8261_v4  ;;  %8426 = vxpose.xlu1.b32.cont [9/16] %v8425_v43, 128 }
 0x627   :  { %v8266_v45 = vunpack.i.h.bf16 %v8262_v30  ;;  %v4094_v38 = vpop.f32.mrf.mxu0  ;;  %v8263_v15 = vunpack.i.l.bf16 %v8262_v30  ;;  %v3649_v30 = vld [vmem:[#allocation7 + $0x6e8] sm:$0xff] }
 0x628   :  { %v8427_v39 = vpack.i.bf16 %v4092_v1, %v4094_v38  ;;  %5929 = vmatprep.subr.mxu1 %v3649_v30  ;;  %v10338_v30 = vld [vmem:[#allocation5 + $0x288] sm:$0xff] }
 0x629   :  { %v4098_v26 = vpop.f32.mrf.mxu0  ;;  %4603 = vmatprep.mubr.f32.mxu1 %v8263_v15 }
 0x62a   :  { %v8267_v42 = vpop.trf.xlu1  ;;  %4604 = vmatmul.mubr.f32.gmra.mxu1 %v8266_v45  ;;  %8428 = vxpose.xlu1.b32.cont [10/16] %v8427_v39, 128  ;;  %v3648_v45 = vld [vmem:[#allocation7 + $0x6e0] sm:$0xff] }
 0x62b   :  { %v8271_v51 = vunpack.i.h.bf16 %v8267_v42  ;;  %v4100_v12 = vpop.f32.mrf.mxu0  ;;  %v8268_v41 = vunpack.i.l.bf16 %v8267_v42  ;;  %5930 = vmatpush1.msra.mxu1 %v3648_v45 }
 0x62c   :  { %v8429_v57 = vpack.i.bf16 %v4098_v26, %v4100_v12  ;;  %v3647_v12 = vld [vmem:[#allocation7 + $0x6d8] sm:$0xff] }
 0x62d   :  { %v4104_v10 = vpop.f32.mrf.mxu0  ;;  %4609 = vmatprep.mubr.f32.mxu1 %v8268_v41  ;;  %v3646_v41 = vld [vmem:[#allocation7 + $0x6d0] sm:$0xff]  ;;  %5931 = vmatprep.subr.mxu1 %v3647_v12 }
 0x62e   :  { %v8272_v36 = vpop.trf.xlu1  ;;  %4610 = vmatmul.mubr.f32.gmra.mxu1 %v8271_v51  ;;  %8430 = vxpose.xlu1.b32.cont [11/16] %v8429_v57, 128 }
 0x62f   :  { %v8276_v49 = vunpack.i.h.bf16 %v8272_v36  ;;  %v4106_v19 = vpop.f32.mrf.mxu0  ;;  %v8273_v28 = vunpack.i.l.bf16 %v8272_v36  ;;  %5932 = vmatpush1.msra.mxu1 %v3646_v41 }
 0x630   :  { %v8431_v16 = vpack.i.bf16 %v4104_v10, %v4106_v19 }
 0x631   :  { %v4110_v37 = vpop.f32.mrf.mxu0  ;;  %4615 = vmatprep.mubr.f32.mxu1 %v8273_v28 }
 0x632   :  { %v8277_v11 = vpop.trf.xlu1  ;;  %4616 = vmatmul.mubr.f32.gmra.mxu1 %v8276_v49  ;;  %8432 = vxpose.xlu1.b32.cont [12/16] %v8431_v16, 128  ;;  %v3645_v16 = vld [vmem:[#allocation7 + $0x6c8] sm:$0xff] }
 0x633   :  { %v8281_v34 = vunpack.i.h.bf16 %v8277_v11  ;;  %v4112_v5 = vpop.f32.mrf.mxu0  ;;  %v8278_v62 = vunpack.i.l.bf16 %v8277_v11  ;;  %5933 = vmatprep.subr.mxu1 %v3645_v16 }
 0x634   :  { %v8433_v60 = vpack.i.bf16 %v4110_v37, %v4112_v5  ;;  %v3644_v37 = vld [vmem:[#allocation7 + $0x6c0] sm:$0xff] }
 0x635   :  { %v4116_v55 = vpop.f32.mrf.mxu0  ;;  %4621 = vmatprep.mubr.f32.mxu1 %v8278_v62  ;;  %5934 = vmatpush1.msra.mxu1 %v3644_v37 }
 0x636   :  { %v8282_v21 = vpop.trf.xlu1  ;;  %4622 = vmatmul.mubr.f32.gmra.mxu1 %v8281_v34  ;;  %8434 = vxpose.xlu1.b32.cont [13/16] %v8433_v60, 128 }
 0x637   :  { %v8286_v44 = vunpack.i.h.bf16 %v8282_v21  ;;  %v4118_v47 = vpop.f32.mrf.mxu0  ;;  %v8283_v58 = vunpack.i.l.bf16 %v8282_v21  ;;  %v3643_v21 = vld [vmem:[#allocation7 + $0x6b8] sm:$0xff] }
 0x638   :  { %v8435_v24 = vpack.i.bf16 %v4116_v55, %v4118_v47  ;;  %5935 = vmatprep.subr.mxu1 %v3643_v21 }
 0x639   :  { %v4122_v20 = vpop.f32.mrf.mxu0  ;;  %4627 = vmatprep.mubr.f32.mxu1 %v8283_v58 }
 0x63a   :  { %v8287_v9 = vpop.trf.xlu1  ;;  %4628 = vmatmul.mubr.f32.gmra.mxu1 %v8286_v44  ;;  %8436 = vxpose.xlu1.b32.cont [14/16] %v8435_v24, 128  ;;  %v3642_v44 = vld [vmem:[#allocation7 + $0x6b0] sm:$0xff] }
 0x63b   :  { %v4124_v63 = vpop.f32.mrf.mxu0  ;;  %v8288_v6 = vunpack.i.l.bf16 %v8287_v9  ;;  %v8291_v46 = vunpack.i.h.bf16 %v8287_v9  ;;  %5936 = vmatpush1.msra.mxu1 %v3642_v44 }
 0x63c   :  { %v8437_v7 = vpack.i.bf16 %v4122_v20, %v4124_v63 }
 0x63d   :  { %v4128_v29 = vpop.f32.mrf.mxu0  ;;  %4633 = vmatprep.mubr.f32.mxu1 %v8288_v6  ;;  %v3641_v6 = vld [vmem:[#allocation7 + $0x6a8] sm:$0xff] }
 0x63e   :  { %v8292_v33 = vpop.trf.xlu1  ;;  %4634 = vmatmul.mubr.f32.gmra.mxu1 %v8291_v46  ;;  %8438 = vxpose.xlu1.b32.cont [15/16] %v8437_v7, 128  ;;  %v3640_v46 = vld [vmem:[#allocation7 + $0x6a0] sm:$0xff] }
 0x63f   :  { %v4130_v0 = vpop.f32.mrf.mxu0  ;;  %v8293_v40 = vunpack.i.l.bf16 %v8292_v33  ;;  %v8296_v59 = vunpack.i.h.bf16 %v8292_v33  ;;  %5937 = vmatprep.subr.mxu1 %v3641_v6 }
 0x640   :  { %v8439_v61 = vpack.i.bf16 %v4128_v29, %v4130_v0  ;;  %5938 = vmatpush1.msra.mxu1 %v3640_v46 }
 0x641   :  { %4639 = vmatprep.mubr.f32.mxu1 %v8293_v40 }
 0x642   :  { %4640 = vmatmul.mubr.f32.gmra.mxu1 %v8296_v59  ;;  %v8329_v18 = vpop.trf.xlu0  ;;  %8440 = vxpose.xlu1.b32.end [16/16] %v8439_v61, 128  ;;  %v3639_v61 = vld [vmem:[#allocation7 + $0x698] sm:$0xff] }
 0x643   :  { %v8330_v52 = vunpack.i.l.bf16 %v8329_v18  ;;  %v8333_v53 = vunpack.i.h.bf16 %v8329_v18  ;;  %v3638_v18 = vld [vmem:[#allocation7 + $0x690] sm:$0xff]  ;;  %5939 = vmatprep.subr.mxu1 %v3639_v61 }
 0x644   :  { %5940 = vmatpush1.msra.mxu1 %v3638_v18  ;;  %v10362_v18 = vld [vmem:[#allocation5 + $0x2a0] sm:$0xff] }
 0x645   :  { %4645 = vmatprep.mubr.f32.mxu1 %v8330_v52  ;;  %5941 = vmatprep.subr.mxu1 %v3637_v35  ;;  %v10367_v35 = vld [vmem:[#allocation5 + $0x228] sm:$0xff] }
 0x646   :  { %v8334_v14 = vpop.trf.xlu0  ;;  %4646 = vmatmul.mubr.f32.gmra.mxu1 %v8333_v53 }
 0x647   :  { %v8335_v54 = vunpack.i.l.bf16 %v8334_v14  ;;  %v8338_v23 = vunpack.i.h.bf16 %v8334_v14  ;;  %5942 = vmatpush1.msra.mxu1 %v3636_v56 }
 0x649   :  { %4651 = vmatprep.mubr.f32.mxu1 %v8335_v54 }
 0x64a   :  { %v8339_v8 = vpop.trf.xlu0  ;;  %4652 = vmatmul.mubr.f32.gmra.mxu1 %v8338_v23 }
 0x64b   :  { %v8340_v2 = vunpack.i.l.bf16 %v8339_v8  ;;  %v8343_v50 = vunpack.i.h.bf16 %v8339_v8  ;;  %v10327_v8 = vld [vmem:[#allocation5 + $0x200] sm:$0xff] }
 0x64d   :  { %4657 = vmatprep.mubr.f32.mxu1 %v8340_v2 }
 0x64e   :  { %v8344_v17 = vpop.trf.xlu0  ;;  %4658 = vmatmul.mubr.f32.gmra.mxu1 %v8343_v50  ;;  %v10330_v50 = vld [vmem:[#allocation5 + $0x280] sm:$0xff] }
 0x64f   :  { %v8345_v32 = vunpack.i.l.bf16 %v8344_v17  ;;  %v8348_v27 = vunpack.i.h.bf16 %v8344_v17 }
 0x651   :  { %4663 = vmatprep.mubr.f32.mxu1 %v8345_v32 }
 0x652   :  { %v8349_v13 = vpop.trf.xlu0  ;;  %4664 = vmatmul.mubr.f32.gmra.mxu1 %v8348_v27 }
 0x653   :  { %v8350_v3 = vunpack.i.l.bf16 %v8349_v13  ;;  %v8353_v22 = vunpack.i.h.bf16 %v8349_v13 }
 0x655   :  { %4669 = vmatprep.mubr.f32.mxu1 %v8350_v3 }
 0x656   :  { %v8354_v48 = vpop.trf.xlu0  ;;  %4670 = vmatmul.mubr.f32.gmra.mxu1 %v8353_v22 }
 0x657   :  { %v8355_v4 = vunpack.i.l.bf16 %v8354_v48  ;;  %v8358_v31 = vunpack.i.h.bf16 %v8354_v48 }
 0x659   :  { %4675 = vmatprep.mubr.f32.mxu1 %v8355_v4 }
 0x65a   :  { %v8359_v25 = vpop.trf.xlu0  ;;  %4676 = vmatmul.mubr.f32.gmra.mxu1 %v8358_v31 }
 0x65b   :  { %v8360_v43 = vunpack.i.l.bf16 %v8359_v25  ;;  %v8363_v1 = vunpack.i.h.bf16 %v8359_v25 }
 0x65d   :  { %4681 = vmatprep.mubr.f32.mxu1 %v8360_v43  ;;  %v10335_v43 = vld [vmem:[#allocation5 + $0x208] sm:$0xff] }
 0x65e   :  { %v8364_v38 = vpop.trf.xlu0  ;;  %4682 = vmatmul.mubr.f32.gmra.mxu1 %v8363_v1 }
 0x65f   :  { %v8365_v15 = vunpack.i.l.bf16 %v8364_v38  ;;  %v8368_v39 = vunpack.i.h.bf16 %v8364_v38 }
 0x661   :  { %4687 = vmatprep.mubr.f32.mxu1 %v8365_v15 }
 0x662   :  { %v8369_v26 = vpop.trf.xlu0  ;;  %4688 = vmatmul.mubr.f32.gmra.mxu1 %v8368_v39 }
 0x663   :  { %v8370_v42 = vunpack.i.l.bf16 %v8369_v26  ;;  %v8373_v51 = vunpack.i.h.bf16 %v8369_v26 }
 0x665   :  { %4693 = vmatprep.mubr.f32.mxu1 %v8370_v42 }
 0x666   :  { %v8374_v57 = vpop.trf.xlu0  ;;  %4694 = vmatmul.mubr.f32.gmra.mxu1 %v8373_v51 }
 0x667   :  { %v8375_v10 = vunpack.i.l.bf16 %v8374_v57  ;;  %v8378_v36 = vunpack.i.h.bf16 %v8374_v57 }
 0x669   :  { %4699 = vmatprep.mubr.f32.mxu1 %v8375_v10  ;;  %v10343_v10 = vld [vmem:[#allocation5 + $0x210] sm:$0xff] }
 0x66a   :  { %v8379_v49 = vpop.trf.xlu0  ;;  %4700 = vmatmul.mubr.f32.gmra.mxu1 %v8378_v36 }
 0x66b   :  { %v8380_v19 = vunpack.i.l.bf16 %v8379_v49  ;;  %v8383_v28 = vunpack.i.h.bf16 %v8379_v49  ;;  %v10346_v49 = vld [vmem:[#allocation5 + $0x290] sm:$0xff] }
 0x66d   :  { %4705 = vmatprep.mubr.f32.mxu1 %v8380_v19 }
 0x66e   :  { %v8384_v11 = vpop.trf.xlu0  ;;  %4706 = vmatmul.mubr.f32.gmra.mxu1 %v8383_v28 }
 0x66f   :  { %v8385_v34 = vunpack.i.l.bf16 %v8384_v11  ;;  %v8388_v5 = vunpack.i.h.bf16 %v8384_v11 }
 0x671   :  { %4711 = vmatprep.mubr.f32.mxu1 %v8385_v34 }
 0x672   :  { %v8389_v62 = vpop.trf.xlu0  ;;  %4712 = vmatmul.mubr.f32.gmra.mxu1 %v8388_v5  ;;  %v3635_v5 = vld [vmem:[#allocation7 + $0x678] sm:$0xff] }
 0x673   :  { %v8390_v60 = vunpack.i.l.bf16 %v8389_v62  ;;  %v8393_v55 = vunpack.i.h.bf16 %v8389_v62  ;;  %v3634_v62 = vld [vmem:[#allocation7 + $0x670] sm:$0xff]  ;;  %5943 = vmatprep.subr.mxu1 %v3635_v5 }
 0x674   :  { %5944 = vmatpush1.msra.mxu1 %v3634_v62 }
 0x675   :  { %4717 = vmatprep.mubr.f32.mxu1 %v8390_v60 }
 0x676   :  { %v8394_v47 = vpop.trf.xlu0  ;;  %4718 = vmatmul.mubr.f32.gmra.mxu1 %v8393_v55 }
 0x677   :  { %v8395_v58 = vunpack.i.l.bf16 %v8394_v47  ;;  %v8398_v24 = vunpack.i.h.bf16 %v8394_v47  ;;  %v10351_v47 = vld [vmem:[#allocation5 + $0x218] sm:$0xff] }
 0x679   :  { %4723 = vmatprep.mubr.f32.mxu1 %v8395_v58 }
 0x67a   :  { %v8399_v20 = vpop.trf.xlu0  ;;  %4724 = vmatmul.mubr.f32.gmra.mxu1 %v8398_v24  ;;  %v10354_v24 = vld [vmem:[#allocation5 + $0x298] sm:$0xff] }
 0x67b   :  { %v8400_v9 = vunpack.i.l.bf16 %v8399_v20  ;;  %v8403_v63 = vunpack.i.h.bf16 %v8399_v20 }
 0x67d   :  { %4729 = vmatprep.mubr.f32.mxu1 %v8400_v9 }
 0x67e   :  { %v8404_v7 = vpop.trf.xlu0  ;;  %4730 = vmatmul.mubr.f32.gmra.mxu1 %v8403_v63 }
 0x67f   :  { %v8405_v29 = vunpack.i.l.bf16 %v8404_v7  ;;  %v8408_v33 = vunpack.i.h.bf16 %v8404_v7 }
 0x681   :  { %4735 = vmatprep.mubr.f32.mxu1 %v8405_v29 }
 0x682   :  { %4736 = vmatmul.mubr.f32.gmra.mxu1 %v8408_v33  ;;  %v8441_v0 = vpop.trf.xlu1 }
 0x683   :  { %v8442_v40 = vunpack.i.l.bf16 %v8441_v0  ;;  %v8445_v59 = vunpack.i.h.bf16 %v8441_v0 }
 0x685   :  { %4741 = vmatprep.mubr.f32.mxu1 %v8442_v40 }
 0x686   :  { %v4455_v52 = vpop.f32.mrf.mxu1  ;;  %v8446_v53 = vpop.trf.xlu1  ;;  %4742 = vmatmul.mubr.f32.gmra.mxu1 %v8445_v59  ;;  %v10359_v59 = vld [vmem:[#allocation5 + $0x220] sm:$0xff] }
 0x687   :  { %v8447_v54 = vunpack.i.l.bf16 %v8446_v53  ;;  %v8450_v23 = vunpack.i.h.bf16 %v8446_v53  ;;  %v4838_v2 = vmul.f32 %v10327_v8, %v4455_v52  ;;  %v5094_v27 = vmul.f32 %v10330_v50, %v4455_v52 }
 0x688   :  { %v4457_v14 = vpop.f32.mrf.mxu1 }
 0x689   :  { %v4902_v17 = vmul.f32 %v10330_v50, %v4457_v14  ;;  %v5030_v32 = vmul.f32 %v10327_v8, %v4457_v14  ;;  %4747 = vmatprep.mubr.f32.mxu1 %v8447_v54 }
 0x68a   :  { %v4461_v13 = vpop.f32.mrf.mxu1  ;;  %v8451_v3 = vpop.trf.xlu1  ;;  %4748 = vmatmul.mubr.f32.gmra.mxu1 %v8450_v23 }
 0x68b   :  { %v4966_v22 = vsub.f32 %v4838_v2, %v4902_v17  ;;  %v8452_v4 = vunpack.i.l.bf16 %v8451_v3  ;;  %v5158_v31 = vadd.f32 %v5094_v27, %v5030_v32  ;;  %v8455_v25 = vunpack.i.h.bf16 %v8451_v3  ;;  %v3633_v17 = vld [vmem:[#allocation7 + $0x668] sm:$0xff]  ;;  %v3632_v32 = vld [vmem:[#allocation7 + $0x660] sm:$0xff] }
 0x68c   :  { %v4463_v48 = vpop.f32.mrf.mxu1  ;;  %v4839_v1 = vmul.f32 %v10335_v43, %v4461_v13  ;;  %v5095_v15 = vmul.f32 %v10338_v30, %v4461_v13  ;;  %5945 = vmatprep.subr.mxu1 %v3633_v17 }
 0x68d   :  { %v4903_v45 = vmul.f32 %v10338_v30, %v4463_v48  ;;  %v5031_v38 = vmul.f32 %v10335_v43, %v4463_v48  ;;  %4753 = vmatprep.mubr.f32.mxu1 %v8452_v4  ;;  %5286 = vmatprep.mubr.f32.mxu0 %v5158_v31  ;;  %v10370_v48 = vld [vmem:[#allocation5 + $0x2a8] sm:$0xff] }
 0x68e   :  { %v4467_v39 = vpop.f32.mrf.mxu1  ;;  %v8456_v26 = vpop.trf.xlu1  ;;  %5287 = vmatmul.mubr.f32.vlgmr.msra.gmra.mxu0 %v4966_v22  ;;  %4754 = vmatmul.mubr.f32.gmra.mxu1 %v8455_v25 }
 0x68f   :  { %v4967_v42 = vsub.f32 %v4839_v1, %v4903_v45  ;;  %v8457_v12 = vunpack.i.l.bf16 %v8456_v26  ;;  %v5159_v41 = vadd.f32 %v5095_v15, %v5031_v38  ;;  %v8460_v57 = vunpack.i.h.bf16 %v8456_v26  ;;  %5946 = vmatpush1.msra.mxu1 %v3632_v32 }
 0x690   :  { %v4469_v51 = vpop.f32.mrf.mxu1  ;;  %v4840_v36 = vmul.f32 %v10343_v10, %v4467_v39  ;;  %v5096_v16 = vmul.f32 %v10346_v49, %v4467_v39 }
 0x691   :  { %v4904_v19 = vmul.f32 %v10346_v49, %v4469_v51  ;;  %v5032_v28 = vmul.f32 %v10343_v10, %v4469_v51  ;;  %4759 = vmatprep.mubr.f32.mxu1 %v8457_v12  ;;  %5292 = vmatprep.mubr.f32.mxu0 %v5159_v41  ;;  %v10375_v51 = vld [vmem:[#allocation5 + $0x230] sm:$0xff] }
 0x692   :  { %v4473_v37 = vpop.f32.mrf.mxu1  ;;  %v8461_v11 = vpop.trf.xlu1  ;;  %5293 = vmatmul.mubr.f32.gmra.mxu0 %v4967_v42  ;;  %4760 = vmatmul.mubr.f32.gmra.mxu1 %v8460_v57  ;;  %v10378_v41 = vld [vmem:[#allocation5 + $0x2b0] sm:$0xff] }
 0x693   :  { %v4968_v34 = vsub.f32 %v4840_v36, %v4904_v19  ;;  %v8462_v55 = vunpack.i.l.bf16 %v8461_v11  ;;  %v5160_v21 = vadd.f32 %v5096_v16, %v5032_v28  ;;  %v8465_v44 = vunpack.i.h.bf16 %v8461_v11  ;;  %v3631_v11 = vld [vmem:[#allocation7 + $0x658] sm:$0xff] }
 0x694   :  { %v4475_v60 = vpop.f32.mrf.mxu1  ;;  %v4841_v58 = vmul.f32 %v10351_v47, %v4473_v37  ;;  %v5097_v63 = vmul.f32 %v10354_v24, %v4473_v37  ;;  %5947 = vmatprep.subr.mxu1 %v3631_v11 }
 0x695   :  { %v4905_v20 = vmul.f32 %v10354_v24, %v4475_v60  ;;  %v5033_v9 = vmul.f32 %v10351_v47, %v4475_v60  ;;  %4765 = vmatprep.mubr.f32.mxu1 %v8462_v55  ;;  %5298 = vmatprep.mubr.f32.mxu0 %v5160_v21  ;;  %v10383_v21 = vld [vmem:[#allocation5 + $0x238] sm:$0xff] }
 0x696   :  { %v4479_v6 = vpop.f32.mrf.mxu1  ;;  %v8466_v46 = vpop.trf.xlu1  ;;  %5299 = vmatmul.mubr.f32.gmra.mxu0 %v4968_v34  ;;  %4766 = vmatmul.mubr.f32.gmra.mxu1 %v8465_v44  ;;  %v3630_v34 = vld [vmem:[#allocation7 + $0x650] sm:$0xff] }
 0x697   :  { %v4969_v7 = vsub.f32 %v4841_v58, %v4905_v20  ;;  %v8467_v33 = vunpack.i.l.bf16 %v8466_v46  ;;  %v5161_v0 = vadd.f32 %v5097_v63, %v5033_v9  ;;  %v8470_v40 = vunpack.i.h.bf16 %v8466_v46  ;;  %v10386_v58 = vld [vmem:[#allocation5 + $0x2b8] sm:$0xff]  ;;  %5948 = vmatpush1.msra.mxu1 %v3630_v34 }
 0x698   :  { %v4481_v29 = vpop.f32.mrf.mxu1  ;;  %v4842_v61 = vmul.f32 %v10359_v59, %v4479_v6  ;;  %v5098_v14 = vmul.f32 %v10362_v18, %v4479_v6 }
 0x699   :  { %v4906_v52 = vmul.f32 %v10362_v18, %v4481_v29  ;;  %v5034_v53 = vmul.f32 %v10359_v59, %v4481_v29  ;;  %4771 = vmatprep.mubr.f32.mxu1 %v8467_v33  ;;  %5304 = vmatprep.mubr.f32.mxu0 %v5161_v0 }
 0x69a   :  { %v4485_v54 = vpop.f32.mrf.mxu1  ;;  %v8471_v23 = vpop.trf.xlu1  ;;  %5305 = vmatmul.mubr.f32.gmra.mxu0 %v4969_v7  ;;  %4772 = vmatmul.mubr.f32.gmra.mxu1 %v8470_v40 }
 0x69b   :  { %v4970_v2 = vsub.f32 %v4842_v61, %v4906_v52  ;;  %v8472_v13 = vunpack.i.l.bf16 %v8471_v23  ;;  %v5162_v3 = vadd.f32 %v5098_v14, %v5034_v53  ;;  %v8475_v22 = vunpack.i.h.bf16 %v8471_v23  ;;  %v10391_v61 = vld [vmem:[#allocation5 + $0x240] sm:$0xff] }
 0x69c   :  { %v4487_v27 = vpop.f32.mrf.mxu1  ;;  %v4843_v56 = vmul.f32 %v10367_v35, %v4485_v54  ;;  %v5099_v25 = vmul.f32 %v10370_v48, %v4485_v54  ;;  %v10394_v53 = vld [vmem:[#allocation5 + $0x2c0] sm:$0xff] }
 0x69d   :  { %v4907_v4 = vmul.f32 %v10370_v48, %v4487_v27  ;;  %v5035_v31 = vmul.f32 %v10367_v35, %v4487_v27  ;;  %4777 = vmatprep.mubr.f32.mxu1 %v8472_v13  ;;  %5310 = vmatprep.mubr.f32.mxu0 %v5162_v3  ;;  %v3629_v27 = vld [vmem:[#allocation7 + $0x648] sm:$0xff]  ;;  %v3628_v13 = vld [vmem:[#allocation7 + $0x640] sm:$0xff] }
 0x69e   :  { %v4491_v1 = vpop.f32.mrf.mxu1  ;;  %v8476_v45 = vpop.trf.xlu1  ;;  %5311 = vmatmul.mubr.f32.gmra.mxu0 %v4970_v2  ;;  %4778 = vmatmul.mubr.f32.gmra.mxu1 %v8475_v22 }
 0x69f   :  { %v4971_v38 = vsub.f32 %v4843_v56, %v4907_v4  ;;  %v8477_v39 = vunpack.i.l.bf16 %v8476_v45  ;;  %v5163_v26 = vadd.f32 %v5099_v25, %v5035_v31  ;;  %v8480_v42 = vunpack.i.h.bf16 %v8476_v45  ;;  %5949 = vmatprep.subr.mxu1 %v3629_v27  ;;  %v10399_v31 = vld [vmem:[#allocation5 + $0x248] sm:$0xff] }
 0x6a0   :  { %v4493_v15 = vpop.f32.mrf.mxu1  ;;  %v4844_v12 = vmul.f32 %v10375_v51, %v4491_v1  ;;  %v5100_v19 = vmul.f32 %v10378_v41, %v4491_v1  ;;  %v10402_v1 = vld [vmem:[#allocation5 + $0x2c8] sm:$0xff]  ;;  %5950 = vmatpush1.msra.mxu1 %v3628_v13  ;;  %v10423_v13 = vld [vmem:[#allocation5 + $0x260] sm:$0xff] }
 0x6a1   :  { %v4908_v57 = vmul.f32 %v10378_v41, %v4493_v15  ;;  %v5036_v36 = vmul.f32 %v10375_v51, %v4493_v15  ;;  %4783 = vmatprep.mubr.f32.mxu1 %v8477_v39  ;;  %5316 = vmatprep.mubr.f32.mxu0 %v5163_v26 }
 0x6a2   :  { %v4497_v28 = vpop.f32.mrf.mxu1  ;;  %v8481_v16 = vpop.trf.xlu1  ;;  %5317 = vmatmul.mubr.f32.gmra.mxu0 %v4971_v38  ;;  %4784 = vmatmul.mubr.f32.gmra.mxu1 %v8480_v42 }
 0x6a3   :  { %v4972_v37 = vsub.f32 %v4844_v12, %v4908_v57  ;;  %v8482_v62 = vunpack.i.l.bf16 %v8481_v16  ;;  %v5164_v60 = vadd.f32 %v5100_v19, %v5036_v36  ;;  %v8485_v55 = vunpack.i.h.bf16 %v8481_v16 }
 0x6a4   :  { %v4499_v5 = vpop.f32.mrf.mxu1  ;;  %v4845_v44 = vmul.f32 %v10383_v21, %v4497_v28  ;;  %v5101_v63 = vmul.f32 %v10386_v58, %v4497_v28  ;;  %v10407_v28 = vld [vmem:[#allocation5 + $0x250] sm:$0xff] }
 0x6a5   :  { %v4909_v20 = vmul.f32 %v10386_v58, %v4499_v5  ;;  %v5037_v9 = vmul.f32 %v10383_v21, %v4499_v5  ;;  %4789 = vmatprep.mubr.f32.mxu1 %v8482_v62  ;;  %5322 = vmatprep.mubr.f32.mxu0 %v5164_v60 }
 0x6a6   :  { %v4503_v6 = vpop.f32.mrf.mxu1  ;;  %v8486_v46 = vpop.trf.xlu1  ;;  %5323 = vmatmul.mubr.f32.gmra.mxu0 %v4972_v37  ;;  %4790 = vmatmul.mubr.f32.gmra.mxu1 %v8485_v55  ;;  %v10410_v37 = vld [vmem:[#allocation5 + $0x2d0] sm:$0xff] }
 0x6a7   :  { %v4973_v7 = vsub.f32 %v4845_v44, %v4909_v20  ;;  %v8487_v33 = vunpack.i.l.bf16 %v8486_v46  ;;  %v5165_v0 = vadd.f32 %v5101_v63, %v5037_v9  ;;  %v8490_v40 = vunpack.i.h.bf16 %v8486_v46  ;;  %v3627_v44 = vld [vmem:[#allocation7 + $0x638] sm:$0xff]  ;;  %v3626_v20 = vld [vmem:[#allocation7 + $0x630] sm:$0xff] }
 0x6a8   :  { %v4505_v29 = vpop.f32.mrf.mxu1  ;;  %v4846_v52 = vmul.f32 %v10391_v61, %v4503_v6  ;;  %v5102_v23 = vmul.f32 %v10394_v53, %v4503_v6  ;;  %5951 = vmatprep.subr.mxu1 %v3627_v44 }
 0x6a9   :  { %v4910_v14 = vmul.f32 %v10394_v53, %v4505_v29  ;;  %v5038_v54 = vmul.f32 %v10391_v61, %v4505_v29  ;;  %4795 = vmatprep.mubr.f32.mxu1 %v8487_v33  ;;  %5328 = vmatprep.mubr.f32.mxu0 %v5165_v0  ;;  %v10418_v33 = vld [vmem:[#allocation5 + $0x2d8] sm:$0xff] }
 0x6aa   :  { %v4509_v2 = vpop.f32.mrf.mxu1  ;;  %v8491_v17 = vpop.trf.xlu1  ;;  %5329 = vmatmul.mubr.f32.gmra.mxu0 %v4973_v7  ;;  %4796 = vmatmul.mubr.f32.gmra.mxu1 %v8490_v40  ;;  %v10415_v7 = vld [vmem:[#allocation5 + $0x258] sm:$0xff] }
 0x6ab   :  { %v4974_v32 = vsub.f32 %v4846_v52, %v4910_v14  ;;  %v8492_v22 = vunpack.i.l.bf16 %v8491_v17  ;;  %v5166_v56 = vadd.f32 %v5102_v23, %v5038_v54  ;;  %v8495_v4 = vunpack.i.h.bf16 %v8491_v17  ;;  %5952 = vmatpush1.msra.mxu1 %v3626_v20 }
 0x6ac   :  { %v4511_v3 = vpop.f32.mrf.mxu1  ;;  %v4847_v25 = vmul.f32 %v10399_v31, %v4509_v2  ;;  %v5103_v15 = vmul.f32 %v10402_v1, %v4509_v2 }
 0x6ad   :  { %v4911_v45 = vmul.f32 %v10402_v1, %v4511_v3  ;;  %v5039_v38 = vmul.f32 %v10399_v31, %v4511_v3  ;;  %4801 = vmatprep.mubr.f32.mxu1 %v8492_v22  ;;  %5334 = vmatprep.mubr.f32.mxu0 %v5166_v56  ;;  %v10426_v22 = vld [vmem:[#allocation5 + $0x2e0] sm:$0xff] }
 0x6ae   :  { %v4515_v39 = vpop.f32.mrf.mxu1  ;;  %v8496_v26 = vpop.trf.xlu1  ;;  %5335 = vmatmul.mubr.f32.gmra.mxu0 %v4974_v32  ;;  %4802 = vmatmul.mubr.f32.gmra.mxu1 %v8495_v4 }
 0x6af   :  { %v4975_v42 = vsub.f32 %v4847_v25, %v4911_v45  ;;  %v8497_v57 = vunpack.i.l.bf16 %v8496_v26  ;;  %v5167_v36 = vadd.f32 %v5103_v15, %v5039_v38  ;;  %v8500_v19 = vunpack.i.h.bf16 %v8496_v26  ;;  %v3624_v26 = vld [vmem:[#allocation7 + $0x620] sm:$0xff] }
 0x6b0   :  { %v4517_v12 = vpop.f32.mrf.mxu1  ;;  %v4848_v16 = vmul.f32 %v10407_v28, %v4515_v39  ;;  %v5104_v5 = vmul.f32 %v10410_v37, %v4515_v39  ;;  %v3625_v39 = vld [vmem:[#allocation7 + $0x628] sm:$0xff] }
 0x6b1   :  { %v4912_v11 = vmul.f32 %v10410_v37, %v4517_v12  ;;  %v5040_v34 = vmul.f32 %v10407_v28, %v4517_v12  ;;  %4807 = vmatprep.mubr.f32.mxu1 %v8497_v57  ;;  %5340 = vmatprep.mubr.f32.mxu0 %v5167_v36 }
 0x6b2   :  { %v4521_v62 = vpop.f32.mrf.mxu1  ;;  %v8501_v60 = vpop.trf.xlu1  ;;  %5341 = vmatmul.mubr.f32.gmra.mxu0 %v4975_v42  ;;  %4808 = vmatmul.mubr.f32.gmra.mxu1 %v8500_v19  ;;  %v10431_v19 = vld [vmem:[#allocation5 + $0x268] sm:$0xff] }
 0x6b3   :  { %v4976_v55 = vsub.f32 %v4848_v16, %v4912_v11  ;;  %v8502_v63 = vunpack.i.l.bf16 %v8501_v60  ;;  %v5168_v6 = vadd.f32 %v5104_v5, %v5040_v34  ;;  %v8505_v46 = vunpack.i.h.bf16 %v8501_v60  ;;  %5953 = vmatprep.subr.mxu1 %v3625_v39  ;;  %v10434_v11 = vld [vmem:[#allocation5 + $0x2e8] sm:$0xff] }
 0x6b4   :  { %v4523_v9 = vpop.f32.mrf.mxu1  ;;  %v4849_v29 = vmul.f32 %v10415_v7, %v4521_v62  ;;  %v5105_v52 = vmul.f32 %v10418_v33, %v4521_v62  ;;  %5954 = vmatpush1.msra.mxu1 %v3624_v26 }
 0x6b5   :  { %v4913_v0 = vmul.f32 %v10418_v33, %v4523_v9  ;;  %v5041_v40 = vmul.f32 %v10415_v7, %v4523_v9  ;;  %4813 = vmatprep.mubr.f32.mxu1 %v8502_v63  ;;  %5346 = vmatprep.mubr.f32.mxu0 %v5168_v6 }
 0x6b6   :  { %v4527_v14 = vpop.f32.mrf.mxu1  ;;  %v8506_v54 = vpop.trf.xlu1  ;;  %5347 = vmatmul.mubr.f32.gmra.mxu0 %v4976_v55  ;;  %4814 = vmatmul.mubr.f32.gmra.mxu1 %v8505_v46  ;;  %v10439_v46 = vld [vmem:[#allocation5 + $0x270] sm:$0xff] }
 0x6b7   :  { %v4977_v23 = vsub.f32 %v4849_v29, %v4913_v0  ;;  %v8507_v17 = vunpack.i.l.bf16 %v8506_v54  ;;  %v5169_v32 = vadd.f32 %v5105_v52, %v5041_v40  ;;  %v8510_v27 = vunpack.i.h.bf16 %v8506_v54  ;;  %v10442_v0 = vld [vmem:[#allocation5 + $0x2f0] sm:$0xff] }
 0x6b8   :  { %v4529_v2 = vpop.f32.mrf.mxu1  ;;  %v4850_v3 = vmul.f32 %v10423_v13, %v4527_v14  ;;  %v5106_v25 = vmul.f32 %v10426_v22, %v4527_v14 }
 0x6b9   :  { %v4914_v56 = vmul.f32 %v10426_v22, %v4529_v2  ;;  %v5042_v4 = vmul.f32 %v10423_v13, %v4529_v2  ;;  %4819 = vmatprep.mubr.f32.mxu1 %v8507_v17  ;;  %5352 = vmatprep.mubr.f32.mxu0 %v5169_v32  ;;  %v3623_v2 = vld [vmem:[#allocation7 + $0x618] sm:$0xff]  ;;  %v3622_v17 = vld [vmem:[#allocation7 + $0x610] sm:$0xff] }
 0x6ba   :  { %v4533_v45 = vpop.f32.mrf.mxu1  ;;  %v8511_v38 = vpop.trf.xlu1  ;;  %5353 = vmatmul.mubr.f32.gmra.mxu0 %v4977_v23  ;;  %4820 = vmatmul.mubr.f32.gmra.mxu1 %v8510_v27 }
 0x6bb   :  { %v4978_v15 = vsub.f32 %v4850_v3, %v4914_v56  ;;  %v8512_v12 = vunpack.i.l.bf16 %v8511_v38  ;;  %v5170_v57 = vadd.f32 %v5106_v25, %v5042_v4  ;;  %v8515_v36 = vunpack.i.h.bf16 %v8511_v38  ;;  %5955 = vmatprep.subr.mxu1 %v3623_v2  ;;  %v10447_v3 = vld [vmem:[#allocation5 + $0x278] sm:$0xff] }
 0x6bc   :  { %v4535_v42 = vpop.f32.mrf.mxu1  ;;  %v4851_v16 = vmul.f32 %v10431_v19, %v4533_v45  ;;  %v5107_v62 = vmul.f32 %v10434_v11, %v4533_v45  ;;  %v10450_v4 = vld [vmem:[#allocation5 + $0x2f8] sm:$0xff]  ;;  %5956 = vmatpush1.msra.mxu1 %v3622_v17 }
 0x6bd   :  { %v4915_v34 = vmul.f32 %v10434_v11, %v4535_v42  ;;  %v5043_v5 = vmul.f32 %v10431_v19, %v4535_v42  ;;  %4825 = vmatprep.mubr.f32.mxu1 %v8512_v12  ;;  %5358 = vmatprep.mubr.f32.mxu0 %v5170_v57 }
 0x6be   :  { %v4539_v60 = vpop.f32.mrf.mxu1  ;;  %v8516_v55 = vpop.trf.xlu1  ;;  %5359 = vmatmul.mubr.f32.gmra.mxu0 %v4978_v15  ;;  %4826 = vmatmul.mubr.f32.gmra.mxu1 %v8515_v36 }
 0x6bf   :  { %v4979_v44 = vsub.f32 %v4851_v16, %v4915_v34  ;;  %v8517_v9 = vunpack.i.l.bf16 %v8516_v55  ;;  %v5171_v63 = vadd.f32 %v5107_v62, %v5043_v5  ;;  %v8520_v6 = vunpack.i.h.bf16 %v8516_v55 }
 0x6c0   :  { %v4541_v20 = vpop.f32.mrf.mxu1  ;;  %v4852_v29 = vmul.f32 %v10439_v46, %v4539_v60  ;;  %v5108_v14 = vmul.f32 %v10442_v0, %v4539_v60 }
 0x6c1   :  { %v4916_v40 = vmul.f32 %v10442_v0, %v4541_v20  ;;  %v5044_v52 = vmul.f32 %v10439_v46, %v4541_v20  ;;  %4831 = vmatprep.mubr.f32.mxu1 %v8517_v9  ;;  %5364 = vmatprep.mubr.f32.mxu0 %v5171_v63  ;;  %v3620_v20 = vld [vmem:[#allocation7 + $0x600] sm:$0xff] }
 0x6c2   :  { %v4545_v54 = vpop.f32.mrf.mxu1  ;;  %4832 = vmatmul.mubr.f32.gmra.mxu1 %v8520_v6  ;;  %5365 = vmatmul.mubr.f32.gmra.mxu0 %v4979_v44  ;;  %v3621_v44 = vld [vmem:[#allocation7 + $0x608] sm:$0xff] }
 0x6c3   :  { %v4980_v23 = vsub.f32 %v4852_v29, %v4916_v40  ;;  %v5172_v27 = vadd.f32 %v5108_v14, %v5044_v52  ;;  %v4853_v56 = vmul.f32 %v10447_v3, %v4545_v54  ;;  %v5109_v25 = vmul.f32 %v10450_v4, %v4545_v54  ;;  %5957 = vmatprep.subr.mxu1 %v3621_v44 }
 0x6c4   :  { %v4547_v32 = vpop.f32.mrf.mxu1  ;;  %5958 = vmatpush1.msra.mxu1 %v3620_v20 }
 0x6c5   :  { %v4917_v45 = vmul.f32 %v10450_v4, %v4547_v32  ;;  %v5045_v38 = vmul.f32 %v10447_v3, %v4547_v32  ;;  %5370 = vmatprep.mubr.f32.mxu0 %v5172_v27 }
 0x6c6   :  { %v4551_v15 = vpop.f32.mrf.mxu1  ;;  %5371 = vmatmul.mubr.f32.gmra.mxu0 %v4980_v23 }
 0x6c7   :  { %v4981_v39 = vsub.f32 %v4853_v56, %v4917_v45  ;;  %v5173_v26 = vadd.f32 %v5109_v25, %v5045_v38  ;;  %v4854_v12 = vmul.f32 %v10327_v8, %v4551_v15  ;;  %v5110_v57 = vmul.f32 %v10330_v50, %v4551_v15  ;;  %v3683_v38 = vld [vmem:[#allocation7 + $0x7f8] sm:$0xff]  ;;  %v3682_v15 = vld [vmem:[#allocation7 + $0x7f0] sm:$0xff] }
 0x6c8   :  { %v4553_v42 = vpop.f32.mrf.mxu1  ;;  %5959 = vmatprep.subr.mxu1 %v3683_v38 }
 0x6c9   :  { %v4918_v36 = vmul.f32 %v10330_v50, %v4553_v42  ;;  %v5046_v16 = vmul.f32 %v10327_v8, %v4553_v42  ;;  %5376 = vmatprep.mubr.f32.mxu0 %v5173_v26  ;;  %5960 = vmatpush2.msra.mxu1 %v3682_v15 }
 0x6ca   :  { %v4557_v34 = vpop.f32.mrf.mxu1  ;;  %5377 = vmatmul.mubr.f32.gmra.mxu0 %v4981_v39 }
 0x6cb   :  { %v4982_v5 = vsub.f32 %v4854_v12, %v4918_v36  ;;  %v5174_v62 = vadd.f32 %v5110_v57, %v5046_v16  ;;  %v4855_v60 = vmul.f32 %v10335_v43, %v4557_v34  ;;  %v5111_v9 = vmul.f32 %v10338_v30, %v4557_v34 }
 0x6cc   :  { %v4559_v55 = vpop.f32.mrf.mxu1 }
 0x6cd   :  { %v4919_v63 = vmul.f32 %v10338_v30, %v4559_v55  ;;  %v5047_v6 = vmul.f32 %v10335_v43, %v4559_v55  ;;  %5382 = vmatprep.mubr.f32.mxu0 %v5174_v62 }
 0x6ce   :  { %v4563_v29 = vpop.f32.mrf.mxu1  ;;  %5383 = vmatmul.mubr.f32.gmra.mxu0 %v4982_v5 }
 0x6cf   :  { %v4983_v40 = vsub.f32 %v4855_v60, %v4919_v63  ;;  %v5175_v52 = vadd.f32 %v5111_v9, %v5047_v6  ;;  %v4856_v54 = vmul.f32 %v10343_v10, %v4563_v29  ;;  %v5112_v23 = vmul.f32 %v10346_v49, %v4563_v29  ;;  %v3681_v6 = vld [vmem:[#allocation7 + $0x7e8] sm:$0xff]  ;;  %v3680_v29 = vld [vmem:[#allocation7 + $0x7e0] sm:$0xff] }
 0x6d0   :  { %v4565_v14 = vpop.f32.mrf.mxu1  ;;  %5961 = vmatprep.subr.mxu1 %v3681_v6 }
 0x6d1   :  { %v4920_v2 = vmul.f32 %v10346_v49, %v4565_v14  ;;  %v5048_v17 = vmul.f32 %v10343_v10, %v4565_v14  ;;  %5388 = vmatprep.mubr.f32.mxu0 %v5175_v52  ;;  %5962 = vmatpush2.msra.mxu1 %v3680_v29 }
 0x6d2   :  { %v4569_v32 = vpop.f32.mrf.mxu1  ;;  %5389 = vmatmul.mubr.f32.gmra.mxu0 %v4983_v40 }
 0x6d3   :  { %v4984_v27 = vsub.f32 %v4856_v54, %v4920_v2  ;;  %v5176_v56 = vadd.f32 %v5112_v23, %v5048_v17  ;;  %v4857_v25 = vmul.f32 %v10351_v47, %v4569_v32  ;;  %v5113_v39 = vmul.f32 %v10354_v24, %v4569_v32 }
 0x6d4   :  { %v4571_v45 = vpop.f32.mrf.mxu1 }
 0x6d5   :  { %v4921_v26 = vmul.f32 %v10354_v24, %v4571_v45  ;;  %v5049_v42 = vmul.f32 %v10351_v47, %v4571_v45  ;;  %5394 = vmatprep.mubr.f32.mxu0 %v5176_v56 }
 0x6d6   :  { %v4575_v12 = vpop.f32.mrf.mxu1  ;;  %5395 = vmatmul.mubr.f32.gmra.mxu0 %v4984_v27 }
 0x6d7   :  { %v4985_v57 = vsub.f32 %v4857_v25, %v4921_v26  ;;  %v5177_v36 = vadd.f32 %v5113_v39, %v5049_v42  ;;  %v4858_v34 = vmul.f32 %v10359_v59, %v4575_v12  ;;  %v5114_v5 = vmul.f32 %v10362_v18, %v4575_v12  ;;  %v3679_v42 = vld [vmem:[#allocation7 + $0x7d8] sm:$0xff]  ;;  %v3678_v12 = vld [vmem:[#allocation7 + $0x7d0] sm:$0xff] }
 0x6d8   :  { %v4577_v16 = vpop.f32.mrf.mxu1  ;;  %5963 = vmatprep.subr.mxu1 %v3679_v42 }
 0x6d9   :  { %v4922_v62 = vmul.f32 %v10362_v18, %v4577_v16  ;;  %v5050_v60 = vmul.f32 %v10359_v59, %v4577_v16  ;;  %5400 = vmatprep.mubr.f32.mxu0 %v5177_v36  ;;  %5964 = vmatpush2.msra.mxu1 %v3678_v12 }
 0x6da   :  { %v4581_v55 = vpop.f32.mrf.mxu1  ;;  %5401 = vmatmul.mubr.f32.gmra.mxu0 %v4985_v57 }
 0x6db   :  { %v4986_v44 = vsub.f32 %v4858_v34, %v4922_v62  ;;  %v5178_v20 = vadd.f32 %v5114_v5, %v5050_v60  ;;  %v4859_v9 = vmul.f32 %v10367_v35, %v4581_v55  ;;  %v5115_v40 = vmul.f32 %v10370_v48, %v4581_v55 }
 0x6dc   :  { %v4583_v63 = vpop.f32.mrf.mxu1 }
 0x6dd   :  { %v4923_v52 = vmul.f32 %v10370_v48, %v4583_v63  ;;  %v5051_v14 = vmul.f32 %v10367_v35, %v4583_v63  ;;  %5406 = vmatprep.mubr.f32.mxu0 %v5178_v20 }
 0x6de   :  { %v4587_v54 = vpop.f32.mrf.mxu1  ;;  %5407 = vmatmul.mubr.f32.gmra.mxu0 %v4986_v44 }
 0x6df   :  { %v4987_v23 = vsub.f32 %v4859_v9, %v4923_v52  ;;  %v5179_v2 = vadd.f32 %v5115_v40, %v5051_v14  ;;  %v4860_v32 = vmul.f32 %v10375_v51, %v4587_v54  ;;  %v5116_v27 = vmul.f32 %v10378_v41, %v4587_v54  ;;  %v3677_v14 = vld [vmem:[#allocation7 + $0x7c8] sm:$0xff]  ;;  %v3676_v54 = vld [vmem:[#allocation7 + $0x7c0] sm:$0xff] }
 0x6e0   :  { %v4589_v17 = vpop.f32.mrf.mxu1  ;;  %5965 = vmatprep.subr.mxu1 %v3677_v14 }
 0x6e1   :  { %v4924_v56 = vmul.f32 %v10378_v41, %v4589_v17  ;;  %v5052_v25 = vmul.f32 %v10375_v51, %v4589_v17  ;;  %5412 = vmatprep.mubr.f32.mxu0 %v5179_v2  ;;  %5966 = vmatpush2.msra.mxu1 %v3676_v54 }
 0x6e2   :  { %v4593_v45 = vpop.f32.mrf.mxu1  ;;  %5413 = vmatmul.mubr.f32.gmra.mxu0 %v4987_v23 }
 0x6e3   :  { %v4988_v38 = vsub.f32 %v4860_v32, %v4924_v56  ;;  %v5180_v15 = vadd.f32 %v5116_v27, %v5052_v25  ;;  %v4861_v39 = vmul.f32 %v10383_v21, %v4593_v45  ;;  %v5117_v57 = vmul.f32 %v10386_v58, %v4593_v45 }
 0x6e4   :  { %v4595_v26 = vpop.f32.mrf.mxu1 }
 0x6e5   :  { %v4925_v36 = vmul.f32 %v10386_v58, %v4595_v26  ;;  %v5053_v16 = vmul.f32 %v10383_v21, %v4595_v26  ;;  %5418 = vmatprep.mubr.f32.mxu0 %v5180_v15 }
 0x6e6   :  { %v4599_v34 = vpop.f32.mrf.mxu1  ;;  %5419 = vmatmul.mubr.f32.gmra.mxu0 %v4988_v38 }
 0x6e7   :  { %v4989_v5 = vsub.f32 %v4861_v39, %v4925_v36  ;;  %v5181_v62 = vadd.f32 %v5117_v57, %v5053_v16  ;;  %v4862_v55 = vmul.f32 %v10391_v61, %v4599_v34  ;;  %v5118_v44 = vmul.f32 %v10394_v53, %v4599_v34  ;;  %v3675_v16 = vld [vmem:[#allocation7 + $0x7b8] sm:$0xff]  ;;  %v3674_v34 = vld [vmem:[#allocation7 + $0x7b0] sm:$0xff] }
 0x6e8   :  { %v4601_v60 = vpop.f32.mrf.mxu1  ;;  %5967 = vmatprep.subr.mxu1 %v3675_v16 }
 0x6e9   :  { %v4926_v20 = vmul.f32 %v10394_v53, %v4601_v60  ;;  %v5054_v9 = vmul.f32 %v10391_v61, %v4601_v60  ;;  %5424 = vmatprep.mubr.f32.mxu0 %v5181_v62  ;;  %5968 = vmatpush2.msra.mxu1 %v3674_v34 }
 0x6ea   :  { %v4605_v63 = vpop.f32.mrf.mxu1  ;;  %5425 = vmatmul.mubr.f32.gmra.mxu0 %v4989_v5 }
 0x6eb   :  { %v4990_v6 = vsub.f32 %v4862_v55, %v4926_v20  ;;  %v5182_v29 = vadd.f32 %v5118_v44, %v5054_v9  ;;  %v4863_v40 = vmul.f32 %v10399_v31, %v4605_v63  ;;  %v5119_v23 = vmul.f32 %v10402_v1, %v4605_v63 }
 0x6ec   :  { %v4607_v52 = vpop.f32.mrf.mxu1 }
 0x6ed   :  { %v4927_v2 = vmul.f32 %v10402_v1, %v4607_v52  ;;  %v5055_v17 = vmul.f32 %v10399_v31, %v4607_v52  ;;  %5430 = vmatprep.mubr.f32.mxu0 %v5182_v29 }
 0x6ee   :  { %v4611_v32 = vpop.f32.mrf.mxu1  ;;  %5431 = vmatmul.mubr.f32.gmra.mxu0 %v4990_v6 }
 0x6ef   :  { %v4991_v27 = vsub.f32 %v4863_v40, %v4927_v2  ;;  %v5183_v56 = vadd.f32 %v5119_v23, %v5055_v17  ;;  %v4864_v45 = vmul.f32 %v10407_v28, %v4611_v32  ;;  %v5120_v38 = vmul.f32 %v10410_v37, %v4611_v32  ;;  %v3673_v17 = vld [vmem:[#allocation7 + $0x7a8] sm:$0xff]  ;;  %v3672_v32 = vld [vmem:[#allocation7 + $0x7a0] sm:$0xff] }
 0x6f0   :  { %v4613_v25 = vpop.f32.mrf.mxu1  ;;  %5969 = vmatprep.subr.mxu1 %v3673_v17 }
 0x6f1   :  { %v4928_v15 = vmul.f32 %v10410_v37, %v4613_v25  ;;  %v5056_v39 = vmul.f32 %v10407_v28, %v4613_v25  ;;  %5436 = vmatprep.mubr.f32.mxu0 %v5183_v56  ;;  %5970 = vmatpush2.msra.mxu1 %v3672_v32 }
 0x6f2   :  { %v4617_v26 = vpop.f32.mrf.mxu1  ;;  %5437 = vmatmul.mubr.f32.gmra.mxu0 %v4991_v27 }
 0x6f3   :  { %v4992_v42 = vsub.f32 %v4864_v45, %v4928_v15  ;;  %v5184_v12 = vadd.f32 %v5120_v38, %v5056_v39  ;;  %v4865_v57 = vmul.f32 %v10415_v7, %v4617_v26  ;;  %v5121_v5 = vmul.f32 %v10418_v33, %v4617_v26 }
 0x6f4   :  { %v4619_v36 = vpop.f32.mrf.mxu1 }
 0x6f5   :  { %v4929_v62 = vmul.f32 %v10418_v33, %v4619_v36  ;;  %v5057_v60 = vmul.f32 %v10415_v7, %v4619_v36  ;;  %5442 = vmatprep.mubr.f32.mxu0 %v5184_v12 }
 0x6f6   :  { %v4623_v55 = vpop.f32.mrf.mxu1  ;;  %5443 = vmatmul.mubr.f32.gmra.mxu0 %v4992_v42 }
 0x6f7   :  { %v4993_v44 = vsub.f32 %v4865_v57, %v4929_v62  ;;  %v5185_v20 = vadd.f32 %v5121_v5, %v5057_v60  ;;  %v4866_v63 = vmul.f32 %v10423_v13, %v4623_v55  ;;  %v5122_v6 = vmul.f32 %v10426_v22, %v4623_v55  ;;  %v3671_v60 = vld [vmem:[#allocation7 + $0x798] sm:$0xff]  ;;  %v3670_v55 = vld [vmem:[#allocation7 + $0x790] sm:$0xff] }
 0x6f8   :  { %v4625_v9 = vpop.f32.mrf.mxu1  ;;  %5971 = vmatprep.subr.mxu1 %v3671_v60 }
 0x6f9   :  { %v4930_v29 = vmul.f32 %v10426_v22, %v4625_v9  ;;  %v5058_v40 = vmul.f32 %v10423_v13, %v4625_v9  ;;  %5448 = vmatprep.mubr.f32.mxu0 %v5185_v20  ;;  %5972 = vmatpush2.msra.mxu1 %v3670_v55 }
 0x6fa   :  { %v4629_v52 = vpop.f32.mrf.mxu1  ;;  %5449 = vmatmul.mubr.f32.gmra.mxu0 %v4993_v44 }
 0x6fb   :  { %v4994_v14 = vsub.f32 %v4866_v63, %v4930_v29  ;;  %v5186_v54 = vadd.f32 %v5122_v6, %v5058_v40  ;;  %v4867_v23 = vmul.f32 %v10431_v19, %v4629_v52  ;;  %v5123_v27 = vmul.f32 %v10434_v11, %v4629_v52 }
 0x6fc   :  { %v4631_v2 = vpop.f32.mrf.mxu1 }
 0x6fd   :  { %v4931_v56 = vmul.f32 %v10434_v11, %v4631_v2  ;;  %v5059_v25 = vmul.f32 %v10431_v19, %v4631_v2  ;;  %5454 = vmatprep.mubr.f32.mxu0 %v5186_v54 }
 0x6fe   :  { %v4635_v45 = vpop.f32.mrf.mxu1  ;;  %5455 = vmatmul.mubr.f32.gmra.mxu0 %v4994_v14 }
 0x6ff   :  { %v4995_v38 = vsub.f32 %v4867_v23, %v4931_v56  ;;  %v5187_v15 = vadd.f32 %v5123_v27, %v5059_v25  ;;  %v4868_v26 = vmul.f32 %v10439_v46, %v4635_v45  ;;  %v5124_v42 = vmul.f32 %v10442_v0, %v4635_v45  ;;  %v3669_v27 = vld [vmem:[#allocation7 + $0x788] sm:$0xff]  ;;  %v3668_v56 = vld [vmem:[#allocation7 + $0x780] sm:$0xff] }
 0x700   :  { %v4637_v39 = vpop.f32.mrf.mxu1  ;;  %5973 = vmatprep.subr.mxu1 %v3669_v27 }
 0x701   :  { %v4932_v12 = vmul.f32 %v10442_v0, %v4637_v39  ;;  %v5060_v57 = vmul.f32 %v10439_v46, %v4637_v39  ;;  %5460 = vmatprep.mubr.f32.mxu0 %v5187_v15  ;;  %5974 = vmatpush2.msra.mxu1 %v3668_v56 }
 0x702   :  { %v4641_v36 = vpop.f32.mrf.mxu1  ;;  %5461 = vmatmul.mubr.f32.gmra.mxu0 %v4995_v38 }
 0x703   :  { %v4996_v16 = vsub.f32 %v4868_v26, %v4932_v12  ;;  %v5188_v34 = vadd.f32 %v5124_v42, %v5060_v57  ;;  %v4869_v5 = vmul.f32 %v10447_v3, %v4641_v36  ;;  %v5125_v44 = vmul.f32 %v10450_v4, %v4641_v36 }
 0x704   :  { %v4643_v62 = vpop.f32.mrf.mxu1 }
 0x705   :  { %v4933_v20 = vmul.f32 %v10450_v4, %v4643_v62  ;;  %v5061_v9 = vmul.f32 %v10447_v3, %v4643_v62  ;;  %5466 = vmatprep.mubr.f32.mxu0 %v5188_v34  ;;  %v3666_v62 = vld [vmem:[#allocation7 + $0x770] sm:$0xff] }
 0x706   :  { %v4647_v63 = vpop.f32.mrf.mxu1  ;;  %5467 = vmatmul.mubr.f32.gmra.mxu0 %v4996_v16 }
 0x707   :  { %v4997_v6 = vsub.f32 %v4869_v5, %v4933_v20  ;;  %v5189_v29 = vadd.f32 %v5125_v44, %v5061_v9  ;;  %v4870_v52 = vmul.f32 %v10327_v8, %v4647_v63  ;;  %v5126_v14 = vmul.f32 %v10330_v50, %v4647_v63  ;;  %v3667_v5 = vld [vmem:[#allocation7 + $0x778] sm:$0xff] }
 0x708   :  { %v4649_v40 = vpop.f32.mrf.mxu1  ;;  %5975 = vmatprep.subr.mxu1 %v3667_v5 }
 0x709   :  { %v4934_v54 = vmul.f32 %v10330_v50, %v4649_v40  ;;  %v5062_v23 = vmul.f32 %v10327_v8, %v4649_v40  ;;  %5472 = vmatprep.mubr.f32.mxu0 %v5189_v29  ;;  %5976 = vmatpush2.msra.mxu1 %v3666_v62 }
 0x70a   :  { %v4653_v2 = vpop.f32.mrf.mxu1  ;;  %5473 = vmatmul.mubr.f32.gmra.mxu0 %v4997_v6 }
 0x70b   :  { %v4998_v17 = vsub.f32 %v4870_v52, %v4934_v54  ;;  %v5190_v32 = vadd.f32 %v5126_v14, %v5062_v23  ;;  %v4871_v25 = vmul.f32 %v10335_v43, %v4653_v2  ;;  %v5127_v38 = vmul.f32 %v10338_v30, %v4653_v2  ;;  %v3665_v23 = vld [vmem:[#allocation7 + $0x768] sm:$0xff]  ;;  %v3664_v2 = vld [vmem:[#allocation7 + $0x760] sm:$0xff] }
 0x70c   :  { %v4655_v45 = vpop.f32.mrf.mxu1  ;;  %5977 = vmatprep.subr.mxu1 %v3665_v23 }
 0x70d   :  { %v4935_v15 = vmul.f32 %v10338_v30, %v4655_v45  ;;  %v5063_v39 = vmul.f32 %v10335_v43, %v4655_v45  ;;  %5478 = vmatprep.mubr.f32.mxu0 %v5190_v32  ;;  %5978 = vmatpush2.msra.mxu1 %v3664_v2 }
 0x70e   :  { %v4659_v8 = vpop.f32.mrf.mxu1  ;;  %5479 = vmatmul.mubr.f32.gmra.mxu0 %v4998_v17 }
 0x70f   :  { %v4999_v50 = vsub.f32 %v4871_v25, %v4935_v15  ;;  %v5191_v26 = vadd.f32 %v5127_v38, %v5063_v39  ;;  %v4872_v12 = vmul.f32 %v10343_v10, %v4659_v8  ;;  %v5128_v57 = vmul.f32 %v10346_v49, %v4659_v8 }
 0x710   :  { %v4661_v42 = vpop.f32.mrf.mxu1 }
 0x711   :  { %v4936_v36 = vmul.f32 %v10346_v49, %v4661_v42  ;;  %v5064_v16 = vmul.f32 %v10343_v10, %v4661_v42  ;;  %5484 = vmatprep.mubr.f32.mxu0 %v5191_v26  ;;  %v3663_v42 = vld [vmem:[#allocation7 + $0x758] sm:$0xff] }
 0x712   :  { %v4665_v34 = vpop.f32.mrf.mxu1  ;;  %5485 = vmatmul.mubr.f32.gmra.mxu0 %v4999_v50  ;;  %5979 = vmatprep.subr.mxu1 %v3663_v42 }
 0x713   :  { %v5000_v30 = vsub.f32 %v4872_v12, %v4936_v36  ;;  %v5192_v43 = vadd.f32 %v5128_v57, %v5064_v16  ;;  %v4873_v60 = vmul.f32 %v10351_v47, %v4665_v34  ;;  %v5129_v44 = vmul.f32 %v10354_v24, %v4665_v34  ;;  %v3662_v12 = vld [vmem:[#allocation7 + $0x750] sm:$0xff] }
 0x714   :  { %v4667_v55 = vpop.f32.mrf.mxu1  ;;  %5980 = vmatpush2.msra.mxu1 %v3662_v12 }
 0x715   :  { %v4937_v20 = vmul.f32 %v10354_v24, %v4667_v55  ;;  %v5065_v9 = vmul.f32 %v10351_v47, %v4667_v55  ;;  %5490 = vmatprep.mubr.f32.mxu0 %v5192_v43 }
 0x716   :  { %v4671_v10 = vpop.f32.mrf.mxu1  ;;  %5491 = vmatmul.mubr.f32.gmra.mxu0 %v5000_v30 }
 0x717   :  { %v5001_v49 = vsub.f32 %v4873_v60, %v4937_v20  ;;  %v5193_v63 = vadd.f32 %v5129_v44, %v5065_v9  ;;  %v4874_v29 = vmul.f32 %v10359_v59, %v4671_v10  ;;  %v5130_v40 = vmul.f32 %v10362_v18, %v4671_v10  ;;  %v3661_v9 = vld [vmem:[#allocation7 + $0x748] sm:$0xff]  ;;  %v3660_v10 = vld [vmem:[#allocation7 + $0x740] sm:$0xff] }
 0x718   :  { %v4673_v6 = vpop.f32.mrf.mxu1  ;;  %5981 = vmatprep.subr.mxu1 %v3661_v9 }
 0x719   :  { %v4938_v52 = vmul.f32 %v10362_v18, %v4673_v6  ;;  %v5066_v14 = vmul.f32 %v10359_v59, %v4673_v6  ;;  %5496 = vmatprep.mubr.f32.mxu0 %v5193_v63  ;;  %5982 = vmatpush2.msra.mxu1 %v3660_v10 }
 0x71a   :  { %v4677_v54 = vpop.f32.mrf.mxu1  ;;  %5497 = vmatmul.mubr.f32.gmra.mxu0 %v5001_v49 }
 0x71b   :  { %v5002_v24 = vsub.f32 %v4874_v29, %v4938_v52  ;;  %v5194_v47 = vadd.f32 %v5130_v40, %v5066_v14  ;;  %v4875_v17 = vmul.f32 %v10367_v35, %v4677_v54  ;;  %v5131_v27 = vmul.f32 %v10370_v48, %v4677_v54 }
 0x71c   :  { %v4679_v32 = vpop.f32.mrf.mxu1 }
 0x71d   :  { %v4939_v56 = vmul.f32 %v10370_v48, %v4679_v32  ;;  %v5067_v25 = vmul.f32 %v10367_v35, %v4679_v32  ;;  %5502 = vmatprep.mubr.f32.mxu0 %v5194_v47  ;;  %v3658_v32 = vld [vmem:[#allocation7 + $0x730] sm:$0xff] }
 0x71e   :  { %v4683_v59 = vpop.f32.mrf.mxu1  ;;  %5503 = vmatmul.mubr.f32.gmra.mxu0 %v5002_v24 }
 0x71f   :  { %v5003_v18 = vsub.f32 %v4875_v17, %v4939_v56  ;;  %v5195_v45 = vadd.f32 %v5131_v27, %v5067_v25  ;;  %v4876_v15 = vmul.f32 %v10375_v51, %v4683_v59  ;;  %v5132_v39 = vmul.f32 %v10378_v41, %v4683_v59  ;;  %v3659_v17 = vld [vmem:[#allocation7 + $0x738] sm:$0xff] }
 0x720   :  { %v4685_v38 = vpop.f32.mrf.mxu1  ;;  %5983 = vmatprep.subr.mxu1 %v3659_v17 }
 0x721   :  { %v4940_v8 = vmul.f32 %v10378_v41, %v4685_v38  ;;  %v5068_v50 = vmul.f32 %v10375_v51, %v4685_v38  ;;  %5508 = vmatprep.mubr.f32.mxu0 %v5195_v45  ;;  %5984 = vmatpush2.msra.mxu1 %v3658_v32 }
 0x722   :  { %v4689_v26 = vpop.f32.mrf.mxu1  ;;  %5509 = vmatmul.mubr.f32.gmra.mxu0 %v5003_v18 }
 0x723   :  { %v5004_v48 = vsub.f32 %v4876_v15, %v4940_v8  ;;  %v5196_v35 = vadd.f32 %v5132_v39, %v5068_v50  ;;  %v4877_v57 = vmul.f32 %v10383_v21, %v4689_v26  ;;  %v5133_v16 = vmul.f32 %v10386_v58, %v4689_v26 }
 0x724   :  { %v4691_v36 = vpop.f32.mrf.mxu1 }
 0x725   :  { %v4941_v34 = vmul.f32 %v10386_v58, %v4691_v36  ;;  %v5069_v30 = vmul.f32 %v10383_v21, %v4691_v36  ;;  %5514 = vmatprep.mubr.f32.mxu0 %v5196_v35  ;;  %v3656_v35 = vld [vmem:[#allocation7 + $0x720] sm:$0xff] }
 0x726   :  { %v4695_v51 = vpop.f32.mrf.mxu1  ;;  %5515 = vmatmul.mubr.f32.gmra.mxu0 %v5004_v48  ;;  %v3657_v48 = vld [vmem:[#allocation7 + $0x728] sm:$0xff] }
 0x727   :  { %v5005_v41 = vsub.f32 %v4877_v57, %v4941_v34  ;;  %v5197_v43 = vadd.f32 %v5133_v16, %v5069_v30  ;;  %v4878_v62 = vmul.f32 %v10391_v61, %v4695_v51  ;;  %v5134_v60 = vmul.f32 %v10394_v53, %v4695_v51  ;;  %5985 = vmatprep.subr.mxu1 %v3657_v48  ;;  %v9198_v48 = vld [vmem:[#allocation5 + $0x218] sm:$0xff] }
 0x728   :  { %v4697_v5 = vpop.f32.mrf.mxu1  ;;  %5986 = vmatpush2.msra.mxu1 %v3656_v35 }
 0x729   :  { %v4942_v55 = vmul.f32 %v10394_v53, %v4697_v5  ;;  %v5070_v44 = vmul.f32 %v10391_v61, %v4697_v5  ;;  %5520 = vmatprep.mubr.f32.mxu0 %v5197_v43 }
 0x72a   :  { %v4701_v20 = vpop.f32.mrf.mxu1  ;;  %5521 = vmatmul.mubr.f32.gmra.mxu0 %v5005_v41 }
 0x72b   :  { %v5006_v58 = vsub.f32 %v4878_v62, %v4942_v55  ;;  %v5198_v21 = vadd.f32 %v5134_v60, %v5070_v44  ;;  %v4879_v49 = vmul.f32 %v10399_v31, %v4701_v20  ;;  %v5135_v6 = vmul.f32 %v10402_v1, %v4701_v20  ;;  %v3655_v60 = vld [vmem:[#allocation7 + $0x718] sm:$0xff]  ;;  %v3654_v55 = vld [vmem:[#allocation7 + $0x710] sm:$0xff] }
 0x72c   :  { %v4703_v63 = vpop.f32.mrf.mxu1  ;;  %5987 = vmatprep.subr.mxu1 %v3655_v60 }
 0x72d   :  { %v4943_v29 = vmul.f32 %v10402_v1, %v4703_v63  ;;  %v5071_v40 = vmul.f32 %v10399_v31, %v4703_v63  ;;  %5526 = vmatprep.mubr.f32.mxu0 %v5198_v21  ;;  %5988 = vmatpush2.msra.mxu1 %v3654_v55  ;;  %v9192_v63 = vld [vmem:[#allocation5 + $0x200] sm:$0xff] }
 0x72e   :  { %v4707_v61 = vpop.f32.mrf.mxu1  ;;  %5527 = vmatmul.mubr.f32.gmra.mxu0 %v5006_v58 }
 0x72f   :  { %v5007_v53 = vsub.f32 %v4879_v49, %v4943_v29  ;;  %v5199_v52 = vadd.f32 %v5135_v6, %v5071_v40  ;;  %v4880_v54 = vmul.f32 %v10407_v28, %v4707_v61  ;;  %v5136_v24 = vmul.f32 %v10410_v37, %v4707_v61  ;;  %v9193_v29 = vld [vmem:[#allocation5 + $0x280] sm:$0xff] }
 0x730   :  { %v4709_v14 = vpop.f32.mrf.mxu1 }
 0x731   :  { %v4944_v47 = vmul.f32 %v10410_v37, %v4709_v14  ;;  %v5072_v23 = vmul.f32 %v10407_v28, %v4709_v14  ;;  %5532 = vmatprep.mubr.f32.mxu0 %v5199_v52 }
 0x732   :  { %v4713_v2 = vpop.f32.mrf.mxu1  ;;  %5533 = vmatmul.mubr.f32.gmra.mxu0 %v5007_v53 }
 0x733   :  { %v5008_v1 = vsub.f32 %v4880_v54, %v4944_v47  ;;  %v5200_v31 = vadd.f32 %v5136_v24, %v5072_v23  ;;  %v4881_v27 = vmul.f32 %v10415_v7, %v4713_v2  ;;  %v5137_v25 = vmul.f32 %v10418_v33, %v4713_v2  ;;  %v3653_v54 = vld [vmem:[#allocation7 + $0x708] sm:$0xff] }
 0x734   :  { %v4715_v56 = vpop.f32.mrf.mxu1  ;;  %5989 = vmatprep.subr.mxu1 %v3653_v54  ;;  %v9194_v47 = vld [vmem:[#allocation5 + $0x208] sm:$0xff] }
 0x735   :  { %v4945_v59 = vmul.f32 %v10418_v33, %v4715_v56  ;;  %v5073_v18 = vmul.f32 %v10415_v7, %v4715_v56  ;;  %5538 = vmatprep.mubr.f32.mxu0 %v5200_v31  ;;  %v9195_v2 = vld [vmem:[#allocation5 + $0x288] sm:$0xff] }
 0x736   :  { %v4719_v28 = vpop.f32.mrf.mxu1  ;;  %5539 = vmatmul.mubr.f32.gmra.mxu0 %v5008_v1 }
 0x737   :  { %v5009_v37 = vsub.f32 %v4881_v27, %v4945_v59  ;;  %v5201_v45 = vadd.f32 %v5137_v25, %v5073_v18  ;;  %v4882_v15 = vmul.f32 %v10423_v13, %v4719_v28  ;;  %v5138_v39 = vmul.f32 %v10426_v22, %v4719_v28  ;;  %v9196_v59 = vld [vmem:[#allocation5 + $0x210] sm:$0xff] }
 0x738   :  { %v4721_v38 = vpop.f32.mrf.mxu1 }
 0x739   :  { %v4946_v8 = vmul.f32 %v10426_v22, %v4721_v38  ;;  %v5074_v50 = vmul.f32 %v10423_v13, %v4721_v38  ;;  %5544 = vmatprep.mubr.f32.mxu0 %v5201_v45  ;;  %v9197_v45 = vld [vmem:[#allocation5 + $0x290] sm:$0xff] }
 0x73a   :  { %v4725_v26 = vpop.f32.mrf.mxu1  ;;  %5545 = vmatmul.mubr.f32.gmra.mxu0 %v5009_v37 }
 0x73b   :  { %v5010_v33 = vsub.f32 %v4882_v15, %v4946_v8  ;;  %v5202_v7 = vadd.f32 %v5138_v39, %v5074_v50  ;;  %v4883_v42 = vmul.f32 %v10431_v19, %v4725_v26  ;;  %v5139_v57 = vmul.f32 %v10434_v11, %v4725_v26 }
 0x73c   :  { %v4727_v12 = vpop.f32.mrf.mxu1 }
 0x73d   :  { %v4947_v36 = vmul.f32 %v10434_v11, %v4727_v12  ;;  %v5075_v16 = vmul.f32 %v10431_v19, %v4727_v12  ;;  %5550 = vmatprep.mubr.f32.mxu0 %v5202_v7 }
 0x73e   :  { %v4731_v13 = vpop.f32.mrf.mxu1  ;;  %5551 = vmatmul.mubr.f32.gmra.mxu0 %v5010_v33 }
 0x73f   :  { %v5011_v22 = vsub.f32 %v4883_v42, %v4947_v36  ;;  %v5203_v34 = vadd.f32 %v5139_v57, %v5075_v16  ;;  %v4884_v51 = vmul.f32 %v10439_v46, %v4731_v13  ;;  %v5140_v41 = vmul.f32 %v10442_v0, %v4731_v13  ;;  %v9199_v57 = vld [vmem:[#allocation5 + $0x298] sm:$0xff] }
 0x740   :  { %v4733_v30 = vpop.f32.mrf.mxu1 }
 0x741   :  { %v4948_v43 = vmul.f32 %v10442_v0, %v4733_v30  ;;  %v5076_v5 = vmul.f32 %v10439_v46, %v4733_v30  ;;  %5556 = vmatprep.mubr.f32.mxu0 %v5203_v34 }
 0x742   :  { %v4737_v62 = vpop.f32.mrf.mxu1  ;;  %5557 = vmatmul.mubr.f32.gmra.mxu0 %v5011_v22 }
 0x743   :  { %v5012_v11 = vsub.f32 %v4884_v51, %v4948_v43  ;;  %v5204_v19 = vadd.f32 %v5140_v41, %v5076_v5  ;;  %v4885_v44 = vmul.f32 %v10447_v3, %v4737_v62  ;;  %v5141_v58 = vmul.f32 %v10450_v4, %v4737_v62  ;;  %v9200_v43 = vld [vmem:[#allocation5 + $0x220] sm:$0xff] }
 0x744   :  { %v4739_v20 = vpop.f32.mrf.mxu1 }
 0x745   :  { %v4949_v21 = vmul.f32 %v10450_v4, %v4739_v20  ;;  %v5077_v9 = vmul.f32 %v10447_v3, %v4739_v20  ;;  %5562 = vmatprep.mubr.f32.mxu0 %v5204_v19  ;;  %v3652_v3 = vld [vmem:[#allocation7 + $0x700] sm:$0xff] }
 0x746   :  { %v4743_v46 = vpop.f32.mrf.mxu1  ;;  %5563 = vmatmul.mubr.f32.gmra.mxu0 %v5012_v11  ;;  %5990 = vmatpush2.msra.mxu1 %v3652_v3  ;;  %v9201_v19 = vld [vmem:[#allocation5 + $0x2a0] sm:$0xff]  ;;  %v9204_v3 = vld [vmem:[#allocation5 + $0x230] sm:$0xff] }
 0x747   :  { %v5013_v0 = vsub.f32 %v4885_v44, %v4949_v21  ;;  %v5205_v10 = vadd.f32 %v5141_v58, %v5077_v9  ;;  %v4886_v6 = vmul.f32 %v9192_v63, %v4743_v46  ;;  %v5142_v40 = vmul.f32 %v9193_v29, %v4743_v46 }
 0x748   :  { %v4745_v49 = vpop.f32.mrf.mxu1 }
 0x749   :  { %v4950_v61 = vmul.f32 %v9193_v29, %v4745_v49  ;;  %v5078_v53 = vmul.f32 %v9192_v63, %v4745_v49  ;;  %5568 = vmatprep.mubr.f32.mxu0 %v5205_v10 }
 0x74a   :  { %v4749_v14 = vpop.f32.mrf.mxu1  ;;  %5569 = vmatmul.mubr.f32.gmra.mxu0 %v5013_v0  ;;  %v9202_v0 = vld [vmem:[#allocation5 + $0x228] sm:$0xff] }
 0x74b   :  { %v5014_v52 = vsub.f32 %v4886_v6, %v4950_v61  ;;  %v5206_v4 = vadd.f32 %v5142_v40, %v5078_v53  ;;  %v4887_v23 = vmul.f32 %v9194_v47, %v4749_v14  ;;  %v5143_v1 = vmul.f32 %v9195_v2, %v4749_v14  ;;  %v9203_v6 = vld [vmem:[#allocation5 + $0x2a8] sm:$0xff] }
 0x74c   :  { %v4751_v24 = vpop.f32.mrf.mxu1 }
 0x74d   :  { %5574 = vmatprep.mubr.f32.mxu0 %v5206_v4  ;;  %v4951_v31 = vmul.f32 %v9195_v2, %v4751_v24  ;;  %v5079_v17 = vmul.f32 %v9194_v47, %v4751_v24  ;;  %v9205_v2 = vld [vmem:[#allocation5 + $0x2b0] sm:$0xff] }
 0x74e   :  { %v4755_v32 = vpop.f32.mrf.mxu1  ;;  %v5288_v27 = vpop.f32.mrf.mxu0  ;;  %5575 = vmatmul.mubr.f32.gmra.mxu0 %v5014_v52 }
 0x74f   :  { %v5015_v56 = vsub.f32 %v4887_v23, %v4951_v31  ;;  %v5207_v25 = vadd.f32 %v5143_v1, %v5079_v17  ;;  %v4888_v18 = vmul.f32 %v9196_v59, %v4755_v32  ;;  %v5144_v38 = vmul.f32 %v9197_v45, %v4755_v32 }
 0x750   :  { %v4757_v28 = vpop.f32.mrf.mxu1  ;;  %v5290_v37 = vpop.f32.mrf.mxu0 }
 0x751   :  { %v4952_v15 = vmul.f32 %v9197_v45, %v4757_v28  ;;  %v5080_v39 = vmul.f32 %v9196_v59, %v4757_v28  ;;  %v8521_v8 = vpack.i.bf16 %v5288_v27, %v5290_v37  ;;  %5580 = vmatprep.mubr.f32.mxu0 %v5207_v25 }
 0x752   :  { %v4761_v50 = vpop.f32.mrf.mxu1  ;;  %v5294_v26 = vpop.f32.mrf.mxu0  ;;  %5581 = vmatmul.mubr.f32.gmra.mxu0 %v5015_v56 }
 0x753   :  { %v5016_v33 = vsub.f32 %v4888_v18, %v4952_v15  ;;  %8522 = vxpose.xlu0.b32.start [1/16] %v8521_v8, 128  ;;  %v5208_v7 = vadd.f32 %v5144_v38, %v5080_v39  ;;  %v4889_v35 = vmul.f32 %v9198_v48, %v4761_v50  ;;  %v5145_v36 = vmul.f32 %v9199_v57, %v4761_v50  ;;  %v9206_v18 = vld [vmem:[#allocation5 + $0x238] sm:$0xff] }
 0x754   :  { %v4763_v42 = vpop.f32.mrf.mxu1  ;;  %v5296_v12 = vpop.f32.mrf.mxu0  ;;  %v9207_v38 = vld [vmem:[#allocation5 + $0x2b8] sm:$0xff] }
 0x755   :  { %v4953_v16 = vmul.f32 %v9199_v57, %v4763_v42  ;;  %v5081_v13 = vmul.f32 %v9198_v48, %v4763_v42  ;;  %v8523_v22 = vpack.i.bf16 %v5294_v26, %v5296_v12  ;;  %5586 = vmatprep.mubr.f32.mxu0 %v5208_v7 }
 0x756   :  { %v4767_v34 = vpop.f32.mrf.mxu1  ;;  %v5300_v30 = vpop.f32.mrf.mxu0  ;;  %5587 = vmatmul.mubr.f32.gmra.mxu0 %v5016_v33 }
 0x757   :  { %v5017_v51 = vsub.f32 %v4889_v35, %v4953_v16  ;;  %8524 = vxpose.xlu0.b32.cont [2/16] %v8523_v22, 128  ;;  %v5209_v41 = vadd.f32 %v5145_v36, %v5081_v13  ;;  %v4890_v5 = vmul.f32 %v9200_v43, %v4767_v34  ;;  %v5146_v60 = vmul.f32 %v9201_v19, %v4767_v34  ;;  %v9208_v35 = vld [vmem:[#allocation5 + $0x240] sm:$0xff] }
 0x758   :  { %v4769_v62 = vpop.f32.mrf.mxu1  ;;  %v5302_v11 = vpop.f32.mrf.mxu0  ;;  %v9209_v36 = vld [vmem:[#allocation5 + $0x2c0] sm:$0xff] }
 0x759   :  { %v4954_v55 = vmul.f32 %v9201_v19, %v4769_v62  ;;  %v5082_v44 = vmul.f32 %v9200_v43, %v4769_v62  ;;  %v8525_v20 = vpack.i.bf16 %v5300_v30, %v5302_v11  ;;  %5592 = vmatprep.mubr.f32.mxu0 %v5209_v41 }
 0x75a   :  { %v4773_v58 = vpop.f32.mrf.mxu1  ;;  %v5306_v21 = vpop.f32.mrf.mxu0  ;;  %5593 = vmatmul.mubr.f32.gmra.mxu0 %v5017_v51 }
 0x75b   :  { %v5018_v9 = vsub.f32 %v4890_v5, %v4954_v55  ;;  %8526 = vxpose.xlu0.b32.cont [3/16] %v8525_v20, 128  ;;  %v5210_v46 = vadd.f32 %v5146_v60, %v5082_v44  ;;  %v4891_v10 = vmul.f32 %v9202_v0, %v4773_v58  ;;  %v5147_v29 = vmul.f32 %v9203_v6, %v4773_v58  ;;  %v9210_v5 = vld [vmem:[#allocation5 + $0x248] sm:$0xff] }
 0x75c   :  { %v4775_v49 = vpop.f32.mrf.mxu1  ;;  %v5308_v63 = vpop.f32.mrf.mxu0  ;;  %v9211_v60 = vld [vmem:[#allocation5 + $0x2c8] sm:$0xff] }
 0x75d   :  { %v4955_v40 = vmul.f32 %v9203_v6, %v4775_v49  ;;  %v5083_v61 = vmul.f32 %v9202_v0, %v4775_v49  ;;  %v8527_v53 = vpack.i.bf16 %v5306_v21, %v5308_v63  ;;  %5598 = vmatprep.mubr.f32.mxu0 %v5210_v46 }
 0x75e   :  { %v4779_v52 = vpop.f32.mrf.mxu1  ;;  %v5312_v14 = vpop.f32.mrf.mxu0  ;;  %5599 = vmatmul.mubr.f32.gmra.mxu0 %v5018_v9 }
 0x75f   :  { %v5019_v4 = vsub.f32 %v4891_v10, %v4955_v40  ;;  %8528 = vxpose.xlu0.b32.cont [4/16] %v8527_v53, 128  ;;  %v5211_v54 = vadd.f32 %v5147_v29, %v5083_v61  ;;  %v4892_v24 = vmul.f32 %v9204_v3, %v4779_v52  ;;  %v5148_v1 = vmul.f32 %v9205_v2, %v4779_v52  ;;  %v9212_v10 = vld [vmem:[#allocation5 + $0x250] sm:$0xff] }
 0x760   :  { %v4781_v47 = vpop.f32.mrf.mxu1  ;;  %v5314_v23 = vpop.f32.mrf.mxu0  ;;  %v9213_v29 = vld [vmem:[#allocation5 + $0x2d0] sm:$0xff] }
 0x761   :  { %v4956_v31 = vmul.f32 %v9205_v2, %v4781_v47  ;;  %v5084_v17 = vmul.f32 %v9204_v3, %v4781_v47  ;;  %v8529_v32 = vpack.i.bf16 %v5312_v14, %v5314_v23  ;;  %5604 = vmatprep.mubr.f32.mxu0 %v5211_v54 }
 0x762   :  { %v4785_v27 = vpop.f32.mrf.mxu1  ;;  %v5318_v56 = vpop.f32.mrf.mxu0  ;;  %5605 = vmatmul.mubr.f32.gmra.mxu0 %v5019_v4 }
 0x763   :  { %v5020_v25 = vsub.f32 %v4892_v24, %v4956_v31  ;;  %8530 = vxpose.xlu0.b32.cont [5/16] %v8529_v32, 128  ;;  %v5212_v59 = vadd.f32 %v5148_v1, %v5084_v17  ;;  %v4893_v28 = vmul.f32 %v9206_v18, %v4785_v27  ;;  %v5149_v15 = vmul.f32 %v9207_v38, %v4785_v27  ;;  %v9214_v24 = vld [vmem:[#allocation5 + $0x258] sm:$0xff] }
 0x764   :  { %v4787_v37 = vpop.f32.mrf.mxu1  ;;  %v5320_v45 = vpop.f32.mrf.mxu0  ;;  %v9215_v1 = vld [vmem:[#allocation5 + $0x2d8] sm:$0xff] }
 0x765   :  { %v4957_v39 = vmul.f32 %v9207_v38, %v4787_v37  ;;  %v5085_v8 = vmul.f32 %v9206_v18, %v4787_v37  ;;  %v8531_v50 = vpack.i.bf16 %v5318_v56, %v5320_v45  ;;  %5610 = vmatprep.mubr.f32.mxu0 %v5212_v59 }
 0x766   :  { %v4791_v26 = vpop.f32.mrf.mxu1  ;;  %v5324_v33 = vpop.f32.mrf.mxu0  ;;  %5611 = vmatmul.mubr.f32.gmra.mxu0 %v5020_v25 }
 0x767   :  { %v5021_v7 = vsub.f32 %v4893_v28, %v4957_v39  ;;  %8532 = vxpose.xlu0.b32.cont [6/16] %v8531_v50, 128  ;;  %v5213_v48 = vadd.f32 %v5149_v15, %v5085_v8  ;;  %v4894_v42 = vmul.f32 %v9208_v35, %v4791_v26  ;;  %v5150_v16 = vmul.f32 %v9209_v36, %v4791_v26  ;;  %v9216_v28 = vld [vmem:[#allocation5 + $0x260] sm:$0xff] }
 0x768   :  { %v4793_v12 = vpop.f32.mrf.mxu1  ;;  %v5326_v57 = vpop.f32.mrf.mxu0  ;;  %v9217_v15 = vld [vmem:[#allocation5 + $0x2e0] sm:$0xff] }
 0x769   :  { %v4958_v13 = vmul.f32 %v9209_v36, %v4793_v12  ;;  %v5086_v22 = vmul.f32 %v9208_v35, %v4793_v12  ;;  %v8533_v34 = vpack.i.bf16 %v5324_v33, %v5326_v57  ;;  %5616 = vmatprep.mubr.f32.mxu0 %v5213_v48 }
 0x76a   :  { %v4797_v30 = vpop.f32.mrf.mxu1  ;;  %v5330_v51 = vpop.f32.mrf.mxu0  ;;  %5617 = vmatmul.mubr.f32.gmra.mxu0 %v5021_v7 }
 0x76b   :  { %v5022_v41 = vsub.f32 %v4894_v42, %v4958_v13  ;;  %8534 = vxpose.xlu0.b32.cont [7/16] %v8533_v34, 128  ;;  %v5214_v43 = vadd.f32 %v5150_v16, %v5086_v22  ;;  %v4895_v62 = vmul.f32 %v9210_v5, %v4797_v30  ;;  %v5151_v55 = vmul.f32 %v9211_v60, %v4797_v30  ;;  %v9218_v42 = vld [vmem:[#allocation5 + $0x268] sm:$0xff] }
 0x76c   :  { %v4799_v11 = vpop.f32.mrf.mxu1  ;;  %v5332_v19 = vpop.f32.mrf.mxu0  ;;  %v9219_v16 = vld [vmem:[#allocation5 + $0x2e8] sm:$0xff] }
 0x76d   :  { %v4959_v44 = vmul.f32 %v9211_v60, %v4799_v11  ;;  %v5087_v20 = vmul.f32 %v9210_v5, %v4799_v11  ;;  %v8535_v58 = vpack.i.bf16 %v5330_v51, %v5332_v19  ;;  %5622 = vmatprep.mubr.f32.mxu0 %v5214_v43 }
 0x76e   :  { %v4803_v21 = vpop.f32.mrf.mxu1  ;;  %v5336_v9 = vpop.f32.mrf.mxu0  ;;  %5623 = vmatmul.mubr.f32.gmra.mxu0 %v5022_v41 }
 0x76f   :  { %v5023_v46 = vsub.f32 %v4895_v62, %v4959_v44  ;;  %8536 = vxpose.xlu0.b32.cont [8/16] %v8535_v58, 128  ;;  %v5215_v0 = vadd.f32 %v5151_v55, %v5087_v20  ;;  %v4896_v49 = vmul.f32 %v9212_v10, %v4803_v21  ;;  %v5152_v40 = vmul.f32 %v9213_v29, %v4803_v21  ;;  %v9220_v62 = vld [vmem:[#allocation5 + $0x270] sm:$0xff] }
 0x770   :  { %v4805_v63 = vpop.f32.mrf.mxu1  ;;  %v5338_v6 = vpop.f32.mrf.mxu0  ;;  %v9221_v55 = vld [vmem:[#allocation5 + $0x2f0] sm:$0xff] }
 0x771   :  { %v4960_v61 = vmul.f32 %v9213_v29, %v4805_v63  ;;  %v5088_v53 = vmul.f32 %v9212_v10, %v4805_v63  ;;  %v8537_v52 = vpack.i.bf16 %v5336_v9, %v5338_v6  ;;  %5628 = vmatprep.mubr.f32.mxu0 %v5215_v0 }
 0x772   :  { %v4809_v14 = vpop.f32.mrf.mxu1  ;;  %v5342_v4 = vpop.f32.mrf.mxu0  ;;  %5629 = vmatmul.mubr.f32.gmra.mxu0 %v5023_v46 }
 0x773   :  { %v5024_v54 = vsub.f32 %v4896_v49, %v4960_v61  ;;  %8538 = vxpose.xlu0.b32.cont [9/16] %v8537_v52, 128  ;;  %v5216_v3 = vadd.f32 %v5152_v40, %v5088_v53  ;;  %v4897_v47 = vmul.f32 %v9214_v24, %v4809_v14  ;;  %v5153_v31 = vmul.f32 %v9215_v1, %v4809_v14  ;;  %v9222_v49 = vld [vmem:[#allocation5 + $0x278] sm:$0xff] }
 0x774   :  { %v4811_v23 = vpop.f32.mrf.mxu1  ;;  %v5344_v2 = vpop.f32.mrf.mxu0  ;;  %v9223_v40 = vld [vmem:[#allocation5 + $0x2f8] sm:$0xff] }
 0x775   :  { %v4961_v17 = vmul.f32 %v9215_v1, %v4811_v23  ;;  %v5089_v32 = vmul.f32 %v9214_v24, %v4811_v23  ;;  %v8539_v27 = vpack.i.bf16 %v5342_v4, %v5344_v2  ;;  %5634 = vmatprep.mubr.f32.mxu0 %v5216_v3 }
 0x776   :  { %v4815_v56 = vpop.f32.mrf.mxu1  ;;  %v5348_v25 = vpop.f32.mrf.mxu0  ;;  %5635 = vmatmul.mubr.f32.gmra.mxu0 %v5024_v54 }
 0x777   :  { %v5025_v59 = vsub.f32 %v4897_v47, %v4961_v17  ;;  %8540 = vxpose.xlu0.b32.cont [10/16] %v8539_v27, 128  ;;  %v5217_v18 = vadd.f32 %v5153_v31, %v5089_v32  ;;  %v4898_v37 = vmul.f32 %v9216_v28, %v4815_v56  ;;  %v5154_v39 = vmul.f32 %v9217_v15, %v4815_v56 }
 0x778   :  { %v4817_v45 = vpop.f32.mrf.mxu1  ;;  %v5350_v38 = vpop.f32.mrf.mxu0 }
 0x779   :  { %v4962_v8 = vmul.f32 %v9217_v15, %v4817_v45  ;;  %v5090_v50 = vmul.f32 %v9216_v28, %v4817_v45  ;;  %v8541_v26 = vpack.i.bf16 %v5348_v25, %v5350_v38  ;;  %5640 = vmatprep.mubr.f32.mxu0 %v5217_v18 }
 0x77a   :  { %v4821_v33 = vpop.f32.mrf.mxu1  ;;  %v5354_v7 = vpop.f32.mrf.mxu0  ;;  %5641 = vmatmul.mubr.f32.gmra.mxu0 %v5025_v59 }
 0x77b   :  { %v5026_v48 = vsub.f32 %v4898_v37, %v4962_v8  ;;  %8542 = vxpose.xlu0.b32.cont [11/16] %v8541_v26, 128  ;;  %v5218_v35 = vadd.f32 %v5154_v39, %v5090_v50  ;;  %v4899_v12 = vmul.f32 %v9218_v42, %v4821_v33  ;;  %v5155_v13 = vmul.f32 %v9219_v16, %v4821_v33 }
 0x77c   :  { %v4823_v57 = vpop.f32.mrf.mxu1  ;;  %v5356_v36 = vpop.f32.mrf.mxu0 }
 0x77d   :  { %v4963_v22 = vmul.f32 %v9219_v16, %v4823_v57  ;;  %v5091_v34 = vmul.f32 %v9218_v42, %v4823_v57  ;;  %v8543_v30 = vpack.i.bf16 %v5354_v7, %v5356_v36  ;;  %5646 = vmatprep.mubr.f32.mxu0 %v5218_v35 }
 0x77e   :  { %v4827_v51 = vpop.f32.mrf.mxu1  ;;  %v5360_v41 = vpop.f32.mrf.mxu0  ;;  %5647 = vmatmul.mubr.f32.gmra.mxu0 %v5026_v48 }
 0x77f   :  { %v5027_v43 = vsub.f32 %v4899_v12, %v4963_v22  ;;  %8544 = vxpose.xlu0.b32.cont [12/16] %v8543_v30, 128  ;;  %v5219_v5 = vadd.f32 %v5155_v13, %v5091_v34  ;;  %v4900_v11 = vmul.f32 %v9220_v62, %v4827_v51  ;;  %v5156_v44 = vmul.f32 %v9221_v55, %v4827_v51 }
 0x780   :  { %v4829_v19 = vpop.f32.mrf.mxu1  ;;  %v5362_v60 = vpop.f32.mrf.mxu0 }
 0x781   :  { %v4964_v20 = vmul.f32 %v9221_v55, %v4829_v19  ;;  %v5092_v58 = vmul.f32 %v9220_v62, %v4829_v19  ;;  %v8545_v21 = vpack.i.bf16 %v5360_v41, %v5362_v60  ;;  %5652 = vmatprep.mubr.f32.mxu0 %v5219_v5 }
 0x782   :  { %v4833_v9 = vpop.f32.mrf.mxu1  ;;  %v5366_v46 = vpop.f32.mrf.mxu0  ;;  %5653 = vmatmul.mubr.f32.gmra.mxu0 %v5027_v43 }
 0x783   :  { %v5028_v0 = vsub.f32 %v4900_v11, %v4964_v20  ;;  %8546 = vxpose.xlu0.b32.cont [13/16] %v8545_v21, 128  ;;  %v5220_v10 = vadd.f32 %v5156_v44, %v5092_v58  ;;  %v4901_v63 = vmul.f32 %v9222_v49, %v4833_v9  ;;  %v5157_v61 = vmul.f32 %v9223_v40, %v4833_v9 }
 0x784   :  { %v4835_v6 = vpop.f32.mrf.mxu1  ;;  %v5368_v29 = vpop.f32.mrf.mxu0 }
 0x785   :  { %v4965_v53 = vmul.f32 %v9223_v40, %v4835_v6  ;;  %v5093_v52 = vmul.f32 %v9222_v49, %v4835_v6  ;;  %v8547_v14 = vpack.i.bf16 %v5366_v46, %v5368_v29  ;;  %5658 = vmatprep.mubr.f32.mxu0 %v5220_v10 }
 0x786   :  { %v5372_v4 = vpop.f32.mrf.mxu0  ;;  %5659 = vmatmul.mubr.f32.gmra.mxu0 %v5028_v0 }
 0x787   :  { %v5029_v54 = vsub.f32 %v4901_v63, %v4965_v53  ;;  %8548 = vxpose.xlu0.b32.cont [14/16] %v8547_v14, 128  ;;  %v5221_v3 = vadd.f32 %v5157_v61, %v5093_v52 }
 0x788   :  { %v5374_v24 = vpop.f32.mrf.mxu0 }
 0x789   :  { %v8549_v47 = vpack.i.bf16 %v5372_v4, %v5374_v24  ;;  %5664 = vmatprep.mubr.f32.mxu0 %v5221_v3 }
 0x78a   :  { %v5378_v23 = vpop.f32.mrf.mxu0  ;;  %5665 = vmatmul.mubr.f32.gmra.mxu0 %v5029_v54 }
 0x78b   :  { %8550 = vxpose.xlu0.b32.cont [15/16] %v8549_v47, 128 }
 0x78c   :  { %v5380_v2 = vpop.f32.mrf.mxu0 }
 0x78d   :  { %v8551_v1 = vpack.i.bf16 %v5378_v23, %v5380_v2 }
 0x78e   :  { %v5384_v31 = vpop.f32.mrf.mxu0 }
 0x78f   :  { %8552 = vxpose.xlu0.b32.end [16/16] %v8551_v1, 128 }
 0x790   :  { %v5386_v17 = vpop.f32.mrf.mxu0 }
 0x791   :  { %v8633_v32 = vpack.i.bf16 %v5384_v31, %v5386_v17 }
 0x792   :  { %v5390_v27 = vpop.f32.mrf.mxu0 }
 0x793   :  { %8634 = vxpose.xlu1.b32.start [1/16] %v8633_v32, 128 }
 0x794   :  { %v5392_v56 = vpop.f32.mrf.mxu0 }
 0x795   :  { %v8635_v25 = vpack.i.bf16 %v5390_v27, %v5392_v56 }
 0x796   :  { %v5396_v59 = vpop.f32.mrf.mxu0 }
 0x797   :  { %8636 = vxpose.xlu1.b32.cont [2/16] %v8635_v25, 128 }
 0x798   :  { %v5398_v18 = vpop.f32.mrf.mxu0 }
 0x799   :  { %v8637_v28 = vpack.i.bf16 %v5396_v59, %v5398_v18 }
 0x79a   :  { %v5402_v37 = vpop.f32.mrf.mxu0 }
 0x79b   :  { %8638 = vxpose.xlu1.b32.cont [3/16] %v8637_v28, 128 }
 0x79c   :  { %v5404_v45 = vpop.f32.mrf.mxu0 }
 0x79d   :  { %v8639_v38 = vpack.i.bf16 %v5402_v37, %v5404_v45 }
 0x79e   :  { %v5408_v15 = vpop.f32.mrf.mxu0 }
 0x79f   :  { %8640 = vxpose.xlu1.b32.cont [4/16] %v8639_v38, 128 }
 0x7a0   :  { %v5410_v39 = vpop.f32.mrf.mxu0 }
 0x7a1   :  { %v8641_v8 = vpack.i.bf16 %v5408_v15, %v5410_v39 }
 0x7a2   :  { %v5414_v50 = vpop.f32.mrf.mxu0 }
 0x7a3   :  { %8642 = vxpose.xlu1.b32.cont [5/16] %v8641_v8, 128 }
 0x7a4   :  { %v5416_v26 = vpop.f32.mrf.mxu0 }
 0x7a5   :  { %v8643_v33 = vpack.i.bf16 %v5414_v50, %v5416_v26 }
 0x7a6   :  { %v5420_v7 = vpop.f32.mrf.mxu0 }
 0x7a7   :  { %8644 = vxpose.xlu1.b32.cont [6/16] %v8643_v33, 128 }
 0x7a8   :  { %v5422_v48 = vpop.f32.mrf.mxu0 }
 0x7a9   :  { %v8645_v35 = vpack.i.bf16 %v5420_v7, %v5422_v48 }
 0x7aa   :  { %v5426_v42 = vpop.f32.mrf.mxu0 }
 0x7ab   :  { %8646 = vxpose.xlu1.b32.cont [7/16] %v8645_v35, 128 }
 0x7ac   :  { %v5428_v12 = vpop.f32.mrf.mxu0 }
 0x7ad   :  { %v8647_v57 = vpack.i.bf16 %v5426_v42, %v5428_v12 }
 0x7ae   :  { %v5432_v36 = vpop.f32.mrf.mxu0 }
 0x7af   :  { %8648 = vxpose.xlu1.b32.cont [8/16] %v8647_v57, 128 }
 0x7b0   :  { %v5434_v16 = vpop.f32.mrf.mxu0 }
 0x7b1   :  { %v8649_v13 = vpack.i.bf16 %v5432_v36, %v5434_v16 }
 0x7b2   :  { %v5438_v22 = vpop.f32.mrf.mxu0 }
 0x7b3   :  { %8650 = vxpose.xlu1.b32.cont [9/16] %v8649_v13, 128 }
 0x7b4   :  { %v5440_v34 = vpop.f32.mrf.mxu0 }
 0x7b5   :  { %v8651_v30 = vpack.i.bf16 %v5438_v22, %v5440_v34 }
 0x7b6   :  { %v5444_v51 = vpop.f32.mrf.mxu0 }
 0x7b7   :  { %8652 = vxpose.xlu1.b32.cont [10/16] %v8651_v30, 128 }
 0x7b8   :  { %v5446_v41 = vpop.f32.mrf.mxu0 }
 0x7b9   :  { %v8653_v43 = vpack.i.bf16 %v5444_v51, %v5446_v41 }
 0x7ba   :  { %v5450_v5 = vpop.f32.mrf.mxu0 }
 0x7bb   :  { %8654 = vxpose.xlu1.b32.cont [11/16] %v8653_v43, 128 }
 0x7bc   :  { %v5452_v62 = vpop.f32.mrf.mxu0 }
 0x7bd   :  { %v8655_v11 = vpack.i.bf16 %v5450_v5, %v5452_v62 }
 0x7be   :  { %v5456_v19 = vpop.f32.mrf.mxu0 }
 0x7bf   :  { %8656 = vxpose.xlu1.b32.cont [12/16] %v8655_v11, 128 }
 0x7c0   :  { %v5458_v60 = vpop.f32.mrf.mxu0 }
 0x7c1   :  { %v8657_v55 = vpack.i.bf16 %v5456_v19, %v5458_v60 }
 0x7c2   :  { %v5462_v44 = vpop.f32.mrf.mxu0 }
 0x7c3   :  { %8658 = vxpose.xlu1.b32.cont [13/16] %v8657_v55, 128 }
 0x7c4   :  { %v5464_v20 = vpop.f32.mrf.mxu0 }
 0x7c5   :  { %v8659_v58 = vpack.i.bf16 %v5462_v44, %v5464_v20 }
 0x7c6   :  { %v5468_v21 = vpop.f32.mrf.mxu0 }
 0x7c7   :  { %8660 = vxpose.xlu1.b32.cont [14/16] %v8659_v58, 128 }
 0x7c8   :  { %v5470_v9 = vpop.f32.mrf.mxu0 }
 0x7c9   :  { %v8661_v46 = vpack.i.bf16 %v5468_v21, %v5470_v9 }
 0x7ca   :  { %v5474_v0 = vpop.f32.mrf.mxu0 }
 0x7cb   :  { %8662 = vxpose.xlu1.b32.cont [15/16] %v8661_v46, 128 }
 0x7cc   :  { %v5476_v10 = vpop.f32.mrf.mxu0 }
 0x7cd   :  { %v8663_v49 = vpack.i.bf16 %v5474_v0, %v5476_v10 }
 0x7ce   :  { %v5480_v63 = vpop.f32.mrf.mxu0 }
 0x7cf   :  { %v8553_v6 = vpop.trf.xlu0  ;;  %8664 = vxpose.xlu1.b32.end [16/16] %v8663_v49, 128 }
 0x7d0   :  { %v8557_v29 = vunpack.i.h.bf16 %v8553_v6  ;;  %v5482_v40 = vpop.f32.mrf.mxu0  ;;  %v8554_v61 = vunpack.i.l.bf16 %v8553_v6 }
 0x7d1   :  { %v8745_v53 = vpack.i.bf16 %v5480_v63, %v5482_v40 }
 0x7d2   :  { %v5486_v52 = vpop.f32.mrf.mxu0  ;;  %5991 = vmatprep.mubr.f32.mxu1 %v8554_v61 }
 0x7d3   :  { %v8558_v14 = vpop.trf.xlu0  ;;  %5992 = vmatmul.mubr.f32.vlgmr.msra.gmra.mxu1 %v8557_v29  ;;  %8746 = vxpose.xlu0.b32.start [1/16] %v8745_v53, 128 }
 0x7d4   :  { %v5488_v4 = vpop.f32.mrf.mxu0  ;;  %v8559_v54 = vunpack.i.l.bf16 %v8558_v14  ;;  %v8562_v3 = vunpack.i.h.bf16 %v8558_v14 }
 0x7d5   :  { %v8747_v24 = vpack.i.bf16 %v5486_v52, %v5488_v4 }
 0x7d6   :  { %v5492_v47 = vpop.f32.mrf.mxu0  ;;  %5997 = vmatprep.mubr.f32.mxu1 %v8559_v54 }
 0x7d7   :  { %v8563_v23 = vpop.trf.xlu0  ;;  %5998 = vmatmul.mubr.f32.gmra.mxu1 %v8562_v3  ;;  %8748 = vxpose.xlu0.b32.cont [2/16] %v8747_v24, 128 }
 0x7d8   :  { %v5494_v2 = vpop.f32.mrf.mxu0  ;;  %v8564_v1 = vunpack.i.l.bf16 %v8563_v23  ;;  %v8567_v31 = vunpack.i.h.bf16 %v8563_v23 }
 0x7d9   :  { %v8749_v17 = vpack.i.bf16 %v5492_v47, %v5494_v2 }
 0x7da   :  { %v5498_v32 = vpop.f32.mrf.mxu0  ;;  %6003 = vmatprep.mubr.f32.mxu1 %v8564_v1 }
 0x7db   :  { %v8568_v27 = vpop.trf.xlu0  ;;  %6004 = vmatmul.mubr.f32.gmra.mxu1 %v8567_v31  ;;  %8750 = vxpose.xlu0.b32.cont [3/16] %v8749_v17, 128 }
 0x7dc   :  { %v5500_v56 = vpop.f32.mrf.mxu0  ;;  %v8569_v25 = vunpack.i.l.bf16 %v8568_v27  ;;  %v8572_v59 = vunpack.i.h.bf16 %v8568_v27 }
 0x7dd   :  { %v8751_v18 = vpack.i.bf16 %v5498_v32, %v5500_v56 }
 0x7de   :  { %v5504_v28 = vpop.f32.mrf.mxu0  ;;  %6009 = vmatprep.mubr.f32.mxu1 %v8569_v25 }
 0x7df   :  { %v8573_v37 = vpop.trf.xlu0  ;;  %6010 = vmatmul.mubr.f32.gmra.mxu1 %v8572_v59  ;;  %8752 = vxpose.xlu0.b32.cont [4/16] %v8751_v18, 128 }
 0x7e0   :  { %v5506_v45 = vpop.f32.mrf.mxu0  ;;  %v8574_v38 = vunpack.i.l.bf16 %v8573_v37  ;;  %v8577_v15 = vunpack.i.h.bf16 %v8573_v37 }
 0x7e1   :  { %v8753_v39 = vpack.i.bf16 %v5504_v28, %v5506_v45 }
 0x7e2   :  { %v5510_v8 = vpop.f32.mrf.mxu0  ;;  %6015 = vmatprep.mubr.f32.mxu1 %v8574_v38 }
 0x7e3   :  { %v8578_v50 = vpop.trf.xlu0  ;;  %6016 = vmatmul.mubr.f32.gmra.mxu1 %v8577_v15  ;;  %8754 = vxpose.xlu0.b32.cont [5/16] %v8753_v39, 128 }
 0x7e4   :  { %v5512_v26 = vpop.f32.mrf.mxu0  ;;  %v8579_v33 = vunpack.i.l.bf16 %v8578_v50  ;;  %v8582_v7 = vunpack.i.h.bf16 %v8578_v50 }
 0x7e5   :  { %v8755_v48 = vpack.i.bf16 %v5510_v8, %v5512_v26 }
 0x7e6   :  { %v5516_v35 = vpop.f32.mrf.mxu0  ;;  %6021 = vmatprep.mubr.f32.mxu1 %v8579_v33 }
 0x7e7   :  { %v8583_v42 = vpop.trf.xlu0  ;;  %6022 = vmatmul.mubr.f32.gmra.mxu1 %v8582_v7  ;;  %8756 = vxpose.xlu0.b32.cont [6/16] %v8755_v48, 128 }
 0x7e8   :  { %v5518_v12 = vpop.f32.mrf.mxu0  ;;  %v8584_v57 = vunpack.i.l.bf16 %v8583_v42  ;;  %v8587_v36 = vunpack.i.h.bf16 %v8583_v42 }
 0x7e9   :  { %v8757_v16 = vpack.i.bf16 %v5516_v35, %v5518_v12 }
 0x7ea   :  { %v5522_v13 = vpop.f32.mrf.mxu0  ;;  %6027 = vmatprep.mubr.f32.mxu1 %v8584_v57 }
 0x7eb   :  { %v8588_v22 = vpop.trf.xlu0  ;;  %6028 = vmatmul.mubr.f32.gmra.mxu1 %v8587_v36  ;;  %8758 = vxpose.xlu0.b32.cont [7/16] %v8757_v16, 128 }
 0x7ec   :  { %v5524_v34 = vpop.f32.mrf.mxu0  ;;  %v8589_v30 = vunpack.i.l.bf16 %v8588_v22  ;;  %v8592_v51 = vunpack.i.h.bf16 %v8588_v22 }
 0x7ed   :  { %v8759_v41 = vpack.i.bf16 %v5522_v13, %v5524_v34 }
 0x7ee   :  { %v5528_v43 = vpop.f32.mrf.mxu0  ;;  %6033 = vmatprep.mubr.f32.mxu1 %v8589_v30 }
 0x7ef   :  { %v8593_v5 = vpop.trf.xlu0  ;;  %6034 = vmatmul.mubr.f32.gmra.mxu1 %v8592_v51  ;;  %8760 = vxpose.xlu0.b32.cont [8/16] %v8759_v41, 128 }
 0x7f0   :  { %v5530_v62 = vpop.f32.mrf.mxu0  ;;  %v8594_v11 = vunpack.i.l.bf16 %v8593_v5  ;;  %v8597_v19 = vunpack.i.h.bf16 %v8593_v5 }
 0x7f1   :  { %v8761_v60 = vpack.i.bf16 %v5528_v43, %v5530_v62 }
 0x7f2   :  { %v5534_v55 = vpop.f32.mrf.mxu0  ;;  %6039 = vmatprep.mubr.f32.mxu1 %v8594_v11 }
 0x7f3   :  { %v8598_v44 = vpop.trf.xlu0  ;;  %6040 = vmatmul.mubr.f32.gmra.mxu1 %v8597_v19  ;;  %8762 = vxpose.xlu0.b32.cont [9/16] %v8761_v60, 128 }
 0x7f4   :  { %v5536_v20 = vpop.f32.mrf.mxu0  ;;  %v8599_v58 = vunpack.i.l.bf16 %v8598_v44  ;;  %v8602_v21 = vunpack.i.h.bf16 %v8598_v44 }
 0x7f5   :  { %v8763_v9 = vpack.i.bf16 %v5534_v55, %v5536_v20 }
 0x7f6   :  { %v5540_v46 = vpop.f32.mrf.mxu0  ;;  %6045 = vmatprep.mubr.f32.mxu1 %v8599_v58 }
 0x7f7   :  { %v8603_v0 = vpop.trf.xlu0  ;;  %6046 = vmatmul.mubr.f32.gmra.mxu1 %v8602_v21  ;;  %8764 = vxpose.xlu0.b32.cont [10/16] %v8763_v9, 128 }
 0x7f8   :  { %v5542_v10 = vpop.f32.mrf.mxu0  ;;  %v8604_v49 = vunpack.i.l.bf16 %v8603_v0  ;;  %v8607_v63 = vunpack.i.h.bf16 %v8603_v0 }
 0x7f9   :  { %v8765_v6 = vpack.i.bf16 %v5540_v46, %v5542_v10 }
 0x7fa   :  { %v5546_v29 = vpop.f32.mrf.mxu0  ;;  %6051 = vmatprep.mubr.f32.mxu1 %v8604_v49 }
 0x7fb   :  { %v8608_v40 = vpop.trf.xlu0  ;;  %6052 = vmatmul.mubr.f32.gmra.mxu1 %v8607_v63  ;;  %8766 = vxpose.xlu0.b32.cont [11/16] %v8765_v6, 128 }
 0x7fc   :  { %v5548_v61 = vpop.f32.mrf.mxu0  ;;  %v8609_v53 = vunpack.i.l.bf16 %v8608_v40  ;;  %v8612_v52 = vunpack.i.h.bf16 %v8608_v40 }
 0x7fd   :  { %v8767_v14 = vpack.i.bf16 %v5546_v29, %v5548_v61 }
 0x7fe   :  { %v5552_v4 = vpop.f32.mrf.mxu0  ;;  %6057 = vmatprep.mubr.f32.mxu1 %v8609_v53 }
 0x7ff   :  { %v8613_v54 = vpop.trf.xlu0  ;;  %6058 = vmatmul.mubr.f32.gmra.mxu1 %v8612_v52  ;;  %8768 = vxpose.xlu0.b32.cont [12/16] %v8767_v14, 128 }
 0x800   :  { %v5554_v3 = vpop.f32.mrf.mxu0  ;;  %v8614_v24 = vunpack.i.l.bf16 %v8613_v54  ;;  %v8617_v47 = vunpack.i.h.bf16 %v8613_v54 }
 0x801   :  { %v8769_v23 = vpack.i.bf16 %v5552_v4, %v5554_v3 }
 0x802   :  { %v5558_v2 = vpop.f32.mrf.mxu0  ;;  %6063 = vmatprep.mubr.f32.mxu1 %v8614_v24 }
 0x803   :  { %v8618_v1 = vpop.trf.xlu0  ;;  %6064 = vmatmul.mubr.f32.gmra.mxu1 %v8617_v47  ;;  %8770 = vxpose.xlu0.b32.cont [13/16] %v8769_v23, 128 }
 0x804   :  { %v5560_v31 = vpop.f32.mrf.mxu0  ;;  %v8619_v17 = vunpack.i.l.bf16 %v8618_v1  ;;  %v8622_v32 = vunpack.i.h.bf16 %v8618_v1 }
 0x805   :  { %v8771_v27 = vpack.i.bf16 %v5558_v2, %v5560_v31 }
 0x806   :  { %v5564_v56 = vpop.f32.mrf.mxu0  ;;  %6069 = vmatprep.mubr.f32.mxu1 %v8619_v17 }
 0x807   :  { %v8623_v25 = vpop.trf.xlu0  ;;  %6070 = vmatmul.mubr.f32.gmra.mxu1 %v8622_v32  ;;  %8772 = vxpose.xlu0.b32.cont [14/16] %v8771_v27, 128 }
 0x808   :  { %v5566_v59 = vpop.f32.mrf.mxu0  ;;  %v8624_v18 = vunpack.i.l.bf16 %v8623_v25  ;;  %v8627_v28 = vunpack.i.h.bf16 %v8623_v25 }
 0x809   :  { %v8773_v37 = vpack.i.bf16 %v5564_v56, %v5566_v59 }
 0x80a   :  { %v5570_v45 = vpop.f32.mrf.mxu0  ;;  %6075 = vmatprep.mubr.f32.mxu1 %v8624_v18 }
 0x80b   :  { %v8628_v38 = vpop.trf.xlu0  ;;  %6076 = vmatmul.mubr.f32.gmra.mxu1 %v8627_v28  ;;  %8774 = vxpose.xlu0.b32.cont [15/16] %v8773_v37, 128 }
 0x80c   :  { %v5572_v15 = vpop.f32.mrf.mxu0  ;;  %v8629_v39 = vunpack.i.l.bf16 %v8628_v38  ;;  %v8632_v8 = vunpack.i.h.bf16 %v8628_v38 }
 0x80d   :  { %v8775_v50 = vpack.i.bf16 %v5570_v45, %v5572_v15 }
 0x80e   :  { %v5576_v26 = vpop.f32.mrf.mxu0  ;;  %6081 = vmatprep.mubr.f32.mxu1 %v8629_v39 }
 0x80f   :  { %6082 = vmatmul.mubr.f32.gmra.mxu1 %v8632_v8  ;;  %v8665_v33 = vpop.trf.xlu1  ;;  %8776 = vxpose.xlu0.b32.end [16/16] %v8775_v50, 128 }
 0x810   :  { %v5578_v7 = vpop.f32.mrf.mxu0  ;;  %v8666_v48 = vunpack.i.l.bf16 %v8665_v33  ;;  %v8669_v35 = vunpack.i.h.bf16 %v8665_v33 }
 0x811   :  { %v8857_v42 = vpack.i.bf16 %v5576_v26, %v5578_v7 }
 0x812   :  { %v5582_v12 = vpop.f32.mrf.mxu0  ;;  %6085 = vmatprep.mubr.f32.mxu1 %v8666_v48 }
 0x813   :  { %v8670_v57 = vpop.trf.xlu1  ;;  %6086 = vmatmul.mubr.f32.gmra.mxu1 %v8669_v35  ;;  %8858 = vxpose.xlu1.b32.start [1/16] %v8857_v42, 128 }
 0x814   :  { %v5584_v36 = vpop.f32.mrf.mxu0  ;;  %v8671_v16 = vunpack.i.l.bf16 %v8670_v57  ;;  %v8674_v13 = vunpack.i.h.bf16 %v8670_v57 }
 0x815   :  { %v8859_v22 = vpack.i.bf16 %v5582_v12, %v5584_v36 }
 0x816   :  { %v5588_v34 = vpop.f32.mrf.mxu0  ;;  %6091 = vmatprep.mubr.f32.mxu1 %v8671_v16 }
 0x817   :  { %v8675_v30 = vpop.trf.xlu1  ;;  %6092 = vmatmul.mubr.f32.gmra.mxu1 %v8674_v13  ;;  %8860 = vxpose.xlu1.b32.cont [2/16] %v8859_v22, 128 }
 0x818   :  { %v5590_v51 = vpop.f32.mrf.mxu0  ;;  %v8676_v41 = vunpack.i.l.bf16 %v8675_v30  ;;  %v8679_v43 = vunpack.i.h.bf16 %v8675_v30 }
 0x819   :  { %v8861_v5 = vpack.i.bf16 %v5588_v34, %v5590_v51 }
 0x81a   :  { %v5594_v62 = vpop.f32.mrf.mxu0  ;;  %6097 = vmatprep.mubr.f32.mxu1 %v8676_v41 }
 0x81b   :  { %v8680_v11 = vpop.trf.xlu1  ;;  %6098 = vmatmul.mubr.f32.gmra.mxu1 %v8679_v43  ;;  %8862 = vxpose.xlu1.b32.cont [3/16] %v8861_v5, 128 }
 0x81c   :  { %v5596_v19 = vpop.f32.mrf.mxu0  ;;  %v8681_v60 = vunpack.i.l.bf16 %v8680_v11  ;;  %v8684_v55 = vunpack.i.h.bf16 %v8680_v11 }
 0x81d   :  { %v8863_v44 = vpack.i.bf16 %v5594_v62, %v5596_v19 }
 0x81e   :  { %v5600_v20 = vpop.f32.mrf.mxu0  ;;  %6103 = vmatprep.mubr.f32.mxu1 %v8681_v60 }
 0x81f   :  { %v8685_v58 = vpop.trf.xlu1  ;;  %6104 = vmatmul.mubr.f32.gmra.mxu1 %v8684_v55  ;;  %8864 = vxpose.xlu1.b32.cont [4/16] %v8863_v44, 128 }
 0x820   :  { %v5602_v21 = vpop.f32.mrf.mxu0  ;;  %v8686_v9 = vunpack.i.l.bf16 %v8685_v58  ;;  %v8689_v46 = vunpack.i.h.bf16 %v8685_v58 }
 0x821   :  { %v8865_v0 = vpack.i.bf16 %v5600_v20, %v5602_v21 }
 0x822   :  { %v5606_v10 = vpop.f32.mrf.mxu0  ;;  %6109 = vmatprep.mubr.f32.mxu1 %v8686_v9 }
 0x823   :  { %v8690_v49 = vpop.trf.xlu1  ;;  %6110 = vmatmul.mubr.f32.gmra.mxu1 %v8689_v46  ;;  %8866 = vxpose.xlu1.b32.cont [5/16] %v8865_v0, 128 }
 0x824   :  { %v5608_v63 = vpop.f32.mrf.mxu0  ;;  %v8691_v6 = vunpack.i.l.bf16 %v8690_v49  ;;  %v8694_v29 = vunpack.i.h.bf16 %v8690_v49 }
 0x825   :  { %v8867_v40 = vpack.i.bf16 %v5606_v10, %v5608_v63 }
 0x826   :  { %v5612_v61 = vpop.f32.mrf.mxu0  ;;  %6115 = vmatprep.mubr.f32.mxu1 %v8691_v6 }
 0x827   :  { %v8695_v53 = vpop.trf.xlu1  ;;  %6116 = vmatmul.mubr.f32.gmra.mxu1 %v8694_v29  ;;  %8868 = vxpose.xlu1.b32.cont [6/16] %v8867_v40, 128 }
 0x828   :  { %v5614_v52 = vpop.f32.mrf.mxu0  ;;  %v8696_v14 = vunpack.i.l.bf16 %v8695_v53  ;;  %v8699_v4 = vunpack.i.h.bf16 %v8695_v53 }
 0x829   :  { %v8869_v54 = vpack.i.bf16 %v5612_v61, %v5614_v52 }
 0x82a   :  { %v5618_v3 = vpop.f32.mrf.mxu0  ;;  %6121 = vmatprep.mubr.f32.mxu1 %v8696_v14 }
 0x82b   :  { %v8700_v24 = vpop.trf.xlu1  ;;  %6122 = vmatmul.mubr.f32.gmra.mxu1 %v8699_v4  ;;  %8870 = vxpose.xlu1.b32.cont [7/16] %v8869_v54, 128 }
 0x82c   :  { %v5620_v47 = vpop.f32.mrf.mxu0  ;;  %v8701_v23 = vunpack.i.l.bf16 %v8700_v24  ;;  %v8704_v2 = vunpack.i.h.bf16 %v8700_v24 }
 0x82d   :  { %v8871_v1 = vpack.i.bf16 %v5618_v3, %v5620_v47 }
 0x82e   :  { %v5624_v31 = vpop.f32.mrf.mxu0  ;;  %6127 = vmatprep.mubr.f32.mxu1 %v8701_v23 }
 0x82f   :  { %v8705_v17 = vpop.trf.xlu1  ;;  %6128 = vmatmul.mubr.f32.gmra.mxu1 %v8704_v2  ;;  %8872 = vxpose.xlu1.b32.cont [8/16] %v8871_v1, 128 }
 0x830   :  { %v5626_v32 = vpop.f32.mrf.mxu0  ;;  %v8706_v27 = vunpack.i.l.bf16 %v8705_v17  ;;  %v8709_v56 = vunpack.i.h.bf16 %v8705_v17 }
 0x831   :  { %v8873_v25 = vpack.i.bf16 %v5624_v31, %v5626_v32 }
 0x832   :  { %v5630_v59 = vpop.f32.mrf.mxu0  ;;  %6133 = vmatprep.mubr.f32.mxu1 %v8706_v27 }
 0x833   :  { %v8710_v18 = vpop.trf.xlu1  ;;  %6134 = vmatmul.mubr.f32.gmra.mxu1 %v8709_v56  ;;  %8874 = vxpose.xlu1.b32.cont [9/16] %v8873_v25, 128 }
 0x834   :  { %v5632_v28 = vpop.f32.mrf.mxu0  ;;  %v8711_v37 = vunpack.i.l.bf16 %v8710_v18  ;;  %v8714_v45 = vunpack.i.h.bf16 %v8710_v18 }
 0x835   :  { %v8875_v38 = vpack.i.bf16 %v5630_v59, %v5632_v28 }
 0x836   :  { %v5636_v15 = vpop.f32.mrf.mxu0  ;;  %6139 = vmatprep.mubr.f32.mxu1 %v8711_v37 }
 0x837   :  { %v8715_v39 = vpop.trf.xlu1  ;;  %6140 = vmatmul.mubr.f32.gmra.mxu1 %v8714_v45  ;;  %8876 = vxpose.xlu1.b32.cont [10/16] %v8875_v38, 128 }
 0x838   :  { %v5638_v8 = vpop.f32.mrf.mxu0  ;;  %v8716_v50 = vunpack.i.l.bf16 %v8715_v39  ;;  %v8719_v26 = vunpack.i.h.bf16 %v8715_v39 }
 0x839   :  { %v8877_v33 = vpack.i.bf16 %v5636_v15, %v5638_v8 }
 0x83a   :  { %v5642_v7 = vpop.f32.mrf.mxu0  ;;  %6145 = vmatprep.mubr.f32.mxu1 %v8716_v50 }
 0x83b   :  { %v8720_v48 = vpop.trf.xlu1  ;;  %6146 = vmatmul.mubr.f32.gmra.mxu1 %v8719_v26  ;;  %8878 = vxpose.xlu1.b32.cont [11/16] %v8877_v33, 128 }
 0x83c   :  { %v5644_v35 = vpop.f32.mrf.mxu0  ;;  %v8721_v42 = vunpack.i.l.bf16 %v8720_v48  ;;  %v8724_v12 = vunpack.i.h.bf16 %v8720_v48 }
 0x83d   :  { %v8879_v57 = vpack.i.bf16 %v5642_v7, %v5644_v35 }
 0x83e   :  { %v5648_v36 = vpop.f32.mrf.mxu0  ;;  %6151 = vmatprep.mubr.f32.mxu1 %v8721_v42 }
 0x83f   :  { %v8725_v16 = vpop.trf.xlu1  ;;  %6152 = vmatmul.mubr.f32.gmra.mxu1 %v8724_v12  ;;  %8880 = vxpose.xlu1.b32.cont [12/16] %v8879_v57, 128 }
 0x840   :  { %v5650_v13 = vpop.f32.mrf.mxu0  ;;  %v8726_v22 = vunpack.i.l.bf16 %v8725_v16  ;;  %v8729_v34 = vunpack.i.h.bf16 %v8725_v16 }
 0x841   :  { %v8881_v30 = vpack.i.bf16 %v5648_v36, %v5650_v13 }
 0x842   :  { %v5654_v51 = vpop.f32.mrf.mxu0  ;;  %6157 = vmatprep.mubr.f32.mxu1 %v8726_v22 }
 0x843   :  { %v8730_v41 = vpop.trf.xlu1  ;;  %6158 = vmatmul.mubr.f32.gmra.mxu1 %v8729_v34  ;;  %8882 = vxpose.xlu1.b32.cont [13/16] %v8881_v30, 128 }
 0x844   :  { %v5656_v43 = vpop.f32.mrf.mxu0  ;;  %v8731_v5 = vunpack.i.l.bf16 %v8730_v41  ;;  %v8734_v62 = vunpack.i.h.bf16 %v8730_v41 }
 0x845   :  { %v8883_v11 = vpack.i.bf16 %v5654_v51, %v5656_v43 }
 0x846   :  { %v5660_v19 = vpop.f32.mrf.mxu0  ;;  %6163 = vmatprep.mubr.f32.mxu1 %v8731_v5 }
 0x847   :  { %v8735_v60 = vpop.trf.xlu1  ;;  %6164 = vmatmul.mubr.f32.gmra.mxu1 %v8734_v62  ;;  %8884 = vxpose.xlu1.b32.cont [14/16] %v8883_v11, 128 }
 0x848   :  { %v5662_v55 = vpop.f32.mrf.mxu0  ;;  %v8736_v44 = vunpack.i.l.bf16 %v8735_v60  ;;  %v8739_v20 = vunpack.i.h.bf16 %v8735_v60 }
 0x849   :  { %v8885_v58 = vpack.i.bf16 %v5660_v19, %v5662_v55 }
 0x84a   :  { %v5666_v21 = vpop.f32.mrf.mxu0  ;;  %6169 = vmatprep.mubr.f32.mxu1 %v8736_v44 }
 0x84b   :  { %v8740_v9 = vpop.trf.xlu1  ;;  %6170 = vmatmul.mubr.f32.gmra.mxu1 %v8739_v20  ;;  %8886 = vxpose.xlu1.b32.cont [15/16] %v8885_v58, 128 }
 0x84c   :  { %v5668_v46 = vpop.f32.mrf.mxu0  ;;  %v8741_v0 = vunpack.i.l.bf16 %v8740_v9  ;;  %v8744_v10 = vunpack.i.h.bf16 %v8740_v9 }
 0x84d   :  { %v8887_v49 = vpack.i.bf16 %v5666_v21, %v5668_v46 }
 0x84e   :  { %6175 = vmatprep.mubr.f32.mxu1 %v8741_v0 }
 0x84f   :  { %6176 = vmatmul.mubr.f32.gmra.mxu1 %v8744_v10  ;;  %v8777_v63 = vpop.trf.xlu0  ;;  %8888 = vxpose.xlu1.b32.end [16/16] %v8887_v49, 128 }
 0x850   :  { %v8778_v6 = vunpack.i.l.bf16 %v8777_v63  ;;  %v8781_v29 = vunpack.i.h.bf16 %v8777_v63 }
 0x852   :  { %6179 = vmatprep.mubr.f32.mxu1 %v8778_v6 }
 0x853   :  { %v8782_v40 = vpop.trf.xlu0  ;;  %6180 = vmatmul.mubr.f32.gmra.mxu1 %v8781_v29 }
 0x854   :  { %v8783_v61 = vunpack.i.l.bf16 %v8782_v40  ;;  %v8786_v53 = vunpack.i.h.bf16 %v8782_v40 }
 0x856   :  { %6185 = vmatprep.mubr.f32.mxu1 %v8783_v61 }
 0x857   :  { %v8787_v52 = vpop.trf.xlu0  ;;  %6186 = vmatmul.mubr.f32.gmra.mxu1 %v8786_v53 }
 0x858   :  { %v8788_v14 = vunpack.i.l.bf16 %v8787_v52  ;;  %v8791_v4 = vunpack.i.h.bf16 %v8787_v52 }
 0x85a   :  { %6191 = vmatprep.mubr.f32.mxu1 %v8788_v14 }
 0x85b   :  { %v8792_v54 = vpop.trf.xlu0  ;;  %6192 = vmatmul.mubr.f32.gmra.mxu1 %v8791_v4 }
 0x85c   :  { %v8793_v3 = vunpack.i.l.bf16 %v8792_v54  ;;  %v8796_v24 = vunpack.i.h.bf16 %v8792_v54 }
 0x85e   :  { %6197 = vmatprep.mubr.f32.mxu1 %v8793_v3 }
 0x85f   :  { %v8797_v47 = vpop.trf.xlu0  ;;  %6198 = vmatmul.mubr.f32.gmra.mxu1 %v8796_v24 }
 0x860   :  { %v8798_v23 = vunpack.i.l.bf16 %v8797_v47  ;;  %v8801_v2 = vunpack.i.h.bf16 %v8797_v47 }
 0x862   :  { %6203 = vmatprep.mubr.f32.mxu1 %v8798_v23 }
 0x863   :  { %v8802_v1 = vpop.trf.xlu0  ;;  %6204 = vmatmul.mubr.f32.gmra.mxu1 %v8801_v2 }
 0x864   :  { %v8803_v31 = vunpack.i.l.bf16 %v8802_v1  ;;  %v8806_v17 = vunpack.i.h.bf16 %v8802_v1 }
 0x866   :  { %6209 = vmatprep.mubr.f32.mxu1 %v8803_v31 }
 0x867   :  { %v8807_v32 = vpop.trf.xlu0  ;;  %6210 = vmatmul.mubr.f32.gmra.mxu1 %v8806_v17 }
 0x868   :  { %v8808_v27 = vunpack.i.l.bf16 %v8807_v32  ;;  %v8811_v56 = vunpack.i.h.bf16 %v8807_v32 }
 0x86a   :  { %6215 = vmatprep.mubr.f32.mxu1 %v8808_v27 }
 0x86b   :  { %v8812_v25 = vpop.trf.xlu0  ;;  %6216 = vmatmul.mubr.f32.gmra.mxu1 %v8811_v56 }
 0x86c   :  { %v8813_v59 = vunpack.i.l.bf16 %v8812_v25  ;;  %v8816_v18 = vunpack.i.h.bf16 %v8812_v25 }
 0x86e   :  { %6221 = vmatprep.mubr.f32.mxu1 %v8813_v59 }
 0x86f   :  { %v8817_v28 = vpop.trf.xlu0  ;;  %6222 = vmatmul.mubr.f32.gmra.mxu1 %v8816_v18 }
 0x870   :  { %v8818_v37 = vunpack.i.l.bf16 %v8817_v28  ;;  %v8821_v45 = vunpack.i.h.bf16 %v8817_v28 }
 0x872   :  { %6227 = vmatprep.mubr.f32.mxu1 %v8818_v37 }
 0x873   :  { %v8822_v38 = vpop.trf.xlu0  ;;  %6228 = vmatmul.mubr.f32.gmra.mxu1 %v8821_v45 }
 0x874   :  { %v8823_v15 = vunpack.i.l.bf16 %v8822_v38  ;;  %v8826_v39 = vunpack.i.h.bf16 %v8822_v38 }
 0x876   :  { %6233 = vmatprep.mubr.f32.mxu1 %v8823_v15 }
 0x877   :  { %v8827_v8 = vpop.trf.xlu0  ;;  %6234 = vmatmul.mubr.f32.gmra.mxu1 %v8826_v39 }
 0x878   :  { %v8828_v50 = vunpack.i.l.bf16 %v8827_v8  ;;  %v8831_v26 = vunpack.i.h.bf16 %v8827_v8 }
 0x87a   :  { %6239 = vmatprep.mubr.f32.mxu1 %v8828_v50 }
 0x87b   :  { %v8832_v33 = vpop.trf.xlu0  ;;  %6240 = vmatmul.mubr.f32.gmra.mxu1 %v8831_v26 }
 0x87c   :  { %v8833_v7 = vunpack.i.l.bf16 %v8832_v33  ;;  %v8836_v48 = vunpack.i.h.bf16 %v8832_v33 }
 0x87e   :  { %6245 = vmatprep.mubr.f32.mxu1 %v8833_v7 }
 0x87f   :  { %v8837_v35 = vpop.trf.xlu0  ;;  %6246 = vmatmul.mubr.f32.gmra.mxu1 %v8836_v48 }
 0x880   :  { %v8838_v42 = vunpack.i.l.bf16 %v8837_v35  ;;  %v8841_v12 = vunpack.i.h.bf16 %v8837_v35 }
 0x882   :  { %6251 = vmatprep.mubr.f32.mxu1 %v8838_v42 }
 0x883   :  { %v8842_v57 = vpop.trf.xlu0  ;;  %6252 = vmatmul.mubr.f32.gmra.mxu1 %v8841_v12 }
 0x884   :  { %v8843_v36 = vunpack.i.l.bf16 %v8842_v57  ;;  %v8846_v16 = vunpack.i.h.bf16 %v8842_v57 }
 0x886   :  { %6257 = vmatprep.mubr.f32.mxu1 %v8843_v36 }
 0x887   :  { %v8847_v13 = vpop.trf.xlu0  ;;  %6258 = vmatmul.mubr.f32.gmra.mxu1 %v8846_v16 }
 0x888   :  { %v8848_v22 = vunpack.i.l.bf16 %v8847_v13  ;;  %v8851_v34 = vunpack.i.h.bf16 %v8847_v13 }
 0x88a   :  { %6263 = vmatprep.mubr.f32.mxu1 %v8848_v22 }
 0x88b   :  { %v8852_v30 = vpop.trf.xlu0  ;;  %6264 = vmatmul.mubr.f32.gmra.mxu1 %v8851_v34 }
 0x88c   :  { %v8853_v51 = vunpack.i.l.bf16 %v8852_v30  ;;  %v8856_v41 = vunpack.i.h.bf16 %v8852_v30 }
 0x88e   :  { %6269 = vmatprep.mubr.f32.mxu1 %v8853_v51 }
 0x88f   :  { %6270 = vmatmul.mubr.f32.gmra.mxu1 %v8856_v41  ;;  %v8889_v43 = vpop.trf.xlu1 }
 0x890   :  { %v8890_v5 = vunpack.i.l.bf16 %v8889_v43  ;;  %v8893_v62 = vunpack.i.h.bf16 %v8889_v43 }
 0x892   :  { %6273 = vmatprep.mubr.f32.mxu1 %v8890_v5 }
 0x893   :  { %v5993_v11 = vpop.f32.mrf.mxu1  ;;  %v8894_v19 = vpop.trf.xlu1  ;;  %6274 = vmatmul.mubr.f32.gmra.mxu1 %v8893_v62 }
 0x894   :  { %v8895_v60 = vunpack.i.l.bf16 %v8894_v19  ;;  %v8898_v44 = vunpack.i.h.bf16 %v8894_v19  ;;  %v6368_v20 = vmul.f32 %v5993_v11, %v5993_v11 }
 0x895   :  { %v5995_v55 = vpop.f32.mrf.mxu1 }
 0x896   :  { %v6428_v58 = vmul.f32 %v5995_v55, %v5995_v55  ;;  %6279 = vmatprep.mubr.f32.mxu1 %v8895_v60 }
 0x897   :  { %v5999_v21 = vpop.f32.mrf.mxu1  ;;  %v8899_v9 = vpop.trf.xlu1  ;;  %6280 = vmatmul.mubr.f32.gmra.mxu1 %v8898_v44 }
 0x898   :  { %v10583_v46 = vadd.f32 %v6428_v58, %v6368_v20  ;;  %v8900_v10 = vunpack.i.l.bf16 %v8899_v9  ;;  %v8903_v49 = vunpack.i.h.bf16 %v8899_v9  ;;  %v6369_v63 = vmul.f32 %v5999_v21, %v5999_v21 }
 0x899   :  { %v6001_v0 = vpop.f32.mrf.mxu1 }
 0x89a   :  { %v6429_v6 = vmul.f32 %v6001_v0, %v6001_v0  ;;  %6568 = vrot.lane.b32.xlu0 %v10583_v46, %s9317_s0  ;;  %6648 = vrot.lane.b32.xlu1 %v10583_v46, %s9318_s2 }
 0x89b   :  { %6285 = vmatprep.mubr.f32.mxu1 %v8900_v10  ;;  %v6005_v29 = vpop.f32.mrf.mxu1  ;;  %v8904_v40 = vpop.trf.xlu1 }
 0x89c   :  { %v10589_v61 = vadd.f32 %v6429_v6, %v6369_v63  ;;  %6286 = vmatmul.mubr.f32.gmra.mxu1 %v8903_v49  ;;  %v8905_v52 = vunpack.i.l.bf16 %v8904_v40  ;;  %v8908_v14 = vunpack.i.h.bf16 %v8904_v40  ;;  %v6370_v4 = vmul.f32 %v6005_v29, %v6005_v29 }
 0x89d   :  { %v6007_v53 = vpop.f32.mrf.mxu1 }
 0x89e   :  { %v6430_v54 = vmul.f32 %v6007_v53, %v6007_v53  ;;  %6650 = vrot.lane.b32.xlu0 %v10589_v61, %s9318_s2  ;;  %6570 = vrot.lane.b32.xlu1 %v10589_v61, %s9317_s0 }
 0x89f   :  { %6291 = vmatprep.mubr.f32.mxu1 %v8905_v52  ;;  %v6011_v3 = vpop.f32.mrf.mxu1  ;;  %v8909_v24 = vpop.trf.xlu1 }
 0x8a0   :  { %v10595_v47 = vadd.f32 %v6430_v54, %v6370_v4  ;;  %6292 = vmatmul.mubr.f32.gmra.mxu1 %v8908_v14  ;;  %v8910_v2 = vunpack.i.l.bf16 %v8909_v24  ;;  %v8913_v1 = vunpack.i.h.bf16 %v8909_v24  ;;  %v6371_v31 = vmul.f32 %v6011_v3, %v6011_v3 }
 0x8a1   :  { %v6013_v23 = vpop.f32.mrf.mxu1 }
 0x8a2   :  { %v6431_v17 = vmul.f32 %v6013_v23, %v6013_v23  ;;  %6572 = vrot.lane.b32.xlu1 %v10595_v47, %s9317_s0  ;;  %6297 = vmatprep.mubr.f32.mxu1 %v8910_v2 }
 0x8a3   :  { %v6017_v32 = vpop.f32.mrf.mxu1  ;;  %v8914_v27 = vpop.trf.xlu1 }
 0x8a4   :  { %v10599_v56 = vadd.f32 %v6431_v17, %v6371_v31  ;;  %6298 = vmatmul.mubr.f32.gmra.mxu1 %v8913_v1  ;;  %v8915_v59 = vunpack.i.l.bf16 %v8914_v27  ;;  %v8918_v18 = vunpack.i.h.bf16 %v8914_v27  ;;  %v6372_v8 = vmul.f32 %v6017_v32, %v6017_v32 }
 0x8a5   :  { %v6019_v25 = vpop.f32.mrf.mxu1 }
 0x8a6   :  { %6654 = vrot.lane.b32.xlu0 %v10599_v56, %s9318_s2  ;;  %6652 = vrot.lane.b32.xlu1 %v10595_v47, %s9318_s2  ;;  %v6432_v45 = vmul.f32 %v6019_v25, %v6019_v25 }
 0x8a7   :  { %6303 = vmatprep.mubr.f32.mxu1 %v8915_v59  ;;  %v6023_v28 = vpop.f32.mrf.mxu1  ;;  %v8919_v37 = vpop.trf.xlu1 }
 0x8a8   :  { %6304 = vmatmul.mubr.f32.gmra.mxu1 %v8918_v18  ;;  %v8920_v15 = vunpack.i.l.bf16 %v8919_v37  ;;  %v8923_v39 = vunpack.i.h.bf16 %v8919_v37  ;;  %v10607_v33 = vadd.f32 %v6432_v45, %v6372_v8  ;;  %v6373_v51 = vmul.f32 %v6023_v28, %v6023_v28 }
 0x8a9   :  { %v6025_v38 = vpop.f32.mrf.mxu1 }
 0x8aa   :  { %6574 = vrot.lane.b32.xlu1 %v10599_v56, %s9317_s0  ;;  %6309 = vmatprep.mubr.f32.mxu1 %v8920_v15  ;;  %v6433_v16 = vmul.f32 %v6025_v38, %v6025_v38 }
 0x8ab   :  { %v6029_v50 = vpop.f32.mrf.mxu1  ;;  %v8924_v26 = vpop.trf.xlu1 }
 0x8ac   :  { %6310 = vmatmul.mubr.f32.gmra.mxu1 %v8923_v39  ;;  %v8925_v48 = vunpack.i.l.bf16 %v8924_v26  ;;  %v8928_v35 = vunpack.i.h.bf16 %v8924_v26  ;;  %v6374_v42 = vmul.f32 %v6029_v50, %v6029_v50  ;;  %v10617_v5 = vadd.f32 %v6433_v16, %v6373_v51 }
 0x8ad   :  { %v6031_v7 = vpop.f32.mrf.mxu1 }
 0x8ae   :  { %v6434_v12 = vmul.f32 %v6031_v7, %v6031_v7  ;;  %6576 = vrot.lane.b32.xlu1 %v10607_v33, %s9317_s0  ;;  %6315 = vmatprep.mubr.f32.mxu1 %v8925_v48 }
 0x8af   :  { %v6035_v57 = vpop.f32.mrf.mxu1  ;;  %v8929_v36 = vpop.trf.xlu1 }
 0x8b0   :  { %v10611_v13 = vadd.f32 %v6434_v12, %v6374_v42  ;;  %6316 = vmatmul.mubr.f32.gmra.mxu1 %v8928_v35  ;;  %v8930_v34 = vunpack.i.l.bf16 %v8929_v36  ;;  %v8933_v30 = vunpack.i.h.bf16 %v8929_v36  ;;  %v6375_v49 = vmul.f32 %v6035_v57, %v6035_v57 }
 0x8b1   :  { %v6037_v22 = vpop.f32.mrf.mxu1 }
 0x8b2   :  { %6770 = vrot.lane.b32.xlu0 %v10611_v13, %s9317_s0  ;;  %6656 = vrot.lane.b32.xlu1 %v10607_v33, %s9318_s2  ;;  %v6435_v58 = vmul.f32 %v6037_v22, %v6037_v22 }
 0x8b3   :  { %6321 = vmatprep.mubr.f32.mxu1 %v8930_v34  ;;  %v6041_v41 = vpop.f32.mrf.mxu1  ;;  %v8934_v43 = vpop.trf.xlu1 }
 0x8b4   :  { %6322 = vmatmul.mubr.f32.gmra.mxu1 %v8933_v30  ;;  %v8935_v11 = vunpack.i.l.bf16 %v8934_v43  ;;  %v8938_v19 = vunpack.i.h.bf16 %v8934_v43  ;;  %v6376_v60 = vmul.f32 %v6041_v41, %v6041_v41  ;;  %v10629_v29 = vadd.f32 %v6435_v58, %v6375_v49 }
 0x8b5   :  { %v6043_v62 = vpop.f32.mrf.mxu1 }
 0x8b6   :  { %v6436_v55 = vmul.f32 %v6043_v62, %v6043_v62  ;;  %6850 = vrot.lane.b32.xlu0 %v10611_v13, %s9318_s2  ;;  %6768 = vrot.lane.b32.xlu1 %v10617_v5, %s9317_s0 }
 0x8b7   :  { %6327 = vmatprep.mubr.f32.mxu1 %v8935_v11  ;;  %v6047_v44 = vpop.f32.mrf.mxu1  ;;  %v8939_v20 = vpop.trf.xlu1 }
 0x8b8   :  { %v10623_v21 = vadd.f32 %v6436_v55, %v6376_v60  ;;  %6328 = vmatmul.mubr.f32.gmra.mxu1 %v8938_v19  ;;  %v8940_v0 = vunpack.i.l.bf16 %v8939_v20  ;;  %v8943_v10 = vunpack.i.h.bf16 %v8939_v20  ;;  %v6377_v2 = vmul.f32 %v6047_v44, %v6047_v44 }
 0x8b9   :  { %v6049_v9 = vpop.f32.mrf.mxu1 }
 0x8ba   :  { %6774 = vrot.lane.b32.xlu0 %v10623_v21, %s9317_s0  ;;  %6848 = vrot.lane.b32.xlu1 %v10617_v5, %s9318_s2  ;;  %v6437_v54 = vmul.f32 %v6049_v9, %v6049_v9 }
 0x8bb   :  { %6333 = vmatprep.mubr.f32.mxu1 %v8940_v0  ;;  %v6053_v63 = vpop.f32.mrf.mxu1  ;;  %v8944_v6 = vpop.trf.xlu1 }
 0x8bc   :  { %6334 = vmatmul.mubr.f32.gmra.mxu1 %v8943_v10  ;;  %v8945_v53 = vunpack.i.l.bf16 %v8944_v6  ;;  %v8948_v52 = vunpack.i.h.bf16 %v8944_v6  ;;  %v10637_v27 = vadd.f32 %v6437_v54, %v6377_v2  ;;  %v6378_v50 = vmul.f32 %v6053_v63, %v6053_v63 }
 0x8bd   :  { %v6055_v40 = vpop.f32.mrf.mxu1 }
 0x8be   :  { %6854 = vrot.lane.b32.xlu0 %v10623_v21, %s9318_s2  ;;  %6772 = vrot.lane.b32.xlu1 %v10629_v29, %s9317_s0  ;;  %v6438_v38 = vmul.f32 %v6055_v40, %v6055_v40 }
 0x8bf   :  { %6339 = vmatprep.mubr.f32.mxu1 %v8945_v53  ;;  %v6059_v14 = vpop.f32.mrf.mxu1  ;;  %v8949_v4 = vpop.trf.xlu1 }
 0x8c0   :  { %6340 = vmatmul.mubr.f32.gmra.mxu1 %v8948_v52  ;;  %v8950_v24 = vunpack.i.l.bf16 %v8949_v4  ;;  %v8953_v23 = vunpack.i.h.bf16 %v8949_v4  ;;  %v6379_v1 = vmul.f32 %v6059_v14, %v6059_v14  ;;  %v10649_v42 = vadd.f32 %v6438_v38, %v6378_v50 }
 0x8c1   :  { %v6061_v3 = vpop.f32.mrf.mxu1 }
 0x8c2   :  { %v6439_v31 = vmul.f32 %v6061_v3, %v6061_v3  ;;  %6852 = vrot.lane.b32.xlu1 %v10629_v29, %s9318_s2  ;;  %6345 = vmatprep.mubr.f32.mxu1 %v8950_v24 }
 0x8c3   :  { %v6065_v17 = vpop.f32.mrf.mxu1  ;;  %v8954_v32 = vpop.trf.xlu1 }
 0x8c4   :  { %v10639_v25 = vadd.f32 %v6439_v31, %v6379_v1  ;;  %6346 = vmatmul.mubr.f32.gmra.mxu1 %v8953_v23  ;;  %v8955_v18 = vunpack.i.l.bf16 %v8954_v32  ;;  %v8958_v28 = vunpack.i.h.bf16 %v8954_v32  ;;  %v6380_v51 = vmul.f32 %v6065_v17, %v6065_v17 }
 0x8c5   :  { %v6067_v59 = vpop.f32.mrf.mxu1 }
 0x8c6   :  { %6970 = vrot.lane.b32.xlu0 %v10639_v25, %s9317_s0  ;;  %6776 = vrot.lane.b32.xlu1 %v10637_v27, %s9317_s0  ;;  %v6440_v34 = vmul.f32 %v6067_v59, %v6067_v59 }
 0x8c7   :  { %6351 = vmatprep.mubr.f32.mxu1 %v8955_v18  ;;  %v6071_v37 = vpop.f32.mrf.mxu1  ;;  %v8959_v45 = vpop.trf.xlu1 }
 0x8c8   :  { %6352 = vmatmul.mubr.f32.gmra.mxu1 %v8958_v28  ;;  %v8960_v39 = vunpack.i.l.bf16 %v8959_v45  ;;  %v8963_v8 = vunpack.i.h.bf16 %v8959_v45  ;;  %v6381_v26 = vmul.f32 %v6071_v37, %v6071_v37  ;;  %v10661_v43 = vadd.f32 %v6440_v34, %v6380_v51 }
 0x8c9   :  { %v6073_v15 = vpop.f32.mrf.mxu1 }
 0x8ca   :  { %v6441_v7 = vmul.f32 %v6073_v15, %v6073_v15  ;;  %7050 = vrot.lane.b32.xlu0 %v10639_v25, %s9318_s2  ;;  %6856 = vrot.lane.b32.xlu1 %v10637_v27, %s9318_s2 }
 0x8cb   :  { %v6077_v48 = vpop.f32.mrf.mxu1  ;;  %6357 = vmatprep.mubr.f32.mxu1 %v8960_v39  ;;  %v8964_v35 = vpop.trf.xlu1 }
 0x8cc   :  { %v10651_v12 = vadd.f32 %v6441_v7, %v6381_v26  ;;  %6358 = vmatmul.mubr.f32.gmra.mxu1 %v8963_v8  ;;  %v8965_v36 = vunpack.i.l.bf16 %v8964_v35  ;;  %v8968_v16 = vunpack.i.h.bf16 %v8964_v35  ;;  %v6382_v58 = vmul.f32 %v6077_v48, %v6077_v48 }
 0x8cd   :  { %v6079_v57 = vpop.f32.mrf.mxu1 }
 0x8ce   :  { %6974 = vrot.lane.b32.xlu0 %v10651_v12, %s9317_s0  ;;  %6968 = vrot.lane.b32.xlu1 %v10649_v42, %s9317_s0  ;;  %v6442_v55 = vmul.f32 %v6079_v57, %v6079_v57 }
 0x8cf   :  { %v6083_v22 = vpop.f32.mrf.mxu1  ;;  %6363 = vmatprep.mubr.f32.mxu1 %v8965_v36 }
 0x8d0   :  { %6364 = vmatmul.mubr.f32.gmra.mxu1 %v8968_v16  ;;  %v10671_v0 = vadd.f32 %v6442_v55, %v6382_v58 }
 0x8d1   :  { %v6084_v30 = vpop.f32.mrf.mxu1 }
 0x8d2   :  { %7054 = vrot.lane.b32.xlu0 %v10651_v12, %s9318_s2  ;;  %7048 = vrot.lane.b32.xlu1 %v10649_v42, %s9318_s2 }
 0x8d3   :  { %v6087_v41 = vpop.f32.mrf.mxu1 }
 0x8d4   :  { %v6383_v11 = vmul.f32 %v6087_v41, %v6087_v41 }
 0x8d5   :  { %v6089_v62 = vpop.f32.mrf.mxu1 }
 0x8d6   :  { %v6443_v19 = vmul.f32 %v6089_v62, %v6089_v62  ;;  %6972 = vrot.lane.b32.xlu1 %v10661_v43, %s9317_s0 }
 0x8d7   :  { %v6093_v60 = vpop.f32.mrf.mxu1 }
 0x8d8   :  { %v10665_v44 = vadd.f32 %v6443_v19, %v6383_v11  ;;  %v6384_v14 = vmul.f32 %v6093_v60, %v6093_v60 }
 0x8d9   :  { %v6095_v20 = vpop.f32.mrf.mxu1 }
 0x8da   :  { %6578 = vrot.lane.b32.xlu0 %v10665_v44, %s9317_s0  ;;  %7052 = vrot.lane.b32.xlu1 %v10661_v43, %s9318_s2  ;;  %v6444_v40 = vmul.f32 %v6095_v20, %v6095_v20 }
 0x8db   :  { %v6099_v9 = vpop.f32.mrf.mxu1 }
 0x8dc   :  { %v6385_v49 = vmul.f32 %v6099_v9, %v6099_v9  ;;  %v10683_v54 = vadd.f32 %v6444_v40, %v6384_v14 }
 0x8dd   :  { %v6101_v10 = vpop.f32.mrf.mxu1 }
 0x8de   :  { %v6445_v63 = vmul.f32 %v6101_v10, %v6101_v10  ;;  %6658 = vrot.lane.b32.xlu0 %v10665_v44, %s9318_s2  ;;  %6976 = vrot.lane.b32.xlu1 %v10671_v0, %s9317_s0 }
 0x8df   :  { %v6105_v6 = vpop.f32.mrf.mxu1 }
 0x8e0   :  { %v10677_v53 = vadd.f32 %v6445_v63, %v6385_v49  ;;  %v6386_v32 = vmul.f32 %v6105_v6, %v6105_v6 }
 0x8e1   :  { %v6107_v52 = vpop.f32.mrf.mxu1 }
 0x8e2   :  { %6582 = vrot.lane.b32.xlu0 %v10677_v53, %s9317_s0  ;;  %7056 = vrot.lane.b32.xlu1 %v10671_v0, %s9318_s2  ;;  %v6446_v1 = vmul.f32 %v6107_v52, %v6107_v52 }
 0x8e3   :  { %v6111_v4 = vpop.f32.mrf.mxu1 }
 0x8e4   :  { %v6387_v24 = vmul.f32 %v6111_v4, %v6111_v4  ;;  %v10695_v18 = vadd.f32 %v6446_v1, %v6386_v32 }
 0x8e5   :  { %v6113_v3 = vpop.f32.mrf.mxu1 }
 0x8e6   :  { %v6447_v23 = vmul.f32 %v6113_v3, %v6113_v3  ;;  %6662 = vrot.lane.b32.xlu0 %v10677_v53, %s9318_s2  ;;  %6580 = vrot.lane.b32.xlu1 %v10683_v54, %s9317_s0 }
 0x8e7   :  { %v6117_v2 = vpop.f32.mrf.mxu1 }
 0x8e8   :  { %v10689_v31 = vadd.f32 %v6447_v23, %v6387_v24  ;;  %v6388_v45 = vmul.f32 %v6117_v2, %v6117_v2 }
 0x8e9   :  { %v6119_v17 = vpop.f32.mrf.mxu1 }
 0x8ea   :  { %6586 = vrot.lane.b32.xlu0 %v10689_v31, %s9317_s0  ;;  %6660 = vrot.lane.b32.xlu1 %v10683_v54, %s9318_s2  ;;  %v6448_v28 = vmul.f32 %v6119_v17, %v6119_v17 }
 0x8eb   :  { %v6123_v59 = vpop.f32.mrf.mxu1 }
 0x8ec   :  { %v10701_v15 = vadd.f32 %v6448_v28, %v6388_v45  ;;  %v6389_v50 = vmul.f32 %v6123_v59, %v6123_v59 }
 0x8ed   :  { %v6125_v37 = vpop.f32.mrf.mxu1 }
 0x8ee   :  { %6666 = vrot.lane.b32.xlu0 %v10689_v31, %s9318_s2  ;;  %6584 = vrot.lane.b32.xlu1 %v10695_v18, %s9317_s0  ;;  %v6449_v39 = vmul.f32 %v6125_v37, %v6125_v37 }
 0x8ef   :  { %v6129_v38 = vpop.f32.mrf.mxu1 }
 0x8f0   :  { %v10707_v7 = vadd.f32 %v6449_v39, %v6389_v50  ;;  %v6390_v57 = vmul.f32 %v6129_v38, %v6129_v38 }
 0x8f1   :  { %v6131_v8 = vpop.f32.mrf.mxu1 }
 0x8f2   :  { %6778 = vrot.lane.b32.xlu0 %v10701_v15, %s9317_s0  ;;  %6664 = vrot.lane.b32.xlu1 %v10695_v18, %s9318_s2  ;;  %v6450_v48 = vmul.f32 %v6131_v8, %v6131_v8 }
 0x8f3   :  { %v6135_v26 = vpop.f32.mrf.mxu1 }
 0x8f4   :  { %v10713_v16 = vadd.f32 %v6450_v48, %v6390_v57  ;;  %v6391_v30 = vmul.f32 %v6135_v26, %v6135_v26 }
 0x8f5   :  { %v6137_v35 = vpop.f32.mrf.mxu1 }
 0x8f6   :  { %6858 = vrot.lane.b32.xlu0 %v10701_v15, %s9318_s2  ;;  %6780 = vrot.lane.b32.xlu1 %v10707_v7, %s9317_s0  ;;  %v6451_v22 = vmul.f32 %v6137_v35, %v6137_v35 }
 0x8f7   :  { %v6141_v36 = vpop.f32.mrf.mxu1 }
 0x8f8   :  { %v10719_v41 = vadd.f32 %v6451_v22, %v6391_v30  ;;  %v6392_v19 = vmul.f32 %v6141_v36, %v6141_v36 }
 0x8f9   :  { %v6143_v34 = vpop.f32.mrf.mxu1 }
 0x8fa   :  { %6782 = vrot.lane.b32.xlu0 %v10713_v16, %s9317_s0  ;;  %6860 = vrot.lane.b32.xlu1 %v10707_v7, %s9318_s2  ;;  %v6452_v62 = vmul.f32 %v6143_v34, %v6143_v34 }
 0x8fb   :  { %v6147_v51 = vpop.f32.mrf.mxu1 }
 0x8fc   :  { %v10725_v55 = vadd.f32 %v6452_v62, %v6392_v19  ;;  %v6393_v40 = vmul.f32 %v6147_v51, %v6147_v51 }
 0x8fd   :  { %v6149_v11 = vpop.f32.mrf.mxu1 }
 0x8fe   :  { %6862 = vrot.lane.b32.xlu0 %v10713_v16, %s9318_s2  ;;  %6784 = vrot.lane.b32.xlu1 %v10719_v41, %s9317_s0  ;;  %v6453_v49 = vmul.f32 %v6149_v11, %v6149_v11 }
 0x8ff   :  { %v6153_v60 = vpop.f32.mrf.mxu1 }
 0x900   :  { %v6394_v58 = vmul.f32 %v6153_v60, %v6153_v60  ;;  %v10737_v14 = vadd.f32 %v6453_v49, %v6393_v40 }
 0x901   :  { %v6155_v20 = vpop.f32.mrf.mxu1 }
 0x902   :  { %v6454_v9 = vmul.f32 %v6155_v20, %v6155_v20  ;;  %6786 = vrot.lane.b32.xlu0 %v10725_v55, %s9317_s0  ;;  %6864 = vrot.lane.b32.xlu1 %v10719_v41, %s9318_s2 }
 0x903   :  { %v6159_v10 = vpop.f32.mrf.mxu1 }
 0x904   :  { %v10731_v63 = vadd.f32 %v6454_v9, %v6394_v58  ;;  %v6395_v59 = vmul.f32 %v6159_v10, %v6159_v10 }
 0x905   :  { %v6161_v6 = vpop.f32.mrf.mxu1 }
 0x906   :  { %6866 = vrot.lane.b32.xlu0 %v10725_v55, %s9318_s2  ;;  %6980 = vrot.lane.b32.xlu1 %v10731_v63, %s9317_s0  ;;  %v6455_v2 = vmul.f32 %v6161_v6, %v6161_v6 }
 0x907   :  { %v6165_v52 = vpop.f32.mrf.mxu1 }
 0x908   :  { %v6396_v3 = vmul.f32 %v6165_v52, %v6165_v52  ;;  %v10751_v37 = vadd.f32 %v6455_v2, %v6395_v59 }
 0x909   :  { %v6167_v4 = vpop.f32.mrf.mxu1 }
 0x90a   :  { %v6456_v24 = vmul.f32 %v6167_v4, %v6167_v4  ;;  %6978 = vrot.lane.b32.xlu0 %v10737_v14, %s9317_s0  ;;  %7060 = vrot.lane.b32.xlu1 %v10731_v63, %s9318_s2 }
 0x90b   :  { %v6171_v23 = vpop.f32.mrf.mxu1 }
 0x90c   :  { %v10743_v1 = vadd.f32 %v6456_v24, %v6396_v3  ;;  %v10745_v17 = vpop.permute.xlu1 %6648  ;;  %v6397_v48 = vmul.f32 %v6171_v23, %v6171_v23  ;;  %v10759_v35 = vpop.permute.xlu0 %6568 }
 0x90d   :  { %v6173_v32 = vpop.f32.mrf.mxu1 }
 0x90e   :  { %7058 = vrot.lane.b32.xlu0 %v10737_v14, %s9318_s2  ;;  %6984 = vrot.lane.b32.xlu1 %v10743_v1, %s9317_s0  ;;  %v6457_v8 = vmul.f32 %v6173_v32, %v6173_v32 }
 0x90f   :  { %v6177_v28 = vpop.f32.mrf.mxu1 }
 0x910   :  { %v6571_v45 = vpop.permute.xlu1 %6570  ;;  %v10763_v34 = vadd.f32 %v6457_v8, %v6397_v48  ;;  %v6651_v19 = vpop.permute.xlu0 %6650 }
 0x911   :  { %v6178_v38 = vpop.f32.mrf.mxu1 }
 0x912   :  { %6982 = vrot.lane.b32.xlu0 %v10751_v37, %s9317_s0  ;;  %7064 = vrot.lane.b32.xlu1 %v10743_v1, %s9318_s2 }
 0x913   :  { %v6181_v39 = vpop.f32.mrf.mxu1 }
 0x914   :  { %v10757_v50 = vpop.permute.xlu1 %6572  ;;  %v6398_v57 = vmul.f32 %v6181_v39, %v6181_v39 }
 0x915   :  { %v6183_v26 = vpop.f32.mrf.mxu1 }
 0x916   :  { %v6458_v36 = vmul.f32 %v6183_v26, %v6183_v26  ;;  %7062 = vrot.lane.b32.xlu0 %v10751_v37, %s9318_s2 }
 0x917   :  { %v6187_v22 = vpop.f32.mrf.mxu1 }
 0x918   :  { %v10765_v30 = vadd.f32 %v6458_v36, %v6398_v57  ;;  %v10767_v51 = vpop.permute.xlu1 %6652  ;;  %v6399_v9 = vmul.f32 %v6187_v22, %v6187_v22  ;;  %v6655_v40 = vpop.permute.xlu0 %6654 }
 0x919   :  { %v6189_v62 = vpop.f32.mrf.mxu1 }
 0x91a   :  { %6986 = vrot.lane.b32.xlu0 %v10763_v34, %s9317_s0  ;;  %6588 = vrot.lane.b32.xlu1 %v10765_v30, %s9317_s0  ;;  %v6459_v60 = vmul.f32 %v6189_v62, %v6189_v62  ;;  %v6629_v62 = vmax.f32 %v10589_v61, %v6571_v45 }
 0x91b   :  { %v6193_v11 = vpop.f32.mrf.mxu1 }
 0x91c   :  { %v6575_v20 = vpop.permute.xlu1 %6574  ;;  %v6400_v10 = vmul.f32 %v6193_v11, %v6193_v11  ;;  %v10777_v52 = vadd.f32 %v6459_v60, %v6399_v9 }
 0x91d   :  { %v6195_v58 = vpop.f32.mrf.mxu1 }
 0x91e   :  { %v6460_v49 = vmul.f32 %v6195_v58, %v6195_v58  ;;  %7066 = vrot.lane.b32.xlu0 %v10763_v34, %s9318_s2  ;;  %6668 = vrot.lane.b32.xlu1 %v10765_v30, %s9318_s2 }
 0x91f   :  { %v6199_v6 = vpop.f32.mrf.mxu1 }
 0x920   :  { %v10779_v4 = vadd.f32 %v6460_v49, %v6400_v10  ;;  %v10781_v3 = vpop.permute.xlu1 %6576  ;;  %v6401_v38 = vmul.f32 %v6199_v6, %v6199_v6  ;;  %v6709_v10 = vmax.f32 %v6629_v62, %v6651_v19  ;;  %v6628_v19 = vmax.f32 %v10583_v46, %v10759_v35 }
 0x921   :  { %v6201_v24 = vpop.f32.mrf.mxu1 }
 0x922   :  { %6590 = vrot.lane.b32.xlu0 %v10777_v52, %s9317_s0  ;;  %6592 = vrot.lane.b32.xlu1 %v10779_v4, %s9317_s0  ;;  %v6461_v2 = vmul.f32 %v6201_v24, %v6201_v24 }
 0x923   :  { %v6205_v23 = vpop.f32.mrf.mxu1 }
 0x924   :  { %v6771_v32 = vpop.permute.xlu0 %6770  ;;  %v10787_v59 = vpop.permute.xlu1 %6656  ;;  %v6402_v39 = vmul.f32 %v6205_v23, %v6205_v23  ;;  %v10793_v48 = vadd.f32 %v6461_v2, %v6401_v38 }
 0x925   :  { %v6207_v28 = vpop.f32.mrf.mxu1 }
 0x926   :  { %v6462_v8 = vmul.f32 %v6207_v28, %v6207_v28  ;;  %6670 = vrot.lane.b32.xlu0 %v10777_v52, %s9318_s2  ;;  %6672 = vrot.lane.b32.xlu1 %v10779_v4, %s9318_s2 }
 0x927   :  { %v6211_v26 = vpop.f32.mrf.mxu1 }
 0x928   :  { %v10795_v57 = vadd.f32 %v6462_v8, %v6402_v39  ;;  %v6851_v36 = vpop.permute.xlu0 %6850  ;;  %v6769_v22 = vpop.permute.xlu1 %6768  ;;  %v6403_v6 = vmul.f32 %v6211_v26, %v6211_v26  ;;  %v6631_v39 = vmax.f32 %v10599_v56, %v6575_v20  ;;  %v6729_v8 = vmax.f32 %v6709_v10, %v10611_v13 }
 0x929   :  { %v6213_v11 = vpop.f32.mrf.mxu1 }
 0x92a   :  { %6594 = vrot.lane.b32.xlu0 %v10793_v48, %s9317_s0  ;;  %6596 = vrot.lane.b32.xlu1 %v10795_v57, %s9317_s0  ;;  %v6463_v58 = vmul.f32 %v6213_v11, %v6213_v11  ;;  %v6829_v62 = vmax.f32 %v6729_v8, %v6771_v32  ;;  %v6711_v46 = vmax.f32 %v6631_v39, %v6655_v40 }
 0x92b   :  { %v6217_v60 = vpop.f32.mrf.mxu1 }
 0x92c   :  { %v10802_v9 = vpop.permute.xlu1 %6848  ;;  %v6404_v24 = vmul.f32 %v6217_v60, %v6217_v60  ;;  %v6775_v23 = vpop.permute.xlu0 %6774  ;;  %v10808_v45 = vadd.f32 %v6463_v58, %v6403_v6  ;;  %v6708_v6 = vmax.f32 %v6628_v19, %v10745_v17  ;;  %v6909_v35 = vmax.f32 %v6829_v62, %v6851_v36 }
 0x92d   :  { %v6219_v49 = vpop.f32.mrf.mxu1  ;;  %v6731_v40 = vmax.f32 %v6711_v46, %v10623_v21  ;;  %v6630_v19 = vmax.f32 %v10595_v47, %v10757_v50 }
 0x92e   :  { %v6464_v2 = vmul.f32 %v6219_v49, %v6219_v49  ;;  %6674 = vrot.lane.b32.xlu0 %v10793_v48, %s9318_s2  ;;  %6676 = vrot.lane.b32.xlu1 %v10795_v57, %s9318_s2  ;;  %v6728_v17 = vmax.f32 %v6708_v6, %v10617_v5  ;;  %v6929_v36 = vmax.f32 %v6909_v35, %v10639_v25 }
 0x92f   :  { %v6223_v61 = vpop.f32.mrf.mxu1  ;;  %v6831_v62 = vmax.f32 %v6731_v40, %v6775_v23  ;;  %v6710_v25 = vmax.f32 %v6630_v19, %v10767_v51 }
 0x930   :  { %v10810_v28 = vadd.f32 %v6464_v2, %v6404_v24  ;;  %v6773_v38 = vpop.permute.xlu1 %6772  ;;  %v6855_v60 = vpop.permute.xlu0 %6854  ;;  %v6405_v20 = vmul.f32 %v6223_v61, %v6223_v61  ;;  %v6828_v39 = vmax.f32 %v6728_v17, %v6769_v22  ;;  %v6632_v17 = vmax.f32 %v10607_v33, %v10781_v3 }
 0x931   :  { %v6225_v26 = vpop.f32.mrf.mxu1  ;;  %v6911_v46 = vmax.f32 %v6831_v62, %v6855_v60  ;;  %v6730_v51 = vmax.f32 %v6710_v25, %v10629_v29 }
 0x932   :  { %6790 = vrot.lane.b32.xlu0 %v10810_v28, %s9317_s0  ;;  %6788 = vrot.lane.b32.xlu1 %v10808_v45, %s9317_s0  ;;  %v6465_v58 = vmul.f32 %v6225_v26, %v6225_v26  ;;  %v6908_v6 = vmax.f32 %v6828_v39, %v10802_v9 }
 0x933   :  { %v6229_v11 = vpop.f32.mrf.mxu1  ;;  %v6931_v9 = vmax.f32 %v6911_v46, %v10651_v12  ;;  %v6830_v40 = vmax.f32 %v6730_v51, %v6773_v38 }
 0x934   :  { %v10820_v49 = vpop.permute.xlu1 %6852  ;;  %v6406_v13 = vmul.f32 %v6229_v11, %v6229_v11  ;;  %v10827_v24 = vadd.f32 %v6465_v58, %v6405_v20  ;;  %v6928_v60 = vmax.f32 %v6908_v6, %v10649_v42  ;;  %v6712_v42 = vmax.f32 %v6632_v17, %v10787_v59 }
 0x935   :  { %v6231_v56 = vpop.f32.mrf.mxu1 }
 0x936   :  { %v6466_v10 = vmul.f32 %v6231_v56, %v6231_v56  ;;  %6870 = vrot.lane.b32.xlu0 %v10810_v28, %s9318_s2  ;;  %6868 = vrot.lane.b32.xlu1 %v10808_v45, %s9318_s2  ;;  %v6732_v38 = vmax.f32 %v6712_v42, %v10637_v27 }
 0x937   :  { %v6235_v32 = vpop.f32.mrf.mxu1 }
 0x938   :  { %v10829_v2 = vadd.f32 %v6466_v10, %v6406_v13  ;;  %v6971_v8 = vpop.permute.xlu0 %6970  ;;  %v10831_v26 = vpop.permute.xlu1 %6776  ;;  %v6407_v13 = vmul.f32 %v6235_v32, %v6235_v32 }
 0x939   :  { %v6237_v61 = vpop.f32.mrf.mxu1  ;;  %v7029_v11 = vmax.f32 %v6929_v36, %v6971_v8 }
 0x93a   :  { %6794 = vrot.lane.b32.xlu0 %v10829_v2, %s9317_s0  ;;  %6792 = vrot.lane.b32.xlu1 %v10827_v24, %s9317_s0  ;;  %v6467_v56 = vmul.f32 %v6237_v61, %v6237_v61 }
 0x93b   :  { %v6241_v58 = vpop.f32.mrf.mxu1 }
 0x93c   :  { %v7051_v5 = vpop.permute.xlu0 %7050  ;;  %v10842_v21 = vpop.permute.xlu1 %6856  ;;  %v10851_v50 = vadd.f32 %v6467_v56, %v6407_v13  ;;  %v6408_v6 = vmul.f32 %v6241_v58, %v6241_v58 }
 0x93d   :  { %v7109_v35 = vmax.f32 %v7029_v11, %v7051_v5  ;;  %v6243_v20 = vpop.f32.mrf.mxu1  ;;  %v6910_v11 = vmax.f32 %v6830_v40, %v10820_v49 }
 0x93e   :  { %6874 = vrot.lane.b32.xlu0 %v10829_v2, %s9318_s2  ;;  %6872 = vrot.lane.b32.xlu1 %v10827_v24, %s9318_s2  ;;  %v6468_v39 = vmul.f32 %v6243_v20, %v6243_v20  ;;  %v6832_v20 = vmax.f32 %v6732_v38, %v10831_v26 }
 0x93f   :  { %7130 = vst.msk [vmem:[#allocation8 + $0x8] sm:$0xff] %vm7128_vm0, %v7109_v35  ;;  %v6247_v47 = vpop.f32.mrf.mxu1  ;;  %v6930_v49 = vmax.f32 %v6910_v11, %v10661_v43 }
 0x940   :  { %v6975_v22 = vpop.permute.xlu0 %6974  ;;  %v6969_v23 = vpop.permute.xlu1 %6968  ;;  %v6409_v32 = vmul.f32 %v6247_v47, %v6247_v47  ;;  %v10870_v3 = vadd.f32 %v6468_v39, %v6408_v6  ;;  %v6912_v43 = vmax.f32 %v6832_v20, %v10842_v21 }
 0x941   :  { %v6249_v10 = vpop.f32.mrf.mxu1  ;;  %v7031_v36 = vmax.f32 %v6931_v9, %v6975_v22  ;;  %v7028_v61 = vmax.f32 %v6928_v60, %v6969_v23 }
 0x942   :  { %v6469_v8 = vmul.f32 %v6249_v10, %v6249_v10  ;;  %6796 = vrot.lane.b32.xlu1 %v10851_v50, %s9317_s0  ;;  %v6932_v40 = vmax.f32 %v6912_v43, %v10671_v0 }
 0x943   :  { %v6253_v19 = vpop.f32.mrf.mxu1 }
 0x944   :  { %v10860_v62 = vadd.f32 %v6469_v8, %v6409_v32  ;;  %v7055_v29 = vpop.permute.xlu0 %7054  ;;  %v7049_v12 = vpop.permute.xlu1 %7048  ;;  %v6410_v10 = vmul.f32 %v6253_v19, %v6253_v19 }
 0x945   :  { %v7111_v56 = vmax.f32 %v7031_v36, %v7055_v29  ;;  %v7108_v5 = vmax.f32 %v7028_v61, %v7049_v12  ;;  %v6255_v25 = vpop.f32.mrf.mxu1 }
 0x946   :  { %6990 = vrot.lane.b32.xlu0 %v10860_v62, %s9317_s0  ;;  %6876 = vrot.lane.b32.xlu1 %v10851_v50, %s9318_s2  ;;  %v6470_v22 = vmul.f32 %v6255_v25, %v6255_v25 }
 0x947   :  { %7132 = vst.msk [vmem:[#allocation8 + $0x18] sm:$0xff] %vm7128_vm0, %v7111_v56  ;;  %7129 = vst.msk [vmem:[#allocation8] sm:$0xff] %vm7128_vm0, %v7108_v5  ;;  %v6259_v33 = vpop.f32.mrf.mxu1 }
 0x948   :  { %v6973_v59 = vpop.permute.xlu1 %6972  ;;  %v6411_v58 = vmul.f32 %v6259_v33, %v6259_v33  ;;  %v10889_v32 = vadd.f32 %v6470_v22, %v6410_v10 }
 0x949   :  { %v6261_v46 = vpop.f32.mrf.mxu1  ;;  %v7030_v13 = vmax.f32 %v6930_v49, %v6973_v59 }
 0x94a   :  { %v6471_v35 = vmul.f32 %v6261_v46, %v6261_v46  ;;  %7070 = vrot.lane.b32.xlu0 %v10860_v62, %s9318_s2  ;;  %6988 = vrot.lane.b32.xlu1 %v10870_v3, %s9317_s0 }
 0x94b   :  { %v6265_v47 = vpop.f32.mrf.mxu1 }
 0x94c   :  { %v10879_v23 = vadd.f32 %v6471_v35, %v6411_v58  ;;  %v10881_v51 = vpop.permute.xlu0 %6578  ;;  %v7053_v27 = vpop.permute.xlu1 %7052  ;;  %v6412_v11 = vmul.f32 %v6265_v47, %v6265_v47 }
 0x94d   :  { %v7110_v9 = vmax.f32 %v7030_v13, %v7053_v27  ;;  %v6267_v60 = vpop.f32.mrf.mxu1 }
 0x94e   :  { %6994 = vrot.lane.b32.xlu0 %v10879_v23, %s9317_s0  ;;  %7068 = vrot.lane.b32.xlu1 %v10870_v3, %s9318_s2  ;;  %v6472_v19 = vmul.f32 %v6267_v60, %v6267_v60 }
 0x94f   :  { %7131 = vst.msk [vmem:[#allocation8 + $0x10] sm:$0xff] %vm7128_vm0, %v7110_v9  ;;  %v6271_v26 = vpop.f32.mrf.mxu1 }
 0x950   :  { %v10891_v8 = vpop.permute.xlu0 %6658  ;;  %v6977_v17 = vpop.permute.xlu1 %6976  ;;  %v10903_v25 = vadd.f32 %v6472_v19, %v6412_v11 }
 0x951   :  { %v6272_v21 = vpop.f32.mrf.mxu1  ;;  %v7032_v36 = vmax.f32 %v6932_v40, %v6977_v17 }
 0x952   :  { %7074 = vrot.lane.b32.xlu0 %v10879_v23, %s9318_s2  ;;  %6992 = vrot.lane.b32.xlu1 %v10889_v32, %s9317_s0 }
 0x953   :  { %v6275_v61 = vpop.f32.mrf.mxu1 }
 0x954   :  { %v10898_v39 = vpop.permute.xlu0 %6582  ;;  %v7057_v29 = vpop.permute.xlu1 %7056  ;;  %v6413_v56 = vmul.f32 %v6275_v61, %v6275_v61 }
 0x955   :  { %v7112_v12 = vmax.f32 %v7032_v36, %v7057_v29  ;;  %v6277_v42 = vpop.f32.mrf.mxu1 }
 0x956   :  { %v6473_v5 = vmul.f32 %v6277_v42, %v6277_v42  ;;  %7072 = vrot.lane.b32.xlu1 %v10889_v32, %s9318_s2 }
 0x957   :  { %7133 = vst.msk [vmem:[#allocation8 + $0x20] sm:$0xff] %vm7128_vm0, %v7112_v12  ;;  %v6281_v0 = vpop.f32.mrf.mxu1 }
 0x958   :  { %v10905_v6 = vadd.f32 %v6473_v5, %v6413_v56  ;;  %v10907_v33 = vpop.permute.xlu0 %6662  ;;  %v6581_v59 = vpop.permute.xlu1 %6580  ;;  %v6414_v20 = vmul.f32 %v6281_v0, %v6281_v0 }
 0x959   :  { %v6283_v38 = vpop.f32.mrf.mxu1 }
 0x95a   :  { %6996 = vrot.lane.b32.xlu1 %v10903_v25, %s9317_s0  ;;  %6598 = vrot.lane.b32.xlu0 %v10905_v6, %s9317_s0  ;;  %v6474_v49 = vmul.f32 %v6283_v38, %v6283_v38 }
 0x95c   :  { %v6287_v46 = vpop.f32.mrf.mxu1  ;;  %v10913_v58 = vpop.permute.xlu0 %6586  ;;  %v10919_v27 = vadd.f32 %v6474_v49, %v6414_v20  ;;  %v6634_v49 = vmax.f32 %v10683_v54, %v6581_v59 }
 0x95d   :  { %v6661_v35 = vpop.permute.xlu1 %6660  ;;  %v6415_v47 = vmul.f32 %v6287_v46, %v6287_v46 }
 0x95e   :  { %v6289_v13 = vpop.f32.mrf.mxu1  ;;  %7076 = vrot.lane.b32.xlu1 %v10903_v25, %s9318_s2  ;;  %6678 = vrot.lane.b32.xlu0 %v10905_v6, %s9318_s2 }
 0x95f   :  { %v6475_v22 = vmul.f32 %v6289_v13, %v6289_v13 }
 0x960   :  { %v6293_v43 = vpop.f32.mrf.mxu1  ;;  %v10921_v9 = vpop.permute.xlu0 %6666 }
 0x961   :  { %v10923_v60 = vadd.f32 %v6475_v22, %v6415_v47  ;;  %v6585_v10 = vpop.permute.xlu1 %6584  ;;  %v6416_v61 = vmul.f32 %v6293_v43, %v6293_v43 }
 0x962   :  { %v6295_v26 = vpop.f32.mrf.mxu1  ;;  %6600 = vrot.lane.b32.xlu1 %v10919_v27, %s9317_s0 }
 0x963   :  { %11098 = vst [vmem:[#allocation12_spill] sm:$0xff] %v10923_v60  ;;  %6602 = vrot.lane.b32.xlu0 %v10923_v60, %s9317_s0  ;;  %v6476_v17 = vmul.f32 %v6295_v26, %v6295_v26  ;;  %v6714_v26 = vmax.f32 %v6634_v49, %v6661_v35 }
 0x964   :  { %v6299_v40 = vpop.f32.mrf.mxu1  ;;  %v6779_v21 = vpop.permute.xlu0 %6778 }
 0x965   :  { %v6665_v36 = vpop.permute.xlu1 %6664  ;;  %v6417_v29 = vmul.f32 %v6299_v40, %v6299_v40  ;;  %v10933_v42 = vadd.f32 %v6476_v17, %v6416_v61  ;;  %v6633_v40 = vmax.f32 %v10665_v44, %v10881_v51  ;;  %v6636_v44 = vmax.f32 %v10695_v18, %v6585_v10 }
 0x966   :  { %v6301_v19 = vpop.f32.mrf.mxu1  ;;  %6680 = vrot.lane.b32.xlu1 %v10919_v27, %s9318_s2 }
 0x967   :  { %v6477_v12 = vmul.f32 %v6301_v19, %v6301_v19  ;;  %6682 = vrot.lane.b32.xlu0 %v10923_v60, %s9318_s2  ;;  %v6713_v19 = vmax.f32 %v6633_v40, %v10891_v8 }
 0x968   :  { %v6305_v11 = vpop.f32.mrf.mxu1  ;;  %v10935_v56 = vpop.permute.xlu0 %6858 }
 0x969   :  { %v10937_v5 = vadd.f32 %v6477_v12, %v6417_v29  ;;  %v6781_v0 = vpop.permute.xlu1 %6780  ;;  %v6418_v13 = vmul.f32 %v6305_v11, %v6305_v11  ;;  %v6734_v11 = vmax.f32 %v6714_v26, %v10707_v7  ;;  %v6733_v8 = vmax.f32 %v6713_v19, %v10701_v15 }
 0x96a   :  { %v6307_v38 = vpop.f32.mrf.mxu1  ;;  %6604 = vrot.lane.b32.xlu1 %v10933_v42, %s9317_s0  ;;  %v6716_v7 = vmax.f32 %v6636_v44, %v6665_v36 }
 0x96b   :  { %11099 = vst [vmem:[#allocation13_spill] sm:$0xff] %v10937_v5  ;;  %6606 = vrot.lane.b32.xlu0 %v10937_v5, %s9317_s0  ;;  %v6478_v47 = vmul.f32 %v6307_v38, %v6307_v38  ;;  %v6834_v51 = vmax.f32 %v6734_v11, %v6781_v0 }
 0x96c   :  { %v6311_v46 = vpop.f32.mrf.mxu1  ;;  %v10944_v20 = vpop.permute.xlu0 %6782 }
 0x96d   :  { %v6419_v22 = vmul.f32 %v6311_v46, %v6311_v46  ;;  %v6861_v43 = vpop.permute.xlu1 %6860  ;;  %v10955_v29 = vadd.f32 %v6478_v47, %v6418_v13 }
 0x96e   :  { %v6313_v17 = vpop.f32.mrf.mxu1  ;;  %6684 = vrot.lane.b32.xlu1 %v10933_v42, %s9318_s2  ;;  %v6914_v26 = vmax.f32 %v6834_v51, %v6861_v43 }
 0x96f   :  { %v6479_v61 = vmul.f32 %v6313_v17, %v6313_v17  ;;  %6686 = vrot.lane.b32.xlu0 %v10937_v5, %s9318_s2  ;;  %v6833_v5 = vmax.f32 %v6733_v8, %v6779_v21 }
 0x970   :  { %v6317_v54 = vpop.f32.mrf.mxu1  ;;  %v10952_v59 = vpop.permute.xlu0 %6862  ;;  %v6934_v21 = vmax.f32 %v6914_v26, %v10731_v63  ;;  %v6637_v63 = vmax.f32 %v10689_v31, %v10913_v58 }
 0x971   :  { %v10957_v12 = vadd.f32 %v6479_v61, %v6419_v22  ;;  %v6785_v35 = vpop.permute.xlu1 %6784  ;;  %v6420_v13 = vmul.f32 %v6317_v54, %v6317_v54  ;;  %v6635_v61 = vmax.f32 %v10677_v53, %v10898_v39  ;;  %v6913_v36 = vmax.f32 %v6833_v5, %v10935_v56 }
 0x972   :  { %v6319_v38 = vpop.f32.mrf.mxu1  ;;  %v6736_v39 = vmax.f32 %v6716_v7, %v10719_v41 }
 0x973   :  { %6798 = vrot.lane.b32.xlu0 %v10955_v29, %s9317_s0  ;;  %6800 = vrot.lane.b32.xlu1 %v10957_v12, %s9317_s0  ;;  %v6480_v47 = vmul.f32 %v6319_v38, %v6319_v38  ;;  %v6715_v10 = vmax.f32 %v6635_v61, %v10907_v33  ;;  %v6933_v44 = vmax.f32 %v6913_v36, %v10737_v14 }
 0x974   :  { %v6323_v49 = vpop.f32.mrf.mxu1  ;;  %v10965_v46 = vpop.permute.xlu0 %6786  ;;  %v6836_v19 = vmax.f32 %v6736_v39, %v6785_v35 }
 0x975   :  { %v6421_v22 = vmul.f32 %v6323_v49, %v6323_v49  ;;  %v6865_v17 = vpop.permute.xlu1 %6864  ;;  %v10978_v0 = vadd.f32 %v6480_v47, %v6420_v13  ;;  %v6735_v5 = vmax.f32 %v6715_v10, %v10713_v16  ;;  %v6717_v16 = vmax.f32 %v6637_v63, %v10921_v9 }
 0x976   :  { %v6325_v40 = vpop.f32.mrf.mxu1  ;;  %v6916_v51 = vmax.f32 %v6836_v19, %v6865_v17 }
 0x977   :  { %v6481_v60 = vmul.f32 %v6325_v40, %v6325_v40  ;;  %6878 = vrot.lane.b32.xlu0 %v10955_v29, %s9318_s2  ;;  %6880 = vrot.lane.b32.xlu1 %v10957_v12, %s9318_s2  ;;  %v6835_v13 = vmax.f32 %v6735_v5, %v10944_v20  ;;  %v6737_v9 = vmax.f32 %v6717_v16, %v10725_v55 }
 0x978   :  { %v6329_v18 = vpop.f32.mrf.mxu1  ;;  %v10974_v15 = vpop.permute.xlu0 %6866  ;;  %v6936_v7 = vmax.f32 %v6916_v51, %v10743_v1 }
 0x979   :  { %v10980_v43 = vadd.f32 %v6481_v60, %v6421_v22  ;;  %v6981_v53 = vpop.permute.xlu1 %6980  ;;  %v6422_v60 = vmul.f32 %v6329_v18, %v6329_v18  ;;  %v6915_v31 = vmax.f32 %v6835_v13, %v10952_v59  ;;  %v6837_v19 = vmax.f32 %v6737_v9, %v10965_v46 }
 0x97a   :  { %v6331_v54 = vpop.f32.mrf.mxu1  ;;  %v7034_v33 = vmax.f32 %v6934_v21, %v6981_v53 }
 0x97b   :  { %6802 = vrot.lane.b32.xlu0 %v10978_v0, %s9317_s0  ;;  %6804 = vrot.lane.b32.xlu1 %v10980_v43, %s9317_s0  ;;  %v6482_v38 = vmul.f32 %v6331_v54, %v6331_v54  ;;  %v6935_v39 = vmax.f32 %v6915_v31, %v10751_v37 }
 0x97c   :  { %v6335_v11 = vpop.f32.mrf.mxu1  ;;  %v6979_v56 = vpop.permute.xlu0 %6978 }
 0x97d   :  { %v7061_v41 = vpop.permute.xlu1 %7060  ;;  %v7033_v47 = vmax.f32 %v6933_v44, %v6979_v56  ;;  %v11000_v58 = vadd.f32 %v6482_v38, %v6422_v60  ;;  %v6423_v59 = vmul.f32 %v6335_v11, %v6335_v11  ;;  %v6917_v56 = vmax.f32 %v6837_v19, %v10974_v15 }
 0x97e   :  { %v7114_v49 = vmax.f32 %v7034_v33, %v7061_v41  ;;  %v6337_v8 = vpop.f32.mrf.mxu1 }
 0x97f   :  { %6882 = vrot.lane.b32.xlu0 %v10978_v0, %s9318_s2  ;;  %6884 = vrot.lane.b32.xlu1 %v10980_v43, %s9318_s2  ;;  %v6483_v36 = vmul.f32 %v6337_v8, %v6337_v8  ;;  %v6937_v15 = vmax.f32 %v6917_v56, %v10763_v34 }
 0x980   :  { %7135 = vst.msk [vmem:[#allocation8 + $0x30] sm:$0xff] %vm7128_vm0, %v7114_v49  ;;  %v6341_v14 = vpop.f32.mrf.mxu1  ;;  %v7059_v35 = vpop.permute.xlu0 %7058 }
 0x981   :  { %v6424_v22 = vmul.f32 %v6341_v14, %v6341_v14  ;;  %v7113_v17 = vmax.f32 %v7033_v47, %v7059_v35  ;;  %v6985_v20 = vpop.permute.xlu1 %6984  ;;  %v11017_v5 = vadd.f32 %v6483_v36, %v6423_v59 }
 0x982   :  { %v6343_v26 = vpop.f32.mrf.mxu1  ;;  %v7036_v61 = vmax.f32 %v6936_v7, %v6985_v20 }
 0x983   :  { %7134 = vst.msk [vmem:[#allocation8 + $0x28] sm:$0xff] %vm7128_vm0, %v7113_v17  ;;  %v6484_v40 = vmul.f32 %v6343_v26, %v6343_v26  ;;  %6806 = vrot.lane.b32.xlu0 %v11000_v58, %s9317_s0 }
 0x984   :  { %v6347_v18 = vpop.f32.mrf.mxu1  ;;  %v6983_v10 = vpop.permute.xlu0 %6982 }
 0x985   :  { %v11007_v53 = vadd.f32 %v6484_v40, %v6424_v22  ;;  %v7065_v21 = vpop.permute.xlu1 %7064  ;;  %v7035_v33 = vmax.f32 %v6935_v39, %v6983_v10  ;;  %v6425_v63 = vmul.f32 %v6347_v18, %v6347_v18 }
 0x986   :  { %v7116_v1 = vmax.f32 %v7036_v61, %v7065_v21  ;;  %v6349_v54 = vpop.f32.mrf.mxu1 }
 0x987   :  { %6886 = vrot.lane.b32.xlu0 %v11000_v58, %s9318_s2  ;;  %7000 = vrot.lane.b32.xlu1 %v11007_v53, %s9317_s0  ;;  %v6485_v51 = vmul.f32 %v6349_v54, %v6349_v54 }
 0x988   :  { %7137 = vst.msk [vmem:[#allocation8 + $0x40] sm:$0xff] %vm7128_vm0, %v7116_v1  ;;  %v6353_v55 = vpop.f32.mrf.mxu1  ;;  %v7063_v11 = vpop.permute.xlu0 %7062 }
 0x989   :  { %v6426_v37 = vmul.f32 %v6353_v55, %v6353_v55  ;;  %v7115_v60 = vmax.f32 %v7035_v33, %v7063_v11  ;;  %v11031_v35 = vadd.f32 %v6485_v51, %v6425_v63 }
 0x98a   :  { %v6355_v38 = vpop.f32.mrf.mxu1 }
 0x98b   :  { %7136 = vst.msk [vmem:[#allocation8 + $0x38] sm:$0xff] %vm7128_vm0, %v7115_v60  ;;  %v6486_v46 = vmul.f32 %v6355_v38, %v6355_v38  ;;  %6998 = vrot.lane.b32.xlu0 %v11017_v5, %s9317_s0  ;;  %7080 = vrot.lane.b32.xlu1 %v11007_v53, %s9318_s2 }
 0x98c   :  { %v6987_v44 = vpop.permute.xlu0 %6986  ;;  %v6589_v41 = vpop.permute.xlu1 %6588 }
 0x98d   :  { %v11024_v49 = vadd.f32 %v6486_v46, %v6426_v37  ;;  %v6359_v8 = vpop.f32.mrf.mxu1  ;;  %v7037_v13 = vmax.f32 %v6937_v15, %v6987_v44  ;;  %v6638_v56 = vmax.f32 %v10765_v30, %v6589_v41 }
 0x98e   :  { %v6427_v7 = vmul.f32 %v6359_v8, %v6359_v8 }
 0x98f   :  { %7078 = vrot.lane.b32.xlu0 %v11017_v5, %s9318_s2  ;;  %7004 = vrot.lane.b32.xlu1 %v11024_v49, %s9317_s0  ;;  %v6361_v47 = vpop.f32.mrf.mxu1 }
 0x990   :  { %v7067_v16 = vpop.permute.xlu0 %7066  ;;  %v6669_v14 = vpop.permute.xlu1 %6668  ;;  %v6487_v26 = vmul.f32 %v6361_v47, %v6361_v47 }
 0x991   :  { %v7117_v31 = vmax.f32 %v7037_v13, %v7067_v16  ;;  %v6365_v22 = vpop.f32.mrf.mxu1  ;;  %v6718_v60 = vmax.f32 %v6638_v56, %v6669_v14 }
 0x992   :  { %v11040_v61 = vadd.f32 %v6487_v26, %v6427_v7 }
 0x993   :  { %7138 = vst.msk [vmem:[#allocation8 + $0x48] sm:$0xff] %vm7128_vm0, %v7117_v31  ;;  %7002 = vrot.lane.b32.xlu0 %v11031_v35, %s9317_s0  ;;  %7084 = vrot.lane.b32.xlu1 %v11024_v49, %s9318_s2  ;;  %v6366_v34 = vpop.f32.mrf.mxu1  ;;  %v6738_v8 = vmax.f32 %v6718_v60, %v10808_v45 }
 0x994   :  { %v6591_v17 = vpop.permute.xlu0 %6590  ;;  %v6593_v20 = vpop.permute.xlu1 %6592 }
 0x995   :  { %v6639_v19 = vmax.f32 %v10777_v52, %v6591_v17  ;;  %v6640_v52 = vmax.f32 %v10779_v4, %v6593_v20 }
 0x997   :  { %7082 = vrot.lane.b32.xlu0 %v11031_v35, %s9318_s2 }
 0x998   :  { %v6671_v40 = vpop.permute.xlu0 %6670  ;;  %v6673_v9 = vpop.permute.xlu1 %6672 }
 0x999   :  { %v6719_v55 = vmax.f32 %v6639_v19, %v6671_v40  ;;  %v6720_v22 = vmax.f32 %v6640_v52, %v6673_v9 }
 0x99b   :  { %7006 = vrot.lane.b32.xlu0 %v11040_v61, %s9317_s0  ;;  %v6739_v38 = vmax.f32 %v6719_v55, %v10810_v28  ;;  %v6740_v7 = vmax.f32 %v6720_v22, %v10827_v24 }
 0x99c   :  { %v6595_v18 = vpop.permute.xlu0 %6594  ;;  %v6597_v10 = vpop.permute.xlu1 %6596 }
 0x99d   :  { %v6641_v46 = vmax.f32 %v10793_v48, %v6595_v18  ;;  %v6642_v4 = vmax.f32 %v10795_v57, %v6597_v10 }
 0x99f   :  { %7086 = vrot.lane.b32.xlu0 %v11040_v61, %s9318_s2 }
 0x9a0   :  { %v6675_v59 = vpop.permute.xlu0 %6674  ;;  %v6677_v36 = vpop.permute.xlu1 %6676 }
 0x9a1   :  { %v6721_v15 = vmax.f32 %v6641_v46, %v6675_v59  ;;  %v6722_v59 = vmax.f32 %v6642_v4, %v6677_v36 }
 0x9a3   :  { %v6741_v41 = vmax.f32 %v6721_v15, %v10829_v2 }
 0x9a4   :  { %v6791_v39 = vpop.permute.xlu0 %6790  ;;  %v6789_v21 = vpop.permute.xlu1 %6788 }
 0x9a5   :  { %v6839_v44 = vmax.f32 %v6739_v38, %v6791_v39  ;;  %v6838_v47 = vmax.f32 %v6738_v8, %v6789_v21 }
 0x9a8   :  { %v6871_v1 = vpop.permute.xlu0 %6870  ;;  %v6869_v54 = vpop.permute.xlu1 %6868 }
 0x9a9   :  { %v6919_v13 = vmax.f32 %v6839_v44, %v6871_v1  ;;  %v6918_v30 = vmax.f32 %v6838_v47, %v6869_v54 }
 0x9ab   :  { %v6939_v28 = vmax.f32 %v6919_v13, %v10860_v62  ;;  %v6938_v40 = vmax.f32 %v6918_v30, %v10870_v3  ;;  %v6742_v3 = vmax.f32 %v6722_v59, %v10851_v50 }
 0x9ac   :  { %v6793_v33 = vpop.permute.xlu1 %6792  ;;  %v6795_v11 = vpop.permute.xlu0 %6794 }
 0x9ad   :  { %v6841_v14 = vmax.f32 %v6741_v41, %v6795_v11  ;;  %v6840_v20 = vmax.f32 %v6740_v7, %v6793_v33 }
 0x9b0   :  { %v6873_v37 = vpop.permute.xlu1 %6872  ;;  %v6875_v63 = vpop.permute.xlu0 %6874 }
 0x9b1   :  { %v6921_v26 = vmax.f32 %v6841_v14, %v6875_v63  ;;  %v6920_v62 = vmax.f32 %v6840_v20, %v6873_v37 }
 0x9b3   :  { %v6941_v39 = vmax.f32 %v6921_v26, %v10879_v23  ;;  %v6940_v57 = vmax.f32 %v6920_v62, %v10889_v32 }
 0x9b4   :  { %v6797_v51 = vpop.permute.xlu1 %6796 }
 0x9b5   :  { %v6842_v10 = vmax.f32 %v6742_v3, %v6797_v51 }
 0x9b8   :  { %v6991_v16 = vpop.permute.xlu0 %6990  ;;  %v6877_v31 = vpop.permute.xlu1 %6876 }
 0x9b9   :  { %v7039_v48 = vmax.f32 %v6939_v28, %v6991_v16  ;;  %v6922_v36 = vmax.f32 %v6842_v10, %v6877_v31  ;;  %v11101_v10 = vld [vmem:[#allocation13_spill] sm:$0xff] }
 0x9bb   :  { %v6942_v37 = vmax.f32 %v6922_v36, %v10903_v25 }
 0x9bc   :  { %v7071_v34 = vpop.permute.xlu0 %7070  ;;  %v6989_v17 = vpop.permute.xlu1 %6988 }
 0x9bd   :  { %v7119_v45 = vmax.f32 %v7039_v48, %v7071_v34  ;;  %v7038_v9 = vmax.f32 %v6938_v40, %v6989_v17 }
 0x9bf   :  { %7140 = vst.msk [vmem:[#allocation8 + $0x58] sm:$0xff] %vm7128_vm0, %v7119_v45 }
 0x9c0   :  { %v6995_v18 = vpop.permute.xlu0 %6994  ;;  %v7069_v2 = vpop.permute.xlu1 %7068 }
 0x9c1   :  { %v7118_v21 = vmax.f32 %v7038_v9, %v7069_v2  ;;  %v7041_v1 = vmax.f32 %v6941_v39, %v6995_v18  ;;  %v11100_v18 = vld [vmem:[#allocation12_spill] sm:$0xff] }
 0x9c3   :  { %7139 = vst.msk [vmem:[#allocation8 + $0x50] sm:$0xff] %vm7128_vm0, %v7118_v21 }
 0x9c4   :  { %v7075_v24 = vpop.permute.xlu0 %7074  ;;  %v6993_v54 = vpop.permute.xlu1 %6992 }
 0x9c5   :  { %v7121_v19 = vmax.f32 %v7041_v1, %v7075_v24  ;;  %v7040_v33 = vmax.f32 %v6940_v57, %v6993_v54 }
 0x9c7   :  { %7142 = vst.msk [vmem:[#allocation8 + $0x68] sm:$0xff] %vm7128_vm0, %v7121_v19 }
 0x9c8   :  { %v7073_v55 = vpop.permute.xlu1 %7072 }
 0x9c9   :  { %v7120_v11 = vmax.f32 %v7040_v33, %v7073_v55 }
 0x9cb   :  { %7141 = vst.msk [vmem:[#allocation8 + $0x60] sm:$0xff] %vm7128_vm0, %v7120_v11 }
 0x9cc   :  { %v6997_v23 = vpop.permute.xlu1 %6996  ;;  %v6599_v56 = vpop.permute.xlu0 %6598 }
 0x9cd   :  { %v7042_v60 = vmax.f32 %v6942_v37, %v6997_v23  ;;  %v6643_v14 = vmax.f32 %v10905_v6, %v6599_v56 }
 0x9d0   :  { %v7077_v38 = vpop.permute.xlu1 %7076  ;;  %v6679_v46 = vpop.permute.xlu0 %6678 }
 0x9d1   :  { %v7122_v50 = vmax.f32 %v7042_v60, %v7077_v38  ;;  %v6723_v34 = vmax.f32 %v6643_v14, %v6679_v46 }
 0x9d3   :  { %7143 = vst.msk [vmem:[#allocation8 + $0x70] sm:$0xff] %vm7128_vm0, %v7122_v50  ;;  %v6743_v20 = vmax.f32 %v6723_v34, %v10955_v29 }
 0x9d4   :  { %v6601_v32 = vpop.permute.xlu1 %6600 }
 0x9d5   :  { %v6603_v44 = vpop.permute.xlu0 %6602  ;;  %v6644_v25 = vmax.f32 %v10919_v27, %v6601_v32 }
 0x9d6   :  { %v6645_v27 = vmax.f32 %v11100_v18, %v6603_v44 }
 0x9d8   :  { %v6681_v63 = vpop.permute.xlu1 %6680 }
 0x9d9   :  { %v6683_v51 = vpop.permute.xlu0 %6682  ;;  %v6724_v41 = vmax.f32 %v6644_v25, %v6681_v63 }
 0x9da   :  { %v6725_v39 = vmax.f32 %v6645_v27, %v6683_v51 }
 0x9db   :  { %v6744_v17 = vmax.f32 %v6724_v41, %v10957_v12 }
 0x9dc   :  { %v6605_v15 = vpop.permute.xlu1 %6604  ;;  %v6745_v3 = vmax.f32 %v6725_v39, %v10978_v0 }
 0x9dd   :  { %v6607_v8 = vpop.permute.xlu0 %6606  ;;  %v6646_v7 = vmax.f32 %v10933_v42, %v6605_v15 }
 0x9de   :  { %v6647_v33 = vmax.f32 %v11101_v10, %v6607_v8 }
 0x9e0   :  { %v6685_v13 = vpop.permute.xlu1 %6684 }
 0x9e1   :  { %v6687_v52 = vpop.permute.xlu0 %6686  ;;  %v6726_v4 = vmax.f32 %v6646_v7, %v6685_v13 }
 0x9e2   :  { %v6727_v23 = vmax.f32 %v6647_v33, %v6687_v52 }
 0x9e3   :  { %v6746_v21 = vmax.f32 %v6726_v4, %v10980_v43 }
 0x9e5   :  { %v6799_v47 = vpop.permute.xlu0 %6798  ;;  %v6801_v16 = vpop.permute.xlu1 %6800 }
 0x9e6   :  { %v6844_v26 = vmax.f32 %v6744_v17, %v6801_v16  ;;  %v6843_v2 = vmax.f32 %v6743_v20, %v6799_v47 }
 0x9e9   :  { %v6879_v31 = vpop.permute.xlu0 %6878  ;;  %v6881_v22 = vpop.permute.xlu1 %6880 }
 0x9ea   :  { %v6924_v9 = vmax.f32 %v6844_v26, %v6881_v22  ;;  %v6923_v6 = vmax.f32 %v6843_v2, %v6879_v31 }
 0x9ec   :  { %v6944_v12 = vmax.f32 %v6924_v9, %v11007_v53  ;;  %v6943_v29 = vmax.f32 %v6923_v6, %v11017_v5  ;;  %v6747_v5 = vmax.f32 %v6727_v23, %v11000_v58 }
 0x9ed   :  { %v6803_v30 = vpop.permute.xlu0 %6802  ;;  %v6805_v28 = vpop.permute.xlu1 %6804 }
 0x9ee   :  { %v6846_v1 = vmax.f32 %v6746_v21, %v6805_v28  ;;  %v6845_v55 = vmax.f32 %v6745_v3, %v6803_v30 }
 0x9f1   :  { %v6883_v48 = vpop.permute.xlu0 %6882  ;;  %v6885_v45 = vpop.permute.xlu1 %6884 }
 0x9f2   :  { %v6926_v19 = vmax.f32 %v6846_v1, %v6885_v45  ;;  %v6925_v53 = vmax.f32 %v6845_v55, %v6883_v48 }
 0x9f4   :  { %v6946_v37 = vmax.f32 %v6926_v19, %v11024_v49  ;;  %v6945_v46 = vmax.f32 %v6925_v53, %v11031_v35 }
 0x9f5   :  { %v6807_v40 = vpop.permute.xlu0 %6806 }
 0x9f6   :  { %v6847_v32 = vmax.f32 %v6747_v5, %v6807_v40 }
 0x9f9   :  { %v6887_v59 = vpop.permute.xlu0 %6886  ;;  %v7001_v62 = vpop.permute.xlu1 %7000 }
 0x9fa   :  { %v7044_v42 = vmax.f32 %v6944_v12, %v7001_v62  ;;  %v6927_v51 = vmax.f32 %v6847_v32, %v6887_v59 }
 0x9fc   :  { %v6947_v8 = vmax.f32 %v6927_v51, %v11040_v61 }
 0x9fd   :  { %v6999_v24 = vpop.permute.xlu0 %6998  ;;  %v7081_v54 = vpop.permute.xlu1 %7080 }
 0x9fe   :  { %v7124_v57 = vmax.f32 %v7044_v42, %v7081_v54  ;;  %v7043_v36 = vmax.f32 %v6943_v29, %v6999_v24 }
 0xa00   :  { %7145 = vst.msk [vmem:[#allocation8 + $0x80] sm:$0xff] %vm7128_vm0, %v7124_v57 }
 0xa01   :  { %v7079_v11 = vpop.permute.xlu0 %7078  ;;  %v7005_v43 = vpop.permute.xlu1 %7004 }
 0xa02   :  { %v7123_v56 = vmax.f32 %v7043_v36, %v7079_v11  ;;  %v7046_v0 = vmax.f32 %v6946_v37, %v7005_v43 }
 0xa04   :  { %7144 = vst.msk [vmem:[#allocation8 + $0x78] sm:$0xff] %vm7128_vm0, %v7123_v56 }
 0xa05   :  { %v7003_v60 = vpop.permute.xlu0 %7002  ;;  %v7085_v38 = vpop.permute.xlu1 %7084 }
 0xa06   :  { %v7126_v50 = vmax.f32 %v7046_v0, %v7085_v38  ;;  %v7045_v44 = vmax.f32 %v6945_v46, %v7003_v60 }
 0xa08   :  { %7147 = vst.msk [vmem:[#allocation8 + $0x90] sm:$0xff] %vm7128_vm0, %v7126_v50 }
 0xa09   :  { %v7083_v63 = vpop.permute.xlu0 %7082 }
 0xa0a   :  { %v7125_v15 = vmax.f32 %v7045_v44, %v7083_v63 }
 0xa0c   :  { %7146 = vst.msk [vmem:[#allocation8 + $0x88] sm:$0xff] %vm7128_vm0, %v7125_v15 }
 0xa0d   :  { %v7007_v49 = vpop.permute.xlu0 %7006 }
 0xa0e   :  { %v7047_v13 = vmax.f32 %v6947_v8, %v7007_v49 }
 0xa11   :  { %v7087_v52 = vpop.permute.xlu0 %7086 }
 0xa12   :  { %v7127_v58 = vmax.f32 %v7047_v13, %v7087_v52 }
 0xa14   :  { %7148 = vst.msk [vmem:[#allocation8 + $0x98] sm:$0xff] %vm7128_vm0, %v7127_v58 }
 0xa15   :  { %9295 = shalt.err (!%p9292_p5)
}
 0xa16   :  { %7160 = dma.vmem_to_hbm [thread:$0]  %s7155_s4, 2560, %s11095_s3, [#allocation4], %s9312_s17, %s9312_s17, %s9313_s18  }
 0xa17   :  { %9308 = dma.done.wait [#allocation4], 2560  }
 0xa18   :  { %9309 = vsyncadd [#allocation4], 4294964736 }
 0xa19   :  { %7164 = vsyncpa [#allocation3], 1 }
 0xa1a   :  { %7165 = vsyncpa [#allocation6], 1 }
 0xa1b   :  { %7166 = vsyncpa [#allocation4], 1 }

</bundles_post_ra>
